<compile_context>
chip_gen: v7x
topology: tpu7x:2x2x1
jax: 0.10.0
libtpu: 0.0.40
codegen_flags: <defaults>
</compile_context>

<pallas_src>
import jax
import jax.numpy as jnp
import numpy as np
from jax.experimental import pallas as pl
from jax.experimental.pallas import tpu as pltpu

MAX_LENGTH = 200
LANE = 128
CHUNK = 8          # decode steps fused (fully unrolled) per grid iteration


def _round_up(x, m):
    return (x + m - 1) // m * m


def attn_decoder_kernel(nsteps_ref, tok_ref,                 # SMEM scalar-prefetch: [1], [Tpad]
                        emb_ref, h0_ref, enc_ref,
                        attn_w_ref, attn_b_ref,
                        comb_w_ref, comb_b_ref,
                        gru_wi_ref, gru_wh_ref, gru_bi_ref, gru_bh_ref,
                        out_w_ref, out_b_ref,
                        logp_ref, attnw_ref, hfin_ref):
    f32 = jnp.float32
    bf16 = jnp.bfloat16
    hp = gru_wi_ref.shape[0]
    c = pl.program_id(0)
    nsteps = nsteps_ref[0]

    @pl.when(c == 0)
    def _():
        hfin_ref[...] = h0_ref[...]

    # Weights / encoder outputs are VMEM-resident (constant-index BlockSpecs); load once
    # per grid step, outside the unrolled per-token loop.
    attn_w = attn_w_ref[...]
    attn_b = attn_b_ref[...]
    comb_w = comb_w_ref[...]
    comb_b = comb_b_ref[...]
    gru_wi = gru_wi_ref[...]
    gru_wh = gru_wh_ref[...]
    gru_bi = gru_bi_ref[...]
    gru_bh = gru_bh_ref[...]
    out_w = out_w_ref[...]
    out_b = out_b_ref[...]
    enc = enc_ref[...]

    hid = hfin_ref[...]                                      # [1, Hp] f32 carry

    # CHUNK is small and static: fully unroll so the scheduler sees every step.
    for s in range(CHUNK):
        g = c * CHUNK + s                                    # global decode step
        tok = tok_ref[g]
        emb = emb_ref[tok].astype(f32)                       # [1, Hp]  (dropout = identity)

        # attn_weights = softmax(Linear(2H -> L)(cat(emb, hid)))
        cat_eh = jnp.concatenate([emb, hid], axis=1).astype(bf16)            # [1, 2Hp]
        attn_logits = (jnp.dot(cat_eh, attn_w, preferred_element_type=f32)
                       + attn_b)                                             # [1, Lp]
        m = jnp.max(attn_logits, axis=1, keepdims=True)
        e = jnp.exp(attn_logits - m)
        attn_p = e / jnp.sum(e, axis=1, keepdims=True)                       # exact softmax
        attnw_ref[s] = attn_p

        # attn_applied = attn_weights @ encoder_outputs
        attn_applied = jnp.dot(attn_p.astype(bf16), enc,
                               preferred_element_type=f32)                   # [1, Hp]

        # output = relu(Linear(2H -> H)(cat(emb, attn_applied)))
        cat_ea = jnp.concatenate([emb, attn_applied], axis=1).astype(bf16)   # [1, 2Hp]
        x = jnp.maximum(jnp.dot(cat_ea, comb_w, preferred_element_type=f32)
                        + comb_b, 0.0)                                       # [1, Hp]

        # GRU cell (PyTorch gate order r, z, n), gates merged along lanes.
        gi = jnp.dot(x.astype(bf16), gru_wi, preferred_element_type=f32) + gru_bi
        gh = jnp.dot(hid.astype(bf16), gru_wh, preferred_element_type=f32) + gru_bh
        r = jax.nn.sigmoid(gi[:, 0:hp] + gh[:, 0:hp])
        z = jax.nn.sigmoid(gi[:, hp:2 * hp] + gh[:, hp:2 * hp])
        n = jnp.tanh(gi[:, 2 * hp:] + r * gh[:, 2 * hp:])
        h_new = (1.0 - z) * n + z * hid                                      # [1, Hp]

        # output = log_softmax(Linear(H -> V)(h_new))
        logits = jnp.dot(h_new.astype(bf16), out_w, preferred_element_type=f32) + out_b
        lm = jnp.max(logits, axis=1, keepdims=True)
        sh = logits - lm
        lse = jnp.log(jnp.sum(jnp.exp(sh), axis=1, keepdims=True))
        logp_ref[s] = sh - lse                                               # [1, Vp]

        # Padded tail steps (g >= T) must not advance the hidden state.
        hid = jnp.where(g < nsteps, h_new, hid)

    hfin_ref[...] = hid


def init_params(key, hidden_size, output_size, max_length):
    """Logical (unpadded) parameters, stored transposed so y = x @ W + b."""
    H, V, L = hidden_size, output_size, max_length
    ks = jax.random.split(key, 10)

    def u(k, shape, scale):
        return jax.random.uniform(k, shape, jnp.float32, -scale, scale)

    s_cat = 1.0 / np.sqrt(2 * H)
    s_h = 1.0 / np.sqrt(H)
    return dict(
        hidden_size=H, output_size=V, max_length=L,
        embedding=jax.random.normal(ks[0], (V, H), jnp.float32),
        attn_w=u(ks[1], (2 * H, L), s_cat),      # Linear(2H, L)
        attn_b=u(ks[2], (L,), s_cat),
        comb_w=u(ks[3], (2 * H, H), s_cat),      # Linear(2H, H)
        comb_b=u(ks[4], (H,), s_cat),
        gru_wi=u(ks[5], (H, 3 * H), s_h),        # GRU gates (r|z|n) concat along out axis
        gru_wh=u(ks[6], (H, 3 * H), s_h),
        gru_bi=u(ks[7], (3 * H,), s_h),
        gru_bh=u(ks[8], (3 * H,), s_h),
        out_w=u(ks[9], (H, V), s_h),             # Linear(H, V)
        out_b=jnp.zeros((V,), jnp.float32),
    )


def pad_for_kernel(params):
    """Pads lane dims to 128 multiples and casts weight matrices to bf16.

    Padded weight rows/cols are zero; padded attn/out bias lanes are -1e30 so the
    softmax / log_softmax ignore them exactly (no in-kernel masking needed)."""
    H, V, L = params["hidden_size"], params["output_size"], params["max_length"]
    Hp, Vp, Lp = _round_up(H, LANE), _round_up(V, LANE), _round_up(L, LANE)
    bf16 = jnp.bfloat16
    NEG = -1e30

    def pad2(a, rows, cols, fill=0.0):
        return jnp.pad(a, ((0, rows - a.shape[0]), (0, cols - a.shape[1])),
                       constant_values=fill)

    def pad_cat_w(w, out_p):
        # [2H, out] -> [2Hp, out_p]; the two K-halves stay aligned with the
        # lane-concatenated [emb | second operand] row.
        return jnp.concatenate([pad2(w[:H].astype(bf16), Hp, out_p),
                                pad2(w[H:].astype(bf16), Hp, out_p)], axis=0)

    def pad_gate_w(w):
        # [H, 3H] -> [Hp, 3Hp]; gate k occupies lanes k*Hp .. k*Hp+H-1.
        return jnp.concatenate(
            [pad2(w[:, k * H:(k + 1) * H].astype(bf16), Hp, Hp) for k in range(3)], axis=1)

    def pad_gate_b(b):
        return jnp.concatenate(
            [pad2(b[k * H:(k + 1) * H].reshape(1, H), 1, Hp) for k in range(3)], axis=1)

    return dict(
        H=H, V=V, L=L, Hp=Hp, Vp=Vp, Lp=Lp,
        embedding=pad2(params["embedding"].astype(bf16), Vp, Hp).reshape(Vp, 1, Hp),
        attn_w=pad_cat_w(params["attn_w"], Lp),
        attn_b=pad2(params["attn_b"].reshape(1, L), 1, Lp, fill=NEG),
        comb_w=pad_cat_w(params["comb_w"], Hp),
        comb_b=pad2(params["comb_b"].reshape(1, H), 1, Hp),
        gru_wi=pad_gate_w(params["gru_wi"]),
        gru_wh=pad_gate_w(params["gru_wh"]),
        gru_bi=pad_gate_b(params["gru_bi"]),
        gru_bh=pad_gate_b(params["gru_bh"]),
        out_w=pad2(params["out_w"].astype(bf16), Hp, Vp),
        out_b=pad2(params["out_b"].reshape(1, V), 1, Vp, fill=NEG),
    )


def attn_decoder_decode(kp, token_ids, hidden, encoder_outputs):
    """Fused T-step decode. token_ids: int32 [T]; hidden: [1,1,H]; encoder_outputs: [L,H].

    Returns (log_probs [T, V], final_hidden [1,1,H], attn_weights [T, L]); row t is the
    output of decode step t (identical per-step semantics to the PyTorch module)."""
    H, V, L = kp["H"], kp["V"], kp["L"]
    Hp, Vp, Lp = kp["Hp"], kp["Vp"], kp["Lp"]
    T = int(token_ids.shape[0])
    Tpad = _round_up(max(T, 1), CHUNK)
    num_chunks = Tpad // CHUNK

    tok = jnp.clip(token_ids.astype(jnp.int32), 0, V - 1)       # clamp malformed ids
    tok = jnp.pad(tok, (0, Tpad - T))                           # padded tail steps are no-ops
    nsteps = jnp.array([T], jnp.int32)

    h0 = jnp.pad(hidden.reshape(1, H).astype(jnp.float32), ((0, 0), (0, Hp - H)))
    enc = jnp.pad(encoder_outputs.astype(jnp.bfloat16), ((0, Lp - L), (0, Hp - H)))

    grid_spec = pltpu.PrefetchScalarGridSpec(
        num_scalar_prefetch=2,           # (nsteps, token_ids) land in SMEM
        grid=(num_chunks,),
        in_specs=[
            # Whole embedding table resident in VMEM; rows gathered in-kernel by token id.
            pl.BlockSpec((Vp, 1, Hp), lambda c, n, t: (0, 0, 0)),
            pl.BlockSpec((1, Hp), lambda c, n, t: (0, 0)),          # initial hidden
            pl.BlockSpec((Lp, Hp), lambda c, n, t: (0, 0)),         # encoder outputs (resident)
            pl.BlockSpec((2 * Hp, Lp), lambda c, n, t: (0, 0)),     # attn weight      (resident)
            pl.BlockSpec((1, Lp), lambda c, n, t: (0, 0)),          # attn bias
            pl.BlockSpec((2 * Hp, Hp), lambda c, n, t: (0, 0)),     # attn_combine weight
            pl.BlockSpec((1, Hp), lambda c, n, t: (0, 0)),          # attn_combine bias
            pl.BlockSpec((Hp, 3 * Hp), lambda c, n, t: (0, 0)),     # GRU W_ih (r|z|n)
            pl.BlockSpec((Hp, 3 * Hp), lambda c, n, t: (0, 0)),     # GRU W_hh
            pl.BlockSpec((1, 3 * Hp), lambda c, n, t: (0, 0)),      # GRU b_ih
            pl.BlockSpec((1, 3 * Hp), lambda c, n, t: (0, 0)),      # GRU b_hh
            pl.BlockSpec((Hp, Vp), lambda c, n, t: (0, 0)),         # out weight
            pl.BlockSpec((1, Vp), lambda c, n, t: (0, 0)),          # out bias
        ],
        out_specs=(
            pl.BlockSpec((CHUNK, 1, Vp), lambda c, n, t: (c, 0, 0)),  # per-chunk log-probs
            pl.BlockSpec((CHUNK, 1, Lp), lambda c, n, t: (c, 0, 0)),  # per-chunk attn weights
            pl.BlockSpec((1, Hp), lambda c, n, t: (0, 0)),            # hidden carry / final hidden
        ),
    )
    out_shape = (
        jax.ShapeDtypeStruct((Tpad, 1, Vp), jnp.float32),
        jax.ShapeDtypeStruct((Tpad, 1, Lp), jnp.float32),
        jax.ShapeDtypeStruct((1, Hp), jnp.float32),
    )
    logp_p, attn_p, h_p = pl.pallas_call(
        attn_decoder_kernel,
        out_shape=out_shape,
        grid_spec=grid_spec,
        compiler_params=pltpu.CompilerParams(
            dimension_semantics=("arbitrary",)),                 # sequential hidden carry
    )(nsteps, tok, kp["embedding"], h0, enc,
      kp["attn_w"], kp["attn_b"], kp["comb_w"], kp["comb_b"],
      kp["gru_wi"], kp["gru_wh"], kp["gru_bi"], kp["gru_bh"],
      kp["out_w"], kp["out_b"])

    return logp_p[:T, 0, :V], h_p[:, :H].reshape(1, 1, H), attn_p[:T, 0, :L]


def reference_decode(params, token_ids, hidden, encoder_outputs):
    """Pure-JAX reference using the same bf16-weight / f32-accumulate recipe."""
    H = params["hidden_size"]
    bf16, f32 = jnp.bfloat16, jnp.float32
    w = lambda name: params[name].astype(bf16)
    b = lambda name: params[name].reshape(1, -1)
    enc16 = encoder_outputs.astype(bf16)
    h = hidden.reshape(1, H).astype(f32)
    logps, attns = [], []
    for tid in np.asarray(token_ids):
        emb = params["embedding"][int(tid)].astype(bf16).astype(f32).reshape(1, H)
        cat_eh = jnp.concatenate([emb, h], axis=1).astype(bf16)
        attn_logits = jnp.dot(cat_eh, w("attn_w"), preferred_element_type=f32) + b("attn_b")
        attn_p = jax.nn.softmax(attn_logits, axis=1)
        applied = jnp.dot(attn_p.astype(bf16), enc16, preferred_element_type=f32)
        cat_ea = jnp.concatenate([emb, applied], axis=1).astype(bf16)
        x = jnp.maximum(
            jnp.dot(cat_ea, w("comb_w"), preferred_element_type=f32) + b("comb_b"), 0.0)
        gi = jnp.dot(x.astype(bf16), w("gru_wi"), preferred_element_type=f32) + b("gru_bi")
        gh = jnp.dot(h.astype(bf16), w("gru_wh"), preferred_element_type=f32) + b("gru_bh")
        r = jax.nn.sigmoid(gi[:, :H] + gh[:, :H])
        z = jax.nn.sigmoid(gi[:, H:2 * H] + gh[:, H:2 * H])
        n = jnp.tanh(gi[:, 2 * H:] + r * gh[:, 2 * H:])
        h = (1.0 - z) * n + z * h
        logits = jnp.dot(h.astype(bf16), w("out_w"), preferred_element_type=f32) + b("out_b")
        logps.append(jax.nn.log_softmax(logits, axis=1))
        attns.append(attn_p)
    return jnp.concatenate(logps, axis=0), h.reshape(1, 1, H), jnp.concatenate(attns, axis=0)


if __name__ == "__main__":
    hidden_size = 64
    output_size = 150          # vocab size
    max_length = MAX_LENGTH    # 200 (module default); padded to 256 lanes internally
    num_steps = 12             # decode steps; deliberately NOT a multiple of CHUNK (tests tail)

    key = jax.random.PRNGKey(0)
    k_param, k_tok, k_enc = jax.random.split(key, 3)
    params = init_params(k_param, hidden_size, output_size, max_length)
    kparams = pad_for_kernel(params)

    token_ids = jax.random.randint(k_tok, (num_steps,), 0, output_size, dtype=jnp.int32)
    hidden = jnp.zeros((1, 1, hidden_size), jnp.float32)            # initHidden()
    encoder_outputs = jax.random.normal(k_enc, (max_length, hidden_size), jnp.float32)

    logp, h_new, attn_w = attn_decoder_decode(kparams, token_ids, hidden, encoder_outputs)
    jax.block_until_ready((logp, h_new, attn_w))

    ref_logp, ref_h, ref_attn = reference_decode(params, token_ids, hidden, encoder_outputs)
    # bf16 weights -> loosened tolerance (kernel and reference use the same recipe).
    np.testing.assert_allclose(np.asarray(logp), np.asarray(ref_logp), atol=5e-3, rtol=5e-3)
    np.testing.assert_allclose(np.asarray(h_new), np.asarray(ref_h), atol=5e-3, rtol=5e-3)
    np.testing.assert_allclose(np.asarray(attn_w), np.asarray(ref_attn), atol=5e-3, rtol=5e-3)

    print("KERNEL_OK")
</pallas_src>

<mosaic_0001>
module attributes {stable_mosaic.version = 11 : i64} {
  func.func @attn_decoder_kernel(%arg0: i32, %arg1: memref<1xi32, #tpu.memory_space<smem>>, %arg2: memref<16xi32, #tpu.memory_space<smem>>, %arg3: memref<256x1x128xbf16, #tpu.memory_space<vmem>>, %arg4: memref<1x128xf32, #tpu.memory_space<vmem>>, %arg5: memref<256x128xbf16, #tpu.memory_space<vmem>>, %arg6: memref<256x256xbf16, #tpu.memory_space<vmem>>, %arg7: memref<1x256xf32, #tpu.memory_space<vmem>>, %arg8: memref<256x128xbf16, #tpu.memory_space<vmem>>, %arg9: memref<1x128xf32, #tpu.memory_space<vmem>>, %arg10: memref<128x384xbf16, #tpu.memory_space<vmem>>, %arg11: memref<128x384xbf16, #tpu.memory_space<vmem>>, %arg12: memref<1x384xf32, #tpu.memory_space<vmem>>, %arg13: memref<1x384xf32, #tpu.memory_space<vmem>>, %arg14: memref<128x256xbf16, #tpu.memory_space<vmem>>, %arg15: memref<1x256xf32, #tpu.memory_space<vmem>>, %arg16: memref<8x1x256xf32, #tpu.memory_space<vmem>>, %arg17: memref<8x1x256xf32, #tpu.memory_space<vmem>>, %arg18: memref<1x128xf32, #tpu.memory_space<vmem>>) attributes {dimension_semantics = [#tpu.dimension_semantics<arbitrary>], iteration_bounds = array<i64: 2>, scalar_prefetch = 2 : i64, scratch_operands = 0 : i64, tpu.core_type = #tpu.core_type<tc>, window_params = [{pipeline_mode = #tpu.pipeline_mode<synchronous>, transform_indices = @transform_0, window_bounds = array<i64: 256, 1, 128>}, {pipeline_mode = #tpu.pipeline_mode<synchronous>, transform_indices = @transform_1, window_bounds = array<i64: 1, 128>}, {pipeline_mode = #tpu.pipeline_mode<synchronous>, transform_indices = @transform_2, window_bounds = array<i64: 256, 128>}, {pipeline_mode = #tpu.pipeline_mode<synchronous>, transform_indices = @transform_3, window_bounds = array<i64: 256, 256>}, {pipeline_mode = #tpu.pipeline_mode<synchronous>, transform_indices = @transform_4, window_bounds = array<i64: 1, 256>}, {pipeline_mode = #tpu.pipeline_mode<synchronous>, transform_indices = @transform_5, window_bounds = array<i64: 256, 128>}, {pipeline_mode = #tpu.pipeline_mode<synchronous>, transform_indices = @transform_6, window_bounds = array<i64: 1, 128>}, {pipeline_mode = #tpu.pipeline_mode<synchronous>, transform_indices = @transform_7, window_bounds = array<i64: 128, 384>}, {pipeline_mode = #tpu.pipeline_mode<synchronous>, transform_indices = @transform_8, window_bounds = array<i64: 128, 384>}, {pipeline_mode = #tpu.pipeline_mode<synchronous>, transform_indices = @transform_9, window_bounds = array<i64: 1, 384>}, {pipeline_mode = #tpu.pipeline_mode<synchronous>, transform_indices = @transform_10, window_bounds = array<i64: 1, 384>}, {pipeline_mode = #tpu.pipeline_mode<synchronous>, transform_indices = @transform_11, window_bounds = array<i64: 128, 256>}, {pipeline_mode = #tpu.pipeline_mode<synchronous>, transform_indices = @transform_12, window_bounds = array<i64: 1, 256>}, {transform_indices = @transform_13, window_bounds = array<i64: 8, 1, 256>}, {transform_indices = @transform_14, window_bounds = array<i64: 8, 1, 256>}, {pipeline_mode = #tpu.pipeline_mode<synchronous>, transform_indices = @transform_15, window_bounds = array<i64: 1, 128>}]} {
    %c0 = arith.constant 0 : index
    %0 = memref.load %arg1[%c0] : memref<1xi32, #tpu.memory_space<smem>>
    %c0_i32 = arith.constant 0 : i32
    %1 = arith.cmpi eq, %arg0, %c0_i32 : i32
    %2 = arith.extui %1 : i1 to i32
    %c0_i32_0 = arith.constant 0 : i32
    %3 = arith.cmpi ne, %2, %c0_i32_0 : i32
    scf.if %3 {
      %c0_203 = arith.constant 0 : index
      %c0_204 = arith.constant 0 : index
      %673 = vector.load %arg4[%c0_203, %c0_204] : memref<1x128xf32, #tpu.memory_space<vmem>>, vector<1x128xf32>
      %c0_205 = arith.constant 0 : index
      %c0_206 = arith.constant 0 : index
      %674 = vector.load %arg18[%c0_205, %c0_206] : memref<1x128xf32, #tpu.memory_space<vmem>>, vector<1x128xf32>
      tpu.vector_store %arg18[%c0_205, %c0_206], %673 {strides = array<i32>} : memref<1x128xf32, #tpu.memory_space<vmem>>, vector<1x128xf32>,
    } else {
    }
    %c0_1 = arith.constant 0 : index
    %c0_2 = arith.constant 0 : index
    %4 = vector.load %arg6[%c0_1, %c0_2] : memref<256x256xbf16, #tpu.memory_space<vmem>>, vector<256x256xbf16>
    %c0_3 = arith.constant 0 : index
    %c0_4 = arith.constant 0 : index
    %5 = vector.load %arg7[%c0_3, %c0_4] : memref<1x256xf32, #tpu.memory_space<vmem>>, vector<1x256xf32>
    %c0_5 = arith.constant 0 : index
    %c0_6 = arith.constant 0 : index
    %6 = vector.load %arg8[%c0_5, %c0_6] : memref<256x128xbf16, #tpu.memory_space<vmem>>, vector<256x128xbf16>
    %c0_7 = arith.constant 0 : index
    %c0_8 = arith.constant 0 : index
    %7 = vector.load %arg9[%c0_7, %c0_8] : memref<1x128xf32, #tpu.memory_space<vmem>>, vector<1x128xf32>
    %c0_9 = arith.constant 0 : index
    %c0_10 = arith.constant 0 : index
    %8 = vector.load %arg10[%c0_9, %c0_10] : memref<128x384xbf16, #tpu.memory_space<vmem>>, vector<128x384xbf16>
    %c0_11 = arith.constant 0 : index
    %c0_12 = arith.constant 0 : index
    %9 = vector.load %arg11[%c0_11, %c0_12] : memref<128x384xbf16, #tpu.memory_space<vmem>>, vector<128x384xbf16>
    %c0_13 = arith.constant 0 : index
    %c0_14 = arith.constant 0 : index
    %10 = vector.load %arg12[%c0_13, %c0_14] : memref<1x384xf32, #tpu.memory_space<vmem>>, vector<1x384xf32>
    %c0_15 = arith.constant 0 : index
    %c0_16 = arith.constant 0 : index
    %11 = vector.load %arg13[%c0_15, %c0_16] : memref<1x384xf32, #tpu.memory_space<vmem>>, vector<1x384xf32>
    %c0_17 = arith.constant 0 : index
    %c0_18 = arith.constant 0 : index
    %12 = vector.load %arg14[%c0_17, %c0_18] : memref<128x256xbf16, #tpu.memory_space<vmem>>, vector<128x256xbf16>
    %c0_19 = arith.constant 0 : index
    %c0_20 = arith.constant 0 : index
    %13 = vector.load %arg15[%c0_19, %c0_20] : memref<1x256xf32, #tpu.memory_space<vmem>>, vector<1x256xf32>
    %c0_21 = arith.constant 0 : index
    %c0_22 = arith.constant 0 : index
    %14 = vector.load %arg5[%c0_21, %c0_22] : memref<256x128xbf16, #tpu.memory_space<vmem>>, vector<256x128xbf16>
    %c0_23 = arith.constant 0 : index
    %c0_24 = arith.constant 0 : index
    %15 = vector.load %arg18[%c0_23, %c0_24] : memref<1x128xf32, #tpu.memory_space<vmem>>, vector<1x128xf32>
    %c8_i32 = arith.constant 8 : i32
    %16 = arith.muli %arg0, %c8_i32 : i32
    %c0_i32_25 = arith.constant 0 : i32
    %17 = arith.addi %16, %c0_i32_25 : i32
    %18 = arith.index_cast %17 : i32 to index
    %19 = memref.load %arg2[%18] : memref<16xi32, #tpu.memory_space<smem>>
    %20 = arith.index_cast %19 : i32 to index
    %c0_26 = arith.constant 0 : index
    %c0_27 = arith.constant 0 : index
    %21 = vector.load %arg3[%20, %c0_26, %c0_27] : memref<256x1x128xbf16, #tpu.memory_space<vmem>>, vector<1x1x128xbf16>
    %22 = vector.shape_cast %21 : vector<1x1x128xbf16> to vector<1x128xbf16>
    %23 = arith.extf %22 : vector<1x128xbf16> to vector<1x128xf32>
    %24 = tpu.concatenate %23, %15 in 1 : vector<1x128xf32>, vector<1x128xf32> -> vector<1x256xf32>
    %25 = arith.truncf %24 : vector<1x256xf32> to vector<1x256xbf16>
    %cst = arith.constant dense<0.000000e+00> : vector<1x256xf32>
    %26 = tpu.matmul %25, %4, %cst {dimension_numbers = #tpu.dot_dimension_numbers<[1], [0], [0], [1], [0, 0, 1, 1], [], []>} : vector<1x256xbf16>, vector<256x256xbf16>, vector<1x256xf32> -> vector<1x256xf32>
    %27 = arith.addf %26, %5 : vector<1x256xf32>
    %cst_28 = arith.constant dense<0xFF800000> : vector<1xf32>
    %28 = vector.multi_reduction <maximumf>, %27, %cst_28 [1] : vector<1x256xf32> to vector<1xf32>
    %29 = vector.shape_cast %28 : vector<1xf32> to vector<1x1xf32>
    %30 = vector.broadcast %29 : vector<1x1xf32> to vector<1x256xf32>
    %31 = arith.subf %27, %30 : vector<1x256xf32>
    %32 = math.exp %31 : vector<1x256xf32>
    %cst_29 = arith.constant dense<0.000000e+00> : vector<1xf32>
    %33 = vector.multi_reduction <add>, %32, %cst_29 [1] : vector<1x256xf32> to vector<1xf32>
    %34 = vector.shape_cast %33 : vector<1xf32> to vector<1x1xf32>
    %35 = vector.broadcast %34 : vector<1x1xf32> to vector<1x256xf32>
    %36 = arith.divf %32, %35 : vector<1x256xf32>
    %c0_30 = arith.constant 0 : index
    %c0_31 = arith.constant 0 : index
    %c0_32 = arith.constant 0 : index
    %37 = vector.load %arg17[%c0_30, %c0_31, %c0_32] : memref<8x1x256xf32, #tpu.memory_space<vmem>>, vector<1x1x256xf32>
    %38 = vector.shape_cast %37 : vector<1x1x256xf32> to vector<1x256xf32>
    %39 = vector.shape_cast %36 : vector<1x256xf32> to vector<1x1x256xf32>
    tpu.vector_store %arg17[%c0_30, %c0_31, %c0_32], %39 {strides = array<i32>} : memref<8x1x256xf32, #tpu.memory_space<vmem>>, vector<1x1x256xf32>,
    %40 = arith.truncf %36 : vector<1x256xf32> to vector<1x256xbf16>
    %cst_33 = arith.constant dense<0.000000e+00> : vector<1x128xf32>
    %41 = tpu.matmul %40, %14, %cst_33 {dimension_numbers = #tpu.dot_dimension_numbers<[1], [0], [0], [1], [0, 0, 1, 1], [], []>} : vector<1x256xbf16>, vector<256x128xbf16>, vector<1x128xf32> -> vector<1x128xf32>
    %42 = tpu.concatenate %23, %41 in 1 : vector<1x128xf32>, vector<1x128xf32> -> vector<1x256xf32>
    %43 = arith.truncf %42 : vector<1x256xf32> to vector<1x256xbf16>
    %cst_34 = arith.constant dense<0.000000e+00> : vector<1x128xf32>
    %44 = tpu.matmul %43, %6, %cst_34 {dimension_numbers = #tpu.dot_dimension_numbers<[1], [0], [0], [1], [0, 0, 1, 1], [], []>} : vector<1x256xbf16>, vector<256x128xbf16>, vector<1x128xf32> -> vector<1x128xf32>
    %45 = arith.addf %44, %7 : vector<1x128xf32>
    %cst_35 = arith.constant 0.000000e+00 : f32
    %46 = vector.broadcast %cst_35 : f32 to vector<1x128xf32>
    %47 = arith.maximumf %45, %46 : vector<1x128xf32>
    %48 = arith.truncf %47 : vector<1x128xf32> to vector<1x128xbf16>
    %cst_36 = arith.constant dense<0.000000e+00> : vector<1x384xf32>
    %49 = tpu.matmul %48, %8, %cst_36 {dimension_numbers = #tpu.dot_dimension_numbers<[1], [0], [0], [1], [0, 0, 1, 1], [], []>} : vector<1x128xbf16>, vector<128x384xbf16>, vector<1x384xf32> -> vector<1x384xf32>
    %50 = arith.addf %49, %10 : vector<1x384xf32>
    %51 = arith.truncf %15 : vector<1x128xf32> to vector<1x128xbf16>
    %cst_37 = arith.constant dense<0.000000e+00> : vector<1x384xf32>
    %52 = tpu.matmul %51, %9, %cst_37 {dimension_numbers = #tpu.dot_dimension_numbers<[1], [0], [0], [1], [0, 0, 1, 1], [], []>} : vector<1x128xbf16>, vector<128x384xbf16>, vector<1x384xf32> -> vector<1x384xf32>
    %53 = arith.addf %52, %11 : vector<1x384xf32>
    %54 = vector.extract_strided_slice %50 {offsets = [0, 0], sizes = [1, 128], strides = [1, 1]} : vector<1x384xf32> to vector<1x128xf32>
    %55 = vector.extract_strided_slice %53 {offsets = [0, 0], sizes = [1, 128], strides = [1, 1]} : vector<1x384xf32> to vector<1x128xf32>
    %56 = arith.addf %54, %55 : vector<1x128xf32>
    %57 = arith.negf %56 : vector<1x128xf32>
    %58 = math.exp %57 : vector<1x128xf32>
    %cst_38 = arith.constant 1.000000e+00 : f32
    %59 = vector.broadcast %cst_38 : f32 to vector<1x128xf32>
    %60 = arith.addf %59, %58 : vector<1x128xf32>
    %61 = arith.divf %59, %60 : vector<1x128xf32>
    %62 = vector.extract_strided_slice %50 {offsets = [0, 128], sizes = [1, 128], strides = [1, 1]} : vector<1x384xf32> to vector<1x128xf32>
    %63 = vector.extract_strided_slice %53 {offsets = [0, 128], sizes = [1, 128], strides = [1, 1]} : vector<1x384xf32> to vector<1x128xf32>
    %64 = arith.addf %62, %63 : vector<1x128xf32>
    %65 = arith.negf %64 : vector<1x128xf32>
    %66 = math.exp %65 : vector<1x128xf32>
    %cst_39 = arith.constant 1.000000e+00 : f32
    %67 = vector.broadcast %cst_39 : f32 to vector<1x128xf32>
    %68 = arith.addf %67, %66 : vector<1x128xf32>
    %69 = arith.divf %67, %68 : vector<1x128xf32>
    %70 = vector.extract_strided_slice %50 {offsets = [0, 256], sizes = [1, 128], strides = [1, 1]} : vector<1x384xf32> to vector<1x128xf32>
    %71 = vector.extract_strided_slice %53 {offsets = [0, 256], sizes = [1, 128], strides = [1, 1]} : vector<1x384xf32> to vector<1x128xf32>
    %72 = arith.mulf %61, %71 : vector<1x128xf32>
    %73 = arith.addf %70, %72 : vector<1x128xf32>
    %74 = math.tanh %73 : vector<1x128xf32>
    %cst_40 = arith.constant 1.000000e+00 : f32
    %75 = vector.broadcast %cst_40 : f32 to vector<1x128xf32>
    %76 = arith.subf %75, %69 : vector<1x128xf32>
    %77 = arith.mulf %76, %74 : vector<1x128xf32>
    %78 = arith.mulf %69, %15 : vector<1x128xf32>
    %79 = arith.addf %77, %78 : vector<1x128xf32>
    %80 = arith.truncf %79 : vector<1x128xf32> to vector<1x128xbf16>
    %cst_41 = arith.constant dense<0.000000e+00> : vector<1x256xf32>
    %81 = tpu.matmul %80, %12, %cst_41 {dimension_numbers = #tpu.dot_dimension_numbers<[1], [0], [0], [1], [0, 0, 1, 1], [], []>} : vector<1x128xbf16>, vector<128x256xbf16>, vector<1x256xf32> -> vector<1x256xf32>
    %82 = arith.addf %81, %13 : vector<1x256xf32>
    %cst_42 = arith.constant dense<0xFF800000> : vector<1xf32>
    %83 = vector.multi_reduction <maximumf>, %82, %cst_42 [1] : vector<1x256xf32> to vector<1xf32>
    %84 = vector.shape_cast %83 : vector<1xf32> to vector<1x1xf32>
    %85 = vector.broadcast %84 : vector<1x1xf32> to vector<1x256xf32>
    %86 = arith.subf %82, %85 : vector<1x256xf32>
    %87 = math.exp %86 : vector<1x256xf32>
    %cst_43 = arith.constant dense<0.000000e+00> : vector<1xf32>
    %88 = vector.multi_reduction <add>, %87, %cst_43 [1] : vector<1x256xf32> to vector<1xf32>
    %89 = vector.shape_cast %88 : vector<1xf32> to vector<1x1xf32>
    %90 = math.log %89 : vector<1x1xf32>
    %91 = vector.broadcast %90 : vector<1x1xf32> to vector<1x256xf32>
    %92 = arith.subf %86, %91 : vector<1x256xf32>
    %c0_44 = arith.constant 0 : index
    %c0_45 = arith.constant 0 : index
    %c0_46 = arith.constant 0 : index
    %93 = vector.load %arg16[%c0_44, %c0_45, %c0_46] : memref<8x1x256xf32, #tpu.memory_space<vmem>>, vector<1x1x256xf32>
    %94 = vector.shape_cast %93 : vector<1x1x256xf32> to vector<1x256xf32>
    %95 = vector.shape_cast %92 : vector<1x256xf32> to vector<1x1x256xf32>
    tpu.vector_store %arg16[%c0_44, %c0_45, %c0_46], %95 {strides = array<i32>} : memref<8x1x256xf32, #tpu.memory_space<vmem>>, vector<1x1x256xf32>,
    %96 = arith.cmpi slt, %17, %0 : i32
    %97 = arith.select %96, %79, %15 : vector<1x128xf32>
    %c8_i32_47 = arith.constant 8 : i32
    %98 = arith.muli %arg0, %c8_i32_47 : i32
    %c1_i32 = arith.constant 1 : i32
    %99 = arith.addi %98, %c1_i32 : i32
    %100 = arith.index_cast %99 : i32 to index
    %101 = memref.load %arg2[%100] : memref<16xi32, #tpu.memory_space<smem>>
    %102 = arith.index_cast %101 : i32 to index
    %c0_48 = arith.constant 0 : index
    %c0_49 = arith.constant 0 : index
    %103 = vector.load %arg3[%102, %c0_48, %c0_49] : memref<256x1x128xbf16, #tpu.memory_space<vmem>>, vector<1x1x128xbf16>
    %104 = vector.shape_cast %103 : vector<1x1x128xbf16> to vector<1x128xbf16>
    %105 = arith.extf %104 : vector<1x128xbf16> to vector<1x128xf32>
    %106 = tpu.concatenate %105, %97 in 1 : vector<1x128xf32>, vector<1x128xf32> -> vector<1x256xf32>
    %107 = arith.truncf %106 : vector<1x256xf32> to vector<1x256xbf16>
    %cst_50 = arith.constant dense<0.000000e+00> : vector<1x256xf32>
    %108 = tpu.matmul %107, %4, %cst_50 {dimension_numbers = #tpu.dot_dimension_numbers<[1], [0], [0], [1], [0, 0, 1, 1], [], []>} : vector<1x256xbf16>, vector<256x256xbf16>, vector<1x256xf32> -> vector<1x256xf32>
    %109 = arith.addf %108, %5 : vector<1x256xf32>
    %cst_51 = arith.constant dense<0xFF800000> : vector<1xf32>
    %110 = vector.multi_reduction <maximumf>, %109, %cst_51 [1] : vector<1x256xf32> to vector<1xf32>
    %111 = vector.shape_cast %110 : vector<1xf32> to vector<1x1xf32>
    %112 = vector.broadcast %111 : vector<1x1xf32> to vector<1x256xf32>
    %113 = arith.subf %109, %112 : vector<1x256xf32>
    %114 = math.exp %113 : vector<1x256xf32>
    %cst_52 = arith.constant dense<0.000000e+00> : vector<1xf32>
    %115 = vector.multi_reduction <add>, %114, %cst_52 [1] : vector<1x256xf32> to vector<1xf32>
    %116 = vector.shape_cast %115 : vector<1xf32> to vector<1x1xf32>
    %117 = vector.broadcast %116 : vector<1x1xf32> to vector<1x256xf32>
    %118 = arith.divf %114, %117 : vector<1x256xf32>
    %c1 = arith.constant 1 : index
    %c0_53 = arith.constant 0 : index
    %c0_54 = arith.constant 0 : index
    %119 = vector.load %arg17[%c1, %c0_53, %c0_54] : memref<8x1x256xf32, #tpu.memory_space<vmem>>, vector<1x1x256xf32>
    %120 = vector.shape_cast %119 : vector<1x1x256xf32> to vector<1x256xf32>
    %121 = vector.shape_cast %118 : vector<1x256xf32> to vector<1x1x256xf32>
    tpu.vector_store %arg17[%c1, %c0_53, %c0_54], %121 {strides = array<i32>} : memref<8x1x256xf32, #tpu.memory_space<vmem>>, vector<1x1x256xf32>,
    %122 = arith.truncf %118 : vector<1x256xf32> to vector<1x256xbf16>
    %cst_55 = arith.constant dense<0.000000e+00> : vector<1x128xf32>
    %123 = tpu.matmul %122, %14, %cst_55 {dimension_numbers = #tpu.dot_dimension_numbers<[1], [0], [0], [1], [0, 0, 1, 1], [], []>} : vector<1x256xbf16>, vector<256x128xbf16>, vector<1x128xf32> -> vector<1x128xf32>
    %124 = tpu.concatenate %105, %123 in 1 : vector<1x128xf32>, vector<1x128xf32> -> vector<1x256xf32>
    %125 = arith.truncf %124 : vector<1x256xf32> to vector<1x256xbf16>
    %cst_56 = arith.constant dense<0.000000e+00> : vector<1x128xf32>
    %126 = tpu.matmul %125, %6, %cst_56 {dimension_numbers = #tpu.dot_dimension_numbers<[1], [0], [0], [1], [0, 0, 1, 1], [], []>} : vector<1x256xbf16>, vector<256x128xbf16>, vector<1x128xf32> -> vector<1x128xf32>
    %127 = arith.addf %126, %7 : vector<1x128xf32>
    %cst_57 = arith.constant 0.000000e+00 : f32
    %128 = vector.broadcast %cst_57 : f32 to vector<1x128xf32>
    %129 = arith.maximumf %127, %128 : vector<1x128xf32>
    %130 = arith.truncf %129 : vector<1x128xf32> to vector<1x128xbf16>
    %cst_58 = arith.constant dense<0.000000e+00> : vector<1x384xf32>
    %131 = tpu.matmul %130, %8, %cst_58 {dimension_numbers = #tpu.dot_dimension_numbers<[1], [0], [0], [1], [0, 0, 1, 1], [], []>} : vector<1x128xbf16>, vector<128x384xbf16>, vector<1x384xf32> -> vector<1x384xf32>
    %132 = arith.addf %131, %10 : vector<1x384xf32>
    %133 = arith.truncf %97 : vector<1x128xf32> to vector<1x128xbf16>
    %cst_59 = arith.constant dense<0.000000e+00> : vector<1x384xf32>
    %134 = tpu.matmul %133, %9, %cst_59 {dimension_numbers = #tpu.dot_dimension_numbers<[1], [0], [0], [1], [0, 0, 1, 1], [], []>} : vector<1x128xbf16>, vector<128x384xbf16>, vector<1x384xf32> -> vector<1x384xf32>
    %135 = arith.addf %134, %11 : vector<1x384xf32>
    %136 = vector.extract_strided_slice %132 {offsets = [0, 0], sizes = [1, 128], strides = [1, 1]} : vector<1x384xf32> to vector<1x128xf32>
    %137 = vector.extract_strided_slice %135 {offsets = [0, 0], sizes = [1, 128], strides = [1, 1]} : vector<1x384xf32> to vector<1x128xf32>
    %138 = arith.addf %136, %137 : vector<1x128xf32>
    %139 = arith.negf %138 : vector<1x128xf32>
    %140 = math.exp %139 : vector<1x128xf32>
    %cst_60 = arith.constant 1.000000e+00 : f32
    %141 = vector.broadcast %cst_60 : f32 to vector<1x128xf32>
    %142 = arith.addf %141, %140 : vector<1x128xf32>
    %143 = arith.divf %141, %142 : vector<1x128xf32>
    %144 = vector.extract_strided_slice %132 {offsets = [0, 128], sizes = [1, 128], strides = [1, 1]} : vector<1x384xf32> to vector<1x128xf32>
    %145 = vector.extract_strided_slice %135 {offsets = [0, 128], sizes = [1, 128], strides = [1, 1]} : vector<1x384xf32> to vector<1x128xf32>
    %146 = arith.addf %144, %145 : vector<1x128xf32>
    %147 = arith.negf %146 : vector<1x128xf32>
    %148 = math.exp %147 : vector<1x128xf32>
    %cst_61 = arith.constant 1.000000e+00 : f32
    %149 = vector.broadcast %cst_61 : f32 to vector<1x128xf32>
    %150 = arith.addf %149, %148 : vector<1x128xf32>
    %151 = arith.divf %149, %150 : vector<1x128xf32>
    %152 = vector.extract_strided_slice %132 {offsets = [0, 256], sizes = [1, 128], strides = [1, 1]} : vector<1x384xf32> to vector<1x128xf32>
    %153 = vector.extract_strided_slice %135 {offsets = [0, 256], sizes = [1, 128], strides = [1, 1]} : vector<1x384xf32> to vector<1x128xf32>
    %154 = arith.mulf %143, %153 : vector<1x128xf32>
    %155 = arith.addf %152, %154 : vector<1x128xf32>
    %156 = math.tanh %155 : vector<1x128xf32>
    %cst_62 = arith.constant 1.000000e+00 : f32
    %157 = vector.broadcast %cst_62 : f32 to vector<1x128xf32>
    %158 = arith.subf %157, %151 : vector<1x128xf32>
    %159 = arith.mulf %158, %156 : vector<1x128xf32>
    %160 = arith.mulf %151, %97 : vector<1x128xf32>
    %161 = arith.addf %159, %160 : vector<1x128xf32>
    %162 = arith.truncf %161 : vector<1x128xf32> to vector<1x128xbf16>
    %cst_63 = arith.constant dense<0.000000e+00> : vector<1x256xf32>
    %163 = tpu.matmul %162, %12, %cst_63 {dimension_numbers = #tpu.dot_dimension_numbers<[1], [0], [0], [1], [0, 0, 1, 1], [], []>} : vector<1x128xbf16>, vector<128x256xbf16>, vector<1x256xf32> -> vector<1x256xf32>
    %164 = arith.addf %163, %13 : vector<1x256xf32>
    %cst_64 = arith.constant dense<0xFF800000> : vector<1xf32>
    %165 = vector.multi_reduction <maximumf>, %164, %cst_64 [1] : vector<1x256xf32> to vector<1xf32>
    %166 = vector.shape_cast %165 : vector<1xf32> to vector<1x1xf32>
    %167 = vector.broadcast %166 : vector<1x1xf32> to vector<1x256xf32>
    %168 = arith.subf %164, %167 : vector<1x256xf32>
    %169 = math.exp %168 : vector<1x256xf32>
    %cst_65 = arith.constant dense<0.000000e+00> : vector<1xf32>
    %170 = vector.multi_reduction <add>, %169, %cst_65 [1] : vector<1x256xf32> to vector<1xf32>
    %171 = vector.shape_cast %170 : vector<1xf32> to vector<1x1xf32>
    %172 = math.log %171 : vector<1x1xf32>
    %173 = vector.broadcast %172 : vector<1x1xf32> to vector<1x256xf32>
    %174 = arith.subf %168, %173 : vector<1x256xf32>
    %c1_66 = arith.constant 1 : index
    %c0_67 = arith.constant 0 : index
    %c0_68 = arith.constant 0 : index
    %175 = vector.load %arg16[%c1_66, %c0_67, %c0_68] : memref<8x1x256xf32, #tpu.memory_space<vmem>>, vector<1x1x256xf32>
    %176 = vector.shape_cast %175 : vector<1x1x256xf32> to vector<1x256xf32>
    %177 = vector.shape_cast %174 : vector<1x256xf32> to vector<1x1x256xf32>
    tpu.vector_store %arg16[%c1_66, %c0_67, %c0_68], %177 {strides = array<i32>} : memref<8x1x256xf32, #tpu.memory_space<vmem>>, vector<1x1x256xf32>,
    %178 = arith.cmpi slt, %99, %0 : i32
    %179 = arith.select %178, %161, %97 : vector<1x128xf32>
    %c8_i32_69 = arith.constant 8 : i32
    %180 = arith.muli %arg0, %c8_i32_69 : i32
    %c2_i32 = arith.constant 2 : i32
    %181 = arith.addi %180, %c2_i32 : i32
    %182 = arith.index_cast %181 : i32 to index
    %183 = memref.load %arg2[%182] : memref<16xi32, #tpu.memory_space<smem>>
    %184 = arith.index_cast %183 : i32 to index
    %c0_70 = arith.constant 0 : index
    %c0_71 = arith.constant 0 : index
    %185 = vector.load %arg3[%184, %c0_70, %c0_71] : memref<256x1x128xbf16, #tpu.memory_space<vmem>>, vector<1x1x128xbf16>
    %186 = vector.shape_cast %185 : vector<1x1x128xbf16> to vector<1x128xbf16>
    %187 = arith.extf %186 : vector<1x128xbf16> to vector<1x128xf32>
    %188 = tpu.concatenate %187, %179 in 1 : vector<1x128xf32>, vector<1x128xf32> -> vector<1x256xf32>
    %189 = arith.truncf %188 : vector<1x256xf32> to vector<1x256xbf16>
    %cst_72 = arith.constant dense<0.000000e+00> : vector<1x256xf32>
    %190 = tpu.matmul %189, %4, %cst_72 {dimension_numbers = #tpu.dot_dimension_numbers<[1], [0], [0], [1], [0, 0, 1, 1], [], []>} : vector<1x256xbf16>, vector<256x256xbf16>, vector<1x256xf32> -> vector<1x256xf32>
    %191 = arith.addf %190, %5 : vector<1x256xf32>
    %cst_73 = arith.constant dense<0xFF800000> : vector<1xf32>
    %192 = vector.multi_reduction <maximumf>, %191, %cst_73 [1] : vector<1x256xf32> to vector<1xf32>
    %193 = vector.shape_cast %192 : vector<1xf32> to vector<1x1xf32>
    %194 = vector.broadcast %193 : vector<1x1xf32> to vector<1x256xf32>
    %195 = arith.subf %191, %194 : vector<1x256xf32>
    %196 = math.exp %195 : vector<1x256xf32>
    %cst_74 = arith.constant dense<0.000000e+00> : vector<1xf32>
    %197 = vector.multi_reduction <add>, %196, %cst_74 [1] : vector<1x256xf32> to vector<1xf32>
    %198 = vector.shape_cast %197 : vector<1xf32> to vector<1x1xf32>
    %199 = vector.broadcast %198 : vector<1x1xf32> to vector<1x256xf32>
    %200 = arith.divf %196, %199 : vector<1x256xf32>
    %c2 = arith.constant 2 : index
    %c0_75 = arith.constant 0 : index
    %c0_76 = arith.constant 0 : index
    %201 = vector.load %arg17[%c2, %c0_75, %c0_76] : memref<8x1x256xf32, #tpu.memory_space<vmem>>, vector<1x1x256xf32>
    %202 = vector.shape_cast %201 : vector<1x1x256xf32> to vector<1x256xf32>
    %203 = vector.shape_cast %200 : vector<1x256xf32> to vector<1x1x256xf32>
    tpu.vector_store %arg17[%c2, %c0_75, %c0_76], %203 {strides = array<i32>} : memref<8x1x256xf32, #tpu.memory_space<vmem>>, vector<1x1x256xf32>,
    %204 = arith.truncf %200 : vector<1x256xf32> to vector<1x256xbf16>
    %cst_77 = arith.constant dense<0.000000e+00> : vector<1x128xf32>
    %205 = tpu.matmul %204, %14, %cst_77 {dimension_numbers = #tpu.dot_dimension_numbers<[1], [0], [0], [1], [0, 0, 1, 1], [], []>} : vector<1x256xbf16>, vector<256x128xbf16>, vector<1x128xf32> -> vector<1x128xf32>
    %206 = tpu.concatenate %187, %205 in 1 : vector<1x128xf32>, vector<1x128xf32> -> vector<1x256xf32>
    %207 = arith.truncf %206 : vector<1x256xf32> to vector<1x256xbf16>
    %cst_78 = arith.constant dense<0.000000e+00> : vector<1x128xf32>
    %208 = tpu.matmul %207, %6, %cst_78 {dimension_numbers = #tpu.dot_dimension_numbers<[1], [0], [0], [1], [0, 0, 1, 1], [], []>} : vector<1x256xbf16>, vector<256x128xbf16>, vector<1x128xf32> -> vector<1x128xf32>
    %209 = arith.addf %208, %7 : vector<1x128xf32>
    %cst_79 = arith.constant 0.000000e+00 : f32
    %210 = vector.broadcast %cst_79 : f32 to vector<1x128xf32>
    %211 = arith.maximumf %209, %210 : vector<1x128xf32>
    %212 = arith.truncf %211 : vector<1x128xf32> to vector<1x128xbf16>
    %cst_80 = arith.constant dense<0.000000e+00> : vector<1x384xf32>
    %213 = tpu.matmul %212, %8, %cst_80 {dimension_numbers = #tpu.dot_dimension_numbers<[1], [0], [0], [1], [0, 0, 1, 1], [], []>} : vector<1x128xbf16>, vector<128x384xbf16>, vector<1x384xf32> -> vector<1x384xf32>
    %214 = arith.addf %213, %10 : vector<1x384xf32>
    %215 = arith.truncf %179 : vector<1x128xf32> to vector<1x128xbf16>
    %cst_81 = arith.constant dense<0.000000e+00> : vector<1x384xf32>
    %216 = tpu.matmul %215, %9, %cst_81 {dimension_numbers = #tpu.dot_dimension_numbers<[1], [0], [0], [1], [0, 0, 1, 1], [], []>} : vector<1x128xbf16>, vector<128x384xbf16>, vector<1x384xf32> -> vector<1x384xf32>
    %217 = arith.addf %216, %11 : vector<1x384xf32>
    %218 = vector.extract_strided_slice %214 {offsets = [0, 0], sizes = [1, 128], strides = [1, 1]} : vector<1x384xf32> to vector<1x128xf32>
    %219 = vector.extract_strided_slice %217 {offsets = [0, 0], sizes = [1, 128], strides = [1, 1]} : vector<1x384xf32> to vector<1x128xf32>
    %220 = arith.addf %218, %219 : vector<1x128xf32>
    %221 = arith.negf %220 : vector<1x128xf32>
    %222 = math.exp %221 : vector<1x128xf32>
    %cst_82 = arith.constant 1.000000e+00 : f32
    %223 = vector.broadcast %cst_82 : f32 to vector<1x128xf32>
    %224 = arith.addf %223, %222 : vector<1x128xf32>
    %225 = arith.divf %223, %224 : vector<1x128xf32>
    %226 = vector.extract_strided_slice %214 {offsets = [0, 128], sizes = [1, 128], strides = [1, 1]} : vector<1x384xf32> to vector<1x128xf32>
    %227 = vector.extract_strided_slice %217 {offsets = [0, 128], sizes = [1, 128], strides = [1, 1]} : vector<1x384xf32> to vector<1x128xf32>
    %228 = arith.addf %226, %227 : vector<1x128xf32>
    %229 = arith.negf %228 : vector<1x128xf32>
    %230 = math.exp %229 : vector<1x128xf32>
    %cst_83 = arith.constant 1.000000e+00 : f32
    %231 = vector.broadcast %cst_83 : f32 to vector<1x128xf32>
    %232 = arith.addf %231, %230 : vector<1x128xf32>
    %233 = arith.divf %231, %232 : vector<1x128xf32>
    %234 = vector.extract_strided_slice %214 {offsets = [0, 256], sizes = [1, 128], strides = [1, 1]} : vector<1x384xf32> to vector<1x128xf32>
    %235 = vector.extract_strided_slice %217 {offsets = [0, 256], sizes = [1, 128], strides = [1, 1]} : vector<1x384xf32> to vector<1x128xf32>
    %236 = arith.mulf %225, %235 : vector<1x128xf32>
    %237 = arith.addf %234, %236 : vector<1x128xf32>
    %238 = math.tanh %237 : vector<1x128xf32>
    %cst_84 = arith.constant 1.000000e+00 : f32
    %239 = vector.broadcast %cst_84 : f32 to vector<1x128xf32>
    %240 = arith.subf %239, %233 : vector<1x128xf32>
    %241 = arith.mulf %240, %238 : vector<1x128xf32>
    %242 = arith.mulf %233, %179 : vector<1x128xf32>
    %243 = arith.addf %241, %242 : vector<1x128xf32>
    %244 = arith.truncf %243 : vector<1x128xf32> to vector<1x128xbf16>
    %cst_85 = arith.constant dense<0.000000e+00> : vector<1x256xf32>
    %245 = tpu.matmul %244, %12, %cst_85 {dimension_numbers = #tpu.dot_dimension_numbers<[1], [0], [0], [1], [0, 0, 1, 1], [], []>} : vector<1x128xbf16>, vector<128x256xbf16>, vector<1x256xf32> -> vector<1x256xf32>
    %246 = arith.addf %245, %13 : vector<1x256xf32>
    %cst_86 = arith.constant dense<0xFF800000> : vector<1xf32>
    %247 = vector.multi_reduction <maximumf>, %246, %cst_86 [1] : vector<1x256xf32> to vector<1xf32>
    %248 = vector.shape_cast %247 : vector<1xf32> to vector<1x1xf32>
    %249 = vector.broadcast %248 : vector<1x1xf32> to vector<1x256xf32>
    %250 = arith.subf %246, %249 : vector<1x256xf32>
    %251 = math.exp %250 : vector<1x256xf32>
    %cst_87 = arith.constant dense<0.000000e+00> : vector<1xf32>
    %252 = vector.multi_reduction <add>, %251, %cst_87 [1] : vector<1x256xf32> to vector<1xf32>
    %253 = vector.shape_cast %252 : vector<1xf32> to vector<1x1xf32>
    %254 = math.log %253 : vector<1x1xf32>
    %255 = vector.broadcast %254 : vector<1x1xf32> to vector<1x256xf32>
    %256 = arith.subf %250, %255 : vector<1x256xf32>
    %c2_88 = arith.constant 2 : index
    %c0_89 = arith.constant 0 : index
    %c0_90 = arith.constant 0 : index
    %257 = vector.load %arg16[%c2_88, %c0_89, %c0_90] : memref<8x1x256xf32, #tpu.memory_space<vmem>>, vector<1x1x256xf32>
    %258 = vector.shape_cast %257 : vector<1x1x256xf32> to vector<1x256xf32>
    %259 = vector.shape_cast %256 : vector<1x256xf32> to vector<1x1x256xf32>
    tpu.vector_store %arg16[%c2_88, %c0_89, %c0_90], %259 {strides = array<i32>} : memref<8x1x256xf32, #tpu.memory_space<vmem>>, vector<1x1x256xf32>,
    %260 = arith.cmpi slt, %181, %0 : i32
    %261 = arith.select %260, %243, %179 : vector<1x128xf32>
    %c8_i32_91 = arith.constant 8 : i32
    %262 = arith.muli %arg0, %c8_i32_91 : i32
    %c3_i32 = arith.constant 3 : i32
    %263 = arith.addi %262, %c3_i32 : i32
    %264 = arith.index_cast %263 : i32 to index
    %265 = memref.load %arg2[%264] : memref<16xi32, #tpu.memory_space<smem>>
    %266 = arith.index_cast %265 : i32 to index
    %c0_92 = arith.constant 0 : index
    %c0_93 = arith.constant 0 : index
    %267 = vector.load %arg3[%266, %c0_92, %c0_93] : memref<256x1x128xbf16, #tpu.memory_space<vmem>>, vector<1x1x128xbf16>
    %268 = vector.shape_cast %267 : vector<1x1x128xbf16> to vector<1x128xbf16>
    %269 = arith.extf %268 : vector<1x128xbf16> to vector<1x128xf32>
    %270 = tpu.concatenate %269, %261 in 1 : vector<1x128xf32>, vector<1x128xf32> -> vector<1x256xf32>
    %271 = arith.truncf %270 : vector<1x256xf32> to vector<1x256xbf16>
    %cst_94 = arith.constant dense<0.000000e+00> : vector<1x256xf32>
    %272 = tpu.matmul %271, %4, %cst_94 {dimension_numbers = #tpu.dot_dimension_numbers<[1], [0], [0], [1], [0, 0, 1, 1], [], []>} : vector<1x256xbf16>, vector<256x256xbf16>, vector<1x256xf32> -> vector<1x256xf32>
    %273 = arith.addf %272, %5 : vector<1x256xf32>
    %cst_95 = arith.constant dense<0xFF800000> : vector<1xf32>
    %274 = vector.multi_reduction <maximumf>, %273, %cst_95 [1] : vector<1x256xf32> to vector<1xf32>
    %275 = vector.shape_cast %274 : vector<1xf32> to vector<1x1xf32>
    %276 = vector.broadcast %275 : vector<1x1xf32> to vector<1x256xf32>
    %277 = arith.subf %273, %276 : vector<1x256xf32>
    %278 = math.exp %277 : vector<1x256xf32>
    %cst_96 = arith.constant dense<0.000000e+00> : vector<1xf32>
    %279 = vector.multi_reduction <add>, %278, %cst_96 [1] : vector<1x256xf32> to vector<1xf32>
    %280 = vector.shape_cast %279 : vector<1xf32> to vector<1x1xf32>
    %281 = vector.broadcast %280 : vector<1x1xf32> to vector<1x256xf32>
    %282 = arith.divf %278, %281 : vector<1x256xf32>
    %c3 = arith.constant 3 : index
    %c0_97 = arith.constant 0 : index
    %c0_98 = arith.constant 0 : index
    %283 = vector.load %arg17[%c3, %c0_97, %c0_98] : memref<8x1x256xf32, #tpu.memory_space<vmem>>, vector<1x1x256xf32>
    %284 = vector.shape_cast %283 : vector<1x1x256xf32> to vector<1x256xf32>
    %285 = vector.shape_cast %282 : vector<1x256xf32> to vector<1x1x256xf32>
    tpu.vector_store %arg17[%c3, %c0_97, %c0_98], %285 {strides = array<i32>} : memref<8x1x256xf32, #tpu.memory_space<vmem>>, vector<1x1x256xf32>,
    %286 = arith.truncf %282 : vector<1x256xf32> to vector<1x256xbf16>
    %cst_99 = arith.constant dense<0.000000e+00> : vector<1x128xf32>
    %287 = tpu.matmul %286, %14, %cst_99 {dimension_numbers = #tpu.dot_dimension_numbers<[1], [0], [0], [1], [0, 0, 1, 1], [], []>} : vector<1x256xbf16>, vector<256x128xbf16>, vector<1x128xf32> -> vector<1x128xf32>
    %288 = tpu.concatenate %269, %287 in 1 : vector<1x128xf32>, vector<1x128xf32> -> vector<1x256xf32>
    %289 = arith.truncf %288 : vector<1x256xf32> to vector<1x256xbf16>
    %cst_100 = arith.constant dense<0.000000e+00> : vector<1x128xf32>
    %290 = tpu.matmul %289, %6, %cst_100 {dimension_numbers = #tpu.dot_dimension_numbers<[1], [0], [0], [1], [0, 0, 1, 1], [], []>} : vector<1x256xbf16>, vector<256x128xbf16>, vector<1x128xf32> -> vector<1x128xf32>
    %291 = arith.addf %290, %7 : vector<1x128xf32>
    %cst_101 = arith.constant 0.000000e+00 : f32
    %292 = vector.broadcast %cst_101 : f32 to vector<1x128xf32>
    %293 = arith.maximumf %291, %292 : vector<1x128xf32>
    %294 = arith.truncf %293 : vector<1x128xf32> to vector<1x128xbf16>
    %cst_102 = arith.constant dense<0.000000e+00> : vector<1x384xf32>
    %295 = tpu.matmul %294, %8, %cst_102 {dimension_numbers = #tpu.dot_dimension_numbers<[1], [0], [0], [1], [0, 0, 1, 1], [], []>} : vector<1x128xbf16>, vector<128x384xbf16>, vector<1x384xf32> -> vector<1x384xf32>
    %296 = arith.addf %295, %10 : vector<1x384xf32>
    %297 = arith.truncf %261 : vector<1x128xf32> to vector<1x128xbf16>
    %cst_103 = arith.constant dense<0.000000e+00> : vector<1x384xf32>
    %298 = tpu.matmul %297, %9, %cst_103 {dimension_numbers = #tpu.dot_dimension_numbers<[1], [0], [0], [1], [0, 0, 1, 1], [], []>} : vector<1x128xbf16>, vector<128x384xbf16>, vector<1x384xf32> -> vector<1x384xf32>
    %299 = arith.addf %298, %11 : vector<1x384xf32>
    %300 = vector.extract_strided_slice %296 {offsets = [0, 0], sizes = [1, 128], strides = [1, 1]} : vector<1x384xf32> to vector<1x128xf32>
    %301 = vector.extract_strided_slice %299 {offsets = [0, 0], sizes = [1, 128], strides = [1, 1]} : vector<1x384xf32> to vector<1x128xf32>
    %302 = arith.addf %300, %301 : vector<1x128xf32>
    %303 = arith.negf %302 : vector<1x128xf32>
    %304 = math.exp %303 : vector<1x128xf32>
    %cst_104 = arith.constant 1.000000e+00 : f32
    %305 = vector.broadcast %cst_104 : f32 to vector<1x128xf32>
    %306 = arith.addf %305, %304 : vector<1x128xf32>
    %307 = arith.divf %305, %306 : vector<1x128xf32>
    %308 = vector.extract_strided_slice %296 {offsets = [0, 128], sizes = [1, 128], strides = [1, 1]} : vector<1x384xf32> to vector<1x128xf32>
    %309 = vector.extract_strided_slice %299 {offsets = [0, 128], sizes = [1, 128], strides = [1, 1]} : vector<1x384xf32> to vector<1x128xf32>
    %310 = arith.addf %308, %309 : vector<1x128xf32>
    %311 = arith.negf %310 : vector<1x128xf32>
    %312 = math.exp %311 : vector<1x128xf32>
    %cst_105 = arith.constant 1.000000e+00 : f32
    %313 = vector.broadcast %cst_105 : f32 to vector<1x128xf32>
    %314 = arith.addf %313, %312 : vector<1x128xf32>
    %315 = arith.divf %313, %314 : vector<1x128xf32>
    %316 = vector.extract_strided_slice %296 {offsets = [0, 256], sizes = [1, 128], strides = [1, 1]} : vector<1x384xf32> to vector<1x128xf32>
    %317 = vector.extract_strided_slice %299 {offsets = [0, 256], sizes = [1, 128], strides = [1, 1]} : vector<1x384xf32> to vector<1x128xf32>
    %318 = arith.mulf %307, %317 : vector<1x128xf32>
    %319 = arith.addf %316, %318 : vector<1x128xf32>
    %320 = math.tanh %319 : vector<1x128xf32>
    %cst_106 = arith.constant 1.000000e+00 : f32
    %321 = vector.broadcast %cst_106 : f32 to vector<1x128xf32>
    %322 = arith.subf %321, %315 : vector<1x128xf32>
    %323 = arith.mulf %322, %320 : vector<1x128xf32>
    %324 = arith.mulf %315, %261 : vector<1x128xf32>
    %325 = arith.addf %323, %324 : vector<1x128xf32>
    %326 = arith.truncf %325 : vector<1x128xf32> to vector<1x128xbf16>
    %cst_107 = arith.constant dense<0.000000e+00> : vector<1x256xf32>
    %327 = tpu.matmul %326, %12, %cst_107 {dimension_numbers = #tpu.dot_dimension_numbers<[1], [0], [0], [1], [0, 0, 1, 1], [], []>} : vector<1x128xbf16>, vector<128x256xbf16>, vector<1x256xf32> -> vector<1x256xf32>
    %328 = arith.addf %327, %13 : vector<1x256xf32>
    %cst_108 = arith.constant dense<0xFF800000> : vector<1xf32>
    %329 = vector.multi_reduction <maximumf>, %328, %cst_108 [1] : vector<1x256xf32> to vector<1xf32>
    %330 = vector.shape_cast %329 : vector<1xf32> to vector<1x1xf32>
    %331 = vector.broadcast %330 : vector<1x1xf32> to vector<1x256xf32>
    %332 = arith.subf %328, %331 : vector<1x256xf32>
    %333 = math.exp %332 : vector<1x256xf32>
    %cst_109 = arith.constant dense<0.000000e+00> : vector<1xf32>
    %334 = vector.multi_reduction <add>, %333, %cst_109 [1] : vector<1x256xf32> to vector<1xf32>
    %335 = vector.shape_cast %334 : vector<1xf32> to vector<1x1xf32>
    %336 = math.log %335 : vector<1x1xf32>
    %337 = vector.broadcast %336 : vector<1x1xf32> to vector<1x256xf32>
    %338 = arith.subf %332, %337 : vector<1x256xf32>
    %c3_110 = arith.constant 3 : index
    %c0_111 = arith.constant 0 : index
    %c0_112 = arith.constant 0 : index
    %339 = vector.load %arg16[%c3_110, %c0_111, %c0_112] : memref<8x1x256xf32, #tpu.memory_space<vmem>>, vector<1x1x256xf32>
    %340 = vector.shape_cast %339 : vector<1x1x256xf32> to vector<1x256xf32>
    %341 = vector.shape_cast %338 : vector<1x256xf32> to vector<1x1x256xf32>
    tpu.vector_store %arg16[%c3_110, %c0_111, %c0_112], %341 {strides = array<i32>} : memref<8x1x256xf32, #tpu.memory_space<vmem>>, vector<1x1x256xf32>,
    %342 = arith.cmpi slt, %263, %0 : i32
    %343 = arith.select %342, %325, %261 : vector<1x128xf32>
    %c8_i32_113 = arith.constant 8 : i32
    %344 = arith.muli %arg0, %c8_i32_113 : i32
    %c4_i32 = arith.constant 4 : i32
    %345 = arith.addi %344, %c4_i32 : i32
    %346 = arith.index_cast %345 : i32 to index
    %347 = memref.load %arg2[%346] : memref<16xi32, #tpu.memory_space<smem>>
    %348 = arith.index_cast %347 : i32 to index
    %c0_114 = arith.constant 0 : index
    %c0_115 = arith.constant 0 : index
    %349 = vector.load %arg3[%348, %c0_114, %c0_115] : memref<256x1x128xbf16, #tpu.memory_space<vmem>>, vector<1x1x128xbf16>
    %350 = vector.shape_cast %349 : vector<1x1x128xbf16> to vector<1x128xbf16>
    %351 = arith.extf %350 : vector<1x128xbf16> to vector<1x128xf32>
    %352 = tpu.concatenate %351, %343 in 1 : vector<1x128xf32>, vector<1x128xf32> -> vector<1x256xf32>
    %353 = arith.truncf %352 : vector<1x256xf32> to vector<1x256xbf16>
    %cst_116 = arith.constant dense<0.000000e+00> : vector<1x256xf32>
    %354 = tpu.matmul %353, %4, %cst_116 {dimension_numbers = #tpu.dot_dimension_numbers<[1], [0], [0], [1], [0, 0, 1, 1], [], []>} : vector<1x256xbf16>, vector<256x256xbf16>, vector<1x256xf32> -> vector<1x256xf32>
    %355 = arith.addf %354, %5 : vector<1x256xf32>
    %cst_117 = arith.constant dense<0xFF800000> : vector<1xf32>
    %356 = vector.multi_reduction <maximumf>, %355, %cst_117 [1] : vector<1x256xf32> to vector<1xf32>
    %357 = vector.shape_cast %356 : vector<1xf32> to vector<1x1xf32>
    %358 = vector.broadcast %357 : vector<1x1xf32> to vector<1x256xf32>
    %359 = arith.subf %355, %358 : vector<1x256xf32>
    %360 = math.exp %359 : vector<1x256xf32>
    %cst_118 = arith.constant dense<0.000000e+00> : vector<1xf32>
    %361 = vector.multi_reduction <add>, %360, %cst_118 [1] : vector<1x256xf32> to vector<1xf32>
    %362 = vector.shape_cast %361 : vector<1xf32> to vector<1x1xf32>
    %363 = vector.broadcast %362 : vector<1x1xf32> to vector<1x256xf32>
    %364 = arith.divf %360, %363 : vector<1x256xf32>
    %c4 = arith.constant 4 : index
    %c0_119 = arith.constant 0 : index
    %c0_120 = arith.constant 0 : index
    %365 = vector.load %arg17[%c4, %c0_119, %c0_120] : memref<8x1x256xf32, #tpu.memory_space<vmem>>, vector<1x1x256xf32>
    %366 = vector.shape_cast %365 : vector<1x1x256xf32> to vector<1x256xf32>
    %367 = vector.shape_cast %364 : vector<1x256xf32> to vector<1x1x256xf32>
    tpu.vector_store %arg17[%c4, %c0_119, %c0_120], %367 {strides = array<i32>} : memref<8x1x256xf32, #tpu.memory_space<vmem>>, vector<1x1x256xf32>,
    %368 = arith.truncf %364 : vector<1x256xf32> to vector<1x256xbf16>
    %cst_121 = arith.constant dense<0.000000e+00> : vector<1x128xf32>
    %369 = tpu.matmul %368, %14, %cst_121 {dimension_numbers = #tpu.dot_dimension_numbers<[1], [0], [0], [1], [0, 0, 1, 1], [], []>} : vector<1x256xbf16>, vector<256x128xbf16>, vector<1x128xf32> -> vector<1x128xf32>
    %370 = tpu.concatenate %351, %369 in 1 : vector<1x128xf32>, vector<1x128xf32> -> vector<1x256xf32>
    %371 = arith.truncf %370 : vector<1x256xf32> to vector<1x256xbf16>
    %cst_122 = arith.constant dense<0.000000e+00> : vector<1x128xf32>
    %372 = tpu.matmul %371, %6, %cst_122 {dimension_numbers = #tpu.dot_dimension_numbers<[1], [0], [0], [1], [0, 0, 1, 1], [], []>} : vector<1x256xbf16>, vector<256x128xbf16>, vector<1x128xf32> -> vector<1x128xf32>
    %373 = arith.addf %372, %7 : vector<1x128xf32>
    %cst_123 = arith.constant 0.000000e+00 : f32
    %374 = vector.broadcast %cst_123 : f32 to vector<1x128xf32>
    %375 = arith.maximumf %373, %374 : vector<1x128xf32>
    %376 = arith.truncf %375 : vector<1x128xf32> to vector<1x128xbf16>
    %cst_124 = arith.constant dense<0.000000e+00> : vector<1x384xf32>
    %377 = tpu.matmul %376, %8, %cst_124 {dimension_numbers = #tpu.dot_dimension_numbers<[1], [0], [0], [1], [0, 0, 1, 1], [], []>} : vector<1x128xbf16>, vector<128x384xbf16>, vector<1x384xf32> -> vector<1x384xf32>
    %378 = arith.addf %377, %10 : vector<1x384xf32>
    %379 = arith.truncf %343 : vector<1x128xf32> to vector<1x128xbf16>
    %cst_125 = arith.constant dense<0.000000e+00> : vector<1x384xf32>
    %380 = tpu.matmul %379, %9, %cst_125 {dimension_numbers = #tpu.dot_dimension_numbers<[1], [0], [0], [1], [0, 0, 1, 1], [], []>} : vector<1x128xbf16>, vector<128x384xbf16>, vector<1x384xf32> -> vector<1x384xf32>
    %381 = arith.addf %380, %11 : vector<1x384xf32>
    %382 = vector.extract_strided_slice %378 {offsets = [0, 0], sizes = [1, 128], strides = [1, 1]} : vector<1x384xf32> to vector<1x128xf32>
    %383 = vector.extract_strided_slice %381 {offsets = [0, 0], sizes = [1, 128], strides = [1, 1]} : vector<1x384xf32> to vector<1x128xf32>
    %384 = arith.addf %382, %383 : vector<1x128xf32>
    %385 = arith.negf %384 : vector<1x128xf32>
    %386 = math.exp %385 : vector<1x128xf32>
    %cst_126 = arith.constant 1.000000e+00 : f32
    %387 = vector.broadcast %cst_126 : f32 to vector<1x128xf32>
    %388 = arith.addf %387, %386 : vector<1x128xf32>
    %389 = arith.divf %387, %388 : vector<1x128xf32>
    %390 = vector.extract_strided_slice %378 {offsets = [0, 128], sizes = [1, 128], strides = [1, 1]} : vector<1x384xf32> to vector<1x128xf32>
    %391 = vector.extract_strided_slice %381 {offsets = [0, 128], sizes = [1, 128], strides = [1, 1]} : vector<1x384xf32> to vector<1x128xf32>
    %392 = arith.addf %390, %391 : vector<1x128xf32>
    %393 = arith.negf %392 : vector<1x128xf32>
    %394 = math.exp %393 : vector<1x128xf32>
    %cst_127 = arith.constant 1.000000e+00 : f32
    %395 = vector.broadcast %cst_127 : f32 to vector<1x128xf32>
    %396 = arith.addf %395, %394 : vector<1x128xf32>
    %397 = arith.divf %395, %396 : vector<1x128xf32>
    %398 = vector.extract_strided_slice %378 {offsets = [0, 256], sizes = [1, 128], strides = [1, 1]} : vector<1x384xf32> to vector<1x128xf32>
    %399 = vector.extract_strided_slice %381 {offsets = [0, 256], sizes = [1, 128], strides = [1, 1]} : vector<1x384xf32> to vector<1x128xf32>
    %400 = arith.mulf %389, %399 : vector<1x128xf32>
    %401 = arith.addf %398, %400 : vector<1x128xf32>
    %402 = math.tanh %401 : vector<1x128xf32>
    %cst_128 = arith.constant 1.000000e+00 : f32
    %403 = vector.broadcast %cst_128 : f32 to vector<1x128xf32>
    %404 = arith.subf %403, %397 : vector<1x128xf32>
    %405 = arith.mulf %404, %402 : vector<1x128xf32>
    %406 = arith.mulf %397, %343 : vector<1x128xf32>
    %407 = arith.addf %405, %406 : vector<1x128xf32>
    %408 = arith.truncf %407 : vector<1x128xf32> to vector<1x128xbf16>
    %cst_129 = arith.constant dense<0.000000e+00> : vector<1x256xf32>
    %409 = tpu.matmul %408, %12, %cst_129 {dimension_numbers = #tpu.dot_dimension_numbers<[1], [0], [0], [1], [0, 0, 1, 1], [], []>} : vector<1x128xbf16>, vector<128x256xbf16>, vector<1x256xf32> -> vector<1x256xf32>
    %410 = arith.addf %409, %13 : vector<1x256xf32>
    %cst_130 = arith.constant dense<0xFF800000> : vector<1xf32>
    %411 = vector.multi_reduction <maximumf>, %410, %cst_130 [1] : vector<1x256xf32> to vector<1xf32>
    %412 = vector.shape_cast %411 : vector<1xf32> to vector<1x1xf32>
    %413 = vector.broadcast %412 : vector<1x1xf32> to vector<1x256xf32>
    %414 = arith.subf %410, %413 : vector<1x256xf32>
    %415 = math.exp %414 : vector<1x256xf32>
    %cst_131 = arith.constant dense<0.000000e+00> : vector<1xf32>
    %416 = vector.multi_reduction <add>, %415, %cst_131 [1] : vector<1x256xf32> to vector<1xf32>
    %417 = vector.shape_cast %416 : vector<1xf32> to vector<1x1xf32>
    %418 = math.log %417 : vector<1x1xf32>
    %419 = vector.broadcast %418 : vector<1x1xf32> to vector<1x256xf32>
    %420 = arith.subf %414, %419 : vector<1x256xf32>
    %c4_132 = arith.constant 4 : index
    %c0_133 = arith.constant 0 : index
    %c0_134 = arith.constant 0 : index
    %421 = vector.load %arg16[%c4_132, %c0_133, %c0_134] : memref<8x1x256xf32, #tpu.memory_space<vmem>>, vector<1x1x256xf32>
    %422 = vector.shape_cast %421 : vector<1x1x256xf32> to vector<1x256xf32>
    %423 = vector.shape_cast %420 : vector<1x256xf32> to vector<1x1x256xf32>
    tpu.vector_store %arg16[%c4_132, %c0_133, %c0_134], %423 {strides = array<i32>} : memref<8x1x256xf32, #tpu.memory_space<vmem>>, vector<1x1x256xf32>,
    %424 = arith.cmpi slt, %345, %0 : i32
    %425 = arith.select %424, %407, %343 : vector<1x128xf32>
    %c8_i32_135 = arith.constant 8 : i32
    %426 = arith.muli %arg0, %c8_i32_135 : i32
    %c5_i32 = arith.constant 5 : i32
    %427 = arith.addi %426, %c5_i32 : i32
    %428 = arith.index_cast %427 : i32 to index
    %429 = memref.load %arg2[%428] : memref<16xi32, #tpu.memory_space<smem>>
    %430 = arith.index_cast %429 : i32 to index
    %c0_136 = arith.constant 0 : index
    %c0_137 = arith.constant 0 : index
    %431 = vector.load %arg3[%430, %c0_136, %c0_137] : memref<256x1x128xbf16, #tpu.memory_space<vmem>>, vector<1x1x128xbf16>
    %432 = vector.shape_cast %431 : vector<1x1x128xbf16> to vector<1x128xbf16>
    %433 = arith.extf %432 : vector<1x128xbf16> to vector<1x128xf32>
    %434 = tpu.concatenate %433, %425 in 1 : vector<1x128xf32>, vector<1x128xf32> -> vector<1x256xf32>
    %435 = arith.truncf %434 : vector<1x256xf32> to vector<1x256xbf16>
    %cst_138 = arith.constant dense<0.000000e+00> : vector<1x256xf32>
    %436 = tpu.matmul %435, %4, %cst_138 {dimension_numbers = #tpu.dot_dimension_numbers<[1], [0], [0], [1], [0, 0, 1, 1], [], []>} : vector<1x256xbf16>, vector<256x256xbf16>, vector<1x256xf32> -> vector<1x256xf32>
    %437 = arith.addf %436, %5 : vector<1x256xf32>
    %cst_139 = arith.constant dense<0xFF800000> : vector<1xf32>
    %438 = vector.multi_reduction <maximumf>, %437, %cst_139 [1] : vector<1x256xf32> to vector<1xf32>
    %439 = vector.shape_cast %438 : vector<1xf32> to vector<1x1xf32>
    %440 = vector.broadcast %439 : vector<1x1xf32> to vector<1x256xf32>
    %441 = arith.subf %437, %440 : vector<1x256xf32>
    %442 = math.exp %441 : vector<1x256xf32>
    %cst_140 = arith.constant dense<0.000000e+00> : vector<1xf32>
    %443 = vector.multi_reduction <add>, %442, %cst_140 [1] : vector<1x256xf32> to vector<1xf32>
    %444 = vector.shape_cast %443 : vector<1xf32> to vector<1x1xf32>
    %445 = vector.broadcast %444 : vector<1x1xf32> to vector<1x256xf32>
    %446 = arith.divf %442, %445 : vector<1x256xf32>
    %c5 = arith.constant 5 : index
    %c0_141 = arith.constant 0 : index
    %c0_142 = arith.constant 0 : index
    %447 = vector.load %arg17[%c5, %c0_141, %c0_142] : memref<8x1x256xf32, #tpu.memory_space<vmem>>, vector<1x1x256xf32>
    %448 = vector.shape_cast %447 : vector<1x1x256xf32> to vector<1x256xf32>
    %449 = vector.shape_cast %446 : vector<1x256xf32> to vector<1x1x256xf32>
    tpu.vector_store %arg17[%c5, %c0_141, %c0_142], %449 {strides = array<i32>} : memref<8x1x256xf32, #tpu.memory_space<vmem>>, vector<1x1x256xf32>,
    %450 = arith.truncf %446 : vector<1x256xf32> to vector<1x256xbf16>
    %cst_143 = arith.constant dense<0.000000e+00> : vector<1x128xf32>
    %451 = tpu.matmul %450, %14, %cst_143 {dimension_numbers = #tpu.dot_dimension_numbers<[1], [0], [0], [1], [0, 0, 1, 1], [], []>} : vector<1x256xbf16>, vector<256x128xbf16>, vector<1x128xf32> -> vector<1x128xf32>
    %452 = tpu.concatenate %433, %451 in 1 : vector<1x128xf32>, vector<1x128xf32> -> vector<1x256xf32>
    %453 = arith.truncf %452 : vector<1x256xf32> to vector<1x256xbf16>
    %cst_144 = arith.constant dense<0.000000e+00> : vector<1x128xf32>
    %454 = tpu.matmul %453, %6, %cst_144 {dimension_numbers = #tpu.dot_dimension_numbers<[1], [0], [0], [1], [0, 0, 1, 1], [], []>} : vector<1x256xbf16>, vector<256x128xbf16>, vector<1x128xf32> -> vector<1x128xf32>
    %455 = arith.addf %454, %7 : vector<1x128xf32>
    %cst_145 = arith.constant 0.000000e+00 : f32
    %456 = vector.broadcast %cst_145 : f32 to vector<1x128xf32>
    %457 = arith.maximumf %455, %456 : vector<1x128xf32>
    %458 = arith.truncf %457 : vector<1x128xf32> to vector<1x128xbf16>
    %cst_146 = arith.constant dense<0.000000e+00> : vector<1x384xf32>
    %459 = tpu.matmul %458, %8, %cst_146 {dimension_numbers = #tpu.dot_dimension_numbers<[1], [0], [0], [1], [0, 0, 1, 1], [], []>} : vector<1x128xbf16>, vector<128x384xbf16>, vector<1x384xf32> -> vector<1x384xf32>
    %460 = arith.addf %459, %10 : vector<1x384xf32>
    %461 = arith.truncf %425 : vector<1x128xf32> to vector<1x128xbf16>
    %cst_147 = arith.constant dense<0.000000e+00> : vector<1x384xf32>
    %462 = tpu.matmul %461, %9, %cst_147 {dimension_numbers = #tpu.dot_dimension_numbers<[1], [0], [0], [1], [0, 0, 1, 1], [], []>} : vector<1x128xbf16>, vector<128x384xbf16>, vector<1x384xf32> -> vector<1x384xf32>
    %463 = arith.addf %462, %11 : vector<1x384xf32>
    %464 = vector.extract_strided_slice %460 {offsets = [0, 0], sizes = [1, 128], strides = [1, 1]} : vector<1x384xf32> to vector<1x128xf32>
    %465 = vector.extract_strided_slice %463 {offsets = [0, 0], sizes = [1, 128], strides = [1, 1]} : vector<1x384xf32> to vector<1x128xf32>
    %466 = arith.addf %464, %465 : vector<1x128xf32>
    %467 = arith.negf %466 : vector<1x128xf32>
    %468 = math.exp %467 : vector<1x128xf32>
    %cst_148 = arith.constant 1.000000e+00 : f32
    %469 = vector.broadcast %cst_148 : f32 to vector<1x128xf32>
    %470 = arith.addf %469, %468 : vector<1x128xf32>
    %471 = arith.divf %469, %470 : vector<1x128xf32>
    %472 = vector.extract_strided_slice %460 {offsets = [0, 128], sizes = [1, 128], strides = [1, 1]} : vector<1x384xf32> to vector<1x128xf32>
    %473 = vector.extract_strided_slice %463 {offsets = [0, 128], sizes = [1, 128], strides = [1, 1]} : vector<1x384xf32> to vector<1x128xf32>
    %474 = arith.addf %472, %473 : vector<1x128xf32>
    %475 = arith.negf %474 : vector<1x128xf32>
    %476 = math.exp %475 : vector<1x128xf32>
    %cst_149 = arith.constant 1.000000e+00 : f32
    %477 = vector.broadcast %cst_149 : f32 to vector<1x128xf32>
    %478 = arith.addf %477, %476 : vector<1x128xf32>
    %479 = arith.divf %477, %478 : vector<1x128xf32>
    %480 = vector.extract_strided_slice %460 {offsets = [0, 256], sizes = [1, 128], strides = [1, 1]} : vector<1x384xf32> to vector<1x128xf32>
    %481 = vector.extract_strided_slice %463 {offsets = [0, 256], sizes = [1, 128], strides = [1, 1]} : vector<1x384xf32> to vector<1x128xf32>
    %482 = arith.mulf %471, %481 : vector<1x128xf32>
    %483 = arith.addf %480, %482 : vector<1x128xf32>
    %484 = math.tanh %483 : vector<1x128xf32>
    %cst_150 = arith.constant 1.000000e+00 : f32
    %485 = vector.broadcast %cst_150 : f32 to vector<1x128xf32>
    %486 = arith.subf %485, %479 : vector<1x128xf32>
    %487 = arith.mulf %486, %484 : vector<1x128xf32>
    %488 = arith.mulf %479, %425 : vector<1x128xf32>
    %489 = arith.addf %487, %488 : vector<1x128xf32>
    %490 = arith.truncf %489 : vector<1x128xf32> to vector<1x128xbf16>
    %cst_151 = arith.constant dense<0.000000e+00> : vector<1x256xf32>
    %491 = tpu.matmul %490, %12, %cst_151 {dimension_numbers = #tpu.dot_dimension_numbers<[1], [0], [0], [1], [0, 0, 1, 1], [], []>} : vector<1x128xbf16>, vector<128x256xbf16>, vector<1x256xf32> -> vector<1x256xf32>
    %492 = arith.addf %491, %13 : vector<1x256xf32>
    %cst_152 = arith.constant dense<0xFF800000> : vector<1xf32>
    %493 = vector.multi_reduction <maximumf>, %492, %cst_152 [1] : vector<1x256xf32> to vector<1xf32>
    %494 = vector.shape_cast %493 : vector<1xf32> to vector<1x1xf32>
    %495 = vector.broadcast %494 : vector<1x1xf32> to vector<1x256xf32>
    %496 = arith.subf %492, %495 : vector<1x256xf32>
    %497 = math.exp %496 : vector<1x256xf32>
    %cst_153 = arith.constant dense<0.000000e+00> : vector<1xf32>
    %498 = vector.multi_reduction <add>, %497, %cst_153 [1] : vector<1x256xf32> to vector<1xf32>
    %499 = vector.shape_cast %498 : vector<1xf32> to vector<1x1xf32>
    %500 = math.log %499 : vector<1x1xf32>
    %501 = vector.broadcast %500 : vector<1x1xf32> to vector<1x256xf32>
    %502 = arith.subf %496, %501 : vector<1x256xf32>
    %c5_154 = arith.constant 5 : index
    %c0_155 = arith.constant 0 : index
    %c0_156 = arith.constant 0 : index
    %503 = vector.load %arg16[%c5_154, %c0_155, %c0_156] : memref<8x1x256xf32, #tpu.memory_space<vmem>>, vector<1x1x256xf32>
    %504 = vector.shape_cast %503 : vector<1x1x256xf32> to vector<1x256xf32>
    %505 = vector.shape_cast %502 : vector<1x256xf32> to vector<1x1x256xf32>
    tpu.vector_store %arg16[%c5_154, %c0_155, %c0_156], %505 {strides = array<i32>} : memref<8x1x256xf32, #tpu.memory_space<vmem>>, vector<1x1x256xf32>,
    %506 = arith.cmpi slt, %427, %0 : i32
    %507 = arith.select %506, %489, %425 : vector<1x128xf32>
    %c8_i32_157 = arith.constant 8 : i32
    %508 = arith.muli %arg0, %c8_i32_157 : i32
    %c6_i32 = arith.constant 6 : i32
    %509 = arith.addi %508, %c6_i32 : i32
    %510 = arith.index_cast %509 : i32 to index
    %511 = memref.load %arg2[%510] : memref<16xi32, #tpu.memory_space<smem>>
    %512 = arith.index_cast %511 : i32 to index
    %c0_158 = arith.constant 0 : index
    %c0_159 = arith.constant 0 : index
    %513 = vector.load %arg3[%512, %c0_158, %c0_159] : memref<256x1x128xbf16, #tpu.memory_space<vmem>>, vector<1x1x128xbf16>
    %514 = vector.shape_cast %513 : vector<1x1x128xbf16> to vector<1x128xbf16>
    %515 = arith.extf %514 : vector<1x128xbf16> to vector<1x128xf32>
    %516 = tpu.concatenate %515, %507 in 1 : vector<1x128xf32>, vector<1x128xf32> -> vector<1x256xf32>
    %517 = arith.truncf %516 : vector<1x256xf32> to vector<1x256xbf16>
    %cst_160 = arith.constant dense<0.000000e+00> : vector<1x256xf32>
    %518 = tpu.matmul %517, %4, %cst_160 {dimension_numbers = #tpu.dot_dimension_numbers<[1], [0], [0], [1], [0, 0, 1, 1], [], []>} : vector<1x256xbf16>, vector<256x256xbf16>, vector<1x256xf32> -> vector<1x256xf32>
    %519 = arith.addf %518, %5 : vector<1x256xf32>
    %cst_161 = arith.constant dense<0xFF800000> : vector<1xf32>
    %520 = vector.multi_reduction <maximumf>, %519, %cst_161 [1] : vector<1x256xf32> to vector<1xf32>
    %521 = vector.shape_cast %520 : vector<1xf32> to vector<1x1xf32>
    %522 = vector.broadcast %521 : vector<1x1xf32> to vector<1x256xf32>
    %523 = arith.subf %519, %522 : vector<1x256xf32>
    %524 = math.exp %523 : vector<1x256xf32>
    %cst_162 = arith.constant dense<0.000000e+00> : vector<1xf32>
    %525 = vector.multi_reduction <add>, %524, %cst_162 [1] : vector<1x256xf32> to vector<1xf32>
    %526 = vector.shape_cast %525 : vector<1xf32> to vector<1x1xf32>
    %527 = vector.broadcast %526 : vector<1x1xf32> to vector<1x256xf32>
    %528 = arith.divf %524, %527 : vector<1x256xf32>
    %c6 = arith.constant 6 : index
    %c0_163 = arith.constant 0 : index
    %c0_164 = arith.constant 0 : index
    %529 = vector.load %arg17[%c6, %c0_163, %c0_164] : memref<8x1x256xf32, #tpu.memory_space<vmem>>, vector<1x1x256xf32>
    %530 = vector.shape_cast %529 : vector<1x1x256xf32> to vector<1x256xf32>
    %531 = vector.shape_cast %528 : vector<1x256xf32> to vector<1x1x256xf32>
    tpu.vector_store %arg17[%c6, %c0_163, %c0_164], %531 {strides = array<i32>} : memref<8x1x256xf32, #tpu.memory_space<vmem>>, vector<1x1x256xf32>,
    %532 = arith.truncf %528 : vector<1x256xf32> to vector<1x256xbf16>
    %cst_165 = arith.constant dense<0.000000e+00> : vector<1x128xf32>
    %533 = tpu.matmul %532, %14, %cst_165 {dimension_numbers = #tpu.dot_dimension_numbers<[1], [0], [0], [1], [0, 0, 1, 1], [], []>} : vector<1x256xbf16>, vector<256x128xbf16>, vector<1x128xf32> -> vector<1x128xf32>
    %534 = tpu.concatenate %515, %533 in 1 : vector<1x128xf32>, vector<1x128xf32> -> vector<1x256xf32>
    %535 = arith.truncf %534 : vector<1x256xf32> to vector<1x256xbf16>
    %cst_166 = arith.constant dense<0.000000e+00> : vector<1x128xf32>
    %536 = tpu.matmul %535, %6, %cst_166 {dimension_numbers = #tpu.dot_dimension_numbers<[1], [0], [0], [1], [0, 0, 1, 1], [], []>} : vector<1x256xbf16>, vector<256x128xbf16>, vector<1x128xf32> -> vector<1x128xf32>
    %537 = arith.addf %536, %7 : vector<1x128xf32>
    %cst_167 = arith.constant 0.000000e+00 : f32
    %538 = vector.broadcast %cst_167 : f32 to vector<1x128xf32>
    %539 = arith.maximumf %537, %538 : vector<1x128xf32>
    %540 = arith.truncf %539 : vector<1x128xf32> to vector<1x128xbf16>
    %cst_168 = arith.constant dense<0.000000e+00> : vector<1x384xf32>
    %541 = tpu.matmul %540, %8, %cst_168 {dimension_numbers = #tpu.dot_dimension_numbers<[1], [0], [0], [1], [0, 0, 1, 1], [], []>} : vector<1x128xbf16>, vector<128x384xbf16>, vector<1x384xf32> -> vector<1x384xf32>
    %542 = arith.addf %541, %10 : vector<1x384xf32>
    %543 = arith.truncf %507 : vector<1x128xf32> to vector<1x128xbf16>
    %cst_169 = arith.constant dense<0.000000e+00> : vector<1x384xf32>
    %544 = tpu.matmul %543, %9, %cst_169 {dimension_numbers = #tpu.dot_dimension_numbers<[1], [0], [0], [1], [0, 0, 1, 1], [], []>} : vector<1x128xbf16>, vector<128x384xbf16>, vector<1x384xf32> -> vector<1x384xf32>
    %545 = arith.addf %544, %11 : vector<1x384xf32>
    %546 = vector.extract_strided_slice %542 {offsets = [0, 0], sizes = [1, 128], strides = [1, 1]} : vector<1x384xf32> to vector<1x128xf32>
    %547 = vector.extract_strided_slice %545 {offsets = [0, 0], sizes = [1, 128], strides = [1, 1]} : vector<1x384xf32> to vector<1x128xf32>
    %548 = arith.addf %546, %547 : vector<1x128xf32>
    %549 = arith.negf %548 : vector<1x128xf32>
    %550 = math.exp %549 : vector<1x128xf32>
    %cst_170 = arith.constant 1.000000e+00 : f32
    %551 = vector.broadcast %cst_170 : f32 to vector<1x128xf32>
    %552 = arith.addf %551, %550 : vector<1x128xf32>
    %553 = arith.divf %551, %552 : vector<1x128xf32>
    %554 = vector.extract_strided_slice %542 {offsets = [0, 128], sizes = [1, 128], strides = [1, 1]} : vector<1x384xf32> to vector<1x128xf32>
    %555 = vector.extract_strided_slice %545 {offsets = [0, 128], sizes = [1, 128], strides = [1, 1]} : vector<1x384xf32> to vector<1x128xf32>
    %556 = arith.addf %554, %555 : vector<1x128xf32>
    %557 = arith.negf %556 : vector<1x128xf32>
    %558 = math.exp %557 : vector<1x128xf32>
    %cst_171 = arith.constant 1.000000e+00 : f32
    %559 = vector.broadcast %cst_171 : f32 to vector<1x128xf32>
    %560 = arith.addf %559, %558 : vector<1x128xf32>
    %561 = arith.divf %559, %560 : vector<1x128xf32>
    %562 = vector.extract_strided_slice %542 {offsets = [0, 256], sizes = [1, 128], strides = [1, 1]} : vector<1x384xf32> to vector<1x128xf32>
    %563 = vector.extract_strided_slice %545 {offsets = [0, 256], sizes = [1, 128], strides = [1, 1]} : vector<1x384xf32> to vector<1x128xf32>
    %564 = arith.mulf %553, %563 : vector<1x128xf32>
    %565 = arith.addf %562, %564 : vector<1x128xf32>
    %566 = math.tanh %565 : vector<1x128xf32>
    %cst_172 = arith.constant 1.000000e+00 : f32
    %567 = vector.broadcast %cst_172 : f32 to vector<1x128xf32>
    %568 = arith.subf %567, %561 : vector<1x128xf32>
    %569 = arith.mulf %568, %566 : vector<1x128xf32>
    %570 = arith.mulf %561, %507 : vector<1x128xf32>
    %571 = arith.addf %569, %570 : vector<1x128xf32>
    %572 = arith.truncf %571 : vector<1x128xf32> to vector<1x128xbf16>
    %cst_173 = arith.constant dense<0.000000e+00> : vector<1x256xf32>
    %573 = tpu.matmul %572, %12, %cst_173 {dimension_numbers = #tpu.dot_dimension_numbers<[1], [0], [0], [1], [0, 0, 1, 1], [], []>} : vector<1x128xbf16>, vector<128x256xbf16>, vector<1x256xf32> -> vector<1x256xf32>
    %574 = arith.addf %573, %13 : vector<1x256xf32>
    %cst_174 = arith.constant dense<0xFF800000> : vector<1xf32>
    %575 = vector.multi_reduction <maximumf>, %574, %cst_174 [1] : vector<1x256xf32> to vector<1xf32>
    %576 = vector.shape_cast %575 : vector<1xf32> to vector<1x1xf32>
    %577 = vector.broadcast %576 : vector<1x1xf32> to vector<1x256xf32>
    %578 = arith.subf %574, %577 : vector<1x256xf32>
    %579 = math.exp %578 : vector<1x256xf32>
    %cst_175 = arith.constant dense<0.000000e+00> : vector<1xf32>
    %580 = vector.multi_reduction <add>, %579, %cst_175 [1] : vector<1x256xf32> to vector<1xf32>
    %581 = vector.shape_cast %580 : vector<1xf32> to vector<1x1xf32>
    %582 = math.log %581 : vector<1x1xf32>
    %583 = vector.broadcast %582 : vector<1x1xf32> to vector<1x256xf32>
    %584 = arith.subf %578, %583 : vector<1x256xf32>
    %c6_176 = arith.constant 6 : index
    %c0_177 = arith.constant 0 : index
    %c0_178 = arith.constant 0 : index
    %585 = vector.load %arg16[%c6_176, %c0_177, %c0_178] : memref<8x1x256xf32, #tpu.memory_space<vmem>>, vector<1x1x256xf32>
    %586 = vector.shape_cast %585 : vector<1x1x256xf32> to vector<1x256xf32>
    %587 = vector.shape_cast %584 : vector<1x256xf32> to vector<1x1x256xf32>
    tpu.vector_store %arg16[%c6_176, %c0_177, %c0_178], %587 {strides = array<i32>} : memref<8x1x256xf32, #tpu.memory_space<vmem>>, vector<1x1x256xf32>,
    %588 = arith.cmpi slt, %509, %0 : i32
    %589 = arith.select %588, %571, %507 : vector<1x128xf32>
    %c8_i32_179 = arith.constant 8 : i32
    %590 = arith.muli %arg0, %c8_i32_179 : i32
    %c7_i32 = arith.constant 7 : i32
    %591 = arith.addi %590, %c7_i32 : i32
    %592 = arith.index_cast %591 : i32 to index
    %593 = memref.load %arg2[%592] : memref<16xi32, #tpu.memory_space<smem>>
    %594 = arith.index_cast %593 : i32 to index
    %c0_180 = arith.constant 0 : index
    %c0_181 = arith.constant 0 : index
    %595 = vector.load %arg3[%594, %c0_180, %c0_181] : memref<256x1x128xbf16, #tpu.memory_space<vmem>>, vector<1x1x128xbf16>
    %596 = vector.shape_cast %595 : vector<1x1x128xbf16> to vector<1x128xbf16>
    %597 = arith.extf %596 : vector<1x128xbf16> to vector<1x128xf32>
    %598 = tpu.concatenate %597, %589 in 1 : vector<1x128xf32>, vector<1x128xf32> -> vector<1x256xf32>
    %599 = arith.truncf %598 : vector<1x256xf32> to vector<1x256xbf16>
    %cst_182 = arith.constant dense<0.000000e+00> : vector<1x256xf32>
    %600 = tpu.matmul %599, %4, %cst_182 {dimension_numbers = #tpu.dot_dimension_numbers<[1], [0], [0], [1], [0, 0, 1, 1], [], []>} : vector<1x256xbf16>, vector<256x256xbf16>, vector<1x256xf32> -> vector<1x256xf32>
    %601 = arith.addf %600, %5 : vector<1x256xf32>
    %cst_183 = arith.constant dense<0xFF800000> : vector<1xf32>
    %602 = vector.multi_reduction <maximumf>, %601, %cst_183 [1] : vector<1x256xf32> to vector<1xf32>
    %603 = vector.shape_cast %602 : vector<1xf32> to vector<1x1xf32>
    %604 = vector.broadcast %603 : vector<1x1xf32> to vector<1x256xf32>
    %605 = arith.subf %601, %604 : vector<1x256xf32>
    %606 = math.exp %605 : vector<1x256xf32>
    %cst_184 = arith.constant dense<0.000000e+00> : vector<1xf32>
    %607 = vector.multi_reduction <add>, %606, %cst_184 [1] : vector<1x256xf32> to vector<1xf32>
    %608 = vector.shape_cast %607 : vector<1xf32> to vector<1x1xf32>
    %609 = vector.broadcast %608 : vector<1x1xf32> to vector<1x256xf32>
    %610 = arith.divf %606, %609 : vector<1x256xf32>
    %c7 = arith.constant 7 : index
    %c0_185 = arith.constant 0 : index
    %c0_186 = arith.constant 0 : index
    %611 = vector.load %arg17[%c7, %c0_185, %c0_186] : memref<8x1x256xf32, #tpu.memory_space<vmem>>, vector<1x1x256xf32>
    %612 = vector.shape_cast %611 : vector<1x1x256xf32> to vector<1x256xf32>
    %613 = vector.shape_cast %610 : vector<1x256xf32> to vector<1x1x256xf32>
    tpu.vector_store %arg17[%c7, %c0_185, %c0_186], %613 {strides = array<i32>} : memref<8x1x256xf32, #tpu.memory_space<vmem>>, vector<1x1x256xf32>,
    %614 = arith.truncf %610 : vector<1x256xf32> to vector<1x256xbf16>
    %cst_187 = arith.constant dense<0.000000e+00> : vector<1x128xf32>
    %615 = tpu.matmul %614, %14, %cst_187 {dimension_numbers = #tpu.dot_dimension_numbers<[1], [0], [0], [1], [0, 0, 1, 1], [], []>} : vector<1x256xbf16>, vector<256x128xbf16>, vector<1x128xf32> -> vector<1x128xf32>
    %616 = tpu.concatenate %597, %615 in 1 : vector<1x128xf32>, vector<1x128xf32> -> vector<1x256xf32>
    %617 = arith.truncf %616 : vector<1x256xf32> to vector<1x256xbf16>
    %cst_188 = arith.constant dense<0.000000e+00> : vector<1x128xf32>
    %618 = tpu.matmul %617, %6, %cst_188 {dimension_numbers = #tpu.dot_dimension_numbers<[1], [0], [0], [1], [0, 0, 1, 1], [], []>} : vector<1x256xbf16>, vector<256x128xbf16>, vector<1x128xf32> -> vector<1x128xf32>
    %619 = arith.addf %618, %7 : vector<1x128xf32>
    %cst_189 = arith.constant 0.000000e+00 : f32
    %620 = vector.broadcast %cst_189 : f32 to vector<1x128xf32>
    %621 = arith.maximumf %619, %620 : vector<1x128xf32>
    %622 = arith.truncf %621 : vector<1x128xf32> to vector<1x128xbf16>
    %cst_190 = arith.constant dense<0.000000e+00> : vector<1x384xf32>
    %623 = tpu.matmul %622, %8, %cst_190 {dimension_numbers = #tpu.dot_dimension_numbers<[1], [0], [0], [1], [0, 0, 1, 1], [], []>} : vector<1x128xbf16>, vector<128x384xbf16>, vector<1x384xf32> -> vector<1x384xf32>
    %624 = arith.addf %623, %10 : vector<1x384xf32>
    %625 = arith.truncf %589 : vector<1x128xf32> to vector<1x128xbf16>
    %cst_191 = arith.constant dense<0.000000e+00> : vector<1x384xf32>
    %626 = tpu.matmul %625, %9, %cst_191 {dimension_numbers = #tpu.dot_dimension_numbers<[1], [0], [0], [1], [0, 0, 1, 1], [], []>} : vector<1x128xbf16>, vector<128x384xbf16>, vector<1x384xf32> -> vector<1x384xf32>
    %627 = arith.addf %626, %11 : vector<1x384xf32>
    %628 = vector.extract_strided_slice %624 {offsets = [0, 0], sizes = [1, 128], strides = [1, 1]} : vector<1x384xf32> to vector<1x128xf32>
    %629 = vector.extract_strided_slice %627 {offsets = [0, 0], sizes = [1, 128], strides = [1, 1]} : vector<1x384xf32> to vector<1x128xf32>
    %630 = arith.addf %628, %629 : vector<1x128xf32>
    %631 = arith.negf %630 : vector<1x128xf32>
    %632 = math.exp %631 : vector<1x128xf32>
    %cst_192 = arith.constant 1.000000e+00 : f32
    %633 = vector.broadcast %cst_192 : f32 to vector<1x128xf32>
    %634 = arith.addf %633, %632 : vector<1x128xf32>
    %635 = arith.divf %633, %634 : vector<1x128xf32>
    %636 = vector.extract_strided_slice %624 {offsets = [0, 128], sizes = [1, 128], strides = [1, 1]} : vector<1x384xf32> to vector<1x128xf32>
    %637 = vector.extract_strided_slice %627 {offsets = [0, 128], sizes = [1, 128], strides = [1, 1]} : vector<1x384xf32> to vector<1x128xf32>
    %638 = arith.addf %636, %637 : vector<1x128xf32>
    %639 = arith.negf %638 : vector<1x128xf32>
    %640 = math.exp %639 : vector<1x128xf32>
    %cst_193 = arith.constant 1.000000e+00 : f32
    %641 = vector.broadcast %cst_193 : f32 to vector<1x128xf32>
    %642 = arith.addf %641, %640 : vector<1x128xf32>
    %643 = arith.divf %641, %642 : vector<1x128xf32>
    %644 = vector.extract_strided_slice %624 {offsets = [0, 256], sizes = [1, 128], strides = [1, 1]} : vector<1x384xf32> to vector<1x128xf32>
    %645 = vector.extract_strided_slice %627 {offsets = [0, 256], sizes = [1, 128], strides = [1, 1]} : vector<1x384xf32> to vector<1x128xf32>
    %646 = arith.mulf %635, %645 : vector<1x128xf32>
    %647 = arith.addf %644, %646 : vector<1x128xf32>
    %648 = math.tanh %647 : vector<1x128xf32>
    %cst_194 = arith.constant 1.000000e+00 : f32
    %649 = vector.broadcast %cst_194 : f32 to vector<1x128xf32>
    %650 = arith.subf %649, %643 : vector<1x128xf32>
    %651 = arith.mulf %650, %648 : vector<1x128xf32>
    %652 = arith.mulf %643, %589 : vector<1x128xf32>
    %653 = arith.addf %651, %652 : vector<1x128xf32>
    %654 = arith.truncf %653 : vector<1x128xf32> to vector<1x128xbf16>
    %cst_195 = arith.constant dense<0.000000e+00> : vector<1x256xf32>
    %655 = tpu.matmul %654, %12, %cst_195 {dimension_numbers = #tpu.dot_dimension_numbers<[1], [0], [0], [1], [0, 0, 1, 1], [], []>} : vector<1x128xbf16>, vector<128x256xbf16>, vector<1x256xf32> -> vector<1x256xf32>
    %656 = arith.addf %655, %13 : vector<1x256xf32>
    %cst_196 = arith.constant dense<0xFF800000> : vector<1xf32>
    %657 = vector.multi_reduction <maximumf>, %656, %cst_196 [1] : vector<1x256xf32> to vector<1xf32>
    %658 = vector.shape_cast %657 : vector<1xf32> to vector<1x1xf32>
    %659 = vector.broadcast %658 : vector<1x1xf32> to vector<1x256xf32>
    %660 = arith.subf %656, %659 : vector<1x256xf32>
    %661 = math.exp %660 : vector<1x256xf32>
    %cst_197 = arith.constant dense<0.000000e+00> : vector<1xf32>
    %662 = vector.multi_reduction <add>, %661, %cst_197 [1] : vector<1x256xf32> to vector<1xf32>
    %663 = vector.shape_cast %662 : vector<1xf32> to vector<1x1xf32>
    %664 = math.log %663 : vector<1x1xf32>
    %665 = vector.broadcast %664 : vector<1x1xf32> to vector<1x256xf32>
    %666 = arith.subf %660, %665 : vector<1x256xf32>
    %c7_198 = arith.constant 7 : index
    %c0_199 = arith.constant 0 : index
    %c0_200 = arith.constant 0 : index
    %667 = vector.load %arg16[%c7_198, %c0_199, %c0_200] : memref<8x1x256xf32, #tpu.memory_space<vmem>>, vector<1x1x256xf32>
    %668 = vector.shape_cast %667 : vector<1x1x256xf32> to vector<1x256xf32>
    %669 = vector.shape_cast %666 : vector<1x256xf32> to vector<1x1x256xf32>
    tpu.vector_store %arg16[%c7_198, %c0_199, %c0_200], %669 {strides = array<i32>} : memref<8x1x256xf32, #tpu.memory_space<vmem>>, vector<1x1x256xf32>,
    %670 = arith.cmpi slt, %591, %0 : i32
    %671 = arith.select %670, %653, %589 : vector<1x128xf32>
    %c0_201 = arith.constant 0 : index
    %c0_202 = arith.constant 0 : index
    %672 = vector.load %arg18[%c0_201, %c0_202] : memref<1x128xf32, #tpu.memory_space<vmem>>, vector<1x128xf32>
    tpu.vector_store %arg18[%c0_201, %c0_202], %671 {strides = array<i32>} : memref<1x128xf32, #tpu.memory_space<vmem>>, vector<1x128xf32>,
    return
  }
  func.func @transform_0(%arg0: i32, %arg1: memref<1xi32, #tpu.memory_space<smem>>, %arg2: memref<16xi32, #tpu.memory_space<smem>>) -> (i32, i32, i32) {
    %c0_i32 = arith.constant 0 : i32
    %c0_i32_0 = arith.constant 0 : i32
    %c0_i32_1 = arith.constant 0 : i32
    %c0_i32_2 = arith.constant 0 : i32
    return %c0_i32, %c0_i32_0, %c0_i32_1 : i32, i32, i32
  }
  func.func @transform_1(%arg0: i32, %arg1: memref<1xi32, #tpu.memory_space<smem>>, %arg2: memref<16xi32, #tpu.memory_space<smem>>) -> (i32, i32) {
    %c0_i32 = arith.constant 0 : i32
    %c0_i32_0 = arith.constant 0 : i32
    %c0_i32_1 = arith.constant 0 : i32
    return %c0_i32, %c0_i32_0 : i32, i32
  }
  func.func @transform_2(%arg0: i32, %arg1: memref<1xi32, #tpu.memory_space<smem>>, %arg2: memref<16xi32, #tpu.memory_space<smem>>) -> (i32, i32) {
    %c0_i32 = arith.constant 0 : i32
    %c0_i32_0 = arith.constant 0 : i32
    %c0_i32_1 = arith.constant 0 : i32
    return %c0_i32, %c0_i32_0 : i32, i32
  }
  func.func @transform_3(%arg0: i32, %arg1: memref<1xi32, #tpu.memory_space<smem>>, %arg2: memref<16xi32, #tpu.memory_space<smem>>) -> (i32, i32) {
    %c0_i32 = arith.constant 0 : i32
    %c0_i32_0 = arith.constant 0 : i32
    %c0_i32_1 = arith.constant 0 : i32
    return %c0_i32, %c0_i32_0 : i32, i32
  }
  func.func @transform_4(%arg0: i32, %arg1: memref<1xi32, #tpu.memory_space<smem>>, %arg2: memref<16xi32, #tpu.memory_space<smem>>) -> (i32, i32) {
    %c0_i32 = arith.constant 0 : i32
    %c0_i32_0 = arith.constant 0 : i32
    %c0_i32_1 = arith.constant 0 : i32
    return %c0_i32, %c0_i32_0 : i32, i32
  }
  func.func @transform_5(%arg0: i32, %arg1: memref<1xi32, #tpu.memory_space<smem>>, %arg2: memref<16xi32, #tpu.memory_space<smem>>) -> (i32, i32) {
    %c0_i32 = arith.constant 0 : i32
    %c0_i32_0 = arith.constant 0 : i32
    %c0_i32_1 = arith.constant 0 : i32
    return %c0_i32, %c0_i32_0 : i32, i32
  }
  func.func @transform_6(%arg0: i32, %arg1: memref<1xi32, #tpu.memory_space<smem>>, %arg2: memref<16xi32, #tpu.memory_space<smem>>) -> (i32, i32) {
    %c0_i32 = arith.constant 0 : i32
    %c0_i32_0 = arith.constant 0 : i32
    %c0_i32_1 = arith.constant 0 : i32
    return %c0_i32, %c0_i32_0 : i32, i32
  }
  func.func @transform_7(%arg0: i32, %arg1: memref<1xi32, #tpu.memory_space<smem>>, %arg2: memref<16xi32, #tpu.memory_space<smem>>) -> (i32, i32) {
    %c0_i32 = arith.constant 0 : i32
    %c0_i32_0 = arith.constant 0 : i32
    %c0_i32_1 = arith.constant 0 : i32
    return %c0_i32, %c0_i32_0 : i32, i32
  }
  func.func @transform_8(%arg0: i32, %arg1: memref<1xi32, #tpu.memory_space<smem>>, %arg2: memref<16xi32, #tpu.memory_space<smem>>) -> (i32, i32) {
    %c0_i32 = arith.constant 0 : i32
    %c0_i32_0 = arith.constant 0 : i32
    %c0_i32_1 = arith.constant 0 : i32
    return %c0_i32, %c0_i32_0 : i32, i32
  }
  func.func @transform_9(%arg0: i32, %arg1: memref<1xi32, #tpu.memory_space<smem>>, %arg2: memref<16xi32, #tpu.memory_space<smem>>) -> (i32, i32) {
    %c0_i32 = arith.constant 0 : i32
    %c0_i32_0 = arith.constant 0 : i32
    %c0_i32_1 = arith.constant 0 : i32
    return %c0_i32, %c0_i32_0 : i32, i32
  }
  func.func @transform_10(%arg0: i32, %arg1: memref<1xi32, #tpu.memory_space<smem>>, %arg2: memref<16xi32, #tpu.memory_space<smem>>) -> (i32, i32) {
    %c0_i32 = arith.constant 0 : i32
    %c0_i32_0 = arith.constant 0 : i32
    %c0_i32_1 = arith.constant 0 : i32
    return %c0_i32, %c0_i32_0 : i32, i32
  }
  func.func @transform_11(%arg0: i32, %arg1: memref<1xi32, #tpu.memory_space<smem>>, %arg2: memref<16xi32, #tpu.memory_space<smem>>) -> (i32, i32) {
    %c0_i32 = arith.constant 0 : i32
    %c0_i32_0 = arith.constant 0 : i32
    %c0_i32_1 = arith.constant 0 : i32
    return %c0_i32, %c0_i32_0 : i32, i32
  }
  func.func @transform_12(%arg0: i32, %arg1: memref<1xi32, #tpu.memory_space<smem>>, %arg2: memref<16xi32, #tpu.memory_space<smem>>) -> (i32, i32) {
    %c0_i32 = arith.constant 0 : i32
    %c0_i32_0 = arith.constant 0 : i32
    %c0_i32_1 = arith.constant 0 : i32
    return %c0_i32, %c0_i32_0 : i32, i32
  }
  func.func @transform_13(%arg0: i32, %arg1: memref<1xi32, #tpu.memory_space<smem>>, %arg2: memref<16xi32, #tpu.memory_space<smem>>) -> (i32, i32, i32) {
    %c0_i32 = arith.constant 0 : i32
    %c0_i32_0 = arith.constant 0 : i32
    %c0_i32_1 = arith.constant 0 : i32
    return %arg0, %c0_i32, %c0_i32_0 : i32, i32, i32
  }
  func.func @transform_14(%arg0: i32, %arg1: memref<1xi32, #tpu.memory_space<smem>>, %arg2: memref<16xi32, #tpu.memory_space<smem>>) -> (i32, i32, i32) {
    %c0_i32 = arith.constant 0 : i32
    %c0_i32_0 = arith.constant 0 : i32
    %c0_i32_1 = arith.constant 0 : i32
    return %arg0, %c0_i32, %c0_i32_0 : i32, i32, i32
  }
  func.func @transform_15(%arg0: i32, %arg1: memref<1xi32, #tpu.memory_space<smem>>, %arg2: memref<16xi32, #tpu.memory_space<smem>>) -> (i32, i32) {
    %c0_i32 = arith.constant 0 : i32
    %c0_i32_0 = arith.constant 0 : i32
    %c0_i32_1 = arith.constant 0 : i32
    return %c0_i32, %c0_i32_0 : i32, i32
  }
}

</mosaic_0001>

<bundles_post_ra>
// kernel: tpu_custom_call.1
= control target key start
LH: loop header
LB: loop body
LE: loop exit
PB: predicated region body
PF: predicated region fallthrough
CT: control target
= control target key end

     0   :  { %s11287_s0 = inlined_call_operand.<no memory space> [shape: s32[1], index: 0, kind: input, shape index: {}]   ;;  %s11288_s1 = inlined_call_operand.vmem [shape: s32[16], index: 1, kind: input, shape index: {}]   ;;  %s11289_s2 = inlined_call_operand.vmem [shape: bf16[256,1,128], index: 2, kind: input, shape index: {}]   ;;  %s11290_s3 = inlined_call_operand.vmem [shape: f32[1,128], index: 3, kind: input, shape index: {}]   ;;  %s11291_s4 = inlined_call_operand.vmem [shape: bf16[256,128], index: 4, kind: input, shape index: {}]   ;;  %s11292_s5 = inlined_call_operand.vmem [shape: bf16[256,256], index: 5, kind: input, shape index: {}]   ;;  %s11293_s6 = inlined_call_operand.vmem [shape: f32[1,256], index: 6, kind: input, shape index: {}]   ;;  %s11294_s7 = inlined_call_operand.hbm [shape: bf16[256,128], index: 7, kind: input, shape index: {}]   ;;  %s11295_s8 = inlined_call_operand.vmem [shape: f32[1,128], index: 8, kind: input, shape index: {}]   ;;  %s11296_s9 = inlined_call_operand.hbm [shape: bf16[128,384], index: 9, kind: input, shape index: {}]   ;;  %s11297_s10 = inlined_call_operand.hbm [shape: bf16[128,384], index: 10, kind: input, shape index: {}]   ;;  %s11298_s11 = inlined_call_operand.vmem [shape: f32[1,384], index: 11, kind: input, shape index: {}]   ;;  %s11299_s12 = inlined_call_operand.vmem [shape: f32[1,384], index: 12, kind: input, shape index: {}]   ;;  %s11300_s13 = inlined_call_operand.hbm [shape: bf16[128,256], index: 13, kind: input, shape index: {}]   ;;  %s11301_s14 = inlined_call_operand.vmem [shape: f32[1,256], index: 14, kind: input, shape index: {}]   ;;  %s11302_s15 = inlined_call_operand.hbm [shape: f32[16,1,256], index: 15, kind: output, shape index: {0}]   ;;  %s11303_s16 = inlined_call_operand.hbm [shape: f32[16,1,256], index: 16, kind: output, shape index: {1}]   ;;  %s11304_s17 = inlined_call_operand.hbm [shape: f32[1,128], index: 17, kind: output, shape index: {2}]  }
   0x1   :  { %11583 = sst [smem:[#allocation108_spill]] %s11287_s0 }
   0x2   :  { %11584 = sst [smem:[#allocation109_spill]] %s11288_s1  ;;  %s11590_s26 = sld [smem:[#allocation108_spill]] }
   0x3   :  { %11585 = sst [smem:[#allocation110_spill]] %s11296_s9 }
   0x4   :  { %11586 = sst [smem:[#allocation111_spill]] %s11298_s11  ;;  %s11591_s11 = sld [smem:[#allocation109_spill]] }
   0x5   :  { %11587 = sst [smem:[#allocation112_spill]] %s11302_s15 }
   0x6   :  { %11588 = sst [smem:[#allocation113_spill]] %s11303_s16 }
   0x7   :  { %11589 = sst [smem:[#allocation114_spill]] %s11304_s17 }
   0x8   :  { %23 = sst [smem:[#allocation3]] %s11590_s26 }
   0xa   :  { %s24_s29 = sshll.u32 %s11591_s11, 4  ;;  %s25_s29 = int_to_ptr.vmem [resolvable:$true] %s24_s29 }
   0xb   :  { %s7134_s0 = scalar_lea.vmem %s25_s29, 16  ;;  %p7139_p1 = scmp.lt.s32.totalorder %s25_s29, %s25_s29 }
   0xc   :  { %p7135_p0 = scmp.ne.s32.totalorder %s25_s29, %s7134_s0  ;;  %p7140_p2 = scmp.lt.s32.totalorder %s7134_s0, %s7134_s0 }
   0xe   :  { %p7141_p3 = por %p7140_p2, %p7139_p1 }
  0x10   :  { %p7142_p4 = pnand %p7141_p3, %p7135_p0 }
  0x12   :  { %7145 = shalt.err (!%p7142_p4)  }
  0x13   :  { %s7398_s30 = smov [#allocation4]  }
  0x14   :  { %27 = dma.vmem_to_smem %s25_s29, 16, %s7398_s30, [#allocation2] }
  0x15   :  { %7356 = dma.done.wait [#allocation2], 16 }
  0x16   :  { %7357 = vsyncadd [#allocation2], 4294967280 }
  0x17   :  { %29 = sfence }
  0x18   :  { %30 = vsyncpa [#allocation6], 0 }
  0x19   :  { %31 = vsyncpa [#allocation9], 0 }
  0x1a   :  { %32 = vsyncpa [#allocation12], 0 }
  0x1b   :  { %33 = vsyncpa [#allocation7], 0 }
  0x1c   :  { %35 = vsyncpa [#allocation7 + $0x1], 0 }
  0x1d   :  { %36 = vsyncpa [#allocation15], 0 }
  0x1e   :  { %38 = vsyncpa [#allocation15 + $0x1], 0  ;;  %s7514_s11 = smov 0   ;;  %s7516_s18 = smov 0  }
  0x1f   :  { %s7518_s19 = smov 0   ;;  %s7520_s1 = smov 0  }
  0x20 LB: > { %11592 = sst [smem:[#allocation24_spill]] %s7384_s11  ;;  %s7535_s20 = sadd.s32 4294967295, %s7396_s1   ;;  %s7396_s1 = sphi %s7520_s1, %s12153_s1   ;;  %s7392_s19 = sphi %s7518_s19, %s12155_s19   ;;  %s7388_s18 = sphi %s7516_s18, %s12157_s18   ;;  %s7384_s11 = sphi %s7514_s11, %s12156_s11  }
  0x21   : > { %11593 = sst [smem:[#allocation25_spill]] %s7392_s19  ;;  %s11305_s21 = sadd.s32 4294967294, %s7396_s1  }
  0x22   : > { %11594 = sst [smem:[#allocation26_spill]] %s7396_s1  ;;  %s7539_s22 = sadd.s32 1, %s7396_s1  }
  0x23   : > { %11595 = sst [smem:[#allocation27_spill]] %s7539_s22  ;;  %s324_s23 = sadd.s32 1, %s7392_s19 }
  0x24   : > { %s321_s24 = ssub.s32 %s7396_s1, %s7539_s22  ;;  %p334_p5 = scmp.ne.s32.totalorder %s7392_s19, %s7388_s18 }
  0x25   : > { %p322_p6 = scmp.eq.s32.totalorder %s321_s24, 0  ;;  %p11311_p7 = scmp.eq.s32.totalorder %s7535_s20, 1 }
  0x26   : > { %p340_p8 = scmp.ne.s32.totalorder %s7388_s18, %s7384_s11  ;;  %p341_p9 = scmp.eq.s32.totalorder %s11305_s21, 1 }
  0x27   : > { %s7552_s25 = scalar_select %p322_p6, %s7392_s19, %s324_s23  }
  0x28   : > { %p7556_p10 = por %p11311_p7, %p334_p5  ;;  %p7560_p11 = por %p341_p9, %p340_p8 }
  0x29   : > { %11596 = sst [smem:[#allocation28_spill]] %s7552_s25  ;;  %p5213_p12 = scmp.ge.s32.totalorder %s7396_s1, 1 }
  0x2a   : > { %s11597_s26 = scalar_select %p7556_p10, 1, 0 }
  0x2b   : > { %s11598_s27 = scalar_select %p7560_p11, 1, 0 }
  0x2c   : > { %p395_p13 = scmp.lt.s32.totalorder %s7396_s1, 3  ;;  %p11312_p1 = scmp.eq.s32.totalorder %s7535_s20, 0 }
  0x2d   : > { %11599 = sst [smem:[#allocation29_spill]] %s11598_s27  ;;  %s7399_s29 = smov [#allocation8]  }
  0x2e   : > { %p7568_p2 = pnand %p5213_p12, %p395_p13  ;;  %s438_s0 = sshll.u32 %s7399_s29, 4  ;;  %s439_s0 = int_to_ptr.vmem [resolvable:$true] %s438_s0 }
  0x2f   : > { %s7400_s23 = smov [#allocation5]   ;;  %s11602_s9 = sld [smem:[#allocation110_spill]] }
  0x30   : > { %s11600_s28 = scalar_select %p7568_p2, 1, 0 }
  0x31   : > { %p6313_p3 = pneg %p7568_p2  ;;  %s422_s24 = sshll.u32 %s7400_s23, 4  ;;  %s7580_s24 = int_to_ptr.vmem [resolvable:$true] %s422_s24 }
  0x33   : > { %p7576_p4 = pnand %p11312_p1, %p6313_p3 }
  0x35   : > { %s7146_s19 = scalar_lea.hbm %s11602_s9, 3072  ;;  %p7590_p6 = pneg %p7576_p4 }
  0x36   : > { %p7147_p5 = scmp.ne.s32.totalorder %s11602_s9, %s7146_s19  ;;  %p7153_p12 = scmp.lt.u32.totalorder %s7146_s19, %s11602_s9 }
  0x38   : > { %p7149_p8 = pnand %p7590_p6, %p7147_p5 }
  0x3a   : > { %p7150_p9 = pneg %p7149_p8 }
  0x3c   : > { %p7155_p13 = pnand %p7153_p12, %p7150_p9 }
  0x3e   : > { %7158 = shalt.err (!%p7155_p13)
}
  0x3f   : > { %s7159_s21 = scalar_lea.vmem %s439_s0, 3072  ;;  %p7167_p1 = scmp.lt.s32.totalorder %s439_s0, %s439_s0 }
  0x40   : > { %p7160_p3 = scmp.ne.s32.totalorder %s439_s0, %s7159_s21  ;;  %p7168_p11 = scmp.lt.s32.totalorder %s7159_s21, %s7159_s21 }
  0x42   : > { %p7162_p7 = pnand %p7160_p3, %p7590_p6  ;;  %p7169_p10 = por %p7168_p11, %p7167_p1 }
  0x44   : > { %p7163_p0 = pneg %p7162_p7 }
  0x46   : > { %p7170_p2 = pnand %p7169_p10, %p7163_p0 }
  0x48   : > { %7173 = shalt.err (!%p7170_p2)
}
  0x49   : > { %s11320_s22 = smov 192   ;;  %s11321_s25 = smov 12  }
  0x4a   : > { %6319 = dma.hbm_to_vmem [thread:$0]  (!%p7576_p4), %s11602_s9, 3072, %s439_s0, [#allocation9], %s11320_s22, %s11320_s22, %s11321_s25  }
  0x4b   : > { %s7174_s1 = scalar_lea.hbm %s11294_s7, 2048 }
  0x4c   : > { %p7175_p7 = scmp.ne.s32.totalorder %s11294_s7, %s7174_s1  ;;  %p7181_p0 = scmp.lt.u32.totalorder %s7174_s1, %s11294_s7 }
  0x4e   : > { %p7177_p10 = pnand %p7175_p7, %p7590_p6 }
  0x50   : > { %p7178_p11 = pneg %p7177_p10 }
  0x52   : > { %p7183_p1 = pnand %p7181_p0, %p7178_p11 }
  0x54   : > { %7186 = shalt.err (!%p7183_p1)
}
  0x55   : > { %s7187_s0 = scalar_lea.vmem %s7580_s24, 2048  ;;  %p7195_p9 = scmp.lt.s32.totalorder %s7580_s24, %s7580_s24 }
  0x56   : > { %p7188_p2 = scmp.ne.s32.totalorder %s7580_s24, %s7187_s0  ;;  %p7196_p12 = scmp.lt.s32.totalorder %s7187_s0, %s7187_s0 }
  0x58   : > { %p7190_p5 = pnand %p7188_p2, %p7590_p6  ;;  %p7197_p13 = por %p7196_p12, %p7195_p9 }
  0x5a   : > { %p7191_p8 = pneg %p7190_p5 }
  0x5c   : > { %p7198_p3 = pnand %p7197_p13, %p7191_p8 }
  0x5e   : > { %7201 = shalt.err (!%p7198_p3)
}
  0x5f   : > { %s7403_s15 = smov 64   ;;  %s7404_s16 = smov 4  }
  0x60   : > { %6316 = dma.hbm_to_vmem [thread:$0]  (!%p7576_p4), %s11294_s7, 2048, %s7580_s24, [#allocation6], %s7403_s15, %s7403_s15, %s7404_s16  }
  0x61   : > { %s7405_s11 = smov [#allocation10]   ;;  %s7406_s27 = smov [#allocation11]  }
  0x62   : > { %s451_s19 = sshll.u32 %s7405_s11, 4  ;;  %s470_s23 = sshll.u32 %s7406_s27, 4  ;;  %s452_s19 = int_to_ptr.vmem [resolvable:$true] %s451_s19  ;;  %s7632_s23 = int_to_ptr.vmem [resolvable:$true] %s470_s23 }
  0x63   : > { %s7202_s22 = scalar_lea.hbm %s11297_s10, 3072 }
  0x64   : > { %p7203_p7 = scmp.ne.s32.totalorder %s11297_s10, %s7202_s22  ;;  %p7209_p0 = scmp.lt.u32.totalorder %s7202_s22, %s11297_s10 }
  0x66   : > { %p7205_p10 = pnand %p7203_p7, %p7590_p6 }
  0x68   : > { %p7206_p11 = pneg %p7205_p10 }
  0x6a   : > { %p7211_p1 = pnand %p7209_p0, %p7206_p11 }
  0x6c   : > { %7214 = shalt.err (!%p7211_p1)
}
  0x6d   : > { %s7215_s15 = scalar_lea.vmem %s452_s19, 3072  ;;  %p7223_p9 = scmp.lt.s32.totalorder %s452_s19, %s452_s19 }
  0x6e   : > { %p7216_p2 = scmp.ne.s32.totalorder %s452_s19, %s7215_s15  ;;  %p7224_p12 = scmp.lt.s32.totalorder %s7215_s15, %s7215_s15 }
  0x70   : > { %p7218_p5 = pnand %p7216_p2, %p7590_p6  ;;  %p7225_p13 = por %p7224_p12, %p7223_p9 }
  0x72   : > { %p7219_p8 = pneg %p7218_p5 }
  0x74   : > { %p7226_p3 = pnand %p7225_p13, %p7219_p8 }
  0x76   : > { %7229 = shalt.err (!%p7226_p3)
}
  0x77   : > { %s11604_s9 = smov 12   ;;  %s11605_s25 = smov 192  }
  0x78   : > { %6322 = dma.hbm_to_vmem [thread:$0]  (!%p7576_p4), %s11297_s10, 3072, %s452_s19, [#allocation9], %s11605_s25, %s11605_s25, %s11604_s9  }
  0x79   : > { %s7230_s27 = scalar_lea.hbm %s11300_s13, 2048 }
  0x7a   : > { %p7231_p7 = scmp.ne.s32.totalorder %s11300_s13, %s7230_s27  ;;  %p7237_p0 = scmp.lt.u32.totalorder %s7230_s27, %s11300_s13 }
  0x7c   : > { %p7233_p10 = pnand %p7231_p7, %p7590_p6 }
  0x7e   : > { %p7234_p11 = pneg %p7233_p10 }
  0x80   : > { %p7239_p1 = pnand %p7237_p0, %p7234_p11 }
  0x82   : > { %7242 = shalt.err (!%p7239_p1)
}
  0x83   : > { %s7243_s19 = scalar_lea.vmem %s7632_s23, 2048  ;;  %p7251_p9 = scmp.lt.s32.totalorder %s7632_s23, %s7632_s23 }
  0x84   : > { %p7244_p2 = scmp.ne.s32.totalorder %s7632_s23, %s7243_s19  ;;  %p7252_p12 = scmp.lt.s32.totalorder %s7243_s19, %s7243_s19 }
  0x86   : > { %p7246_p5 = pnand %p7244_p2, %p7590_p6  ;;  %p7253_p13 = por %p7252_p12, %p7251_p9 }
  0x88   : > { %p7247_p8 = pneg %p7246_p5 }
  0x8a   : > { %p7254_p3 = pnand %p7253_p13, %p7247_p8 }
  0x8c   : > { %7257 = shalt.err (!%p7254_p3)
}
  0x8d   : > { %s7407_s15 = smov 128   ;;  %s7408_s9 = smov 8  }
  0x8e   : > { %6325 = dma.hbm_to_vmem [thread:$0]  (!%p7576_p4), %s11300_s13, 2048, %s7632_s23, [#allocation12], %s7407_s15, %s7407_s15, %s7408_s9  }
  0x8f   : > { %p11606_p7 = scmp.ne.s32.totalorder %s11600_s28, 0 }
  0x91   : > { %489 = sbr.rel (%p11606_p7) target bundleno = 10964 (0x2ad4), region = 72 }
  0x98   : > { %p11607_p6 = scmp.eq.s32.totalorder %s7535_s20, 0 }
  0x9a   : > { %7359 = dma.done.wait (%p11607_p6), [#allocation6], 2048   ;;  %p11608_p10 = pmov %p11607_p6 }
  0x9b   : > { %p11609_p11 = pmov %p11607_p6 }
  0x9c   : > { %7361 = vsyncadd (%p11608_p10), [#allocation6], 4294965248 }
  0x9d   : > { %7363 = dma.done.wait (%p11609_p11), [#allocation9], 6144   ;;  %p11610_p0 = pmov %p11607_p6 }
  0x9f   : > { %7365 = vsyncadd (%p11610_p0), [#allocation9], 4294961152  ;;  %p11611_p1 = pmov %p11610_p0 }
  0xa0   : > { %p11612_p4 = pmov %p11610_p0 }
  0xa1   : > { %7367 = dma.done.wait (%p11611_p1), [#allocation12], 2048  }
  0xa2   : > { %7369 = vsyncadd (%p11612_p4), [#allocation12], 4294965248  ;;  %s537_s28 = sand.u32 1, %s7388_s18   ;;  %s7693_s30 = sld [smem:[#allocation3]] }
  0xa3   : > { %s5223_s29 = sshll.u32 %s537_s28, 4  ;;  %p11613_p2 = scmp.ne.s32.totalorder %s7535_s20, 0 }
  0xa4   : > { %s7697_s23 = scalar_lea.vmem [#allocation13], %s5223_s29  ;;  %s7699_s22 = scalar_lea.vmem [#allocation14], %s5223_s29  ;;  %v557_v0 = vld [vmem:[%s11290_s3] sm:$0x1] (!%p11613_p2) }
  0xa5   : > { %556 = sbr.rel (%p11613_p2) target bundleno = 172 (0xac), region = 92  ;;  %558 = vst [vmem:[#allocation16] sm:$0x1] (!%p11613_p2), %v557_v0 }
  0xac PF: > { %v7709_v1 = vld [vmem:[%s11292_s5 + $0x4] ss:$8 sps:$4 sm:$0xff]   ;;  %v7714_v2 = vld [vmem:[%s11292_s5] ss:$8 sps:$4 sm:$0xff]   ;;  %v7720_v3 = vld [vmem:[%s11292_s5 + $0x14] ss:$8 sps:$4 sm:$0xff]   ;;  %v11322_v36 = vlaneseq }
  0xad   : > { %919 = vmatprep.subr.bf16.mxu0 %v7709_v1  ;;  %v7726_v4 = vld [vmem:[%s11292_s5 + $0x10] ss:$8 sps:$4 sm:$0xff]   ;;  %v7732_v5 = vld [vmem:[%s11292_s5 + $0x24] ss:$8 sps:$4 sm:$0xff]   ;;  %v7738_v6 = vld [vmem:[%s11292_s5 + $0x20] ss:$8 sps:$4 sm:$0xff]  }
  0xae   : > { %920 = vmatpush1.bf16.msra.mxu0 %v7714_v2  ;;  %v7744_v7 = vld [vmem:[%s11292_s5 + $0x34] ss:$8 sps:$4 sm:$0xff]   ;;  %s7747_s21 = sshll.u32 %s7535_s20, 3  ;;  %v7753_v8 = vld [vmem:[%s11292_s5 + $0x30] ss:$8 sps:$4 sm:$0xff]   ;;  %v7920_v37 = vshrl.u32 %v11322_v36, 7 }
  0xaf   : > { %921 = vmatprep.subr.bf16.mxu0 %v7720_v3  ;;  %v7759_v9 = vld [vmem:[%s11292_s5 + $0x44] ss:$8 sps:$4 sm:$0xff]   ;;  %s7762_s15 = sld [smem:[#allocation4 + %s7747_s21]]  ;;  %v7768_v10 = vld [vmem:[%s11292_s5 + $0x40] ss:$8 sps:$4 sm:$0xff]   ;;  %vm960_vm0 = vcmask 1040384   ;;  %p1923_p5 = scmp.lt.s32.totalorder %s7747_s21, %s7693_s30 }
  0xb0   : > { %v7774_v11 = vld [vmem:[%s11292_s5 + $0x54] ss:$8 sps:$4 sm:$0xff]   ;;  %v7780_v12 = vld [vmem:[%s11292_s5 + $0x50] ss:$8 sps:$4 sm:$0xff]   ;;  %v7786_v13 = vld [vmem:[%s11292_s5 + $0x64] ss:$8 sps:$4 sm:$0xff]  }
  0xb1   : > { %v740_v14 = vld [vmem:[#allocation16] sm:$0x1]  ;;  %v7800_v16 = vld [vmem:[%s11292_s5 + $0x74] ss:$8 sps:$4 sm:$0xff]   ;;  %v7810_v18 = vld [vmem:[%s11292_s5 + $0x70] ss:$8 sps:$4 sm:$0xff]  }
  0xb2   : > { %922 = vmatpush1.bf16.msra.mxu0 %v7726_v4  ;;  %v7795_v15 = vld [vmem:[%s11292_s5 + $0x60] ss:$8 sps:$4 sm:$0xff]   ;;  %v7802_v17 = vpack.c.bf16 %v740_v14, %v740_v14  ;;  %v7815_v19 = vld [vmem:[%s11292_s5 + $0x84] ss:$8 sps:$4 sm:$0xff]   ;;  %v7827_v21 = vld [vmem:[%s11292_s5 + $0x94] ss:$8 sps:$4 sm:$0xff]  }
  0xb3   : > { %923 = vmatprep.subr.bf16.mxu0 %v7732_v5  ;;  %v7822_v20 = vld [vmem:[%s11292_s5 + $0x80] ss:$8 sps:$4 sm:$0xff]   ;;  %v7834_v22 = vld [vmem:[%s11292_s5 + $0x90] ss:$8 sps:$4 sm:$0xff]   ;;  %v7839_v23 = vld [vmem:[%s11292_s5 + $0xa4] ss:$8 sps:$4 sm:$0xff]  }
  0xb4   : > { %951 = vmatprep.mubr.bf16.mxu0 %v7802_v17  ;;  %v7846_v24 = vld [vmem:[%s11292_s5 + $0xa0] ss:$8 sps:$4 sm:$0xff]   ;;  %v7851_v25 = vld [vmem:[%s11292_s5 + $0xb4] ss:$8 sps:$4 sm:$0xff]   ;;  %v7858_v26 = vld [vmem:[%s11292_s5 + $0xb0] ss:$8 sps:$4 sm:$0xff]  }
  0xb5   : > { %s743_s19 = scalar_lea.vmem %s11289_s2, %s7762_s15  ;;  %v7863_v27 = vld [vmem:[%s11292_s5 + $0xc4] ss:$8 sps:$4 sm:$0xff]   ;;  %v7870_v28 = vld [vmem:[%s11292_s5 + $0xc0] ss:$8 sps:$4 sm:$0xff]   ;;  %v7875_v29 = vld [vmem:[%s11292_s5 + $0xd4] ss:$8 sps:$4 sm:$0xff]  }
  0xb6   : > { %924 = vmatpush1.bf16.msra.mxu0 %v7738_v6  ;;  %v7882_v30 = vld [vmem:[%s11292_s5 + $0xd0] ss:$8 sps:$4 sm:$0xff]   ;;  %v7887_v31 = vld [vmem:[%s11292_s5 + $0xe4] ss:$8 sps:$4 sm:$0xff]   ;;  %v7894_v32 = vld [vmem:[%s11292_s5 + $0xe0] ss:$8 sps:$4 sm:$0xff]  }
  0xb7   : > { %925 = vmatprep.subr.bf16.mxu0 %v7744_v7  ;;  %v7899_v33 = vld [vmem:[%s11292_s5 + $0xf4] ss:$8 sps:$4 sm:$0xff]   ;;  %v7906_v34 = vld [vmem:[%s11292_s5 + $0xf0] ss:$8 sps:$4 sm:$0xff]   ;;  %v7923_v38 = vsub.s32 0, %v7920_v37  ;;  %v7929_v40 = vsub.s32 1, %v7920_v37 }
  0xb8   : > { %v7915_v35 = vld [vmem:[%s743_s19] ss:$0 sps:$4 sm:$0x11]   ;;  %v7954_v54 = vld [vmem:[%s11291_s4 + $0x48] sm:$0xff]   ;;  %v7967_v56 = vld [vmem:[%s11291_s4 + $0x50] sm:$0xff]   ;;  %vm7412_vm2 = vmmov 0  }
  0xb9   : > { %11614 = vst [vmem:[#allocation30_spill] sm:$0xff] %v7923_v38  ;;  %v591_v39 = vld [vmem:[%s11293_s6] sm:$0x3]  ;;  %11615 = vst [vmem:[#allocation31_spill] sm:$0xff] %v7929_v40  ;;  %v7961_v55 = vld [vmem:[%s11291_s4 + $0x8] sm:$0xff]   ;;  %s1928_s9 = sadd.s32 1, %s7747_s21 }
  0xba   : > { %926 = vmatpush1.bf16.msra.mxu0 %v7753_v8  ;;  %v7932_v41 = vrot.slane %v591_v39, %v7923_v38  ;;  %v7935_v42 = vrot.slane %v591_v39, %v7929_v40  ;;  %v7944_v52 = vld [vmem:[%s11291_s4 + $0x40] sm:$0xff]   ;;  %v7973_v57 = vld [vmem:[%s11291_s4 + $0x10] sm:$0xff]   ;;  %v7979_v58 = vld [vmem:[%s11291_s4 + $0x58] sm:$0xff]   ;;  %s8358_s25 = sld [smem:[#allocation4 + %s1928_s9]]  ;;  %p2365_p8 = scmp.lt.s32.totalorder %s1928_s9, %s7693_s30 }
  0xbb   : > { %927 = vmatprep.subr.bf16.mxu0 %v7759_v9  ;;  %v7949_v53 = vld [vmem:[%s11291_s4] sm:$0xff]   ;;  %5409 = vmatprep.subr.bf16.mxu1 %v7944_v52  ;;  %v7985_v59 = vld [vmem:[%s11291_s4 + $0x18] sm:$0xff]   ;;  %s11682_s0 = sld [smem:[#allocation111_spill]]  ;;  %p12140_p11 = scmp.ne.s32.totalorder %s11597_s26, 0 }
  0xbc   : > { %11616 = vst [vmem:[#allocation32_spill] sm:$0xff] %v7932_v41  ;;  %11617 = vst [vmem:[#allocation33_spill] sm:$0xff] %v7935_v42  ;;  %5410 = vmatpush3.bf16.msra.mxu1 %v7949_v53  ;;  %s1924_s17 = scalar_select %p1923_p5, 1, 0 }
  0xbd   : > { %5411 = vmatprep.subr.bf16.mxu1 %v7954_v54  ;;  %11618 = vst [vmem:[#allocation34_spill] sm:$0xff] %v7985_v59  ;;  %s2366_s11 = scalar_select %p2365_p8, 1, 0 }
  0xbe   : > { %928 = vmatpush1.bf16.msra.mxu0 %v7768_v10 }
  0xbf   : > { %929 = vmatprep.subr.bf16.mxu0 %v7774_v11 }
  0xc0   : > { %5412 = vmatpush3.bf16.msra.mxu1 %v7961_v55  ;;  %s1930_s16 = scalar_lea.vmem %s11289_s2, %s8358_s25  ;;  %s2370_s25 = sadd.s32 2, %s7747_s21 }
  0xc1   : > { %5413 = vmatprep.subr.bf16.mxu1 %v7967_v56  ;;  %s8745_s19 = sld [smem:[#allocation4 + %s2370_s25]]  ;;  %p2807_p9 = scmp.lt.s32.totalorder %s2370_s25, %s7693_s30 }
  0xc2   : > { %930 = vmatpush1.bf16.msra.mxu0 %v7780_v12  ;;  %s3254_s25 = sadd.s32 4, %s7747_s21 }
  0xc3   : > { %931 = vmatprep.subr.bf16.mxu0 %v7786_v13  ;;  %p3691_p13 = scmp.lt.s32.totalorder %s3254_s25, %s7693_s30 }
  0xc4   : > { %5414 = vmatpush3.bf16.msra.mxu1 %v7973_v57 }
  0xc5   : > { %5415 = vmatprep.subr.bf16.mxu1 %v7979_v58 }
  0xc6   : > { %932 = vmatpush1.bf16.msra.mxu0 %v7795_v15 }
  0xc7   : > { %933 = vmatprep.subr.bf16.mxu0 %v7800_v16  ;;  %s2372_s1 = scalar_lea.vmem %s11289_s2, %s8745_s19 }
  0xc8   : > { %5416 = vmatpush3.bf16.msra.mxu1 %v7985_v59  ;;  %v8198_v59 = vld [vmem:[#allocation10 + $0x1c] ss:$12 sps:$4 sm:$0xff]   ;;  %s2808_s19 = scalar_select %p2807_p9, 1, 0 }
  0xca   : > { %934 = vmatpush1.bf16.msra.mxu0 %v7810_v18 }
  0xcb   : > { %935 = vmatprep.subr.bf16.mxu0 %v7815_v19 }
  0xce   : > { %936 = vmatpush1.bf16.msra.mxu0 %v7822_v20 }
  0xcf   : > { %937 = vmatprep.subr.bf16.mxu0 %v7827_v21 }
  0xd2   : > { %938 = vmatpush1.bf16.msra.mxu0 %v7834_v22 }
  0xd3   : > { %939 = vmatprep.subr.bf16.mxu0 %v7839_v23 }
  0xd6   : > { %940 = vmatpush1.bf16.msra.mxu0 %v7846_v24 }
  0xd7   : > { %941 = vmatprep.subr.bf16.mxu0 %v7851_v25 }
  0xda   : > { %942 = vmatpush1.bf16.msra.mxu0 %v7858_v26 }
  0xdb   : > { %943 = vmatprep.subr.bf16.mxu0 %v7863_v27 }
  0xde   : > { %944 = vmatpush1.bf16.msra.mxu0 %v7870_v28 }
  0xdf   : > { %945 = vmatprep.subr.bf16.mxu0 %v7875_v29 }
  0xe2   : > { %946 = vmatpush1.bf16.msra.mxu0 %v7882_v30 }
  0xe3   : > { %947 = vmatprep.subr.bf16.mxu0 %v7887_v31 }
  0xe6   : > { %948 = vmatpush1.bf16.msra.mxu0 %v7894_v32 }
  0xe7   : > { %949 = vmatprep.subr.bf16.mxu0 %v7899_v33 }
  0xea   : > { %950 = vmatpush1.bf16.msra.mxu0 %v7906_v34 }
  0xed   : > { %952 = vmatmul.mubr.bf16.vlgmr.msra.gmra.mrb[0].mxu0 %v7915_v35 }
 0x1c0   : > { %v953_v43 = vpop.f32.mrb[0].mxu0 }
 0x1c1   : > { %v954_v44 = vadd.f32 %v953_v43, %v7932_v41  ;;  %v955_v45 = vpop.f32.mrb[1].mxu0 }
 0x1c2   : > { %v956_v46 = vadd.f32 %v955_v45, %v7935_v42  ;;  %v957_v47 = vpop.f32.mrb[2].mxu0 }
 0x1c3   : > { %v958_v48 = vpop.f32.mrb[3].mxu0  ;;  %v961_v49 = vsel %vm960_vm0, %v954_v44, -inf }
 0x1c4   : > { %v962_v50 = vsel %vm960_vm0, %v956_v46, -inf  ;;  %v7994_v48 = vld [vmem:[%s11291_s4 + $0x60] sm:$0xff]  }
 0x1c5   : > { %v963_v51 = vmax.f32 %v961_v49, %v962_v50  ;;  %11619 = vst [vmem:[#allocation35_spill] sm:$0xff] %v7994_v48  ;;  %5417 = vmatprep.subr.bf16.mxu1 %v7994_v48  ;;  %v8011_v49 = vld [vmem:[%s11291_s4 + $0x28] sm:$0xff]   ;;  %v8017_v50 = vld [vmem:[%s11291_s4 + $0x70] sm:$0xff]  }
 0x1c6   : > { %11622 = vst [vmem:[#allocation38_spill] sm:$0xff] %v8011_v49  ;;  %11623 = vst [vmem:[#allocation39_spill] sm:$0xff] %v8017_v50 }
 0x1c7   : > { %964 = vmax.xlane.f32.xlu0 %v963_v51  ;;  %v8023_v51 = vld [vmem:[%s11291_s4 + $0x30] sm:$0xff]  }
 0x1c8   : > { %11624 = vst [vmem:[#allocation40_spill] sm:$0xff] %v8023_v51 }
 0x254   : > { %v965_v60 = vpop.xlane.xlu0 %964 }
 0x255   : > { %v966_v61 = vsub.f32 %v954_v44, %v965_v60  ;;  %v967_v62 = vsub.f32 %v956_v46, %v965_v60  ;;  %v7999_v44 = vld [vmem:[%s11291_s4 + $0x20] sm:$0xff]   ;;  %v8005_v46 = vld [vmem:[%s11291_s4 + $0x68] sm:$0xff]   ;;  %v8029_v60 = vld [vmem:[%s11291_s4 + $0x78] sm:$0xff]  }
 0x256   : > { %11620 = vst [vmem:[#allocation36_spill] sm:$0xff] %v7999_v44  ;;  %11621 = vst [vmem:[#allocation37_spill] sm:$0xff] %v8005_v46  ;;  %5418 = vmatpush3.bf16.msra.mxu1 %v7999_v44 }
 0x257   : > { %v968_v63 = vmul.f32 1.442695, %v966_v61  ;;  %v970_v0 = vmul.f32 1.442695, %v967_v62  ;;  %5419 = vmatprep.subr.bf16.mxu1 %v8005_v46  ;;  %11625 = vst [vmem:[#allocation41_spill] sm:$0xff] %v8029_v60  ;;  %v8035_v61 = vld [vmem:[%s11291_s4 + $0x38] sm:$0xff]  }
 0x258   : > { %11626 = vst [vmem:[#allocation42_spill] sm:$0xff] %v8035_v61  ;;  %v8039_v62 = vld [vmem:[#allocation5 + $0x40] sm:$0xff]  }
 0x259   : > { %6570 = vpow2.f32 %v968_v63  ;;  %11627 = vst [vmem:[#allocation43_spill] sm:$0xff] %v8039_v62 }
 0x25a   : > { %6572 = vpow2.f32 %v970_v0  ;;  %5420 = vmatpush3.bf16.msra.mxu1 %v8011_v49  ;;  %v7409_v0 = vmov 1966171168   ;;  %v8047_v49 = vld [vmem:[#allocation5 + $0x48] sm:$0xff]  }
 0x25b   : > { %5421 = vmatprep.subr.bf16.mxu1 %v8017_v50  ;;  %11630 = vst [vmem:[#allocation46_spill] sm:$0xff] %v8047_v49 }
 0x25e   : > { %5422 = vmatpush3.bf16.msra.mxu1 %v8023_v51 }
 0x25f   : > { %5423 = vmatprep.subr.bf16.mxu1 %v8029_v60 }
 0x262   : > { %5424 = vmatpush3.bf16.msra.mxu1 %v8035_v61  ;;  %v8045_v61 = vld [vmem:[#allocation5] sm:$0xff]  }
 0x263   : > { %v6571_v14 = vpop.eup %6570  ;;  %5431 = vmatprep.subr.bf16.mxu1 %v8039_v62  ;;  %11629 = vst [vmem:[#allocation45_spill] sm:$0xff] %v8045_v61 }
 0x264   : > { %v6573_v39 = vpop.eup %6572  ;;  %v972_v43 = vsel %vm960_vm0, %v6571_v14, 0.0 }
 0x265   : > { %v973_v45 = vsel %vm960_vm0, %v6573_v39, 0.0 }
 0x266   : > { %v974_v47 = vadd.f32 %v973_v45, %v972_v43  ;;  %v984_v43 = vunpack.c.l.s4 %v7409_v0  ;;  %v11632_v0 = vmov 0 }
 0x268   : > { %975 = vadd.xlane.f32.xlu0 %v974_v47  ;;  %v985_v45 = vunpack.c.0.s8 %v984_v43  ;;  %v8081_v43 = vld [vmem:[#allocation5 + $0x68] sm:$0xff]  }
 0x269   : > { %11642 = vst [vmem:[#allocation55_spill] sm:$0xff] %v8081_v43 }
 0x26a   : > { %v8043_v36 = vsub.s32 %v985_v45, %v7920_v37  ;;  %v8084_v45 = vld [vmem:[#allocation5 + $0x28] sm:$0xff]  }
 0x26b   : > { %11643 = vst [vmem:[#allocation56_spill] sm:$0xff] %v8084_v45 }
 0x26c   : > { %11628 = vst [vmem:[#allocation44_spill] sm:$0xff] %v8043_v36 }
 0x2f5   : > { %v976_v63 = vpop.xlane.xlu0 %975 }
 0x2f6   : > { %6574 = vrcp.f32 %v976_v63  ;;  %v11631_v63 = vlaneseq }
 0x2f8   : > { %vm8051_vm1 = vcmp.lt.s32.totalorder %v11631_v63, 256  ;;  %v8091_v63 = vld [vmem:[#allocation5 + $0x30] sm:$0xff]  }
 0x2f9   : > { %v11633_v0 = vsel %vm8051_vm1, 4294967295, %v11632_v0  ;;  %11645 = vst [vmem:[#allocation58_spill] sm:$0xff] %v8091_v63 }
 0x2fa   : > { %11634 = vst [vmem:[#allocation47_spill] sm:$0xff] %v11633_v0 }
 0x300   : > { %v6575_v47 = vpop.eup %6574 }
 0x301   : > { %v978_v42 = vmul.f32 %v6575_v47, %v6571_v14  ;;  %v979_v41 = vmul.f32 %v6575_v47, %v6573_v39  ;;  %v8057_v39 = vld [vmem:[#allocation5 + $0x8] sm:$0xff]   ;;  %v8087_v47 = vld [vmem:[#allocation5 + $0x70] sm:$0xff]  }
 0x302   : > { %11635 = vst [vmem:[#allocation48_spill] sm:$0xff] %v8057_v39  ;;  %11644 = vst [vmem:[#allocation57_spill] sm:$0xff] %v8087_v47 }
 0x303   : > { %v982_v51 = vcombine.low %v978_v42, %v979_v41  ;;  %v1004_v60 = vpack.c.bf16 %v979_v41, %v979_v41  ;;  %v1003_v50 = vpack.c.bf16 %v978_v42, %v978_v42  ;;  %v8060_v41 = vld [vmem:[#allocation5 + $0x50] sm:$0xff]  }
 0x304   : > { %11636 = vst [vmem:[#allocation49_spill] sm:$0xff] %v8060_v41  ;;  %v8066_v42 = vld [vmem:[#allocation5 + $0x10] sm:$0xff]  }
 0x305   : > { %v989_v62 = vrot.slane %v982_v51, %v8043_v36  ;;  %1133 = vmatprep.mubr.bf16.mxu1 %v1004_v60  ;;  %11637 = vst [vmem:[#allocation50_spill] sm:$0xff] %v8066_v42  ;;  %v8072_v51 = vld [vmem:[#allocation5 + $0x18] sm:$0xff]   ;;  %v8075_v60 = vld [vmem:[#allocation5 + $0x60] sm:$0xff]  }
 0x306   : > { %1134 = vmatmul.mubr.bf16.vlgmr.msra.gmra.mrb[0].mxu1 %v1003_v50  ;;  %v8069_v50 = vld [vmem:[#allocation5 + $0x58] sm:$0xff]   ;;  %11639 = vst [vmem:[#allocation52_spill] sm:$0xff] %v8072_v51  ;;  %11640 = vst [vmem:[#allocation53_spill] sm:$0xff] %v8075_v60 }
 0x307   : > { %v996_v14 = vrot.slane %v989_v62, %v8043_v36  ;;  %5432 = vmatpush3.bf16.msra.mxu1 %v8045_v61  ;;  %11638 = vst [vmem:[#allocation51_spill] sm:$0xff] %v8069_v50  ;;  %v8078_v62 = vld [vmem:[#allocation5 + $0x20] sm:$0xff]  }
 0x308   : > { %5433 = vmatprep.subr.bf16.mxu1 %v8047_v49  ;;  %11641 = vst [vmem:[#allocation54_spill] sm:$0xff] %v8078_v62 }
 0x309   : > { %1002 = vst.msk [vmem:[%s7699_s22] sm:$0x3] %vm8051_vm1, %v996_v14  ;;  %v8094_v14 = vld [vmem:[#allocation5 + $0x78] sm:$0xff]  }
 0x30a   : > { %11646 = vst [vmem:[#allocation59_spill] sm:$0xff] %v8094_v14 }
 0x30b   : > { %5434 = vmatpush3.bf16.msra.mxu1 %v8057_v39  ;;  %v8133_v39 = vld [vmem:[#allocation8 + $0x78] ss:$12 sps:$4 sm:$0xff]  }
 0x30c   : > { %5435 = vmatprep.subr.bf16.mxu1 %v8060_v41  ;;  %v8130_v41 = vld [vmem:[#allocation8 + $0x7c] ss:$12 sps:$4 sm:$0xff]   ;;  %11653 = vst [vmem:[#allocation66_spill] sm:$0xff] %v8133_v39 }
 0x30d   : > { %11652 = vst [vmem:[#allocation65_spill] sm:$0xff] %v8130_v41 }
 0x30f   : > { %5436 = vmatpush3.bf16.msra.mxu1 %v8066_v42  ;;  %v8127_v42 = vld [vmem:[#allocation8 + $0x60] ss:$12 sps:$4 sm:$0xff]  }
 0x310   : > { %5437 = vmatprep.subr.bf16.mxu1 %v8069_v50  ;;  %v8124_v50 = vld [vmem:[#allocation8 + $0x64] ss:$12 sps:$4 sm:$0xff]   ;;  %11651 = vst [vmem:[#allocation64_spill] sm:$0xff] %v8127_v42 }
 0x311   : > { %11650 = vst [vmem:[#allocation63_spill] sm:$0xff] %v8124_v50 }
 0x313   : > { %5438 = vmatpush3.bf16.msra.mxu1 %v8072_v51  ;;  %v11342_v51 = vmov 0.0  }
 0x314   : > { %5439 = vmatprep.subr.bf16.mxu1 %v8075_v60  ;;  %v8096_v60 = vld [vmem:[#allocation5 + $0x38] sm:$0xff]  }
 0x315   : > { %11647 = vst [vmem:[#allocation60_spill] sm:$0xff] %v8096_v60 }
 0x317   : > { %5440 = vmatpush3.bf16.msra.mxu1 %v8078_v62  ;;  %v8100_v62 = vld [vmem:[#allocation8 + $0x4] ss:$12 sps:$4 sm:$0xff]  }
 0x318   : > { %5441 = vmatprep.subr.bf16.mxu1 %v8081_v43  ;;  %11648 = vst [vmem:[#allocation61_spill] sm:$0xff] %v8100_v62  ;;  %v8102_v43 = vld [vmem:[#allocation8] ss:$12 sps:$4 sm:$0xff]   ;;  %1424 = vmatprep.subr.bf16.mxu0 %v8100_v62 }
 0x319   : > { %1425 = vmatpush1.bf16.msra.mxu0 %v8102_v43 }
 0x31b   : > { %5442 = vmatpush3.bf16.msra.mxu1 %v8084_v45  ;;  %v8118_v45 = vld [vmem:[#allocation8 + $0x4c] ss:$12 sps:$4 sm:$0xff]  }
 0x31c   : > { %5443 = vmatprep.subr.bf16.mxu1 %v8087_v47  ;;  %v8105_v47 = vld [vmem:[#allocation8 + $0x1c] ss:$12 sps:$4 sm:$0xff]  }
 0x31d   : > { %1426 = vmatprep.subr.bf16.mxu0 %v8105_v47 }
 0x31f   : > { %5444 = vmatpush3.bf16.msra.mxu1 %v8091_v63  ;;  %v8109_v63 = vld [vmem:[#allocation8 + $0x18] ss:$12 sps:$4 sm:$0xff]  }
 0x320   : > { %5445 = vmatprep.subr.bf16.mxu1 %v8094_v14  ;;  %v8112_v14 = vld [vmem:[#allocation8 + $0x34] ss:$12 sps:$4 sm:$0xff]   ;;  %1427 = vmatpush1.bf16.msra.mxu0 %v8109_v63 }
 0x321   : > { %1428 = vmatprep.subr.bf16.mxu0 %v8112_v14 }
 0x323   : > { %5446 = vmatpush3.bf16.msra.mxu1 %v8096_v60  ;;  %v8115_v60 = vld [vmem:[#allocation8 + $0x30] ss:$12 sps:$4 sm:$0xff]  }
 0x324   : > { %5905 = vmatprep.subr.bf16.mxu1 %v11342_v51  ;;  %1429 = vmatpush1.bf16.msra.mxu0 %v8115_v60  ;;  %v8121_v51 = vld [vmem:[#allocation8 + $0x48] ss:$12 sps:$4 sm:$0xff]  }
 0x325   : > { %11649 = vst [vmem:[#allocation62_spill] sm:$0xff] %v8121_v51  ;;  %1430 = vmatprep.subr.bf16.mxu0 %v8118_v45 }
 0x328   : > { %1431 = vmatpush1.bf16.msra.mxu0 %v8121_v51  ;;  %v8137_v51 = vld [vmem:[#allocation8 + $0x8] ss:$12 sps:$4 sm:$0xff]  }
 0x329   : > { %1432 = vmatprep.subr.bf16.mxu0 %v8124_v50  ;;  %11654 = vst [vmem:[#allocation67_spill] sm:$0xff] %v8137_v51  ;;  %v11656_v50 = vmov 0.0  }
 0x32c   : > { %1433 = vmatpush1.bf16.msra.mxu0 %v8127_v42  ;;  %v8141_v42 = vld [vmem:[#allocation8 + $0x20] ss:$12 sps:$4 sm:$0xff]  }
 0x32d   : > { %1434 = vmatprep.subr.bf16.mxu0 %v8130_v41  ;;  %11655 = vst [vmem:[#allocation68_spill] sm:$0xff] %v8141_v42  ;;  %v8196_v41 = vld [vmem:[#allocation10 + $0x8] ss:$12 sps:$4 sm:$0xff]  }
 0x330   : > { %1435 = vmatpush1.bf16.msra.mxu0 %v8133_v39  ;;  %v8145_v39 = vld [vmem:[#allocation8 + $0x38] ss:$12 sps:$4 sm:$0xff]  }
 0x331   : > { %11657 = vst [vmem:[#allocation69_spill] sm:$0xff] %v8145_v39 }
 0x3d9   : > { %v5425_v0 = vpop.f32.mrb[0].mxu1 }
 0x3da   : > { %v5426_v49 = vpop.f32.mrb[1].mxu1 }
 0x3db   : > { %v5427_v61 = vadd.f32 %v5426_v49, %v5425_v0  ;;  %v5428_v36 = vpop.f32.mrb[2].mxu1  ;;  %v8164_v49 = vld [vmem:[#allocation8 + $0x90] ss:$12 sps:$4 sm:$0xff]   ;;  %v8171_v0 = vld [vmem:[#allocation8 + $0xac] ss:$12 sps:$4 sm:$0xff]  }
 0x3dc   : > { %v5429_v46 = vpop.f32.mrb[3].mxu1  ;;  %v8149_v36 = vld [vmem:[#allocation8 + $0x50] ss:$12 sps:$4 sm:$0xff]   ;;  %11662 = vst [vmem:[#allocation74_spill] sm:$0xff] %v8164_v49  ;;  %11664 = vst [vmem:[#allocation76_spill] sm:$0xff] %v8171_v0 }
 0x3dd   : > { %v1141_v44 = vpack.c.bf16 %v5427_v61, %v5427_v61  ;;  %11658 = vst [vmem:[#allocation70_spill] sm:$0xff] %v8149_v36  ;;  %v8162_v46 = vld [vmem:[#allocation8 + $0x94] ss:$12 sps:$4 sm:$0xff]   ;;  %v8167_v61 = vld [vmem:[#allocation8 + $0x98] ss:$12 sps:$4 sm:$0xff]  }
 0x3de   : > { %11661 = vst [vmem:[#allocation73_spill] sm:$0xff] %v8162_v46  ;;  %1436 = vmatprep.subr.bf16.mxu0 %v8162_v46  ;;  %11663 = vst [vmem:[#allocation75_spill] sm:$0xff] %v8167_v61 }
 0x3df   : > { %1270 = vmatprep.mubr.bf16.mxu1 %v1141_v44  ;;  %v8157_v44 = vld [vmem:[#allocation8 + $0x80] ss:$12 sps:$4 sm:$0xff]   ;;  %1437 = vmatpush1.bf16.msra.mxu0 %v8164_v49 }
 0x3e0   : > { %1271 = vmatmul.mubr.bf16.vlgmr.msra.gmra.mrb[4].mxu1 %v7915_v35  ;;  %v8153_v35 = vld [vmem:[#allocation8 + $0x68] ss:$12 sps:$4 sm:$0xff]   ;;  %11660 = vst [vmem:[#allocation72_spill] sm:$0xff] %v8157_v44  ;;  %1438 = vmatprep.subr.bf16.mxu0 %v8171_v0 }
 0x3e1   : > { %5906 = vmatpush3.bf16.msra.mxu1 %v8137_v51  ;;  %11659 = vst [vmem:[#allocation71_spill] sm:$0xff] %v8153_v35  ;;  %5921 = vmatprep.mubr.msk.bf16.mxu1 %vm7412_vm2, %v11656_v50 }
 0x3e2   : > { %5907 = vmatprep.subr.bf16.mxu1 %v11656_v50 }
 0x3e5   : > { %5908 = vmatpush3.bf16.msra.mxu1 %v8141_v42  ;;  %v8191_v42 = vld [vmem:[%s11295_s8] sm:$0x1] }
 0x3e6   : > { %5909 = vmatprep.subr.bf16.mxu1 %v11656_v50 }
 0x3e9   : > { %5910 = vmatpush3.bf16.msra.mxu1 %v8145_v39  ;;  %v11376_v39 = vmov 0  }
 0x3ea   : > { %5911 = vmatprep.subr.bf16.mxu1 %v11656_v50  ;;  %1456 = vmatprep.mubr.bf16.mxu0 %v11376_v39  ;;  %v8194_v39 = vld [vmem:[#allocation10] ss:$12 sps:$4 sm:$0xff]  }
 0x3ed   : > { %5912 = vmatpush3.bf16.msra.mxu1 %v8149_v36  ;;  %v8181_v36 = vld [vmem:[#allocation10 + $0x4] ss:$12 sps:$4 sm:$0xff]  }
 0x3ee   : > { %5913 = vmatprep.subr.bf16.mxu1 %v11656_v50  ;;  %11667 = vst [vmem:[#allocation79_spill] sm:$0xff] %v8181_v36 }
 0x3f1   : > { %5914 = vmatpush3.bf16.msra.mxu1 %v8153_v35  ;;  %v8173_v35 = vld [vmem:[#allocation8 + $0xa8] ss:$12 sps:$4 sm:$0xff]  }
 0x3f2   : > { %5915 = vmatprep.subr.bf16.mxu1 %v11656_v50  ;;  %11665 = vst [vmem:[#allocation77_spill] sm:$0xff] %v8173_v35  ;;  %1439 = vmatpush1.bf16.msra.mxu0 %v8173_v35 }
 0x3f3   : > { %1649 = vmatprep.subr.bf16.mxu0 %v8181_v36  ;;  %v8201_v36 = vld [vmem:[#allocation10 + $0x18] ss:$12 sps:$4 sm:$0xff]  }
 0x3f4   : > { %11668 = vst [vmem:[#allocation80_spill] sm:$0xff] %v8201_v36 }
 0x3f5   : > { %5916 = vmatpush3.bf16.msra.mxu1 %v8157_v44  ;;  %v8177_v44 = vld [vmem:[#allocation8 + $0xb0] ss:$12 sps:$4 sm:$0xff]  }
 0x3f6   : > { %5917 = vmatprep.subr.bf16.mxu1 %v11656_v50  ;;  %11666 = vst [vmem:[#allocation78_spill] sm:$0xff] %v8177_v44 }
 0x3f9   : > { %5918 = vmatpush3.bf16.msra.mxu1 %v8167_v61 }
 0x3fa   : > { %5919 = vmatprep.subr.bf16.mxu1 %v11656_v50 }
 0x3fd   : > { %5920 = vmatpush3.bf16.msra.mxu1 %v8177_v44 }
 0x3fe   : > { %5925 = vmatprep.subr.bf16.mxu1 %v11656_v50 }
 0x4b3   : > { %v5447_v61 = vpop.f32.mrb[4].mxu1 }
 0x4b4   : > { %v5448_v44 = vpop.f32.mrb[5].mxu1 }
 0x4b5   : > { %v5449_v51 = vadd.f32 %v5448_v44, %v5447_v61  ;;  %v5450_v35 = vpop.f32.mrb[6].mxu1  ;;  %v11671_v44 = vmov 0   ;;  %v8224_v61 = vld [vmem:[#allocation10 + $0x48] ss:$12 sps:$4 sm:$0xff]  }
 0x4b6   : > { %v5451_v0 = vpop.f32.mrb[7].mxu1  ;;  %v8204_v35 = vld [vmem:[#allocation10 + $0x20] ss:$12 sps:$4 sm:$0xff]   ;;  %11675 = vst [vmem:[#allocation86_spill] sm:$0xff] %v8224_v61 }
 0x4b7   : > { %v1273_v49 = vadd.f32 %v5449_v51, %v8191_v42  ;;  %11669 = vst [vmem:[#allocation81_spill] sm:$0xff] %v8204_v35  ;;  %v8207_v51 = vld [vmem:[#allocation10 + $0x34] ss:$12 sps:$4 sm:$0xff]   ;;  %v8227_v0 = vld [vmem:[#allocation10 + $0x50] ss:$12 sps:$4 sm:$0xff]  }
 0x4b8   : > { %11670 = vst [vmem:[#allocation82_spill] sm:$0xff] %v8207_v51  ;;  %11676 = vst [vmem:[#allocation87_spill] sm:$0xff] %v8227_v0 }
 0x4b9   : > { %v1278_v46 = vmax.f32 %v1273_v49, 0.0  ;;  %v8220_v49 = vld [vmem:[#allocation10 + $0x4c] ss:$12 sps:$4 sm:$0xff]  }
 0x4ba   : > { %11674 = vst [vmem:[#allocation85_spill] sm:$0xff] %v8220_v49 }
 0x4bb   : > { %v1279_v48 = vpack.c.bf16 %v1278_v46, %v1278_v46  ;;  %v8217_v46 = vld [vmem:[#allocation10 + $0x38] ss:$12 sps:$4 sm:$0xff]  }
 0x4bc   : > { %11673 = vst [vmem:[#allocation84_spill] sm:$0xff] %v8217_v46 }
 0x4bd   : > { %1457 = vmatmul.mubr.bf16.vlgmr.msra.gmra.mrb[4].mxu0 %v1279_v48  ;;  %5922 = vmatmul.mubr.bf16.vlgmr.msra.gmra.mrb[8].mxu1 %v1279_v48  ;;  %v8214_v48 = vld [vmem:[#allocation10 + $0x30] ss:$12 sps:$4 sm:$0xff]  }
 0x4be   : > { %1650 = vmatpush1.bf16.msra.mxu0 %v8194_v39  ;;  %5926 = vmatpush3.bf16.msra.mxu1 %v8196_v41  ;;  %11672 = vst [vmem:[#allocation83_spill] sm:$0xff] %v8214_v48 }
 0x4bf   : > { %1651 = vmatprep.subr.bf16.mxu0 %v8198_v59  ;;  %5927 = vmatprep.subr.bf16.mxu1 %v11656_v50 }
 0x4c0   : > { %1681 = vmatprep.mubr.bf16.mxu0 %v11671_v44  ;;  %5941 = vmatprep.mubr.msk.bf16.mxu1 %vm7412_vm2, %v11656_v50 }
 0x4c2   : > { %1652 = vmatpush1.bf16.msra.mxu0 %v8201_v36  ;;  %5928 = vmatpush3.bf16.msra.mxu1 %v8204_v35  ;;  %v8230_v36 = vld [vmem:[#allocation10 + $0x64] ss:$12 sps:$4 sm:$0xff]   ;;  %v8237_v35 = vld [vmem:[#allocation10 + $0x68] ss:$12 sps:$4 sm:$0xff]  }
 0x4c3   : > { %1653 = vmatprep.subr.bf16.mxu0 %v8207_v51  ;;  %5929 = vmatprep.subr.bf16.mxu1 %v11656_v50  ;;  %11677 = vst [vmem:[#allocation88_spill] sm:$0xff] %v8230_v36  ;;  %v8234_v51 = vld [vmem:[#allocation10 + $0x60] ss:$12 sps:$4 sm:$0xff]   ;;  %11679 = vst [vmem:[#allocation90_spill] sm:$0xff] %v8237_v35 }
 0x4c4   : > { %11678 = vst [vmem:[#allocation89_spill] sm:$0xff] %v8234_v51 }
 0x4c6   : > { %1654 = vmatpush1.bf16.msra.mxu0 %v8214_v48  ;;  %5930 = vmatpush3.bf16.msra.mxu1 %v8217_v46  ;;  %v8240_v48 = vld [vmem:[#allocation10 + $0x7c] ss:$12 sps:$4 sm:$0xff]   ;;  %v8247_v46 = vld [vmem:[#allocation10 + $0x80] ss:$12 sps:$4 sm:$0xff]  }
 0x4c7   : > { %1655 = vmatprep.subr.bf16.mxu0 %v8220_v49  ;;  %5931 = vmatprep.subr.bf16.mxu1 %v11656_v50  ;;  %11680 = vst [vmem:[#allocation91_spill] sm:$0xff] %v8240_v48  ;;  %v8244_v49 = vld [vmem:[#allocation10 + $0x78] ss:$12 sps:$4 sm:$0xff]  }
 0x4ca   : > { %1656 = vmatpush1.bf16.msra.mxu0 %v8224_v61  ;;  %5932 = vmatpush3.bf16.msra.mxu1 %v8227_v0  ;;  %v8250_v61 = vld [vmem:[#allocation10 + $0x94] ss:$12 sps:$4 sm:$0xff]   ;;  %v8257_v0 = vld [vmem:[#allocation10 + $0x98] ss:$12 sps:$4 sm:$0xff]  }
 0x4cb   : > { %1657 = vmatprep.subr.bf16.mxu0 %v8230_v36  ;;  %5933 = vmatprep.subr.bf16.mxu1 %v11656_v50  ;;  %v8254_v36 = vld [vmem:[#allocation10 + $0x90] ss:$12 sps:$4 sm:$0xff]  }
 0x4ce   : > { %1658 = vmatpush1.bf16.msra.mxu0 %v8234_v51  ;;  %5934 = vmatpush3.bf16.msra.mxu1 %v8237_v35  ;;  %v8260_v51 = vld [vmem:[#allocation10 + $0xac] ss:$12 sps:$4 sm:$0xff]   ;;  %v8267_v35 = vld [vmem:[#allocation10 + $0xb0] ss:$12 sps:$4 sm:$0xff]  }
 0x4cf   : > { %1659 = vmatprep.subr.bf16.mxu0 %v8240_v48  ;;  %5935 = vmatprep.subr.bf16.mxu1 %v11656_v50  ;;  %v8264_v48 = vld [vmem:[#allocation10 + $0xa8] ss:$12 sps:$4 sm:$0xff]  }
 0x4d2   : > { %1660 = vmatpush1.bf16.msra.mxu0 %v8244_v49  ;;  %5936 = vmatpush3.bf16.msra.mxu1 %v8247_v46 }
 0x4d3   : > { %1661 = vmatprep.subr.bf16.mxu0 %v8250_v61  ;;  %5937 = vmatprep.subr.bf16.mxu1 %v11656_v50 }
 0x4d6   : > { %1662 = vmatpush1.bf16.msra.mxu0 %v8254_v36  ;;  %5938 = vmatpush3.bf16.msra.mxu1 %v8257_v0 }
 0x4d7   : > { %1663 = vmatprep.subr.bf16.mxu0 %v8260_v51  ;;  %5939 = vmatprep.subr.bf16.mxu1 %v11656_v50 }
 0x4da   : > { %1664 = vmatpush1.bf16.msra.mxu0 %v8264_v48  ;;  %5940 = vmatpush3.bf16.msra.mxu1 %v8267_v35 }
 0x4db   : > { %1935 = vmatprep.subr.bf16.mxu1 %v7709_v1  ;;  %v8309_v1 = vld [vmem:[#allocation11 + $0x4] ss:$8 sps:$4 sm:$0xff]  }
 0x4dc   : > { %1843 = vmatprep.subr.bf16.mxu0 %v8309_v1 }
 0x4dd   : > { %1682 = vmatmul.mubr.bf16.vlgmr.msra.gmra.mrb[4].mxu0 %v7802_v17  ;;  %5942 = vmatmul.mubr.bf16.vlgmr.msra.gmra.mrb[12].mxu1 %v7802_v17  ;;  %v8354_v17 = vld [vmem:[#allocation11 + $0x70] ss:$8 sps:$4 sm:$0xff]  }
 0x4de   : > { %1936 = vmatpush1.bf16.msra.mxu1 %v7714_v2  ;;  %1875 = vmatprep.mubr.bf16.mxu0 %v11671_v44  ;;  %v8311_v2 = vld [vmem:[#allocation11] ss:$8 sps:$4 sm:$0xff]   ;;  %11681 = vst [vmem:[#allocation92_spill] sm:$0xff] %v8354_v17 }
 0x4df   : > { %1937 = vmatprep.subr.bf16.mxu1 %v7720_v3  ;;  %1844 = vmatpush1.bf16.msra.mxu0 %v8311_v2  ;;  %v8315_v3 = vld [vmem:[#allocation11 + $0x14] ss:$8 sps:$4 sm:$0xff]  }
 0x4e0   : > { %1845 = vmatprep.subr.bf16.mxu0 %v8315_v3 }
 0x4e2   : > { %1938 = vmatpush1.bf16.msra.mxu1 %v7726_v4  ;;  %v8318_v4 = vld [vmem:[#allocation11 + $0x10] ss:$8 sps:$4 sm:$0xff]  }
 0x4e3   : > { %1939 = vmatprep.subr.bf16.mxu1 %v7732_v5  ;;  %1846 = vmatpush1.bf16.msra.mxu0 %v8318_v4  ;;  %v8321_v5 = vld [vmem:[#allocation11 + $0x24] ss:$8 sps:$4 sm:$0xff]  }
 0x4e4   : > { %1847 = vmatprep.subr.bf16.mxu0 %v8321_v5 }
 0x4e6   : > { %1940 = vmatpush1.bf16.msra.mxu1 %v7738_v6  ;;  %v8323_v6 = vld [vmem:[#allocation11 + $0x20] ss:$8 sps:$4 sm:$0xff]  }
 0x4e7   : > { %1941 = vmatprep.subr.bf16.mxu1 %v7744_v7  ;;  %1848 = vmatpush1.bf16.msra.mxu0 %v8323_v6  ;;  %v8327_v7 = vld [vmem:[#allocation11 + $0x34] ss:$8 sps:$4 sm:$0xff]  }
 0x4e8   : > { %1849 = vmatprep.subr.bf16.mxu0 %v8327_v7 }
 0x4ea   : > { %1942 = vmatpush1.bf16.msra.mxu1 %v7753_v8  ;;  %v8329_v8 = vld [vmem:[#allocation11 + $0x30] ss:$8 sps:$4 sm:$0xff]  }
 0x4eb   : > { %1943 = vmatprep.subr.bf16.mxu1 %v7759_v9  ;;  %1850 = vmatpush1.bf16.msra.mxu0 %v8329_v8  ;;  %v8333_v9 = vld [vmem:[#allocation11 + $0x44] ss:$8 sps:$4 sm:$0xff]  }
 0x4ec   : > { %1851 = vmatprep.subr.bf16.mxu0 %v8333_v9 }
 0x4ee   : > { %1944 = vmatpush1.bf16.msra.mxu1 %v7768_v10  ;;  %v8335_v10 = vld [vmem:[#allocation11 + $0x40] ss:$8 sps:$4 sm:$0xff]  }
 0x4ef   : > { %1945 = vmatprep.subr.bf16.mxu1 %v7774_v11  ;;  %v8337_v11 = vld [vmem:[#allocation11 + $0x54] ss:$8 sps:$4 sm:$0xff]   ;;  %1852 = vmatpush1.bf16.msra.mxu0 %v8335_v10 }
 0x4f0   : > { %1853 = vmatprep.subr.bf16.mxu0 %v8337_v11 }
 0x4f2   : > { %1946 = vmatpush1.bf16.msra.mxu1 %v7780_v12  ;;  %v8341_v12 = vld [vmem:[#allocation11 + $0x50] ss:$8 sps:$4 sm:$0xff]  }
 0x4f3   : > { %1947 = vmatprep.subr.bf16.mxu1 %v7786_v13  ;;  %v8344_v13 = vld [vmem:[#allocation11 + $0x64] ss:$8 sps:$4 sm:$0xff]   ;;  %1854 = vmatpush1.bf16.msra.mxu0 %v8341_v12 }
 0x4f4   : > { %1855 = vmatprep.subr.bf16.mxu0 %v8344_v13 }
 0x4f6   : > { %1948 = vmatpush1.bf16.msra.mxu1 %v7795_v15  ;;  %v8347_v15 = vld [vmem:[#allocation11 + $0x60] ss:$8 sps:$4 sm:$0xff]  }
 0x4f7   : > { %1949 = vmatprep.subr.bf16.mxu1 %v7800_v16  ;;  %v8350_v16 = vld [vmem:[#allocation11 + $0x74] ss:$8 sps:$4 sm:$0xff]   ;;  %1856 = vmatpush1.bf16.msra.mxu0 %v8347_v15 }
 0x4f8   : > { %1857 = vmatprep.subr.bf16.mxu0 %v8350_v16 }
 0x4fa   : > { %1950 = vmatpush1.bf16.msra.mxu1 %v7810_v18 }
 0x4fb   : > { %1951 = vmatprep.subr.bf16.mxu1 %v7815_v19  ;;  %1858 = vmatpush1.bf16.msra.mxu0 %v8354_v17 }
 0x4fc   : > { %5471 = vmatprep.subr.bf16.mxu0 %v7944_v52 }
 0x4fe   : > { %1952 = vmatpush1.bf16.msra.mxu1 %v7822_v20 }
 0x4ff   : > { %1953 = vmatprep.subr.bf16.mxu1 %v7827_v21 }
 0x502   : > { %1954 = vmatpush1.bf16.msra.mxu1 %v7834_v22  ;;  %v690_v22 = vld [vmem:[%s11299_s12] sm:$0x7] }
 0x503   : > { %1955 = vmatprep.subr.bf16.mxu1 %v7839_v23  ;;  %v689_v23 = vld [vmem:[%s11682_s0] sm:$0x7]  ;;  %s2812_s0 = sadd.s32 3, %s7747_s21 }
 0x504   : > { %s9178_s9 = sld [smem:[#allocation4 + %s2812_s0]]  ;;  %p3249_p12 = scmp.lt.s32.totalorder %s2812_s0, %s7693_s30 }
 0x506   : > { %1956 = vmatpush1.bf16.msra.mxu1 %v7846_v24  ;;  %v1412_v24 = vrot.slane %v689_v23, %v7923_v38 }
 0x507   : > { %1957 = vmatprep.subr.bf16.mxu1 %v7851_v25  ;;  %v1637_v25 = vrot.slane %v690_v22, %v7923_v38 }
 0x50a   : > { %1958 = vmatpush1.bf16.msra.mxu1 %v7858_v26  ;;  %v1416_v26 = vrot.slane %v689_v23, %v7929_v40  ;;  %s2814_s15 = scalar_lea.vmem %s11289_s2, %s9178_s9 }
 0x50b   : > { %1959 = vmatprep.subr.bf16.mxu1 %v7863_v27  ;;  %v1641_v27 = vrot.slane %v690_v22, %v7929_v40 }
 0x50e   : > { %1960 = vmatpush1.bf16.msra.mxu1 %v7870_v28  ;;  %v8377_v28 = vadd.f32 %v1637_v25, %v1412_v24 }
 0x50f   : > { %1961 = vmatprep.subr.bf16.mxu1 %v7875_v29 }
 0x510   : > { %11683 = vst [vmem:[#allocation93_spill] sm:$0xff] %v8377_v28 }
 0x512   : > { %1962 = vmatpush1.bf16.msra.mxu1 %v7882_v30  ;;  %v8379_v30 = vadd.f32 %v1641_v27, %v1416_v26  ;;  %v1419_v26 = vsub.s32 2, %v7920_v37 }
 0x513   : > { %1963 = vmatprep.subr.bf16.mxu1 %v7887_v31 }
 0x514   : > { %11684 = vst [vmem:[#allocation94_spill] sm:$0xff] %v8379_v30  ;;  %v8384_v27 = vrot.slane %v690_v22, %v1419_v26  ;;  %v1925_v22 = vstv %s1924_s17  ;;  %s3250_s17 = scalar_select %p3249_p12, 1, 0 }
 0x515   : > { %vm1926_vm3 = vcmp.eq.s32.totalorder %v1925_v22, 1 }
 0x516   : > { %1964 = vmatpush1.bf16.msra.mxu1 %v7894_v32  ;;  %11685 = vst [vmem:[#allocation95_spill] sm:$0xff] %v8384_v27 }
 0x517   : > { %1965 = vmatprep.subr.bf16.mxu1 %v7899_v33 }
 0x51a   : > { %1966 = vmatpush1.bf16.msra.mxu1 %v7906_v34 }
 0x51b   : > { %2100 = vmatprep.subr.bf16.mxu1 %v8100_v62 }
 0x590   : > { %v1499_v18 = vpop.f32.mrb[8].mxu1 }
 0x591   : > { %v5923_v19 = vpop.f32.mrb[9].mxu1 }
 0x592   : > { %v1502_v20 = vpop.f32.mrb[10].mxu1 }
 0x593   : > { %v5924_v21 = vpop.f32.mrb[11].mxu1 }
 0x5b0   : > { %v1683_v29 = vpop.f32.mrb[4].mxu0  ;;  %v1724_v31 = vpop.f32.mrb[12].mxu1 }
 0x5b1   : > { %v6226_v32 = vadd.f32 %v8377_v28, %v1683_v29  ;;  %v1685_v33 = vpop.f32.mrb[5].mxu0  ;;  %v5943_v34 = vpop.f32.mrb[13].mxu1 }
 0x5b2   : > { %v1687_v52 = vpop.f32.mrb[6].mxu0  ;;  %v1727_v19 = vpop.f32.mrb[14].mxu1  ;;  %v6228_v38 = vadd.f32 %v8379_v30, %v1685_v33  ;;  %v8386_v34 = vrot.slane %v689_v23, %v1419_v26  ;;  %v6746_v23 = vld [vmem:[#allocation16] sm:$0x1] }
 0x5b3   : > { %v5340_v20 = vmul.f32 -1.442695, %v6226_v32  ;;  %v1688_v21 = vpop.f32.mrb[7].mxu0  ;;  %v5944_v62 = vpop.f32.mrb[15].mxu1 }
 0x5b4   : > { %v5341_v17 = vmul.f32 -1.442695, %v6228_v38  ;;  %11686 = vst [vmem:[#allocation96_spill] sm:$0xff] %v8386_v34  ;;  %v1725_v62 = vadd.f32 %v1724_v31, %v8384_v27  ;;  %v1500_v33 = vadd.f32 %v1499_v18, %v8386_v34  ;;  %v8399_v18 = vld [vmem:[%s1930_s16] ss:$0 sps:$4 sm:$0x11]  }
 0x5b5   : > { %6576 = vpow2.f32 %v5340_v20 }
 0x5b6   : > { %6578 = vpow2.f32 %v5341_v17 }
 0x5bf   : > { %v6577_v24 = vpop.eup %6576 }
 0x5c0   : > { %v1734_v25 = vadd.f32 1.0, %v6577_v24  ;;  %v6579_v29 = vpop.eup %6578 }
 0x5c1   : > { %v1741_v32 = vadd.f32 1.0, %v6579_v29 }
 0x5c2   : > { %6580 = vrcp.f32 %v1734_v25 }
 0x5c3   : > { %6582 = vrcp.f32 %v1741_v32  ;;  %v11699_v32 = vld [vmem:[#allocation40_spill] sm:$0xff] }
 0x5cc   : > { %v6581_v52 = vpop.eup %6580 }
 0x5cd   : > { %v1744_v38 = vmul.f32 %v6581_v52, %v1725_v62  ;;  %v6583_v19 = vpop.eup %6582  ;;  %v11700_v62 = vld [vmem:[#allocation41_spill] sm:$0xff]  ;;  %v11701_v52 = vld [vmem:[#allocation74_spill] sm:$0xff] }
 0x5ce   : > { %v1747_v37 = vsub.f32 1.0, %v6583_v19  ;;  %v1749_v24 = vmul.f32 %v6746_v23, %v6583_v19  ;;  %v11705_v19 = vld [vmem:[#allocation77_spill] sm:$0xff] }
 0x5cf   : > { %v1745_v17 = vadd.f32 %v1744_v38, %v1500_v33  ;;  %v11702_v33 = vld [vmem:[#allocation76_spill] sm:$0xff]  ;;  %v11703_v38 = vld [vmem:[#allocation42_spill] sm:$0xff] }
 0x5d1   : > { %6584 = vtanh.f32 %v1745_v17  ;;  %v11704_v17 = vld [vmem:[#allocation43_spill] sm:$0xff] }
 0x5db   : > { %v6585_v20 = vpop.eup %6584 }
 0x5dc   : > { %v1748_v21 = vmul.f32 %v6585_v20, %v1747_v37  ;;  %v11706_v37 = vld [vmem:[#allocation79_spill] sm:$0xff] }
 0x5de   : > { %v1750_v25 = vadd.f32 %v1749_v24, %v1748_v21  ;;  %v11709_v24 = vld [vmem:[#allocation32_spill] sm:$0xff] }
 0x5e0   : > { %v1751_v31 = vpack.c.bf16 %v1750_v25, %v1750_v25  ;;  %v8392_v26 = vsel %vm1926_vm3, %v1750_v25, %v6746_v23 }
 0x5e1   : > { %v8403_v29 = vpack.c.bf16 %v8392_v26, %v8392_v26 }
 0x5e2   : > { %1876 = vmatmul.mubr.bf16.vlgmr.msra.gmra.mrb[8].mxu0 %v1751_v31 }
 0x5e3   : > { %1967 = vmatprep.mubr.bf16.mxu1 %v8403_v29  ;;  %5472 = vmatpush3.bf16.msra.mxu0 %v7949_v53  ;;  %v11687_v53 = vld [vmem:[#allocation34_spill] sm:$0xff] }
 0x5e4   : > { %1968 = vmatmul.mubr.bf16.vlgmr.msra.gmra.mrb[16].mxu1 %v8399_v18  ;;  %5473 = vmatprep.subr.bf16.mxu0 %v7954_v54  ;;  %v11688_v54 = vld [vmem:[#allocation35_spill] sm:$0xff] }
 0x5e5   : > { %2101 = vmatpush1.bf16.msra.mxu1 %v8102_v43  ;;  %2132 = vmatprep.mubr.bf16.mxu1 %v11671_v44  ;;  %v11689_v43 = vld [vmem:[#allocation62_spill] sm:$0xff] }
 0x5e6   : > { %2102 = vmatprep.subr.bf16.mxu1 %v8105_v47  ;;  %v11692_v47 = vld [vmem:[#allocation37_spill] sm:$0xff] }
 0x5e7   : > { %5474 = vmatpush3.bf16.msra.mxu0 %v7961_v55  ;;  %v11690_v55 = vld [vmem:[#allocation63_spill] sm:$0xff] }
 0x5e8   : > { %5475 = vmatprep.subr.bf16.mxu0 %v7967_v56  ;;  %v11691_v56 = vld [vmem:[#allocation36_spill] sm:$0xff] }
 0x5e9   : > { %2103 = vmatpush1.bf16.msra.mxu1 %v8109_v63  ;;  %v11693_v63 = vld [vmem:[#allocation64_spill] sm:$0xff] }
 0x5ea   : > { %2104 = vmatprep.subr.bf16.mxu1 %v8112_v14  ;;  %v11698_v14 = vld [vmem:[#allocation73_spill] sm:$0xff] }
 0x5eb   : > { %5476 = vmatpush3.bf16.msra.mxu0 %v7973_v57  ;;  %v11694_v57 = vld [vmem:[#allocation65_spill] sm:$0xff] }
 0x5ec   : > { %5477 = vmatprep.subr.bf16.mxu0 %v7979_v58  ;;  %v11695_v58 = vld [vmem:[#allocation38_spill] sm:$0xff] }
 0x5ed   : > { %2105 = vmatpush1.bf16.msra.mxu1 %v8115_v60  ;;  %v11696_v60 = vld [vmem:[#allocation39_spill] sm:$0xff] }
 0x5ee   : > { %2106 = vmatprep.subr.bf16.mxu1 %v8118_v45  ;;  %v11697_v45 = vld [vmem:[#allocation66_spill] sm:$0xff] }
 0x5ef   : > { %5478 = vmatpush3.bf16.msra.mxu0 %v11687_v53 }
 0x5f0   : > { %5479 = vmatprep.subr.bf16.mxu0 %v11688_v54  ;;  %v11710_v54 = vld [vmem:[#allocation33_spill] sm:$0xff] }
 0x5f1   : > { %2107 = vmatpush1.bf16.msra.mxu1 %v11689_v43 }
 0x5f2   : > { %2108 = vmatprep.subr.bf16.mxu1 %v11690_v55 }
 0x5f3   : > { %5480 = vmatpush3.bf16.msra.mxu0 %v11691_v56 }
 0x5f4   : > { %5481 = vmatprep.subr.bf16.mxu0 %v11692_v47 }
 0x5f5   : > { %2109 = vmatpush1.bf16.msra.mxu1 %v11693_v63 }
 0x5f6   : > { %2110 = vmatprep.subr.bf16.mxu1 %v11694_v57 }
 0x5f7   : > { %5482 = vmatpush3.bf16.msra.mxu0 %v11695_v58 }
 0x5f8   : > { %5483 = vmatprep.subr.bf16.mxu0 %v11696_v60 }
 0x5f9   : > { %2111 = vmatpush1.bf16.msra.mxu1 %v11697_v45 }
 0x5fa   : > { %2112 = vmatprep.subr.bf16.mxu1 %v11698_v14 }
 0x5fb   : > { %5484 = vmatpush3.bf16.msra.mxu0 %v11699_v32 }
 0x5fc   : > { %5485 = vmatprep.subr.bf16.mxu0 %v11700_v62 }
 0x5fd   : > { %2113 = vmatpush1.bf16.msra.mxu1 %v11701_v52 }
 0x5fe   : > { %2114 = vmatprep.subr.bf16.mxu1 %v11702_v33 }
 0x5ff   : > { %5486 = vmatpush3.bf16.msra.mxu0 %v11703_v38 }
 0x600   : > { %5493 = vmatprep.subr.bf16.mxu0 %v11704_v17 }
 0x601   : > { %2115 = vmatpush1.bf16.msra.mxu1 %v11705_v19 }
 0x602   : > { %2181 = vmatprep.subr.bf16.mxu1 %v11706_v37 }
 0x6b5   : > { %v8440_v22 = vpop.f32.mrb[8].mxu0 }
 0x6b6   : > { %11707 = vst [vmem:[#allocation34_spill] sm:$0xff] %v8440_v22  ;;  %v8442_v20 = vpop.f32.mrb[9].mxu0 }
 0x6b7   : > { %11708 = vst [vmem:[#allocation35_spill] sm:$0xff] %v8442_v20  ;;  %v1881_v21 = vpop.f32.mrb[10].mxu0  ;;  %v1969_v23 = vpop.f32.mrb[16].mxu1 }
 0x6b8   : > { %v1970_v25 = vadd.f32 %v1969_v23, %v11709_v24  ;;  %v1882_v31 = vpop.f32.mrb[11].mxu0  ;;  %v1971_v53 = vpop.f32.mrb[17].mxu1 }
 0x6b9   : > { %v1972_v43 = vadd.f32 %v1971_v53, %v11710_v54  ;;  %v1973_v55 = vpop.f32.mrb[18].mxu1 }
 0x6ba   : > { %v1974_v56 = vpop.f32.mrb[19].mxu1  ;;  %v1976_v47 = vsel %vm960_vm0, %v1970_v25, -inf }
 0x6bb   : > { %v1977_v63 = vsel %vm960_vm0, %v1972_v43, -inf }
 0x6bc   : > { %v1978_v57 = vmax.f32 %v1976_v47, %v1977_v63 }
 0x6be   : > { %1979 = vmax.xlane.f32.xlu1 %v1978_v57  ;;  %v11711_v57 = vld [vmem:[#allocation44_spill] sm:$0xff] }
 0x74b   : > { %v1980_v58 = vpop.xlane.xlu1 %1979 }
 0x74c   : > { %v1981_v60 = vsub.f32 %v1970_v25, %v1980_v58  ;;  %v1982_v45 = vsub.f32 %v1972_v43, %v1980_v58 }
 0x74e   : > { %v1983_v32 = vmul.f32 1.442695, %v1981_v60  ;;  %v1985_v62 = vmul.f32 1.442695, %v1982_v45  ;;  %v11712_v45 = vld [vmem:[#allocation45_spill] sm:$0xff] }
 0x750   : > { %6586 = vpow2.f32 %v1983_v32  ;;  %v11713_v32 = vld [vmem:[#allocation46_spill] sm:$0xff] }
 0x751   : > { %6588 = vpow2.f32 %v1985_v62 }
 0x75a   : > { %v6587_v38 = vpop.eup %6586 }
 0x75b   : > { %v6589_v17 = vpop.eup %6588  ;;  %v1987_v21 = vsel %vm960_vm0, %v6587_v38, 0.0 }
 0x75c   : > { %v1988_v23 = vsel %vm960_vm0, %v6589_v17, 0.0 }
 0x75d   : > { %v1989_v31 = vadd.f32 %v1988_v23, %v1987_v21  ;;  %v11715_v21 = vld [vmem:[#allocation48_spill] sm:$0xff]  ;;  %v11718_v23 = vld [vmem:[#allocation51_spill] sm:$0xff] }
 0x75f   : > { %1990 = vadd.xlane.f32.xlu1 %v1989_v31  ;;  %v11719_v31 = vld [vmem:[#allocation52_spill] sm:$0xff] }
 0x7ec   : > { %v1991_v53 = vpop.xlane.xlu1 %1990 }
 0x7ed   : > { %6590 = vrcp.f32 %v1991_v53  ;;  %v11720_v53 = vld [vmem:[#allocation53_spill] sm:$0xff] }
 0x7f7   : > { %v6591_v55 = vpop.eup %6590 }
 0x7f8   : > { %v1993_v56 = vmul.f32 %v6591_v55, %v6587_v38  ;;  %v1994_v47 = vmul.f32 %v6591_v55, %v6589_v17  ;;  %v11716_v38 = vld [vmem:[#allocation49_spill] sm:$0xff]  ;;  %v11717_v17 = vld [vmem:[#allocation50_spill] sm:$0xff] }
 0x7f9   : > { %v11721_v55 = vld [vmem:[#allocation54_spill] sm:$0xff] }
 0x7fa   : > { %v1997_v25 = vcombine.low %v1993_v56, %v1994_v47  ;;  %v2016_v43 = vpack.c.bf16 %v1994_v47, %v1994_v47  ;;  %v2015_v63 = vpack.c.bf16 %v1993_v56, %v1993_v56  ;;  %v11722_v56 = vld [vmem:[#allocation55_spill] sm:$0xff]  ;;  %v11723_v47 = vld [vmem:[#allocation56_spill] sm:$0xff] }
 0x7fc   : > { %v2004_v58 = vrot.slane %v1997_v25, %v11711_v57  ;;  %2049 = vmatprep.mubr.bf16.mxu0 %v2016_v43  ;;  %v11724_v25 = vld [vmem:[#allocation57_spill] sm:$0xff]  ;;  %v11725_v43 = vld [vmem:[#allocation58_spill] sm:$0xff] }
 0x7fd   : > { %2050 = vmatmul.mubr.bf16.vlgmr.msra.gmra.mrb[12].mxu0 %v2015_v63  ;;  %v11726_v63 = vld [vmem:[#allocation59_spill] sm:$0xff] }
 0x7fe   : > { %v2011_v60 = vrot.slane %v2004_v58, %v11711_v57  ;;  %5494 = vmatpush3.bf16.msra.mxu0 %v11712_v45  ;;  %v11727_v58 = vld [vmem:[#allocation60_spill] sm:$0xff] }
 0x7ff   : > { %5495 = vmatprep.subr.bf16.mxu0 %v11713_v32 }
 0x800   : > { %5359 = vst.msk [vmem:[%s7699_s22 + $0x2] sm:$0x3] %vm8051_vm1, %v2011_v60 }
 0x802   : > { %5496 = vmatpush3.bf16.msra.mxu0 %v11715_v21 }
 0x803   : > { %5497 = vmatprep.subr.bf16.mxu0 %v11716_v38 }
 0x806   : > { %5498 = vmatpush3.bf16.msra.mxu0 %v11717_v17 }
 0x807   : > { %5499 = vmatprep.subr.bf16.mxu0 %v11718_v23  ;;  %v11728_v23 = vld [vmem:[#allocation67_spill] sm:$0xff] }
 0x80a   : > { %5500 = vmatpush3.bf16.msra.mxu0 %v11719_v31  ;;  %v11729_v31 = vld [vmem:[#allocation68_spill] sm:$0xff] }
 0x80b   : > { %5501 = vmatprep.subr.bf16.mxu0 %v11720_v53  ;;  %v11730_v53 = vld [vmem:[#allocation69_spill] sm:$0xff] }
 0x80e   : > { %5502 = vmatpush3.bf16.msra.mxu0 %v11721_v55  ;;  %v11731_v55 = vld [vmem:[#allocation70_spill] sm:$0xff] }
 0x80f   : > { %5503 = vmatprep.subr.bf16.mxu0 %v11722_v56  ;;  %v11733_v56 = vld [vmem:[#allocation72_spill] sm:$0xff] }
 0x812   : > { %5504 = vmatpush3.bf16.msra.mxu0 %v11723_v47  ;;  %v11734_v47 = vld [vmem:[#allocation75_spill] sm:$0xff] }
 0x813   : > { %5505 = vmatprep.subr.bf16.mxu0 %v11724_v25  ;;  %v11735_v25 = vld [vmem:[#allocation78_spill] sm:$0xff] }
 0x816   : > { %5506 = vmatpush3.bf16.msra.mxu0 %v11725_v43 }
 0x817   : > { %5507 = vmatprep.subr.bf16.mxu0 %v11726_v63 }
 0x81a   : > { %5508 = vmatpush3.bf16.msra.mxu0 %v11727_v58 }
 0x81b   : > { %5945 = vmatprep.subr.bf16.mxu0 %v11656_v50 }
 0x8d0   : > { %v5487_v60 = vpop.f32.mrb[12].mxu0 }
 0x8d1   : > { %v5488_v45 = vpop.f32.mrb[13].mxu0 }
 0x8d2   : > { %v5489_v32 = vadd.f32 %v5488_v45, %v5487_v60  ;;  %v5490_v21 = vpop.f32.mrb[14].mxu0 }
 0x8d3   : > { %v5491_v38 = vpop.f32.mrb[15].mxu0 }
 0x8d4   : > { %v2057_v17 = vpack.c.bf16 %v5489_v32, %v5489_v32 }
 0x8d6   : > { %2090 = vmatprep.mubr.bf16.mxu0 %v2057_v17  ;;  %v11736_v17 = vld [vmem:[#allocation80_spill] sm:$0xff] }
 0x8d7   : > { %2091 = vmatmul.mubr.bf16.vlgmr.msra.gmra.mrb[16].mxu0 %v8399_v18  ;;  %v11732_v18 = vld [vmem:[#allocation71_spill] sm:$0xff] }
 0x8d8   : > { %5946 = vmatpush3.bf16.msra.mxu0 %v11728_v23  ;;  %5961 = vmatprep.mubr.msk.bf16.mxu0 %vm7412_vm2, %v11656_v50  ;;  %v11738_v23 = vld [vmem:[#allocation82_spill] sm:$0xff] }
 0x8d9   : > { %5947 = vmatprep.subr.bf16.mxu0 %v11656_v50 }
 0x8dc   : > { %5948 = vmatpush3.bf16.msra.mxu0 %v11729_v31  ;;  %v11742_v31 = vld [vmem:[#allocation86_spill] sm:$0xff] }
 0x8dd   : > { %5949 = vmatprep.subr.bf16.mxu0 %v11656_v50 }
 0x8e0   : > { %5950 = vmatpush3.bf16.msra.mxu0 %v11730_v53  ;;  %v11743_v53 = vld [vmem:[#allocation87_spill] sm:$0xff] }
 0x8e1   : > { %5951 = vmatprep.subr.bf16.mxu0 %v11656_v50 }
 0x8e4   : > { %5952 = vmatpush3.bf16.msra.mxu0 %v11731_v55  ;;  %v11744_v55 = vld [vmem:[#allocation88_spill] sm:$0xff] }
 0x8e5   : > { %5953 = vmatprep.subr.bf16.mxu0 %v11656_v50 }
 0x8e8   : > { %5954 = vmatpush3.bf16.msra.mxu0 %v11732_v18  ;;  %v11745_v18 = vld [vmem:[#allocation89_spill] sm:$0xff] }
 0x8e9   : > { %5955 = vmatprep.subr.bf16.mxu0 %v11656_v50 }
 0x8ec   : > { %5956 = vmatpush3.bf16.msra.mxu0 %v11733_v56  ;;  %v11746_v56 = vld [vmem:[#allocation90_spill] sm:$0xff] }
 0x8ed   : > { %5957 = vmatprep.subr.bf16.mxu0 %v11656_v50 }
 0x8f0   : > { %5958 = vmatpush3.bf16.msra.mxu0 %v11734_v47  ;;  %v11747_v47 = vld [vmem:[#allocation91_spill] sm:$0xff] }
 0x8f1   : > { %5959 = vmatprep.subr.bf16.mxu0 %v11656_v50 }
 0x8f4   : > { %5960 = vmatpush3.bf16.msra.mxu0 %v11735_v25  ;;  %v8684_v25 = vld [vmem:[%s11292_s5 + $0xb4] ss:$8 sps:$4 sm:$0xff]  }
 0x8f5   : > { %5965 = vmatprep.subr.bf16.mxu0 %v11656_v50 }
 0x9aa   : > { %v5509_v43 = vpop.f32.mrb[16].mxu0 }
 0x9ab   : > { %v5510_v63 = vpop.f32.mrb[17].mxu0 }
 0x9ac   : > { %v5511_v58 = vadd.f32 %v5510_v63, %v5509_v43  ;;  %v5512_v60 = vpop.f32.mrb[18].mxu0  ;;  %v8690_v43 = vld [vmem:[%s11292_s5 + $0xb0] ss:$8 sps:$4 sm:$0xff]   ;;  %v8696_v63 = vld [vmem:[%s11292_s5 + $0xc4] ss:$8 sps:$4 sm:$0xff]  }
 0x9ad   : > { %v5513_v45 = vpop.f32.mrb[19].mxu0  ;;  %v8708_v60 = vld [vmem:[%s11292_s5 + $0xd4] ss:$8 sps:$4 sm:$0xff]  }
 0x9ae   : > { %v2093_v32 = vadd.f32 %v5511_v58, %v8191_v42  ;;  %v11737_v42 = vld [vmem:[#allocation81_spill] sm:$0xff] }
 0x9af   : > { %v8702_v58 = vld [vmem:[%s11292_s5 + $0xc0] ss:$8 sps:$4 sm:$0xff]   ;;  %v8714_v45 = vld [vmem:[%s11292_s5 + $0xd0] ss:$8 sps:$4 sm:$0xff]  }
 0x9b0   : > { %v2098_v21 = vmax.f32 %v2093_v32, 0.0  ;;  %v8720_v32 = vld [vmem:[%s11292_s5 + $0xe4] ss:$8 sps:$4 sm:$0xff]  }
 0x9b2   : > { %v2099_v38 = vpack.c.bf16 %v2098_v21, %v2098_v21  ;;  %v8726_v21 = vld [vmem:[%s11292_s5 + $0xe0] ss:$8 sps:$4 sm:$0xff]  }
 0x9b4   : > { %2133 = vmatmul.mubr.bf16.vlgmr.msra.gmra.mrb[20].mxu1 %v2099_v38  ;;  %5962 = vmatmul.mubr.bf16.vlgmr.msra.gmra.mrb[20].mxu0 %v2099_v38  ;;  %v8732_v38 = vld [vmem:[%s11292_s5 + $0xf4] ss:$8 sps:$4 sm:$0xff]  }
 0x9b5   : > { %2182 = vmatpush1.bf16.msra.mxu1 %v8194_v39  ;;  %5966 = vmatpush3.bf16.msra.mxu0 %v8196_v41  ;;  %v11739_v39 = vld [vmem:[#allocation83_spill] sm:$0xff]  ;;  %v11740_v41 = vld [vmem:[#allocation84_spill] sm:$0xff]  ;;  %11749 = vst [vmem:[#allocation62_spill] sm:$0xff] %v8732_v38 }
 0x9b6   : > { %2183 = vmatprep.subr.bf16.mxu1 %v8198_v59  ;;  %5967 = vmatprep.subr.bf16.mxu0 %v11656_v50  ;;  %v11741_v59 = vld [vmem:[#allocation85_spill] sm:$0xff] }
 0x9b7   : > { %2213 = vmatprep.mubr.bf16.mxu1 %v11671_v44  ;;  %5981 = vmatprep.mubr.msk.bf16.mxu0 %vm7412_vm2, %v11656_v50 }
 0x9b9   : > { %2184 = vmatpush1.bf16.msra.mxu1 %v11736_v17  ;;  %5968 = vmatpush3.bf16.msra.mxu0 %v11737_v42  ;;  %v8738_v17 = vld [vmem:[%s11292_s5 + $0xf0] ss:$8 sps:$4 sm:$0xff]  }
 0x9ba   : > { %2185 = vmatprep.subr.bf16.mxu1 %v11738_v23  ;;  %5969 = vmatprep.subr.bf16.mxu0 %v11656_v50  ;;  %11750 = vst [vmem:[#allocation63_spill] sm:$0xff] %v8738_v17  ;;  %v11751_v42 = vld [vmem:[#allocation61_spill] sm:$0xff] }
 0x9bd   : > { %2186 = vmatpush1.bf16.msra.mxu1 %v11739_v39  ;;  %5970 = vmatpush3.bf16.msra.mxu0 %v11740_v41 }
 0x9be   : > { %2187 = vmatprep.subr.bf16.mxu1 %v11741_v59  ;;  %5971 = vmatprep.subr.bf16.mxu0 %v11656_v50 }
 0x9c1   : > { %2188 = vmatpush1.bf16.msra.mxu1 %v11742_v31  ;;  %5972 = vmatpush3.bf16.msra.mxu0 %v11743_v53 }
 0x9c2   : > { %2189 = vmatprep.subr.bf16.mxu1 %v11744_v55  ;;  %5973 = vmatprep.subr.bf16.mxu0 %v11656_v50 }
 0x9c5   : > { %2190 = vmatpush1.bf16.msra.mxu1 %v11745_v18  ;;  %5974 = vmatpush3.bf16.msra.mxu0 %v11746_v56 }
 0x9c6   : > { %2191 = vmatprep.subr.bf16.mxu1 %v11747_v47  ;;  %5975 = vmatprep.subr.bf16.mxu0 %v11656_v50 }
 0x9c9   : > { %2192 = vmatpush1.bf16.msra.mxu1 %v8244_v49  ;;  %5976 = vmatpush3.bf16.msra.mxu0 %v8247_v46  ;;  %v8527_v46 = vld [vmem:[%s11292_s5 + $0x4] ss:$8 sps:$4 sm:$0xff]   ;;  %v8565_v49 = vld [vmem:[%s11292_s5 + $0x20] ss:$8 sps:$4 sm:$0xff]  }
 0x9ca   : > { %2193 = vmatprep.subr.bf16.mxu1 %v8250_v61  ;;  %5977 = vmatprep.subr.bf16.mxu0 %v11656_v50  ;;  %v8572_v61 = vld [vmem:[%s11292_s5 + $0x34] ss:$8 sps:$4 sm:$0xff]  }
 0x9cd   : > { %2194 = vmatpush1.bf16.msra.mxu1 %v8254_v36  ;;  %5978 = vmatpush3.bf16.msra.mxu0 %v8257_v0  ;;  %v8536_v36 = vld [vmem:[%s11292_s5] ss:$8 sps:$4 sm:$0xff]   ;;  %v8579_v0 = vld [vmem:[%s11292_s5 + $0x30] ss:$8 sps:$4 sm:$0xff]  }
 0x9ce   : > { %2195 = vmatprep.subr.bf16.mxu1 %v8260_v51  ;;  %5979 = vmatprep.subr.bf16.mxu0 %v11656_v50  ;;  %v8551_v51 = vld [vmem:[%s11292_s5 + $0x10] ss:$8 sps:$4 sm:$0xff]  }
 0x9d1   : > { %2196 = vmatpush1.bf16.msra.mxu1 %v8264_v48  ;;  %5980 = vmatpush3.bf16.msra.mxu0 %v8267_v35  ;;  %v8543_v35 = vld [vmem:[%s11292_s5 + $0x14] ss:$8 sps:$4 sm:$0xff]   ;;  %v8558_v48 = vld [vmem:[%s11292_s5 + $0x24] ss:$8 sps:$4 sm:$0xff]  }
 0x9d2   : > { %2377 = vmatprep.subr.bf16.mxu0 %v8527_v46  ;;  %2284 = vmatprep.subr.bf16.mxu1 %v8309_v1  ;;  %v8586_v1 = vld [vmem:[%s11292_s5 + $0x44] ss:$8 sps:$4 sm:$0xff]  }
 0x9d4   : > { %2214 = vmatmul.mubr.bf16.vlgmr.msra.gmra.mrb[20].mxu1 %v8403_v29  ;;  %5982 = vmatmul.mubr.bf16.vlgmr.msra.gmra.mrb[24].mxu0 %v8403_v29  ;;  %v8678_v29 = vld [vmem:[%s11292_s5 + $0xa0] ss:$8 sps:$4 sm:$0xff]  }
 0x9d5   : > { %2378 = vmatpush1.bf16.msra.mxu0 %v8536_v36  ;;  %2285 = vmatpush1.bf16.msra.mxu1 %v8311_v2  ;;  %v8593_v2 = vld [vmem:[%s11292_s5 + $0x40] ss:$8 sps:$4 sm:$0xff]  }
 0x9d6   : > { %2379 = vmatprep.subr.bf16.mxu0 %v8543_v35  ;;  %2286 = vmatprep.subr.bf16.mxu1 %v8315_v3  ;;  %v8600_v3 = vld [vmem:[%s11292_s5 + $0x54] ss:$8 sps:$4 sm:$0xff]  }
 0x9d7   : > { %2316 = vmatprep.mubr.bf16.mxu1 %v11671_v44 }
 0x9d9   : > { %2380 = vmatpush1.bf16.msra.mxu0 %v8551_v51  ;;  %2287 = vmatpush1.bf16.msra.mxu1 %v8318_v4  ;;  %v8607_v4 = vld [vmem:[%s11292_s5 + $0x50] ss:$8 sps:$4 sm:$0xff]  }
 0x9da   : > { %2381 = vmatprep.subr.bf16.mxu0 %v8558_v48  ;;  %2288 = vmatprep.subr.bf16.mxu1 %v8321_v5  ;;  %v8614_v5 = vld [vmem:[%s11292_s5 + $0x64] ss:$8 sps:$4 sm:$0xff]  }
 0x9dd   : > { %2382 = vmatpush1.bf16.msra.mxu0 %v8565_v49  ;;  %2289 = vmatpush1.bf16.msra.mxu1 %v8323_v6  ;;  %v8621_v6 = vld [vmem:[%s11292_s5 + $0x60] ss:$8 sps:$4 sm:$0xff]  }
 0x9de   : > { %2383 = vmatprep.subr.bf16.mxu0 %v8572_v61  ;;  %2290 = vmatprep.subr.bf16.mxu1 %v8327_v7  ;;  %v8628_v7 = vld [vmem:[%s11292_s5 + $0x74] ss:$8 sps:$4 sm:$0xff]  }
 0x9e1   : > { %2384 = vmatpush1.bf16.msra.mxu0 %v8579_v0  ;;  %2291 = vmatpush1.bf16.msra.mxu1 %v8329_v8  ;;  %v8635_v8 = vld [vmem:[%s11292_s5 + $0x70] ss:$8 sps:$4 sm:$0xff]  }
 0x9e2   : > { %2385 = vmatprep.subr.bf16.mxu0 %v8586_v1  ;;  %2292 = vmatprep.subr.bf16.mxu1 %v8333_v9  ;;  %v11748_v9 = vld [vmem:[#allocation92_spill] sm:$0xff] }
 0x9e5   : > { %2386 = vmatpush1.bf16.msra.mxu0 %v8593_v2  ;;  %2293 = vmatpush1.bf16.msra.mxu1 %v8335_v10  ;;  %v8642_v10 = vld [vmem:[%s11292_s5 + $0x84] ss:$8 sps:$4 sm:$0xff]  }
 0x9e6   : > { %2387 = vmatprep.subr.bf16.mxu0 %v8600_v3  ;;  %2294 = vmatprep.subr.bf16.mxu1 %v8337_v11  ;;  %v8648_v11 = vld [vmem:[%s11291_s4 + $0x40] sm:$0xff]  }
 0x9e9   : > { %2388 = vmatpush1.bf16.msra.mxu0 %v8607_v4  ;;  %2295 = vmatpush1.bf16.msra.mxu1 %v8341_v12  ;;  %v8654_v12 = vld [vmem:[%s11292_s5 + $0x80] ss:$8 sps:$4 sm:$0xff]  }
 0x9ea   : > { %2389 = vmatprep.subr.bf16.mxu0 %v8614_v5  ;;  %2296 = vmatprep.subr.bf16.mxu1 %v8344_v13  ;;  %v8660_v13 = vld [vmem:[%s11292_s5 + $0x94] ss:$8 sps:$4 sm:$0xff]  }
 0x9ed   : > { %2390 = vmatpush1.bf16.msra.mxu0 %v8621_v6  ;;  %2297 = vmatpush1.bf16.msra.mxu1 %v8347_v15  ;;  %v8666_v15 = vld [vmem:[%s11292_s5 + $0x90] ss:$8 sps:$4 sm:$0xff]  }
 0x9ee   : > { %2391 = vmatprep.subr.bf16.mxu0 %v8628_v7  ;;  %2298 = vmatprep.subr.bf16.mxu1 %v8350_v16  ;;  %v8672_v16 = vld [vmem:[%s11292_s5 + $0xa4] ss:$8 sps:$4 sm:$0xff]  }
 0x9f1   : > { %2392 = vmatpush1.bf16.msra.mxu0 %v8635_v8  ;;  %2299 = vmatpush1.bf16.msra.mxu1 %v11748_v9 }
 0x9f2   : > { %2393 = vmatprep.subr.bf16.mxu0 %v8642_v10  ;;  %5533 = vmatprep.subr.bf16.mxu1 %v8648_v11 }
 0x9f5   : > { %2394 = vmatpush1.bf16.msra.mxu0 %v8654_v12 }
 0x9f6   : > { %2395 = vmatprep.subr.bf16.mxu0 %v8660_v13 }
 0x9f9   : > { %2396 = vmatpush1.bf16.msra.mxu0 %v8666_v15 }
 0x9fa   : > { %2397 = vmatprep.subr.bf16.mxu0 %v8672_v16 }
 0x9fd   : > { %2398 = vmatpush1.bf16.msra.mxu0 %v8678_v29 }
 0x9fe   : > { %2399 = vmatprep.subr.bf16.mxu0 %v8684_v25 }
 0xa01   : > { %2400 = vmatpush1.bf16.msra.mxu0 %v8690_v43 }
 0xa02   : > { %2401 = vmatprep.subr.bf16.mxu0 %v8696_v63 }
 0xa05   : > { %2402 = vmatpush1.bf16.msra.mxu0 %v8702_v58 }
 0xa06   : > { %2403 = vmatprep.subr.bf16.mxu0 %v8708_v60 }
 0xa09   : > { %2404 = vmatpush1.bf16.msra.mxu0 %v8714_v45 }
 0xa0a   : > { %2405 = vmatprep.subr.bf16.mxu0 %v8720_v32 }
 0xa0d   : > { %2406 = vmatpush1.bf16.msra.mxu0 %v8726_v21 }
 0xa0e   : > { %2407 = vmatprep.subr.bf16.mxu0 %v8732_v38 }
 0xa11   : > { %2408 = vmatpush1.bf16.msra.mxu0 %v8738_v17 }
 0xa12   : > { %2542 = vmatprep.subr.bf16.mxu0 %v11751_v42 }
 0xa87   : > { %v2175_v23 = vpop.f32.mrb[20].mxu0 }
 0xa88   : > { %v5963_v39 = vpop.f32.mrb[21].mxu0 }
 0xa89   : > { %v2178_v41 = vpop.f32.mrb[22].mxu0 }
 0xa8a   : > { %v5964_v59 = vpop.f32.mrb[23].mxu0 }
 0xaa7   : > { %v2215_v31 = vpop.f32.mrb[20].mxu1  ;;  %v2256_v53 = vpop.f32.mrb[24].mxu0 }
 0xaa8   : > { %v6230_v55 = vadd.f32 %v8377_v28, %v2215_v31  ;;  %v2217_v18 = vpop.f32.mrb[21].mxu1  ;;  %v5983_v56 = vpop.f32.mrb[25].mxu0  ;;  %v2257_v31 = vadd.f32 %v2256_v53, %v8384_v27 }
 0xaa9   : > { %v2219_v47 = vpop.f32.mrb[22].mxu1  ;;  %v2259_v9 = vpop.f32.mrb[26].mxu0  ;;  %v6232_v40 = vadd.f32 %v8379_v30, %v2217_v18 }
 0xaaa   : > { %v5360_v42 = vmul.f32 -1.442695, %v6230_v55  ;;  %v2220_v20 = vpop.f32.mrb[23].mxu1  ;;  %v5984_v22 = vpop.f32.mrb[27].mxu0  ;;  %v2176_v47 = vadd.f32 %v2175_v23, %v8386_v34 }
 0xaab   : > { %v5361_v17 = vmul.f32 -1.442695, %v6232_v40 }
 0xaac   : > { %6592 = vpow2.f32 %v5360_v42 }
 0xaad   : > { %6594 = vpow2.f32 %v5361_v17  ;;  %v2367_v17 = vstv %s2366_s11  ;;  %s5060_s11 = sshll.u32 %s7699_s22, 4  ;;  %s11171_s11 = int_to_ptr.vmem [resolvable:$true] %s5060_s11 }
 0xaae   : > { %vm2368_vm4 = vcmp.eq.s32.totalorder %v2367_v17, 1  ;;  %v8821_v17 = vld [vmem:[%s11291_s4 + $0x58] sm:$0xff]  }
 0xaaf   : > { %11756 = vst [vmem:[#allocation38_spill] sm:$0xff] %v8821_v17 }
 0xab6   : > { %v6593_v39 = vpop.eup %6592 }
 0xab7   : > { %v2266_v41 = vadd.f32 1.0, %v6593_v39  ;;  %v6595_v59 = vpop.eup %6594 }
 0xab8   : > { %v2273_v38 = vadd.f32 1.0, %v6595_v59  ;;  %v8777_v59 = vld [vmem:[%s11291_s4] sm:$0xff]  }
 0xab9   : > { %6596 = vrcp.f32 %v2266_v41 }
 0xaba   : > { %6598 = vrcp.f32 %v2273_v38  ;;  %v8767_v38 = vld [vmem:[%s2372_s1] ss:$0 sps:$4 sm:$0x11]   ;;  %s9556_s1 = sld [smem:[#allocation4 + %s3254_s25]]  ;;  %s4138_s25 = sadd.s32 6, %s7747_s21 }
 0xabb   : > { %p4575_p7 = scmp.lt.s32.totalorder %s4138_s25, %s7693_s30 }
 0xac0   : > { %s3256_s9 = scalar_lea.vmem %s11289_s2, %s9556_s1 }
 0xac1   : > { %s3692_s1 = scalar_select %p3691_p13, 1, 0 }
 0xac3   : > { %v6597_v56 = vpop.eup %6596 }
 0xac4   : > { %v2276_v55 = vmul.f32 %v6597_v56, %v2257_v31  ;;  %v6599_v40 = vpop.eup %6598  ;;  %v8787_v31 = vld [vmem:[#allocation8] ss:$12 sps:$4 sm:$0xff]   ;;  %v8791_v56 = vld [vmem:[#allocation8 + $0x1c] ss:$12 sps:$4 sm:$0xff]  }
 0xac5   : > { %v2279_v20 = vsub.f32 1.0, %v6599_v40  ;;  %v2281_v42 = vmul.f32 %v6599_v40, %v8392_v26  ;;  %v8809_v40 = vld [vmem:[#allocation8 + $0x34] ss:$12 sps:$4 sm:$0xff]  }
 0xac6   : > { %v2277_v22 = vadd.f32 %v2276_v55, %v2176_v47  ;;  %v8797_v47 = vld [vmem:[%s11291_s4 + $0x8] sm:$0xff]   ;;  %v8803_v55 = vld [vmem:[%s11291_s4 + $0x50] sm:$0xff]   ;;  %11754 = vst [vmem:[#allocation64_spill] sm:$0xff] %v8809_v40 }
 0xac7   : > { %11752 = vst [vmem:[#allocation36_spill] sm:$0xff] %v8803_v55 }
 0xac8   : > { %6600 = vtanh.f32 %v2277_v22  ;;  %v8806_v22 = vld [vmem:[#allocation8 + $0x18] ss:$12 sps:$4 sm:$0xff]  }
 0xac9   : > { %11753 = vst [vmem:[#allocation37_spill] sm:$0xff] %v8806_v22 }
 0xad2   : > { %v6601_v18 = vpop.eup %6600 }
 0xad3   : > { %v2280_v9 = vmul.f32 %v6601_v18, %v2279_v20  ;;  %v8815_v20 = vld [vmem:[%s11291_s4 + $0x10] sm:$0xff]  }
 0xad4   : > { %11755 = vst [vmem:[#allocation65_spill] sm:$0xff] %v8815_v20  ;;  %v8824_v18 = vld [vmem:[#allocation8 + $0x30] ss:$12 sps:$4 sm:$0xff]  }
 0xad5   : > { %v2282_v53 = vadd.f32 %v2281_v42, %v2280_v9  ;;  %11757 = vst [vmem:[#allocation39_spill] sm:$0xff] %v8824_v18  ;;  %v8827_v9 = vld [vmem:[#allocation8 + $0x4c] ss:$12 sps:$4 sm:$0xff]  }
 0xad6   : > { %11758 = vst [vmem:[#allocation66_spill] sm:$0xff] %v8827_v9  ;;  %v8833_v42 = vld [vmem:[%s11291_s4 + $0x18] sm:$0xff]  }
 0xad7   : > { %v2283_v39 = vpack.c.bf16 %v2282_v53, %v2282_v53  ;;  %v8760_v23 = vsel %vm2368_vm4, %v2282_v53, %v8392_v26  ;;  %v8784_v26 = vld [vmem:[%s11291_s4 + $0x48] sm:$0xff]   ;;  %11759 = vst [vmem:[#allocation73_spill] sm:$0xff] %v8833_v42  ;;  %v8839_v53 = vld [vmem:[%s11291_s4 + $0x60] sm:$0xff]  }
 0xad8   : > { %v8771_v41 = vpack.c.bf16 %v8760_v23, %v8760_v23  ;;  %11760 = vst [vmem:[#allocation40_spill] sm:$0xff] %v8839_v53 }
 0xad9   : > { %2317 = vmatmul.mubr.bf16.vlgmr.msra.gmra.mrb[24].mxu1 %v2283_v39  ;;  %v8842_v39 = vld [vmem:[#allocation8 + $0x48] ss:$12 sps:$4 sm:$0xff]  }
 0xada   : > { %2409 = vmatprep.mubr.bf16.mxu0 %v8771_v41  ;;  %5534 = vmatpush3.bf16.msra.mxu1 %v8777_v59  ;;  %11761 = vst [vmem:[#allocation41_spill] sm:$0xff] %v8842_v39 }
 0xadb   : > { %2410 = vmatmul.mubr.bf16.vlgmr.msra.gmra.mrb[28].mxu0 %v8767_v38  ;;  %5535 = vmatprep.subr.bf16.mxu1 %v8784_v26 }
 0xadc   : > { %2543 = vmatpush1.bf16.msra.mxu0 %v8787_v31  ;;  %2574 = vmatprep.mubr.bf16.mxu0 %v11671_v44 }
 0xadd   : > { %2544 = vmatprep.subr.bf16.mxu0 %v8791_v56 }
 0xade   : > { %5536 = vmatpush3.bf16.msra.mxu1 %v8797_v47 }
 0xadf   : > { %5537 = vmatprep.subr.bf16.mxu1 %v8803_v55 }
 0xae0   : > { %2545 = vmatpush1.bf16.msra.mxu0 %v8806_v22 }
 0xae1   : > { %2546 = vmatprep.subr.bf16.mxu0 %v8809_v40 }
 0xae2   : > { %5538 = vmatpush3.bf16.msra.mxu1 %v8815_v20 }
 0xae3   : > { %5539 = vmatprep.subr.bf16.mxu1 %v8821_v17 }
 0xae4   : > { %2547 = vmatpush1.bf16.msra.mxu0 %v8824_v18  ;;  %v8845_v18 = vld [vmem:[#allocation8 + $0x64] ss:$12 sps:$4 sm:$0xff]  }
 0xae5   : > { %2548 = vmatprep.subr.bf16.mxu0 %v8827_v9  ;;  %11762 = vst [vmem:[#allocation74_spill] sm:$0xff] %v8845_v18  ;;  %v8851_v9 = vld [vmem:[%s11291_s4 + $0x20] sm:$0xff]  }
 0xae6   : > { %5540 = vmatpush3.bf16.msra.mxu1 %v8833_v42  ;;  %11763 = vst [vmem:[#allocation76_spill] sm:$0xff] %v8851_v9  ;;  %v8857_v42 = vld [vmem:[%s11291_s4 + $0x68] sm:$0xff]  }
 0xae7   : > { %5541 = vmatprep.subr.bf16.mxu1 %v8839_v53  ;;  %11764 = vst [vmem:[#allocation42_spill] sm:$0xff] %v8857_v42  ;;  %v8860_v53 = vld [vmem:[#allocation8 + $0x60] ss:$12 sps:$4 sm:$0xff]  }
 0xae8   : > { %2549 = vmatpush1.bf16.msra.mxu0 %v8842_v39  ;;  %11765 = vst [vmem:[#allocation43_spill] sm:$0xff] %v8860_v53  ;;  %v8863_v39 = vld [vmem:[#allocation8 + $0x7c] ss:$12 sps:$4 sm:$0xff]  }
 0xae9   : > { %2550 = vmatprep.subr.bf16.mxu0 %v8845_v18  ;;  %11766 = vst [vmem:[#allocation77_spill] sm:$0xff] %v8863_v39  ;;  %v8869_v18 = vld [vmem:[%s11291_s4 + $0x28] sm:$0xff]  }
 0xaea   : > { %5542 = vmatpush3.bf16.msra.mxu1 %v8851_v9  ;;  %11767 = vst [vmem:[#allocation79_spill] sm:$0xff] %v8869_v18  ;;  %v8875_v9 = vld [vmem:[%s11291_s4 + $0x70] sm:$0xff]  }
 0xaeb   : > { %5543 = vmatprep.subr.bf16.mxu1 %v8857_v42  ;;  %11768 = vst [vmem:[#allocation33_spill] sm:$0xff] %v8875_v9  ;;  %v8878_v42 = vld [vmem:[#allocation8 + $0x78] ss:$12 sps:$4 sm:$0xff]  }
 0xaec   : > { %2551 = vmatpush1.bf16.msra.mxu0 %v8860_v53  ;;  %11769 = vst [vmem:[#allocation44_spill] sm:$0xff] %v8878_v42 }
 0xaed   : > { %2552 = vmatprep.subr.bf16.mxu0 %v8863_v39  ;;  %v8885_v39 = vld [vmem:[%s11291_s4 + $0x30] sm:$0xff]  }
 0xaee   : > { %5544 = vmatpush3.bf16.msra.mxu1 %v8869_v18  ;;  %11770 = vst [vmem:[#allocation45_spill] sm:$0xff] %v8885_v39  ;;  %v8891_v18 = vld [vmem:[%s11291_s4 + $0x78] sm:$0xff]  }
 0xaef   : > { %5545 = vmatprep.subr.bf16.mxu1 %v8875_v9  ;;  %11771 = vst [vmem:[#allocation46_spill] sm:$0xff] %v8891_v18 }
 0xaf0   : > { %2553 = vmatpush1.bf16.msra.mxu0 %v8878_v42  ;;  %v8902_v42 = vld [vmem:[#allocation5 + $0x40] sm:$0xff]  }
 0xaf1   : > { %2554 = vmatprep.subr.bf16.mxu0 %v11698_v14  ;;  %v8899_v14 = vld [vmem:[%s11291_s4 + $0x38] sm:$0xff]   ;;  %11773 = vst [vmem:[#allocation48_spill] sm:$0xff] %v8902_v42 }
 0xaf2   : > { %5546 = vmatpush3.bf16.msra.mxu1 %v8885_v39  ;;  %11772 = vst [vmem:[#allocation47_spill] sm:$0xff] %v8899_v14 }
 0xaf3   : > { %5547 = vmatprep.subr.bf16.mxu1 %v8891_v18 }
 0xaf4   : > { %2555 = vmatpush1.bf16.msra.mxu0 %v11701_v52 }
 0xaf5   : > { %2556 = vmatprep.subr.bf16.mxu0 %v11702_v33 }
 0xaf6   : > { %5548 = vmatpush3.bf16.msra.mxu1 %v8899_v14 }
 0xaf7   : > { %5555 = vmatprep.subr.bf16.mxu1 %v8902_v42 }
 0xaf8   : > { %2557 = vmatpush1.bf16.msra.mxu0 %v11705_v19 }
 0xaf9   : > { %2623 = vmatprep.subr.bf16.mxu0 %v11706_v37 }
 0xbac   : > { %v8907_v18 = vpop.f32.mrb[24].mxu1 }
 0xbad   : > { %11774 = vst [vmem:[#allocation49_spill] sm:$0xff] %v8907_v18  ;;  %v8909_v52 = vpop.f32.mrb[25].mxu1 }
 0xbae   : > { %11775 = vst [vmem:[#allocation50_spill] sm:$0xff] %v8909_v52  ;;  %v2322_v33 = vpop.f32.mrb[26].mxu1  ;;  %v2411_v39 = vpop.f32.mrb[28].mxu0 }
 0xbaf   : > { %v2412_v9 = vadd.f32 %v2411_v39, %v11709_v24  ;;  %v2323_v53 = vpop.f32.mrb[27].mxu1  ;;  %v2413_v17 = vpop.f32.mrb[29].mxu0 }
 0xbb0   : > { %v2414_v14 = vadd.f32 %v2413_v17, %v11710_v54  ;;  %v2415_v20 = vpop.f32.mrb[30].mxu0 }
 0xbb1   : > { %v2416_v40 = vpop.f32.mrb[31].mxu0  ;;  %v2418_v42 = vsel %vm960_vm0, %v2412_v9, -inf }
 0xbb2   : > { %v2419_v19 = vsel %vm960_vm0, %v2414_v14, -inf }
 0xbb3   : > { %v2420_v22 = vmax.f32 %v2418_v42, %v2419_v19 }
 0xbb5   : > { %2421 = vmax.xlane.f32.xlu0 %v2420_v22 }
 0xc42   : > { %v2422_v37 = vpop.xlane.xlu0 %2421 }
 0xc43   : > { %v2423_v18 = vsub.f32 %v2412_v9, %v2422_v37  ;;  %v2424_v55 = vsub.f32 %v2414_v14, %v2422_v37  ;;  %v8919_v37 = vld [vmem:[#allocation5] sm:$0xff]  }
 0xc45   : > { %v2425_v52 = vmul.f32 1.442695, %v2423_v18  ;;  %v2427_v33 = vmul.f32 1.442695, %v2424_v55 }
 0xc47   : > { %6602 = vpow2.f32 %v2425_v52 }
 0xc48   : > { %6604 = vpow2.f32 %v2427_v33  ;;  %v8928_v33 = vld [vmem:[#allocation5 + $0x8] sm:$0xff]  }
 0xc51   : > { %v6603_v39 = vpop.eup %6602 }
 0xc52   : > { %v6605_v53 = vpop.eup %6604  ;;  %v2429_v24 = vsel %vm960_vm0, %v6603_v39, 0.0 }
 0xc53   : > { %v2430_v20 = vsel %vm960_vm0, %v6605_v53, 0.0 }
 0xc54   : > { %v2431_v40 = vadd.f32 %v2430_v20, %v2429_v24  ;;  %v8922_v24 = vld [vmem:[#allocation5 + $0x48] sm:$0xff]   ;;  %v8937_v20 = vld [vmem:[#allocation5 + $0x58] sm:$0xff]  }
 0xc56   : > { %2432 = vadd.xlane.f32.xlu1 %v2431_v40  ;;  %v8940_v40 = vld [vmem:[#allocation5 + $0x18] sm:$0xff]  }
 0xc57   : > { %11776 = vst [vmem:[#allocation51_spill] sm:$0xff] %v8940_v40 }
 0xce3   : > { %v2433_v17 = vpop.xlane.xlu1 %2432 }
 0xce4   : > { %6606 = vrcp.f32 %v2433_v17  ;;  %v8943_v17 = vld [vmem:[#allocation5 + $0x60] sm:$0xff]  }
 0xce5   : > { %11777 = vst [vmem:[#allocation52_spill] sm:$0xff] %v8943_v17 }
 0xcee   : > { %v6607_v42 = vpop.eup %6606 }
 0xcef   : > { %v2435_v22 = vmul.f32 %v6607_v42, %v6603_v39  ;;  %v2436_v19 = vmul.f32 %v6607_v42, %v6605_v53  ;;  %v8931_v39 = vld [vmem:[#allocation5 + $0x50] sm:$0xff]   ;;  %v8946_v42 = vld [vmem:[#allocation5 + $0x20] sm:$0xff]  }
 0xcf0   : > { %v8934_v53 = vld [vmem:[#allocation5 + $0x10] sm:$0xff]   ;;  %11778 = vst [vmem:[#allocation53_spill] sm:$0xff] %v8946_v42 }
 0xcf1   : > { %v2439_v9 = vcombine.low %v2435_v22, %v2436_v19  ;;  %v2458_v14 = vpack.c.bf16 %v2436_v19, %v2436_v19  ;;  %v2457_v18 = vpack.c.bf16 %v2435_v22, %v2435_v22  ;;  %v8949_v22 = vld [vmem:[#allocation5 + $0x68] sm:$0xff]  }
 0xcf2   : > { %11779 = vst [vmem:[#allocation54_spill] sm:$0xff] %v8949_v22  ;;  %v8952_v19 = vld [vmem:[#allocation5 + $0x28] sm:$0xff]  }
 0xcf3   : > { %v2446_v55 = vrot.slane %v2439_v9, %v11711_v57  ;;  %2491 = vmatprep.mubr.bf16.mxu1 %v2458_v14  ;;  %11780 = vst [vmem:[#allocation55_spill] sm:$0xff] %v8952_v19  ;;  %v8955_v9 = vld [vmem:[#allocation5 + $0x70] sm:$0xff]  }
 0xcf4   : > { %2492 = vmatmul.mubr.bf16.vlgmr.msra.gmra.mrb[28].mxu1 %v2457_v18  ;;  %11781 = vst [vmem:[#allocation56_spill] sm:$0xff] %v8955_v9  ;;  %v8958_v14 = vld [vmem:[#allocation5 + $0x30] sm:$0xff]   ;;  %v8961_v18 = vld [vmem:[#allocation5 + $0x78] sm:$0xff]  }
 0xcf5   : > { %v2453_v52 = vrot.slane %v2446_v55, %v11711_v57  ;;  %5556 = vmatpush3.bf16.msra.mxu1 %v8919_v37  ;;  %11782 = vst [vmem:[#allocation57_spill] sm:$0xff] %v8958_v14  ;;  %11783 = vst [vmem:[#allocation58_spill] sm:$0xff] %v8961_v18  ;;  %v8964_v55 = vld [vmem:[#allocation5 + $0x38] sm:$0xff]  }
 0xcf6   : > { %5557 = vmatprep.subr.bf16.mxu1 %v8922_v24  ;;  %11784 = vst [vmem:[#allocation59_spill] sm:$0xff] %v8964_v55 }
 0xcf7   : > { %5364 = vst.msk [vmem:[%s7699_s22 + $0x4] sm:$0x3] %vm8051_vm1, %v2453_v52 }
 0xcf9   : > { %5558 = vmatpush3.bf16.msra.mxu1 %v8928_v33 }
 0xcfa   : > { %5559 = vmatprep.subr.bf16.mxu1 %v8931_v39 }
 0xcfd   : > { %5560 = vmatpush3.bf16.msra.mxu1 %v8934_v53 }
 0xcfe   : > { %5561 = vmatprep.subr.bf16.mxu1 %v8937_v20 }
 0xd01   : > { %5562 = vmatpush3.bf16.msra.mxu1 %v8940_v40  ;;  %v9009_v40 = vld [vmem:[#allocation10] ss:$12 sps:$4 sm:$0xff]  }
 0xd02   : > { %5563 = vmatprep.subr.bf16.mxu1 %v8943_v17 }
 0xd05   : > { %5564 = vmatpush3.bf16.msra.mxu1 %v8946_v42 }
 0xd06   : > { %5565 = vmatprep.subr.bf16.mxu1 %v8949_v22 }
 0xd09   : > { %5566 = vmatpush3.bf16.msra.mxu1 %v8952_v19 }
 0xd0a   : > { %5567 = vmatprep.subr.bf16.mxu1 %v8955_v9 }
 0xd0d   : > { %5568 = vmatpush3.bf16.msra.mxu1 %v8958_v14  ;;  %v8969_v14 = vld [vmem:[#allocation8 + $0x8] ss:$12 sps:$4 sm:$0xff]  }
 0xd0e   : > { %5569 = vmatprep.subr.bf16.mxu1 %v8961_v18  ;;  %11785 = vst [vmem:[#allocation60_spill] sm:$0xff] %v8969_v14 }
 0xd11   : > { %5570 = vmatpush3.bf16.msra.mxu1 %v8964_v55  ;;  %v8975_v55 = vld [vmem:[#allocation8 + $0x20] ss:$12 sps:$4 sm:$0xff]  }
 0xd12   : > { %5985 = vmatprep.subr.bf16.mxu1 %v11656_v50  ;;  %11786 = vst [vmem:[#allocation67_spill] sm:$0xff] %v8975_v55 }
 0xdc7   : > { %v5549_v52 = vpop.f32.mrb[28].mxu1 }
 0xdc8   : > { %v5550_v19 = vpop.f32.mrb[29].mxu1 }
 0xdc9   : > { %v5551_v22 = vadd.f32 %v5550_v19, %v5549_v52  ;;  %v5552_v42 = vpop.f32.mrb[30].mxu1  ;;  %v8995_v19 = vld [vmem:[#allocation8 + $0x98] ss:$12 sps:$4 sm:$0xff]  }
 0xdca   : > { %v5553_v17 = vpop.f32.mrb[31].mxu1  ;;  %v8987_v42 = vld [vmem:[#allocation8 + $0x68] ss:$12 sps:$4 sm:$0xff]   ;;  %11791 = vst [vmem:[#allocation72_spill] sm:$0xff] %v8995_v19 }
 0xdcb   : > { %v2499_v9 = vpack.c.bf16 %v5551_v22, %v5551_v22  ;;  %v8979_v17 = vld [vmem:[#allocation8 + $0x38] ss:$12 sps:$4 sm:$0xff]   ;;  %11789 = vst [vmem:[#allocation70_spill] sm:$0xff] %v8987_v42  ;;  %v8991_v22 = vld [vmem:[#allocation8 + $0x80] ss:$12 sps:$4 sm:$0xff]  }
 0xdcc   : > { %11787 = vst [vmem:[#allocation68_spill] sm:$0xff] %v8979_v17  ;;  %11790 = vst [vmem:[#allocation71_spill] sm:$0xff] %v8991_v22 }
 0xdcd   : > { %2532 = vmatprep.mubr.bf16.mxu1 %v2499_v9  ;;  %v8999_v9 = vld [vmem:[#allocation8 + $0xb0] ss:$12 sps:$4 sm:$0xff]  }
 0xdce   : > { %2533 = vmatmul.mubr.bf16.vlgmr.msra.gmra.mrb[32].mxu1 %v8767_v38  ;;  %v8983_v38 = vld [vmem:[#allocation8 + $0x50] ss:$12 sps:$4 sm:$0xff]   ;;  %11792 = vst [vmem:[#allocation75_spill] sm:$0xff] %v8999_v9 }
 0xdcf   : > { %5986 = vmatpush3.bf16.msra.mxu1 %v8969_v14  ;;  %6001 = vmatprep.mubr.msk.bf16.mxu1 %vm7412_vm2, %v11656_v50  ;;  %11788 = vst [vmem:[#allocation69_spill] sm:$0xff] %v8983_v38 }
 0xdd0   : > { %5987 = vmatprep.subr.bf16.mxu1 %v11656_v50 }
 0xdd3   : > { %5988 = vmatpush3.bf16.msra.mxu1 %v8975_v55 }
 0xdd4   : > { %5989 = vmatprep.subr.bf16.mxu1 %v11656_v50 }
 0xdd7   : > { %5990 = vmatpush3.bf16.msra.mxu1 %v8979_v17 }
 0xdd8   : > { %5991 = vmatprep.subr.bf16.mxu1 %v11656_v50 }
 0xddb   : > { %5992 = vmatpush3.bf16.msra.mxu1 %v8983_v38 }
 0xddc   : > { %5993 = vmatprep.subr.bf16.mxu1 %v11656_v50 }
 0xddf   : > { %5994 = vmatpush3.bf16.msra.mxu1 %v8987_v42 }
 0xde0   : > { %5995 = vmatprep.subr.bf16.mxu1 %v11656_v50 }
 0xde3   : > { %5996 = vmatpush3.bf16.msra.mxu1 %v8991_v22  ;;  %v9006_v22 = vld [vmem:[%s11295_s8] sm:$0x1] }
 0xde4   : > { %5997 = vmatprep.subr.bf16.mxu1 %v11656_v50 }
 0xde7   : > { %5998 = vmatpush3.bf16.msra.mxu1 %v8995_v19 }
 0xde8   : > { %5999 = vmatprep.subr.bf16.mxu1 %v11656_v50 }
 0xdeb   : > { %6000 = vmatpush3.bf16.msra.mxu1 %v8999_v9  ;;  %v9012_v9 = vld [vmem:[#allocation10 + $0x8] ss:$12 sps:$4 sm:$0xff]  }
 0xdec   : > { %6005 = vmatprep.subr.bf16.mxu1 %v11656_v50 }
 0xea1   : > { %v5571_v52 = vpop.f32.mrb[32].mxu1 }
 0xea2   : > { %v5572_v42 = vpop.f32.mrb[33].mxu1 }
 0xea3   : > { %v5573_v38 = vadd.f32 %v5572_v42, %v5571_v52  ;;  %v5574_v17 = vpop.f32.mrb[34].mxu1  ;;  %v9035_v42 = vld [vmem:[#allocation10 + $0x38] ss:$12 sps:$4 sm:$0xff]   ;;  %v9042_v52 = vld [vmem:[#allocation10 + $0x48] ss:$12 sps:$4 sm:$0xff]  }
 0xea4   : > { %v5575_v55 = vpop.f32.mrb[35].mxu1  ;;  %v9028_v17 = vld [vmem:[#allocation10 + $0x34] ss:$12 sps:$4 sm:$0xff]   ;;  %11796 = vst [vmem:[#allocation82_spill] sm:$0xff] %v9035_v42  ;;  %11798 = vst [vmem:[#allocation84_spill] sm:$0xff] %v9042_v52 }
 0xea5   : > { %v2535_v19 = vadd.f32 %v9006_v22, %v5573_v38  ;;  %v9015_v55 = vld [vmem:[#allocation10 + $0x1c] ss:$12 sps:$4 sm:$0xff]   ;;  %11794 = vst [vmem:[#allocation80_spill] sm:$0xff] %v9028_v17 }
 0xea6   : > { %v9032_v38 = vld [vmem:[#allocation10 + $0x30] ss:$12 sps:$4 sm:$0xff]  }
 0xea7   : > { %v2540_v14 = vmax.f32 %v2535_v19, 0.0  ;;  %11795 = vst [vmem:[#allocation81_spill] sm:$0xff] %v9032_v38  ;;  %v9038_v19 = vld [vmem:[#allocation10 + $0x4c] ss:$12 sps:$4 sm:$0xff]  }
 0xea8   : > { %11797 = vst [vmem:[#allocation83_spill] sm:$0xff] %v9038_v19 }
 0xea9   : > { %v2541_v18 = vpack.c.bf16 %v2540_v14, %v2540_v14  ;;  %v9022_v14 = vld [vmem:[#allocation10 + $0x18] ss:$12 sps:$4 sm:$0xff]  }
 0xeab   : > { %2575 = vmatmul.mubr.bf16.vlgmr.msra.gmra.mrb[32].mxu0 %v2541_v18  ;;  %6002 = vmatmul.mubr.bf16.vlgmr.msra.gmra.mrb[36].mxu1 %v2541_v18  ;;  %v9025_v18 = vld [vmem:[#allocation10 + $0x20] ss:$12 sps:$4 sm:$0xff]  }
 0xeac   : > { %2624 = vmatpush1.bf16.msra.mxu0 %v9009_v40  ;;  %6006 = vmatpush3.bf16.msra.mxu1 %v9012_v9  ;;  %11793 = vst [vmem:[#allocation78_spill] sm:$0xff] %v9025_v18 }
 0xead   : > { %2625 = vmatprep.subr.bf16.mxu0 %v9015_v55  ;;  %6007 = vmatprep.subr.bf16.mxu1 %v11656_v50 }
 0xeae   : > { %2655 = vmatprep.mubr.bf16.mxu0 %v11671_v44  ;;  %6021 = vmatprep.mubr.msk.bf16.mxu1 %vm7412_vm2, %v11656_v50 }
 0xeb0   : > { %2626 = vmatpush1.bf16.msra.mxu0 %v9022_v14  ;;  %6008 = vmatpush3.bf16.msra.mxu1 %v9025_v18  ;;  %v9048_v18 = vld [vmem:[#allocation10 + $0x64] ss:$12 sps:$4 sm:$0xff]  }
 0xeb1   : > { %2627 = vmatprep.subr.bf16.mxu0 %v9028_v17  ;;  %6009 = vmatprep.subr.bf16.mxu1 %v11656_v50  ;;  %v9045_v17 = vld [vmem:[#allocation10 + $0x50] ss:$12 sps:$4 sm:$0xff]   ;;  %11800 = vst [vmem:[#allocation86_spill] sm:$0xff] %v9048_v18 }
 0xeb2   : > { %11799 = vst [vmem:[#allocation85_spill] sm:$0xff] %v9045_v17 }
 0xeb4   : > { %2628 = vmatpush1.bf16.msra.mxu0 %v9032_v38  ;;  %6010 = vmatpush3.bf16.msra.mxu1 %v9035_v42  ;;  %v9052_v42 = vld [vmem:[#allocation10 + $0x60] ss:$12 sps:$4 sm:$0xff]   ;;  %v9058_v38 = vld [vmem:[#allocation10 + $0x7c] ss:$12 sps:$4 sm:$0xff]  }
 0xeb5   : > { %2629 = vmatprep.subr.bf16.mxu0 %v9038_v19  ;;  %6011 = vmatprep.subr.bf16.mxu1 %v11656_v50  ;;  %11801 = vst [vmem:[#allocation87_spill] sm:$0xff] %v9052_v42  ;;  %v9055_v19 = vld [vmem:[#allocation10 + $0x68] ss:$12 sps:$4 sm:$0xff]   ;;  %11803 = vst [vmem:[#allocation89_spill] sm:$0xff] %v9058_v38 }
 0xeb6   : > { %11802 = vst [vmem:[#allocation88_spill] sm:$0xff] %v9055_v19 }
 0xeb8   : > { %2630 = vmatpush1.bf16.msra.mxu0 %v9042_v52  ;;  %6012 = vmatpush3.bf16.msra.mxu1 %v9045_v17  ;;  %v9062_v17 = vld [vmem:[#allocation10 + $0x78] ss:$12 sps:$4 sm:$0xff]   ;;  %v9068_v52 = vld [vmem:[#allocation10 + $0x94] ss:$12 sps:$4 sm:$0xff]  }
 0xeb9   : > { %2631 = vmatprep.subr.bf16.mxu0 %v9048_v18  ;;  %6013 = vmatprep.subr.bf16.mxu1 %v11656_v50  ;;  %v9065_v18 = vld [vmem:[#allocation10 + $0x80] ss:$12 sps:$4 sm:$0xff]   ;;  %11805 = vst [vmem:[#allocation91_spill] sm:$0xff] %v9068_v52 }
 0xeba   : > { %11804 = vst [vmem:[#allocation90_spill] sm:$0xff] %v9065_v18 }
 0xebc   : > { %2632 = vmatpush1.bf16.msra.mxu0 %v9052_v42  ;;  %6014 = vmatpush3.bf16.msra.mxu1 %v9055_v19  ;;  %v9072_v19 = vld [vmem:[#allocation10 + $0x90] ss:$12 sps:$4 sm:$0xff]   ;;  %v9078_v42 = vld [vmem:[#allocation10 + $0xac] ss:$12 sps:$4 sm:$0xff]  }
 0xebd   : > { %2633 = vmatprep.subr.bf16.mxu0 %v9058_v38  ;;  %6015 = vmatprep.subr.bf16.mxu1 %v11656_v50  ;;  %11806 = vst [vmem:[#allocation92_spill] sm:$0xff] %v9072_v19  ;;  %v9075_v38 = vld [vmem:[#allocation10 + $0x98] ss:$12 sps:$4 sm:$0xff]   ;;  %11807 = vst [vmem:[#allocation61_spill] sm:$0xff] %v9078_v42 }
 0xec0   : > { %2634 = vmatpush1.bf16.msra.mxu0 %v9062_v17  ;;  %6016 = vmatpush3.bf16.msra.mxu1 %v9065_v18  ;;  %v9082_v18 = vld [vmem:[#allocation10 + $0xa8] ss:$12 sps:$4 sm:$0xff]  }
 0xec1   : > { %2635 = vmatprep.subr.bf16.mxu0 %v9068_v52  ;;  %6017 = vmatprep.subr.bf16.mxu1 %v11656_v50  ;;  %11808 = vst [vmem:[#allocation97_spill] sm:$0xff] %v9082_v18  ;;  %v9085_v52 = vld [vmem:[#allocation10 + $0xb0] ss:$12 sps:$4 sm:$0xff]  }
 0xec4   : > { %2636 = vmatpush1.bf16.msra.mxu0 %v9072_v19  ;;  %6018 = vmatpush3.bf16.msra.mxu1 %v9075_v38  ;;  %v9089_v19 = vld [vmem:[#allocation11 + $0x4] ss:$8 sps:$4 sm:$0xff]  }
 0xec5   : > { %2637 = vmatprep.subr.bf16.mxu0 %v9078_v42  ;;  %6019 = vmatprep.subr.bf16.mxu1 %v11656_v50  ;;  %v9095_v42 = vld [vmem:[#allocation11] ss:$8 sps:$4 sm:$0xff]  }
 0xec8   : > { %2638 = vmatpush1.bf16.msra.mxu0 %v9082_v18  ;;  %6020 = vmatpush3.bf16.msra.mxu1 %v9085_v52  ;;  %v9099_v18 = vld [vmem:[#allocation11 + $0x14] ss:$8 sps:$4 sm:$0xff]  }
 0xec9   : > { %2819 = vmatprep.subr.bf16.mxu1 %v8527_v46  ;;  %2726 = vmatprep.subr.bf16.mxu0 %v9089_v19  ;;  %v9104_v46 = vld [vmem:[#allocation11 + $0x10] ss:$8 sps:$4 sm:$0xff]  }
 0xecb   : > { %2656 = vmatmul.mubr.bf16.vlgmr.msra.gmra.mrb[32].mxu0 %v8771_v41  ;;  %6022 = vmatmul.mubr.bf16.vlgmr.msra.gmra.mrb[40].mxu1 %v8771_v41  ;;  %v9116_v41 = vld [vmem:[#allocation11 + $0x34] ss:$8 sps:$4 sm:$0xff]  }
 0xecc   : > { %2820 = vmatpush1.bf16.msra.mxu1 %v8536_v36  ;;  %2727 = vmatpush1.bf16.msra.mxu0 %v9095_v42  ;;  %v9108_v36 = vld [vmem:[#allocation11 + $0x24] ss:$8 sps:$4 sm:$0xff]  }
 0xecd   : > { %2821 = vmatprep.subr.bf16.mxu1 %v8543_v35  ;;  %2728 = vmatprep.subr.bf16.mxu0 %v9099_v18  ;;  %v9112_v35 = vld [vmem:[#allocation11 + $0x20] ss:$8 sps:$4 sm:$0xff]  }
 0xece   : > { %2758 = vmatprep.mubr.bf16.mxu0 %v11671_v44 }
 0xed0   : > { %2822 = vmatpush1.bf16.msra.mxu1 %v8551_v51  ;;  %2729 = vmatpush1.bf16.msra.mxu0 %v9104_v46  ;;  %v9120_v51 = vld [vmem:[#allocation11 + $0x30] ss:$8 sps:$4 sm:$0xff]  }
 0xed1   : > { %2823 = vmatprep.subr.bf16.mxu1 %v8558_v48  ;;  %2730 = vmatprep.subr.bf16.mxu0 %v9108_v36  ;;  %v9124_v48 = vld [vmem:[#allocation11 + $0x44] ss:$8 sps:$4 sm:$0xff]  }
 0xed4   : > { %2824 = vmatpush1.bf16.msra.mxu1 %v8565_v49  ;;  %2731 = vmatpush1.bf16.msra.mxu0 %v9112_v35  ;;  %v9128_v49 = vld [vmem:[#allocation11 + $0x40] ss:$8 sps:$4 sm:$0xff]  }
 0xed5   : > { %2825 = vmatprep.subr.bf16.mxu1 %v8572_v61  ;;  %2732 = vmatprep.subr.bf16.mxu0 %v9116_v41  ;;  %v9132_v61 = vld [vmem:[#allocation11 + $0x54] ss:$8 sps:$4 sm:$0xff]  }
 0xed8   : > { %2826 = vmatpush1.bf16.msra.mxu1 %v8579_v0  ;;  %2733 = vmatpush1.bf16.msra.mxu0 %v9120_v51  ;;  %v9136_v0 = vld [vmem:[#allocation11 + $0x50] ss:$8 sps:$4 sm:$0xff]  }
 0xed9   : > { %2827 = vmatprep.subr.bf16.mxu1 %v8586_v1  ;;  %2734 = vmatprep.subr.bf16.mxu0 %v9124_v48  ;;  %v9140_v1 = vld [vmem:[#allocation11 + $0x64] ss:$8 sps:$4 sm:$0xff]  }
 0xedc   : > { %2828 = vmatpush1.bf16.msra.mxu1 %v8593_v2  ;;  %2735 = vmatpush1.bf16.msra.mxu0 %v9128_v49  ;;  %v9144_v2 = vld [vmem:[#allocation11 + $0x60] ss:$8 sps:$4 sm:$0xff]  }
 0xedd   : > { %2829 = vmatprep.subr.bf16.mxu1 %v8600_v3  ;;  %2736 = vmatprep.subr.bf16.mxu0 %v9132_v61  ;;  %v9148_v3 = vld [vmem:[#allocation11 + $0x74] ss:$8 sps:$4 sm:$0xff]  }
 0xee0   : > { %2830 = vmatpush1.bf16.msra.mxu1 %v8607_v4  ;;  %2737 = vmatpush1.bf16.msra.mxu0 %v9136_v0  ;;  %v9152_v4 = vld [vmem:[#allocation11 + $0x70] ss:$8 sps:$4 sm:$0xff]  }
 0xee1   : > { %2831 = vmatprep.subr.bf16.mxu1 %v8614_v5  ;;  %2738 = vmatprep.subr.bf16.mxu0 %v9140_v1  ;;  %v11809_v5 = vld [vmem:[#allocation62_spill] sm:$0xff] }
 0xee4   : > { %2832 = vmatpush1.bf16.msra.mxu1 %v8621_v6  ;;  %2739 = vmatpush1.bf16.msra.mxu0 %v9144_v2  ;;  %v11810_v6 = vld [vmem:[#allocation63_spill] sm:$0xff] }
 0xee5   : > { %2833 = vmatprep.subr.bf16.mxu1 %v8628_v7  ;;  %2740 = vmatprep.subr.bf16.mxu0 %v9148_v3  ;;  %v9172_v7 = vld [vmem:[#allocation8 + $0x4] ss:$12 sps:$4 sm:$0xff]  }
 0xee8   : > { %2834 = vmatpush1.bf16.msra.mxu1 %v8635_v8  ;;  %2741 = vmatpush1.bf16.msra.mxu0 %v9152_v4 }
 0xee9   : > { %2835 = vmatprep.subr.bf16.mxu1 %v8642_v10  ;;  %5595 = vmatprep.subr.bf16.mxu0 %v8648_v11 }
 0xeec   : > { %2836 = vmatpush1.bf16.msra.mxu1 %v8654_v12 }
 0xeed   : > { %2837 = vmatprep.subr.bf16.mxu1 %v8660_v13 }
 0xef0   : > { %2838 = vmatpush1.bf16.msra.mxu1 %v8666_v15 }
 0xef1   : > { %2839 = vmatprep.subr.bf16.mxu1 %v8672_v16 }
 0xef4   : > { %2840 = vmatpush1.bf16.msra.mxu1 %v8678_v29 }
 0xef5   : > { %2841 = vmatprep.subr.bf16.mxu1 %v8684_v25 }
 0xef8   : > { %2842 = vmatpush1.bf16.msra.mxu1 %v8690_v43 }
 0xef9   : > { %2843 = vmatprep.subr.bf16.mxu1 %v8696_v63 }
 0xefc   : > { %2844 = vmatpush1.bf16.msra.mxu1 %v8702_v58 }
 0xefd   : > { %2845 = vmatprep.subr.bf16.mxu1 %v8708_v60 }
 0xf00   : > { %2846 = vmatpush1.bf16.msra.mxu1 %v8714_v45 }
 0xf01   : > { %2847 = vmatprep.subr.bf16.mxu1 %v8720_v32 }
 0xf04   : > { %2848 = vmatpush1.bf16.msra.mxu1 %v8726_v21 }
 0xf05   : > { %2849 = vmatprep.subr.bf16.mxu1 %v11809_v5 }
 0xf08   : > { %2850 = vmatpush1.bf16.msra.mxu1 %v11810_v6 }
 0xf09   : > { %2984 = vmatprep.subr.bf16.mxu1 %v9172_v7 }
 0xf7e   : > { %v2617_v8 = vpop.f32.mrb[36].mxu1 }
 0xf7f   : > { %v6003_v10 = vpop.f32.mrb[37].mxu1 }
 0xf80   : > { %v2620_v11 = vpop.f32.mrb[38].mxu1 }
 0xf81   : > { %v6004_v12 = vpop.f32.mrb[39].mxu1 }
 0xf9e   : > { %v2657_v13 = vpop.f32.mrb[32].mxu0  ;;  %v2698_v15 = vpop.f32.mrb[40].mxu1 }
 0xf9f   : > { %v6234_v16 = vadd.f32 %v8377_v28, %v2657_v13  ;;  %v2659_v29 = vpop.f32.mrb[33].mxu0  ;;  %v6023_v25 = vpop.f32.mrb[41].mxu1  ;;  %v2699_v12 = vadd.f32 %v2698_v15, %v8384_v27 }
 0xfa0   : > { %v2661_v43 = vpop.f32.mrb[34].mxu0  ;;  %v2701_v63 = vpop.f32.mrb[42].mxu1  ;;  %v6236_v32 = vadd.f32 %v8379_v30, %v2659_v29  ;;  %v2618_v25 = vadd.f32 %v2617_v8, %v8386_v34 }
 0xfa1   : > { %v5365_v58 = vmul.f32 -1.442695, %v6234_v16  ;;  %v2662_v60 = vpop.f32.mrb[35].mxu0  ;;  %v6024_v45 = vpop.f32.mrb[43].mxu1 }
 0xfa2   : > { %v5366_v21 = vmul.f32 -1.442695, %v6236_v32 }
 0xfa3   : > { %6608 = vpow2.f32 %v5365_v58  ;;  %v2809_v58 = vstv %s2808_s19 }
 0xfa4   : > { %6610 = vpow2.f32 %v5366_v21  ;;  %vm2810_vm5 = vcmp.eq.s32.totalorder %v2809_v58, 1  ;;  %v11826_v58 = vld [vmem:[#allocation79_spill] sm:$0xff] }
 0xfad   : > { %v6609_v5 = vpop.eup %6608 }
 0xfae   : > { %v2708_v6 = vadd.f32 1.0, %v6609_v5  ;;  %v6611_v10 = vpop.eup %6610  ;;  %v9200_v5 = vld [vmem:[%s2814_s15] ss:$0 sps:$4 sm:$0x11]   ;;  %s3696_s15 = sadd.s32 5, %s7747_s21 }
 0xfaf   : > { %v2715_v11 = vadd.f32 1.0, %v6611_v10  ;;  %v11812_v10 = vld [vmem:[#allocation37_spill] sm:$0xff]  ;;  %s9989_s0 = sld [smem:[#allocation4 + %s3696_s15]]  ;;  %p4133_p3 = scmp.lt.s32.totalorder %s3696_s15, %s7693_s30 }
 0xfb0   : > { %6612 = vrcp.f32 %v2708_v6 }
 0xfb1   : > { %6614 = vrcp.f32 %v2715_v11  ;;  %v11813_v11 = vld [vmem:[#allocation64_spill] sm:$0xff]  ;;  %s4134_s19 = scalar_select %p4133_p3, 1, 0 }
 0xfb5   : > { %s3698_s29 = scalar_lea.vmem %s11289_s2, %s9989_s0 }
 0xfba   : > { %v6613_v13 = vpop.eup %6612 }
 0xfbb   : > { %v2718_v16 = vmul.f32 %v6613_v13, %v2699_v12  ;;  %v6615_v29 = vpop.eup %6614  ;;  %v11814_v12 = vld [vmem:[#allocation65_spill] sm:$0xff]  ;;  %v11816_v13 = vld [vmem:[#allocation39_spill] sm:$0xff] }
 0xfbc   : > { %v2721_v63 = vsub.f32 1.0, %v6615_v29  ;;  %v2723_v32 = vmul.f32 %v6615_v29, %v8760_v23  ;;  %v11824_v29 = vld [vmem:[#allocation43_spill] sm:$0xff] }
 0xfbd   : > { %v2719_v43 = vadd.f32 %v2718_v16, %v2618_v25  ;;  %v11819_v25 = vld [vmem:[#allocation40_spill] sm:$0xff] }
 0xfbe   : > { %v11822_v16 = vld [vmem:[#allocation76_spill] sm:$0xff] }
 0xfbf   : > { %6616 = vtanh.f32 %v2719_v43  ;;  %v11823_v43 = vld [vmem:[#allocation42_spill] sm:$0xff] }
 0xfc9   : > { %v6617_v60 = vpop.eup %6616 }
 0xfca   : > { %v2722_v45 = vmul.f32 %v6617_v60, %v2721_v63  ;;  %v11825_v63 = vld [vmem:[#allocation77_spill] sm:$0xff] }
 0xfcb   : > { %v11827_v60 = vld [vmem:[#allocation33_spill] sm:$0xff] }
 0xfcc   : > { %v2724_v15 = vadd.f32 %v2723_v32, %v2722_v45  ;;  %v11828_v45 = vld [vmem:[#allocation44_spill] sm:$0xff] }
 0xfcd   : > { %v9232_v32 = vld [vmem:[#allocation8 + $0x94] ss:$12 sps:$4 sm:$0xff]  }
 0xfce   : > { %v2725_v21 = vpack.c.bf16 %v2724_v15, %v2724_v15  ;;  %v9193_v8 = vsel %vm2810_vm5, %v2724_v15, %v8760_v23  ;;  %v11811_v23 = vld [vmem:[#allocation36_spill] sm:$0xff]  ;;  %v11829_v15 = vld [vmem:[#allocation45_spill] sm:$0xff] }
 0xfcf   : > { %v9204_v6 = vpack.c.bf16 %v9193_v8, %v9193_v8 }
 0xfd0   : > { %2759 = vmatmul.mubr.bf16.vlgmr.msra.gmra.mrb[36].mxu0 %v2725_v21  ;;  %v11830_v21 = vld [vmem:[#allocation46_spill] sm:$0xff] }
 0xfd1   : > { %2851 = vmatprep.mubr.bf16.mxu1 %v9204_v6  ;;  %5596 = vmatpush3.bf16.msra.mxu0 %v8777_v59  ;;  %v11815_v59 = vld [vmem:[#allocation38_spill] sm:$0xff] }
 0xfd2   : > { %2852 = vmatmul.mubr.bf16.vlgmr.msra.gmra.mrb[44].mxu1 %v9200_v5  ;;  %5597 = vmatprep.subr.bf16.mxu0 %v8784_v26  ;;  %v11817_v26 = vld [vmem:[#allocation66_spill] sm:$0xff] }
 0xfd3   : > { %2985 = vmatpush1.bf16.msra.mxu1 %v8787_v31  ;;  %3016 = vmatprep.mubr.bf16.mxu1 %v11671_v44  ;;  %v11818_v31 = vld [vmem:[#allocation73_spill] sm:$0xff] }
 0xfd4   : > { %2986 = vmatprep.subr.bf16.mxu1 %v8791_v56  ;;  %v11820_v56 = vld [vmem:[#allocation41_spill] sm:$0xff] }
 0xfd5   : > { %5598 = vmatpush3.bf16.msra.mxu0 %v8797_v47  ;;  %v11821_v47 = vld [vmem:[#allocation74_spill] sm:$0xff] }
 0xfd6   : > { %5599 = vmatprep.subr.bf16.mxu0 %v11811_v23  ;;  %v9237_v23 = vld [vmem:[#allocation8 + $0x90] ss:$12 sps:$4 sm:$0xff]  }
 0xfd7   : > { %2987 = vmatpush1.bf16.msra.mxu1 %v11812_v10  ;;  %v9240_v10 = vld [vmem:[#allocation8 + $0xac] ss:$12 sps:$4 sm:$0xff]  }
 0xfd8   : > { %2988 = vmatprep.subr.bf16.mxu1 %v11813_v11  ;;  %v11831_v11 = vld [vmem:[#allocation47_spill] sm:$0xff] }
 0xfd9   : > { %5600 = vmatpush3.bf16.msra.mxu0 %v11814_v12  ;;  %v11832_v12 = vld [vmem:[#allocation48_spill] sm:$0xff] }
 0xfda   : > { %5601 = vmatprep.subr.bf16.mxu0 %v11815_v59  ;;  %v9245_v59 = vld [vmem:[#allocation8 + $0xa8] ss:$12 sps:$4 sm:$0xff]  }
 0xfdb   : > { %2989 = vmatpush1.bf16.msra.mxu1 %v11816_v13  ;;  %v9248_v13 = vld [vmem:[#allocation10 + $0x4] ss:$12 sps:$4 sm:$0xff]  }
 0xfdc   : > { %2990 = vmatprep.subr.bf16.mxu1 %v11817_v26 }
 0xfdd   : > { %5602 = vmatpush3.bf16.msra.mxu0 %v11818_v31 }
 0xfde   : > { %5603 = vmatprep.subr.bf16.mxu0 %v11819_v25 }
 0xfdf   : > { %2991 = vmatpush1.bf16.msra.mxu1 %v11820_v56 }
 0xfe0   : > { %2992 = vmatprep.subr.bf16.mxu1 %v11821_v47  ;;  %v11835_v47 = vld [vmem:[#allocation32_spill] sm:$0xff] }
 0xfe1   : > { %5604 = vmatpush3.bf16.msra.mxu0 %v11822_v16 }
 0xfe2   : > { %5605 = vmatprep.subr.bf16.mxu0 %v11823_v43 }
 0xfe3   : > { %2993 = vmatpush1.bf16.msra.mxu1 %v11824_v29 }
 0xfe4   : > { %2994 = vmatprep.subr.bf16.mxu1 %v11825_v63 }
 0xfe5   : > { %5606 = vmatpush3.bf16.msra.mxu0 %v11826_v58 }
 0xfe6   : > { %5607 = vmatprep.subr.bf16.mxu0 %v11827_v60 }
 0xfe7   : > { %2995 = vmatpush1.bf16.msra.mxu1 %v11828_v45 }
 0xfe8   : > { %2996 = vmatprep.subr.bf16.mxu1 %v9232_v32 }
 0xfe9   : > { %5608 = vmatpush3.bf16.msra.mxu0 %v11829_v15 }
 0xfea   : > { %5609 = vmatprep.subr.bf16.mxu0 %v11830_v21 }
 0xfeb   : > { %2997 = vmatpush1.bf16.msra.mxu1 %v9237_v23 }
 0xfec   : > { %2998 = vmatprep.subr.bf16.mxu1 %v9240_v10 }
 0xfed   : > { %5610 = vmatpush3.bf16.msra.mxu0 %v11831_v11 }
 0xfee   : > { %5617 = vmatprep.subr.bf16.mxu0 %v11832_v12 }
 0xfef   : > { %2999 = vmatpush1.bf16.msra.mxu1 %v9245_v59 }
 0xff0   : > { %3065 = vmatprep.subr.bf16.mxu1 %v9248_v13 }
0x10a3   : > { %v9251_v26 = vpop.f32.mrb[36].mxu0 }
0x10a4   : > { %11833 = vst [vmem:[#allocation62_spill] sm:$0xff] %v9251_v26  ;;  %v9253_v31 = vpop.f32.mrb[37].mxu0 }
0x10a5   : > { %11834 = vst [vmem:[#allocation63_spill] sm:$0xff] %v9253_v31  ;;  %v2764_v25 = vpop.f32.mrb[38].mxu0  ;;  %v2853_v56 = vpop.f32.mrb[44].mxu1 }
0x10a6   : > { %v2854_v16 = vadd.f32 %v2853_v56, %v11835_v47  ;;  %v2765_v43 = vpop.f32.mrb[39].mxu0  ;;  %v2855_v29 = vpop.f32.mrb[45].mxu1 }
0x10a7   : > { %v2856_v63 = vadd.f32 %v2855_v29, %v11710_v54  ;;  %v2857_v58 = vpop.f32.mrb[46].mxu1 }
0x10a8   : > { %v2858_v60 = vpop.f32.mrb[47].mxu1  ;;  %v2860_v45 = vsel %vm960_vm0, %v2854_v16, -inf }
0x10a9   : > { %v2861_v15 = vsel %vm960_vm0, %v2856_v63, -inf }
0x10aa   : > { %v2862_v21 = vmax.f32 %v2860_v45, %v2861_v15 }
0x10ac   : > { %2863 = vmax.xlane.f32.xlu0 %v2862_v21 }
0x1139   : > { %v2864_v11 = vpop.xlane.xlu0 %2863 }
0x113a   : > { %v2865_v12 = vsub.f32 %v2854_v16, %v2864_v11  ;;  %v2866_v26 = vsub.f32 %v2856_v63, %v2864_v11 }
0x113c   : > { %v2867_v31 = vmul.f32 1.442695, %v2865_v12  ;;  %v2869_v25 = vmul.f32 1.442695, %v2866_v26  ;;  %v11837_v12 = vld [vmem:[#allocation52_spill] sm:$0xff] }
0x113e   : > { %6618 = vpow2.f32 %v2867_v31 }
0x113f   : > { %6620 = vpow2.f32 %v2869_v25  ;;  %v11838_v25 = vld [vmem:[#allocation53_spill] sm:$0xff] }
0x1148   : > { %v6619_v56 = vpop.eup %6618 }
0x1149   : > { %v6621_v43 = vpop.eup %6620  ;;  %v2871_v47 = vsel %vm960_vm0, %v6619_v56, 0.0 }
0x114a   : > { %v2872_v29 = vsel %vm960_vm0, %v6621_v43, 0.0 }
0x114b   : > { %v2873_v58 = vadd.f32 %v2872_v29, %v2871_v47  ;;  %v11836_v47 = vld [vmem:[#allocation51_spill] sm:$0xff] }
0x114d   : > { %2874 = vadd.xlane.f32.xlu1 %v2873_v58 }
0x11da   : > { %v2875_v60 = vpop.xlane.xlu1 %2874 }
0x11db   : > { %6622 = vrcp.f32 %v2875_v60 }
0x11e5   : > { %v6623_v45 = vpop.eup %6622 }
0x11e6   : > { %v2877_v15 = vmul.f32 %v6623_v45, %v6619_v56  ;;  %v2878_v21 = vmul.f32 %v6623_v45, %v6621_v43  ;;  %v11841_v56 = vld [vmem:[#allocation56_spill] sm:$0xff]  ;;  %v11842_v43 = vld [vmem:[#allocation57_spill] sm:$0xff] }
0x11e8   : > { %v2881_v16 = vcombine.low %v2877_v15, %v2878_v21  ;;  %v2900_v63 = vpack.c.bf16 %v2878_v21, %v2878_v21  ;;  %v2899_v11 = vpack.c.bf16 %v2877_v15, %v2877_v15  ;;  %v11845_v15 = vld [vmem:[#allocation60_spill] sm:$0xff]  ;;  %v11846_v21 = vld [vmem:[#allocation67_spill] sm:$0xff] }
0x11ea   : > { %v2888_v26 = vrot.slane %v2881_v16, %v11711_v57  ;;  %2933 = vmatprep.mubr.bf16.mxu0 %v2900_v63  ;;  %v11847_v16 = vld [vmem:[#allocation68_spill] sm:$0xff]  ;;  %v11848_v63 = vld [vmem:[#allocation69_spill] sm:$0xff] }
0x11eb   : > { %2934 = vmatmul.mubr.bf16.vlgmr.msra.gmra.mrb[40].mxu0 %v2899_v11  ;;  %v11850_v11 = vld [vmem:[#allocation71_spill] sm:$0xff] }
0x11ec   : > { %v2895_v31 = vrot.slane %v2888_v26, %v11711_v57  ;;  %5618 = vmatpush3.bf16.msra.mxu0 %v8919_v37  ;;  %v11839_v37 = vld [vmem:[#allocation54_spill] sm:$0xff]  ;;  %v11851_v26 = vld [vmem:[#allocation72_spill] sm:$0xff] }
0x11ed   : > { %5619 = vmatprep.subr.bf16.mxu0 %v8922_v24  ;;  %v11840_v24 = vld [vmem:[#allocation55_spill] sm:$0xff] }
0x11ee   : > { %5369 = vst.msk [vmem:[%s7699_s22 + $0x6] sm:$0x3] %vm8051_vm1, %v2895_v31  ;;  %v11852_v31 = vld [vmem:[#allocation75_spill] sm:$0xff] }
0x11f0   : > { %5620 = vmatpush3.bf16.msra.mxu0 %v8928_v33  ;;  %v11843_v33 = vld [vmem:[#allocation58_spill] sm:$0xff] }
0x11f1   : > { %5621 = vmatprep.subr.bf16.mxu0 %v8931_v39  ;;  %v11844_v39 = vld [vmem:[#allocation59_spill] sm:$0xff] }
0x11f4   : > { %5622 = vmatpush3.bf16.msra.mxu0 %v8934_v53 }
0x11f5   : > { %5623 = vmatprep.subr.bf16.mxu0 %v8937_v20 }
0x11f8   : > { %5624 = vmatpush3.bf16.msra.mxu0 %v11836_v47 }
0x11f9   : > { %5625 = vmatprep.subr.bf16.mxu0 %v11837_v12 }
0x11fc   : > { %5626 = vmatpush3.bf16.msra.mxu0 %v11838_v25 }
0x11fd   : > { %5627 = vmatprep.subr.bf16.mxu0 %v11839_v37 }
0x1200   : > { %5628 = vmatpush3.bf16.msra.mxu0 %v11840_v24 }
0x1201   : > { %5629 = vmatprep.subr.bf16.mxu0 %v11841_v56 }
0x1204   : > { %5630 = vmatpush3.bf16.msra.mxu0 %v11842_v43 }
0x1205   : > { %5631 = vmatprep.subr.bf16.mxu0 %v11843_v33 }
0x1208   : > { %5632 = vmatpush3.bf16.msra.mxu0 %v11844_v39  ;;  %v11854_v39 = vld [vmem:[#allocation80_spill] sm:$0xff] }
0x1209   : > { %6025 = vmatprep.subr.bf16.mxu0 %v11656_v50 }
0x12be   : > { %v5611_v53 = vpop.f32.mrb[40].mxu0 }
0x12bf   : > { %v5612_v20 = vpop.f32.mrb[41].mxu0 }
0x12c0   : > { %v5613_v29 = vadd.f32 %v5612_v20, %v5611_v53  ;;  %v5614_v58 = vpop.f32.mrb[42].mxu0  ;;  %v11858_v53 = vld [vmem:[#allocation84_spill] sm:$0xff]  ;;  %v11859_v20 = vld [vmem:[#allocation85_spill] sm:$0xff] }
0x12c1   : > { %v5615_v60 = vpop.f32.mrb[43].mxu0  ;;  %v11862_v58 = vld [vmem:[#allocation88_spill] sm:$0xff] }
0x12c2   : > { %v2941_v45 = vpack.c.bf16 %v5613_v29, %v5613_v29  ;;  %v11860_v29 = vld [vmem:[#allocation86_spill] sm:$0xff]  ;;  %v11863_v60 = vld [vmem:[#allocation89_spill] sm:$0xff] }
0x12c4   : > { %2974 = vmatprep.mubr.bf16.mxu0 %v2941_v45  ;;  %v11864_v45 = vld [vmem:[#allocation90_spill] sm:$0xff] }
0x12c5   : > { %2975 = vmatmul.mubr.bf16.vlgmr.msra.gmra.mrb[44].mxu0 %v9200_v5  ;;  %v11849_v5 = vld [vmem:[#allocation70_spill] sm:$0xff] }
0x12c6   : > { %6026 = vmatpush3.bf16.msra.mxu0 %v11845_v15  ;;  %6041 = vmatprep.mubr.msk.bf16.mxu0 %vm7412_vm2, %v11656_v50  ;;  %v11865_v15 = vld [vmem:[#allocation91_spill] sm:$0xff] }
0x12c7   : > { %6027 = vmatprep.subr.bf16.mxu0 %v11656_v50 }
0x12ca   : > { %6028 = vmatpush3.bf16.msra.mxu0 %v11846_v21  ;;  %v11866_v21 = vld [vmem:[#allocation92_spill] sm:$0xff] }
0x12cb   : > { %6029 = vmatprep.subr.bf16.mxu0 %v11656_v50 }
0x12ce   : > { %6030 = vmatpush3.bf16.msra.mxu0 %v11847_v16  ;;  %v11867_v16 = vld [vmem:[#allocation61_spill] sm:$0xff] }
0x12cf   : > { %6031 = vmatprep.subr.bf16.mxu0 %v11656_v50 }
0x12d2   : > { %6032 = vmatpush3.bf16.msra.mxu0 %v11848_v63  ;;  %v11868_v63 = vld [vmem:[#allocation97_spill] sm:$0xff] }
0x12d3   : > { %6033 = vmatprep.subr.bf16.mxu0 %v11656_v50 }
0x12d6   : > { %6034 = vmatpush3.bf16.msra.mxu0 %v11849_v5  ;;  %v9477_v5 = vld [vmem:[%s11292_s5 + $0x90] ss:$8 sps:$4 sm:$0xff]  }
0x12d7   : > { %6035 = vmatprep.subr.bf16.mxu0 %v11656_v50 }
0x12da   : > { %6036 = vmatpush3.bf16.msra.mxu0 %v11850_v11  ;;  %v9483_v11 = vld [vmem:[%s11292_s5 + $0xa4] ss:$8 sps:$4 sm:$0xff]  }
0x12db   : > { %6037 = vmatprep.subr.bf16.mxu0 %v11656_v50 }
0x12de   : > { %6038 = vmatpush3.bf16.msra.mxu0 %v11851_v26  ;;  %v9489_v26 = vld [vmem:[%s11292_s5 + $0xa0] ss:$8 sps:$4 sm:$0xff]  }
0x12df   : > { %6039 = vmatprep.subr.bf16.mxu0 %v11656_v50 }
0x12e2   : > { %6040 = vmatpush3.bf16.msra.mxu0 %v11852_v31  ;;  %v9495_v31 = vld [vmem:[%s11292_s5 + $0xb4] ss:$8 sps:$4 sm:$0xff]  }
0x12e3   : > { %6045 = vmatprep.subr.bf16.mxu0 %v11656_v50 }
0x1398   : > { %v5633_v47 = vpop.f32.mrb[44].mxu0 }
0x1399   : > { %v5634_v12 = vpop.f32.mrb[45].mxu0 }
0x139a   : > { %v5635_v25 = vadd.f32 %v5634_v12, %v5633_v47  ;;  %v5636_v37 = vpop.f32.mrb[46].mxu0  ;;  %v9501_v47 = vld [vmem:[%s11292_s5 + $0xb0] ss:$8 sps:$4 sm:$0xff]   ;;  %v9507_v12 = vld [vmem:[%s11292_s5 + $0xc4] ss:$8 sps:$4 sm:$0xff]  }
0x139b   : > { %v5637_v24 = vpop.f32.mrb[47].mxu0  ;;  %v9519_v37 = vld [vmem:[%s11292_s5 + $0xd4] ss:$8 sps:$4 sm:$0xff]  }
0x139c   : > { %v2977_v56 = vadd.f32 %v9006_v22, %v5635_v25  ;;  %v11853_v22 = vld [vmem:[#allocation78_spill] sm:$0xff]  ;;  %v9525_v24 = vld [vmem:[%s11292_s5 + $0xd0] ss:$8 sps:$4 sm:$0xff]  }
0x139d   : > { %v9513_v25 = vld [vmem:[%s11292_s5 + $0xc0] ss:$8 sps:$4 sm:$0xff]  }
0x139e   : > { %v2982_v43 = vmax.f32 %v2977_v56, 0.0  ;;  %v9531_v56 = vld [vmem:[%s11292_s5 + $0xe4] ss:$8 sps:$4 sm:$0xff]  }
0x13a0   : > { %v2983_v33 = vpack.c.bf16 %v2982_v43, %v2982_v43  ;;  %v9537_v43 = vld [vmem:[%s11292_s5 + $0xe0] ss:$8 sps:$4 sm:$0xff]  }
0x13a2   : > { %3017 = vmatmul.mubr.bf16.vlgmr.msra.gmra.mrb[48].mxu1 %v2983_v33  ;;  %6042 = vmatmul.mubr.bf16.vlgmr.msra.gmra.mrb[48].mxu0 %v2983_v33  ;;  %v9543_v33 = vld [vmem:[%s11292_s5 + $0xf4] ss:$8 sps:$4 sm:$0xff]  }
0x13a3   : > { %3066 = vmatpush1.bf16.msra.mxu1 %v9009_v40  ;;  %6046 = vmatpush3.bf16.msra.mxu0 %v9012_v9  ;;  %v11855_v40 = vld [vmem:[#allocation81_spill] sm:$0xff]  ;;  %v11856_v9 = vld [vmem:[#allocation82_spill] sm:$0xff] }
0x13a4   : > { %3067 = vmatprep.subr.bf16.mxu1 %v9015_v55  ;;  %6047 = vmatprep.subr.bf16.mxu0 %v11656_v50  ;;  %v11857_v55 = vld [vmem:[#allocation83_spill] sm:$0xff] }
0x13a5   : > { %3097 = vmatprep.mubr.bf16.mxu1 %v11671_v44  ;;  %6061 = vmatprep.mubr.msk.bf16.mxu0 %vm7412_vm2, %v11656_v50 }
0x13a7   : > { %3068 = vmatpush1.bf16.msra.mxu1 %v9022_v14  ;;  %6048 = vmatpush3.bf16.msra.mxu0 %v11853_v22  ;;  %v11861_v14 = vld [vmem:[#allocation87_spill] sm:$0xff] }
0x13a8   : > { %3069 = vmatprep.subr.bf16.mxu1 %v11854_v39  ;;  %6049 = vmatprep.subr.bf16.mxu0 %v11656_v50  ;;  %v9549_v22 = vld [vmem:[%s11292_s5 + $0xf0] ss:$8 sps:$4 sm:$0xff]  }
0x13a9   : > { %11869 = vst [vmem:[#allocation36_spill] sm:$0xff] %v9549_v22 }
0x13ab   : > { %3070 = vmatpush1.bf16.msra.mxu1 %v11855_v40  ;;  %6050 = vmatpush3.bf16.msra.mxu0 %v11856_v9 }
0x13ac   : > { %3071 = vmatprep.subr.bf16.mxu1 %v11857_v55  ;;  %6051 = vmatprep.subr.bf16.mxu0 %v11656_v50 }
0x13af   : > { %3072 = vmatpush1.bf16.msra.mxu1 %v11858_v53  ;;  %6052 = vmatpush3.bf16.msra.mxu0 %v11859_v20 }
0x13b0   : > { %3073 = vmatprep.subr.bf16.mxu1 %v11860_v29  ;;  %6053 = vmatprep.subr.bf16.mxu0 %v11656_v50 }
0x13b3   : > { %3074 = vmatpush1.bf16.msra.mxu1 %v11861_v14  ;;  %6054 = vmatpush3.bf16.msra.mxu0 %v11862_v58 }
0x13b4   : > { %3075 = vmatprep.subr.bf16.mxu1 %v11863_v60  ;;  %6055 = vmatprep.subr.bf16.mxu0 %v11656_v50 }
0x13b7   : > { %3076 = vmatpush1.bf16.msra.mxu1 %v9062_v17  ;;  %6056 = vmatpush3.bf16.msra.mxu0 %v11864_v45  ;;  %v9338_v17 = vld [vmem:[%s11292_s5 + $0x4] ss:$8 sps:$4 sm:$0xff]  }
0x13b8   : > { %3077 = vmatprep.subr.bf16.mxu1 %v11865_v15  ;;  %6057 = vmatprep.subr.bf16.mxu0 %v11656_v50 }
0x13bb   : > { %3078 = vmatpush1.bf16.msra.mxu1 %v11866_v21  ;;  %6058 = vmatpush3.bf16.msra.mxu0 %v9075_v38  ;;  %v9347_v38 = vld [vmem:[%s11292_s5] ss:$8 sps:$4 sm:$0xff]  }
0x13bc   : > { %3079 = vmatprep.subr.bf16.mxu1 %v11867_v16  ;;  %6059 = vmatprep.subr.bf16.mxu0 %v11656_v50 }
0x13bf   : > { %3080 = vmatpush1.bf16.msra.mxu1 %v11868_v63  ;;  %6060 = vmatpush3.bf16.msra.mxu0 %v9085_v52  ;;  %v9354_v52 = vld [vmem:[%s11292_s5 + $0x14] ss:$8 sps:$4 sm:$0xff]  }
0x13c0   : > { %3261 = vmatprep.subr.bf16.mxu0 %v9338_v17  ;;  %3168 = vmatprep.subr.bf16.mxu1 %v9089_v19  ;;  %v9362_v19 = vld [vmem:[%s11292_s5 + $0x10] ss:$8 sps:$4 sm:$0xff]  }
0x13c2   : > { %3098 = vmatmul.mubr.bf16.vlgmr.msra.gmra.mrb[48].mxu1 %v9204_v6  ;;  %6062 = vmatmul.mubr.bf16.vlgmr.msra.gmra.mrb[52].mxu0 %v9204_v6  ;;  %v9465_v6 = vld [vmem:[%s11292_s5 + $0x80] ss:$8 sps:$4 sm:$0xff]  }
0x13c3   : > { %3262 = vmatpush1.bf16.msra.mxu0 %v9347_v38  ;;  %3169 = vmatpush1.bf16.msra.mxu1 %v9095_v42  ;;  %v9369_v42 = vld [vmem:[%s11292_s5 + $0x24] ss:$8 sps:$4 sm:$0xff]  }
0x13c4   : > { %3263 = vmatprep.subr.bf16.mxu0 %v9354_v52  ;;  %3170 = vmatprep.subr.bf16.mxu1 %v9099_v18  ;;  %v9376_v18 = vld [vmem:[%s11292_s5 + $0x20] ss:$8 sps:$4 sm:$0xff]  }
0x13c5   : > { %3200 = vmatprep.mubr.bf16.mxu1 %v11671_v44 }
0x13c7   : > { %3264 = vmatpush1.bf16.msra.mxu0 %v9362_v19  ;;  %3171 = vmatpush1.bf16.msra.mxu1 %v9104_v46  ;;  %v9383_v46 = vld [vmem:[%s11292_s5 + $0x34] ss:$8 sps:$4 sm:$0xff]  }
0x13c8   : > { %3265 = vmatprep.subr.bf16.mxu0 %v9369_v42  ;;  %3172 = vmatprep.subr.bf16.mxu1 %v9108_v36  ;;  %v9390_v36 = vld [vmem:[%s11292_s5 + $0x30] ss:$8 sps:$4 sm:$0xff]  }
0x13cb   : > { %3266 = vmatpush1.bf16.msra.mxu0 %v9376_v18  ;;  %3173 = vmatpush1.bf16.msra.mxu1 %v9112_v35  ;;  %v9397_v35 = vld [vmem:[%s11292_s5 + $0x44] ss:$8 sps:$4 sm:$0xff]  }
0x13cc   : > { %3267 = vmatprep.subr.bf16.mxu0 %v9383_v46  ;;  %3174 = vmatprep.subr.bf16.mxu1 %v9116_v41  ;;  %v9404_v41 = vld [vmem:[%s11292_s5 + $0x40] ss:$8 sps:$4 sm:$0xff]  }
0x13cf   : > { %3268 = vmatpush1.bf16.msra.mxu0 %v9390_v36  ;;  %3175 = vmatpush1.bf16.msra.mxu1 %v9120_v51  ;;  %v9411_v51 = vld [vmem:[%s11292_s5 + $0x54] ss:$8 sps:$4 sm:$0xff]  }
0x13d0   : > { %3269 = vmatprep.subr.bf16.mxu0 %v9397_v35  ;;  %3176 = vmatprep.subr.bf16.mxu1 %v9124_v48  ;;  %v9418_v48 = vld [vmem:[%s11292_s5 + $0x50] ss:$8 sps:$4 sm:$0xff]  }
0x13d3   : > { %3270 = vmatpush1.bf16.msra.mxu0 %v9404_v41  ;;  %3177 = vmatpush1.bf16.msra.mxu1 %v9128_v49  ;;  %v9425_v49 = vld [vmem:[%s11292_s5 + $0x64] ss:$8 sps:$4 sm:$0xff]  }
0x13d4   : > { %3271 = vmatprep.subr.bf16.mxu0 %v9411_v51  ;;  %3178 = vmatprep.subr.bf16.mxu1 %v9132_v61  ;;  %v9432_v61 = vld [vmem:[%s11292_s5 + $0x60] ss:$8 sps:$4 sm:$0xff]  }
0x13d7   : > { %3272 = vmatpush1.bf16.msra.mxu0 %v9418_v48  ;;  %3179 = vmatpush1.bf16.msra.mxu1 %v9136_v0  ;;  %v9439_v0 = vld [vmem:[%s11292_s5 + $0x74] ss:$8 sps:$4 sm:$0xff]  }
0x13d8   : > { %3273 = vmatprep.subr.bf16.mxu0 %v9425_v49  ;;  %3180 = vmatprep.subr.bf16.mxu1 %v9140_v1  ;;  %v9446_v1 = vld [vmem:[%s11292_s5 + $0x70] ss:$8 sps:$4 sm:$0xff]  }
0x13db   : > { %3274 = vmatpush1.bf16.msra.mxu0 %v9432_v61  ;;  %3181 = vmatpush1.bf16.msra.mxu1 %v9144_v2  ;;  %v9453_v2 = vld [vmem:[%s11292_s5 + $0x84] ss:$8 sps:$4 sm:$0xff]  }
0x13dc   : > { %3275 = vmatprep.subr.bf16.mxu0 %v9439_v0  ;;  %3182 = vmatprep.subr.bf16.mxu1 %v9148_v3  ;;  %v9459_v3 = vld [vmem:[%s11291_s4 + $0x40] sm:$0xff]  }
0x13df   : > { %3276 = vmatpush1.bf16.msra.mxu0 %v9446_v1  ;;  %3183 = vmatpush1.bf16.msra.mxu1 %v9152_v4  ;;  %v9471_v4 = vld [vmem:[%s11292_s5 + $0x94] ss:$8 sps:$4 sm:$0xff]  }
0x13e0   : > { %3277 = vmatprep.subr.bf16.mxu0 %v9453_v2  ;;  %5657 = vmatprep.subr.bf16.mxu1 %v9459_v3 }
0x13e3   : > { %3278 = vmatpush1.bf16.msra.mxu0 %v9465_v6 }
0x13e4   : > { %3279 = vmatprep.subr.bf16.mxu0 %v9471_v4 }
0x13e7   : > { %3280 = vmatpush1.bf16.msra.mxu0 %v9477_v5 }
0x13e8   : > { %3281 = vmatprep.subr.bf16.mxu0 %v9483_v11 }
0x13eb   : > { %3282 = vmatpush1.bf16.msra.mxu0 %v9489_v26 }
0x13ec   : > { %3283 = vmatprep.subr.bf16.mxu0 %v9495_v31 }
0x13ef   : > { %3284 = vmatpush1.bf16.msra.mxu0 %v9501_v47 }
0x13f0   : > { %3285 = vmatprep.subr.bf16.mxu0 %v9507_v12 }
0x13f3   : > { %3286 = vmatpush1.bf16.msra.mxu0 %v9513_v25 }
0x13f4   : > { %3287 = vmatprep.subr.bf16.mxu0 %v9519_v37 }
0x13f7   : > { %3288 = vmatpush1.bf16.msra.mxu0 %v9525_v24 }
0x13f8   : > { %3289 = vmatprep.subr.bf16.mxu0 %v9531_v56 }
0x13fb   : > { %3290 = vmatpush1.bf16.msra.mxu0 %v9537_v43 }
0x13fc   : > { %3291 = vmatprep.subr.bf16.mxu0 %v9543_v33 }
0x13ff   : > { %3292 = vmatpush1.bf16.msra.mxu0 %v9549_v22 }
0x1400   : > { %3426 = vmatprep.subr.bf16.mxu0 %v9172_v7 }
0x1475   : > { %v3059_v39 = vpop.f32.mrb[48].mxu0 }
0x1476   : > { %v6043_v40 = vpop.f32.mrb[49].mxu0 }
0x1477   : > { %v3062_v9 = vpop.f32.mrb[50].mxu0 }
0x1478   : > { %v6044_v55 = vpop.f32.mrb[51].mxu0 }
0x1495   : > { %v3099_v53 = vpop.f32.mrb[48].mxu1  ;;  %v3140_v20 = vpop.f32.mrb[52].mxu0 }
0x1496   : > { %v6238_v29 = vadd.f32 %v8377_v28, %v3099_v53  ;;  %v3101_v14 = vpop.f32.mrb[49].mxu1  ;;  %v6063_v58 = vpop.f32.mrb[53].mxu0  ;;  %v3141_v53 = vadd.f32 %v3140_v20, %v8384_v27 }
0x1497   : > { %v3103_v7 = vpop.f32.mrb[50].mxu1  ;;  %v3143_v60 = vpop.f32.mrb[54].mxu0  ;;  %v6240_v16 = vadd.f32 %v8379_v30, %v3101_v14 }
0x1498   : > { %v5370_v45 = vmul.f32 -1.442695, %v6238_v29  ;;  %v3104_v15 = vpop.f32.mrb[51].mxu1  ;;  %v6064_v21 = vpop.f32.mrb[55].mxu0  ;;  %v3060_v7 = vadd.f32 %v3059_v39, %v8386_v34 }
0x1499   : > { %v5371_v63 = vmul.f32 -1.442695, %v6240_v16  ;;  %v3251_v15 = vstv %s3250_s17  ;;  %s7413_s17 = smov [#allocation14]  }
0x149a   : > { %6624 = vpow2.f32 %v5370_v45  ;;  %vm3252_vm6 = vcmp.eq.s32.totalorder %v3251_v15, 1  ;;  %v9632_v15 = vld [vmem:[%s11291_s4 + $0x58] sm:$0xff]   ;;  %s7262_s24 = sshll.u32 %s7413_s17, 4  ;;  %s7263_s24 = int_to_ptr.vmem [resolvable:$false] %s7262_s24 }
0x149b   : > { %6626 = vpow2.f32 %v5371_v63  ;;  %11875 = vst [vmem:[#allocation66_spill] sm:$0xff] %v9632_v15  ;;  %p7265_p4 = scmp.lt.s32.totalorder %s11171_s11, %s7263_s24 }
0x14a4   : > { %v6625_v40 = vpop.eup %6624 }
0x14a5   : > { %v3150_v9 = vadd.f32 1.0, %v6625_v40  ;;  %v6627_v55 = vpop.eup %6626 }
0x14a6   : > { %v3157_v22 = vadd.f32 1.0, %v6627_v55  ;;  %v9588_v55 = vld [vmem:[%s11291_s4] sm:$0xff]  }
0x14a7   : > { %6628 = vrcp.f32 %v3150_v9 }
0x14a8   : > { %6630 = vrcp.f32 %v3157_v22  ;;  %v9578_v22 = vld [vmem:[%s3256_s9] ss:$0 sps:$4 sm:$0x11]   ;;  %s10367_s9 = sld [smem:[#allocation4 + %s4138_s25]]  ;;  %s7264_s25 = scalar_lea.vmem %s7263_s24, 512 }
0x14ae   : > { %s4140_s0 = scalar_lea.vmem %s11289_s2, %s10367_s9 }
0x14af   : > { %s4576_s9 = scalar_select %p4575_p7, 1, 0 }
0x14b1   : > { %v6629_v58 = vpop.eup %6628 }
0x14b2   : > { %v3160_v29 = vmul.f32 %v6629_v58, %v3141_v53  ;;  %v6631_v14 = vpop.eup %6630  ;;  %v9598_v53 = vld [vmem:[#allocation8] ss:$12 sps:$4 sm:$0xff]   ;;  %v9602_v58 = vld [vmem:[#allocation8 + $0x1c] ss:$12 sps:$4 sm:$0xff]  }
0x14b3   : > { %v3163_v45 = vsub.f32 1.0, %v6631_v14  ;;  %v3165_v63 = vmul.f32 %v6631_v14, %v9193_v8  ;;  %v9620_v14 = vld [vmem:[#allocation8 + $0x34] ss:$12 sps:$4 sm:$0xff]  }
0x14b4   : > { %v3161_v60 = vadd.f32 %v3160_v29, %v3060_v7  ;;  %v9608_v7 = vld [vmem:[%s11291_s4 + $0x8] sm:$0xff]   ;;  %v9614_v29 = vld [vmem:[%s11291_s4 + $0x50] sm:$0xff]   ;;  %11873 = vst [vmem:[#allocation38_spill] sm:$0xff] %v9620_v14 }
0x14b5   : > { %11870 = vst [vmem:[#allocation37_spill] sm:$0xff] %v9608_v7  ;;  %11871 = vst [vmem:[#allocation64_spill] sm:$0xff] %v9614_v29 }
0x14b6   : > { %6632 = vtanh.f32 %v3161_v60  ;;  %v9617_v60 = vld [vmem:[#allocation8 + $0x18] ss:$12 sps:$4 sm:$0xff]  }
0x14b7   : > { %11872 = vst [vmem:[#allocation65_spill] sm:$0xff] %v9617_v60 }
0x14c0   : > { %v6633_v21 = vpop.eup %6632 }
0x14c1   : > { %v3164_v16 = vmul.f32 %v6633_v21, %v3163_v45  ;;  %v9626_v45 = vld [vmem:[%s11291_s4 + $0x10] sm:$0xff]  }
0x14c2   : > { %11874 = vst [vmem:[#allocation39_spill] sm:$0xff] %v9626_v45  ;;  %v9635_v21 = vld [vmem:[#allocation8 + $0x30] ss:$12 sps:$4 sm:$0xff]  }
0x14c3   : > { %v3166_v20 = vadd.f32 %v3165_v63, %v3164_v16  ;;  %11876 = vst [vmem:[#allocation73_spill] sm:$0xff] %v9635_v21  ;;  %v9638_v16 = vld [vmem:[#allocation8 + $0x4c] ss:$12 sps:$4 sm:$0xff]  }
0x14c4   : > { %11877 = vst [vmem:[#allocation40_spill] sm:$0xff] %v9638_v16  ;;  %v9644_v63 = vld [vmem:[%s11291_s4 + $0x18] sm:$0xff]  }
0x14c5   : > { %v3167_v40 = vpack.c.bf16 %v3166_v20, %v3166_v20  ;;  %v9571_v39 = vsel %vm3252_vm6, %v3166_v20, %v9193_v8  ;;  %v9595_v8 = vld [vmem:[%s11291_s4 + $0x48] sm:$0xff]   ;;  %11878 = vst [vmem:[#allocation41_spill] sm:$0xff] %v9644_v63  ;;  %v9650_v20 = vld [vmem:[%s11291_s4 + $0x60] sm:$0xff]  }
0x14c6   : > { %v9582_v9 = vpack.c.bf16 %v9571_v39, %v9571_v39  ;;  %11879 = vst [vmem:[#allocation74_spill] sm:$0xff] %v9650_v20 }
0x14c7   : > { %3201 = vmatmul.mubr.bf16.vlgmr.msra.gmra.mrb[52].mxu1 %v3167_v40  ;;  %v9653_v40 = vld [vmem:[#allocation8 + $0x48] ss:$12 sps:$4 sm:$0xff]  }
0x14c8   : > { %3293 = vmatprep.mubr.bf16.mxu0 %v9582_v9  ;;  %5658 = vmatpush3.bf16.msra.mxu1 %v9588_v55  ;;  %11880 = vst [vmem:[#allocation76_spill] sm:$0xff] %v9653_v40 }
0x14c9   : > { %3294 = vmatmul.mubr.bf16.vlgmr.msra.gmra.mrb[56].mxu0 %v9578_v22  ;;  %5659 = vmatprep.subr.bf16.mxu1 %v9595_v8 }
0x14ca   : > { %3427 = vmatpush1.bf16.msra.mxu0 %v9598_v53  ;;  %3458 = vmatprep.mubr.bf16.mxu0 %v11671_v44 }
0x14cb   : > { %3428 = vmatprep.subr.bf16.mxu0 %v9602_v58 }
0x14cc   : > { %5660 = vmatpush3.bf16.msra.mxu1 %v9608_v7 }
0x14cd   : > { %5661 = vmatprep.subr.bf16.mxu1 %v9614_v29 }
0x14ce   : > { %3429 = vmatpush1.bf16.msra.mxu0 %v9617_v60 }
0x14cf   : > { %3430 = vmatprep.subr.bf16.mxu0 %v9620_v14 }
0x14d0   : > { %5662 = vmatpush3.bf16.msra.mxu1 %v9626_v45 }
0x14d1   : > { %5663 = vmatprep.subr.bf16.mxu1 %v9632_v15 }
0x14d2   : > { %3431 = vmatpush1.bf16.msra.mxu0 %v9635_v21  ;;  %v9656_v21 = vld [vmem:[#allocation8 + $0x64] ss:$12 sps:$4 sm:$0xff]  }
0x14d3   : > { %3432 = vmatprep.subr.bf16.mxu0 %v9638_v16  ;;  %11881 = vst [vmem:[#allocation42_spill] sm:$0xff] %v9656_v21  ;;  %v9662_v16 = vld [vmem:[%s11291_s4 + $0x20] sm:$0xff]  }
0x14d4   : > { %5664 = vmatpush3.bf16.msra.mxu1 %v9644_v63  ;;  %11882 = vst [vmem:[#allocation43_spill] sm:$0xff] %v9662_v16  ;;  %v9668_v63 = vld [vmem:[%s11291_s4 + $0x68] sm:$0xff]  }
0x14d5   : > { %5665 = vmatprep.subr.bf16.mxu1 %v9650_v20  ;;  %11883 = vst [vmem:[#allocation77_spill] sm:$0xff] %v9668_v63  ;;  %v9671_v20 = vld [vmem:[#allocation8 + $0x60] ss:$12 sps:$4 sm:$0xff]  }
0x14d6   : > { %3433 = vmatpush1.bf16.msra.mxu0 %v9653_v40  ;;  %11884 = vst [vmem:[#allocation79_spill] sm:$0xff] %v9671_v20  ;;  %v9674_v40 = vld [vmem:[#allocation8 + $0x7c] ss:$12 sps:$4 sm:$0xff]  }
0x14d7   : > { %3434 = vmatprep.subr.bf16.mxu0 %v9656_v21  ;;  %11885 = vst [vmem:[#allocation33_spill] sm:$0xff] %v9674_v40  ;;  %v9680_v21 = vld [vmem:[%s11291_s4 + $0x28] sm:$0xff]  }
0x14d8   : > { %5666 = vmatpush3.bf16.msra.mxu1 %v9662_v16  ;;  %11886 = vst [vmem:[#allocation44_spill] sm:$0xff] %v9680_v21  ;;  %v9686_v16 = vld [vmem:[%s11291_s4 + $0x70] sm:$0xff]  }
0x14d9   : > { %5667 = vmatprep.subr.bf16.mxu1 %v9668_v63  ;;  %11887 = vst [vmem:[#allocation45_spill] sm:$0xff] %v9686_v16  ;;  %v9689_v63 = vld [vmem:[#allocation8 + $0x78] ss:$12 sps:$4 sm:$0xff]  }
0x14da   : > { %3435 = vmatpush1.bf16.msra.mxu0 %v9671_v20  ;;  %11888 = vst [vmem:[#allocation46_spill] sm:$0xff] %v9689_v63 }
0x14db   : > { %3436 = vmatprep.subr.bf16.mxu0 %v9674_v40  ;;  %v9696_v40 = vld [vmem:[%s11291_s4 + $0x30] sm:$0xff]  }
0x14dc   : > { %5668 = vmatpush3.bf16.msra.mxu1 %v9680_v21  ;;  %11889 = vst [vmem:[#allocation47_spill] sm:$0xff] %v9696_v40  ;;  %v9702_v21 = vld [vmem:[%s11291_s4 + $0x78] sm:$0xff]  }
0x14dd   : > { %5669 = vmatprep.subr.bf16.mxu1 %v9686_v16  ;;  %11890 = vst [vmem:[#allocation48_spill] sm:$0xff] %v9702_v21  ;;  %v11895_v16 = vld [vmem:[#allocation32_spill] sm:$0xff] }
0x14de   : > { %3437 = vmatpush1.bf16.msra.mxu0 %v9689_v63  ;;  %v9713_v63 = vld [vmem:[#allocation5 + $0x40] sm:$0xff]  }
0x14df   : > { %3438 = vmatprep.subr.bf16.mxu0 %v9232_v32  ;;  %v9710_v32 = vld [vmem:[%s11291_s4 + $0x38] sm:$0xff]   ;;  %11892 = vst [vmem:[#allocation52_spill] sm:$0xff] %v9713_v63 }
0x14e0   : > { %5670 = vmatpush3.bf16.msra.mxu1 %v9696_v40  ;;  %11891 = vst [vmem:[#allocation51_spill] sm:$0xff] %v9710_v32 }
0x14e1   : > { %5671 = vmatprep.subr.bf16.mxu1 %v9702_v21 }
0x14e2   : > { %3439 = vmatpush1.bf16.msra.mxu0 %v9237_v23 }
0x14e3   : > { %3440 = vmatprep.subr.bf16.mxu0 %v9240_v10 }
0x14e4   : > { %5672 = vmatpush3.bf16.msra.mxu1 %v9710_v32 }
0x14e5   : > { %5679 = vmatprep.subr.bf16.mxu1 %v9713_v63 }
0x14e6   : > { %3441 = vmatpush1.bf16.msra.mxu0 %v9245_v59 }
0x14e7   : > { %3507 = vmatprep.subr.bf16.mxu0 %v9248_v13 }
0x159a   : > { %v9718_v21 = vpop.f32.mrb[52].mxu1 }
0x159b   : > { %11893 = vst [vmem:[#allocation53_spill] sm:$0xff] %v9718_v21  ;;  %v9720_v23 = vpop.f32.mrb[53].mxu1 }
0x159c   : > { %11894 = vst [vmem:[#allocation54_spill] sm:$0xff] %v9720_v23  ;;  %v3206_v10 = vpop.f32.mrb[54].mxu1  ;;  %v3295_v40 = vpop.f32.mrb[56].mxu0 }
0x159d   : > { %v3296_v20 = vadd.f32 %v3295_v40, %v11895_v16  ;;  %v3207_v15 = vpop.f32.mrb[55].mxu1  ;;  %v3297_v45 = vpop.f32.mrb[57].mxu0 }
0x159e   : > { %v3298_v32 = vadd.f32 %v3297_v45, %v11710_v54  ;;  %v3299_v14 = vpop.f32.mrb[58].mxu0 }
0x159f   : > { %v3300_v60 = vpop.f32.mrb[59].mxu0  ;;  %v3302_v63 = vsel %vm960_vm0, %v3296_v20, -inf }
0x15a0   : > { %v3303_v59 = vsel %vm960_vm0, %v3298_v32, -inf }
0x15a1   : > { %v3304_v29 = vmax.f32 %v3302_v63, %v3303_v59 }
0x15a3   : > { %3305 = vmax.xlane.f32.xlu0 %v3304_v29 }
0x1630   : > { %v3306_v13 = vpop.xlane.xlu0 %3305 }
0x1631   : > { %v3307_v21 = vsub.f32 %v3296_v20, %v3306_v13  ;;  %v3308_v7 = vsub.f32 %v3298_v32, %v3306_v13  ;;  %v9730_v13 = vld [vmem:[#allocation5] sm:$0xff]  }
0x1633   : > { %v3309_v23 = vmul.f32 1.442695, %v3307_v21  ;;  %v3311_v10 = vmul.f32 1.442695, %v3308_v7 }
0x1635   : > { %6634 = vpow2.f32 %v3309_v23 }
0x1636   : > { %6636 = vpow2.f32 %v3311_v10  ;;  %v9739_v10 = vld [vmem:[#allocation5 + $0x8] sm:$0xff]  }
0x163f   : > { %v6635_v40 = vpop.eup %6634 }
0x1640   : > { %v6637_v15 = vpop.eup %6636  ;;  %v3313_v16 = vsel %vm960_vm0, %v6635_v40, 0.0 }
0x1641   : > { %v3314_v14 = vsel %vm960_vm0, %v6637_v15, 0.0 }
0x1642   : > { %v3315_v60 = vadd.f32 %v3314_v14, %v3313_v16  ;;  %v9733_v16 = vld [vmem:[#allocation5 + $0x48] sm:$0xff]   ;;  %v9748_v14 = vld [vmem:[#allocation5 + $0x58] sm:$0xff]  }
0x1644   : > { %3316 = vadd.xlane.f32.xlu1 %v3315_v60  ;;  %v9751_v60 = vld [vmem:[#allocation5 + $0x18] sm:$0xff]  }
0x1645   : > { %11896 = vst [vmem:[#allocation55_spill] sm:$0xff] %v9751_v60 }
0x16d1   : > { %v3317_v45 = vpop.xlane.xlu1 %3316 }
0x16d2   : > { %6638 = vrcp.f32 %v3317_v45  ;;  %v9754_v45 = vld [vmem:[#allocation5 + $0x60] sm:$0xff]  }
0x16d3   : > { %11897 = vst [vmem:[#allocation56_spill] sm:$0xff] %v9754_v45 }
0x16dc   : > { %v6639_v63 = vpop.eup %6638 }
0x16dd   : > { %v3319_v29 = vmul.f32 %v6639_v63, %v6635_v40  ;;  %v3320_v59 = vmul.f32 %v6639_v63, %v6637_v15  ;;  %v9742_v40 = vld [vmem:[#allocation5 + $0x50] sm:$0xff]   ;;  %v9757_v63 = vld [vmem:[#allocation5 + $0x20] sm:$0xff]  }
0x16de   : > { %v9745_v15 = vld [vmem:[#allocation5 + $0x10] sm:$0xff]   ;;  %11898 = vst [vmem:[#allocation57_spill] sm:$0xff] %v9757_v63 }
0x16df   : > { %v3323_v20 = vcombine.low %v3319_v29, %v3320_v59  ;;  %v3342_v32 = vpack.c.bf16 %v3320_v59, %v3320_v59  ;;  %v3341_v21 = vpack.c.bf16 %v3319_v29, %v3319_v29  ;;  %v9760_v29 = vld [vmem:[#allocation5 + $0x68] sm:$0xff]  }
0x16e0   : > { %11899 = vst [vmem:[#allocation58_spill] sm:$0xff] %v9760_v29  ;;  %v9763_v59 = vld [vmem:[#allocation5 + $0x28] sm:$0xff]  }
0x16e1   : > { %v3330_v7 = vrot.slane %v3323_v20, %v11711_v57  ;;  %3375 = vmatprep.mubr.bf16.mxu1 %v3342_v32  ;;  %11900 = vst [vmem:[#allocation59_spill] sm:$0xff] %v9763_v59  ;;  %v9766_v20 = vld [vmem:[#allocation5 + $0x70] sm:$0xff]  }
0x16e2   : > { %3376 = vmatmul.mubr.bf16.vlgmr.msra.gmra.mrb[56].mxu1 %v3341_v21  ;;  %11901 = vst [vmem:[#allocation60_spill] sm:$0xff] %v9766_v20  ;;  %v9769_v32 = vld [vmem:[#allocation5 + $0x30] sm:$0xff]   ;;  %v9772_v21 = vld [vmem:[#allocation5 + $0x78] sm:$0xff]  }
0x16e3   : > { %v3337_v23 = vrot.slane %v3330_v7, %v11711_v57  ;;  %5680 = vmatpush3.bf16.msra.mxu1 %v9730_v13  ;;  %11902 = vst [vmem:[#allocation67_spill] sm:$0xff] %v9769_v32  ;;  %11903 = vst [vmem:[#allocation68_spill] sm:$0xff] %v9772_v21  ;;  %v9775_v7 = vld [vmem:[#allocation5 + $0x38] sm:$0xff]  }
0x16e4   : > { %5681 = vmatprep.subr.bf16.mxu1 %v9733_v16  ;;  %11904 = vst [vmem:[#allocation69_spill] sm:$0xff] %v9775_v7 }
0x16e5   : > { %5374 = vst.msk [vmem:[%s7699_s22 + $0x8] sm:$0x3] %vm8051_vm1, %v3337_v23 }
0x16e7   : > { %5682 = vmatpush3.bf16.msra.mxu1 %v9739_v10 }
0x16e8   : > { %5683 = vmatprep.subr.bf16.mxu1 %v9742_v40 }
0x16eb   : > { %5684 = vmatpush3.bf16.msra.mxu1 %v9745_v15 }
0x16ec   : > { %5685 = vmatprep.subr.bf16.mxu1 %v9748_v14 }
0x16ef   : > { %5686 = vmatpush3.bf16.msra.mxu1 %v9751_v60  ;;  %v9820_v60 = vld [vmem:[#allocation10] ss:$12 sps:$4 sm:$0xff]  }
0x16f0   : > { %5687 = vmatprep.subr.bf16.mxu1 %v9754_v45 }
0x16f3   : > { %5688 = vmatpush3.bf16.msra.mxu1 %v9757_v63 }
0x16f4   : > { %5689 = vmatprep.subr.bf16.mxu1 %v9760_v29 }
0x16f7   : > { %5690 = vmatpush3.bf16.msra.mxu1 %v9763_v59 }
0x16f8   : > { %5691 = vmatprep.subr.bf16.mxu1 %v9766_v20 }
0x16fb   : > { %5692 = vmatpush3.bf16.msra.mxu1 %v9769_v32  ;;  %v9780_v32 = vld [vmem:[#allocation8 + $0x8] ss:$12 sps:$4 sm:$0xff]  }
0x16fc   : > { %5693 = vmatprep.subr.bf16.mxu1 %v9772_v21  ;;  %11905 = vst [vmem:[#allocation70_spill] sm:$0xff] %v9780_v32 }
0x16ff   : > { %5694 = vmatpush3.bf16.msra.mxu1 %v9775_v7  ;;  %v9786_v7 = vld [vmem:[#allocation8 + $0x20] ss:$12 sps:$4 sm:$0xff]  }
0x1700   : > { %6065 = vmatprep.subr.bf16.mxu1 %v11656_v50  ;;  %11906 = vst [vmem:[#allocation71_spill] sm:$0xff] %v9786_v7 }
0x17b5   : > { %v5673_v23 = vpop.f32.mrb[56].mxu1 }
0x17b6   : > { %v5674_v59 = vpop.f32.mrb[57].mxu1 }
0x17b7   : > { %v5675_v29 = vadd.f32 %v5674_v59, %v5673_v23  ;;  %v5676_v63 = vpop.f32.mrb[58].mxu1  ;;  %v9806_v59 = vld [vmem:[#allocation8 + $0x98] ss:$12 sps:$4 sm:$0xff]  }
0x17b8   : > { %v5677_v45 = vpop.f32.mrb[59].mxu1  ;;  %v9798_v63 = vld [vmem:[#allocation8 + $0x68] ss:$12 sps:$4 sm:$0xff]   ;;  %11911 = vst [vmem:[#allocation81_spill] sm:$0xff] %v9806_v59 }
0x17b9   : > { %v3383_v20 = vpack.c.bf16 %v5675_v29, %v5675_v29  ;;  %v9790_v45 = vld [vmem:[#allocation8 + $0x38] ss:$12 sps:$4 sm:$0xff]   ;;  %11909 = vst [vmem:[#allocation78_spill] sm:$0xff] %v9798_v63  ;;  %v9802_v29 = vld [vmem:[#allocation8 + $0x80] ss:$12 sps:$4 sm:$0xff]  }
0x17ba   : > { %11907 = vst [vmem:[#allocation72_spill] sm:$0xff] %v9790_v45  ;;  %11910 = vst [vmem:[#allocation80_spill] sm:$0xff] %v9802_v29 }
0x17bb   : > { %3416 = vmatprep.mubr.bf16.mxu1 %v3383_v20  ;;  %v9810_v20 = vld [vmem:[#allocation8 + $0xb0] ss:$12 sps:$4 sm:$0xff]  }
0x17bc   : > { %3417 = vmatmul.mubr.bf16.vlgmr.msra.gmra.mrb[60].mxu1 %v9578_v22  ;;  %v9794_v22 = vld [vmem:[#allocation8 + $0x50] ss:$12 sps:$4 sm:$0xff]   ;;  %11912 = vst [vmem:[#allocation82_spill] sm:$0xff] %v9810_v20 }
0x17bd   : > { %6066 = vmatpush3.bf16.msra.mxu1 %v9780_v32  ;;  %6081 = vmatprep.mubr.msk.bf16.mxu1 %vm7412_vm2, %v11656_v50  ;;  %11908 = vst [vmem:[#allocation75_spill] sm:$0xff] %v9794_v22 }
0x17be   : > { %6067 = vmatprep.subr.bf16.mxu1 %v11656_v50 }
0x17c1   : > { %6068 = vmatpush3.bf16.msra.mxu1 %v9786_v7 }
0x17c2   : > { %6069 = vmatprep.subr.bf16.mxu1 %v11656_v50 }
0x17c5   : > { %6070 = vmatpush3.bf16.msra.mxu1 %v9790_v45 }
0x17c6   : > { %6071 = vmatprep.subr.bf16.mxu1 %v11656_v50 }
0x17c9   : > { %6072 = vmatpush3.bf16.msra.mxu1 %v9794_v22 }
0x17ca   : > { %6073 = vmatprep.subr.bf16.mxu1 %v11656_v50 }
0x17cd   : > { %6074 = vmatpush3.bf16.msra.mxu1 %v9798_v63 }
0x17ce   : > { %6075 = vmatprep.subr.bf16.mxu1 %v11656_v50 }
0x17d1   : > { %6076 = vmatpush3.bf16.msra.mxu1 %v9802_v29  ;;  %v9817_v29 = vld [vmem:[%s11295_s8] sm:$0x1] }
0x17d2   : > { %6077 = vmatprep.subr.bf16.mxu1 %v11656_v50 }
0x17d5   : > { %6078 = vmatpush3.bf16.msra.mxu1 %v9806_v59 }
0x17d6   : > { %6079 = vmatprep.subr.bf16.mxu1 %v11656_v50 }
0x17d9   : > { %6080 = vmatpush3.bf16.msra.mxu1 %v9810_v20  ;;  %v9823_v20 = vld [vmem:[#allocation10 + $0x8] ss:$12 sps:$4 sm:$0xff]  }
0x17da   : > { %6085 = vmatprep.subr.bf16.mxu1 %v11656_v50 }
0x188f   : > { %v5695_v23 = vpop.f32.mrb[60].mxu1 }
0x1890   : > { %v5696_v63 = vpop.f32.mrb[61].mxu1 }
0x1891   : > { %v5697_v22 = vadd.f32 %v5696_v63, %v5695_v23  ;;  %v5698_v45 = vpop.f32.mrb[62].mxu1  ;;  %v9846_v63 = vld [vmem:[#allocation10 + $0x38] ss:$12 sps:$4 sm:$0xff]   ;;  %v9853_v23 = vld [vmem:[#allocation10 + $0x48] ss:$12 sps:$4 sm:$0xff]  }
0x1892   : > { %v5699_v7 = vpop.f32.mrb[63].mxu1  ;;  %v9839_v45 = vld [vmem:[#allocation10 + $0x34] ss:$12 sps:$4 sm:$0xff]   ;;  %11916 = vst [vmem:[#allocation86_spill] sm:$0xff] %v9846_v63  ;;  %11918 = vst [vmem:[#allocation88_spill] sm:$0xff] %v9853_v23 }
0x1893   : > { %v3419_v59 = vadd.f32 %v9817_v29, %v5697_v22  ;;  %v9826_v7 = vld [vmem:[#allocation10 + $0x1c] ss:$12 sps:$4 sm:$0xff]   ;;  %11914 = vst [vmem:[#allocation84_spill] sm:$0xff] %v9839_v45 }
0x1894   : > { %v9843_v22 = vld [vmem:[#allocation10 + $0x30] ss:$12 sps:$4 sm:$0xff]  }
0x1895   : > { %v3424_v32 = vmax.f32 %v3419_v59, 0.0  ;;  %11915 = vst [vmem:[#allocation85_spill] sm:$0xff] %v9843_v22  ;;  %v9849_v59 = vld [vmem:[#allocation10 + $0x4c] ss:$12 sps:$4 sm:$0xff]  }
0x1896   : > { %11917 = vst [vmem:[#allocation87_spill] sm:$0xff] %v9849_v59 }
0x1897   : > { %v3425_v21 = vpack.c.bf16 %v3424_v32, %v3424_v32  ;;  %v9833_v32 = vld [vmem:[#allocation10 + $0x18] ss:$12 sps:$4 sm:$0xff]  }
0x1899   : > { %3459 = vmatmul.mubr.bf16.vlgmr.msra.gmra.mrb[60].mxu0 %v3425_v21  ;;  %6082 = vmatmul.mubr.bf16.vlgmr.msra.gmra.mrb[64].mxu1 %v3425_v21  ;;  %v9836_v21 = vld [vmem:[#allocation10 + $0x20] ss:$12 sps:$4 sm:$0xff]  }
0x189a   : > { %3508 = vmatpush1.bf16.msra.mxu0 %v9820_v60  ;;  %6086 = vmatpush3.bf16.msra.mxu1 %v9823_v20  ;;  %11913 = vst [vmem:[#allocation83_spill] sm:$0xff] %v9836_v21 }
0x189b   : > { %3509 = vmatprep.subr.bf16.mxu0 %v9826_v7  ;;  %6087 = vmatprep.subr.bf16.mxu1 %v11656_v50 }
0x189c   : > { %3539 = vmatprep.mubr.bf16.mxu0 %v11671_v44  ;;  %6101 = vmatprep.mubr.msk.bf16.mxu1 %vm7412_vm2, %v11656_v50 }
0x189e   : > { %3510 = vmatpush1.bf16.msra.mxu0 %v9833_v32  ;;  %6088 = vmatpush3.bf16.msra.mxu1 %v9836_v21  ;;  %v9859_v21 = vld [vmem:[#allocation10 + $0x64] ss:$12 sps:$4 sm:$0xff]  }
0x189f   : > { %3511 = vmatprep.subr.bf16.mxu0 %v9839_v45  ;;  %6089 = vmatprep.subr.bf16.mxu1 %v11656_v50  ;;  %v9856_v45 = vld [vmem:[#allocation10 + $0x50] ss:$12 sps:$4 sm:$0xff]   ;;  %11920 = vst [vmem:[#allocation90_spill] sm:$0xff] %v9859_v21 }
0x18a0   : > { %11919 = vst [vmem:[#allocation89_spill] sm:$0xff] %v9856_v45 }
0x18a2   : > { %3512 = vmatpush1.bf16.msra.mxu0 %v9843_v22  ;;  %6090 = vmatpush3.bf16.msra.mxu1 %v9846_v63  ;;  %v9863_v63 = vld [vmem:[#allocation10 + $0x60] ss:$12 sps:$4 sm:$0xff]   ;;  %v9869_v22 = vld [vmem:[#allocation10 + $0x7c] ss:$12 sps:$4 sm:$0xff]  }
0x18a3   : > { %3513 = vmatprep.subr.bf16.mxu0 %v9849_v59  ;;  %6091 = vmatprep.subr.bf16.mxu1 %v11656_v50  ;;  %11921 = vst [vmem:[#allocation91_spill] sm:$0xff] %v9863_v63  ;;  %v9866_v59 = vld [vmem:[#allocation10 + $0x68] ss:$12 sps:$4 sm:$0xff]   ;;  %11923 = vst [vmem:[#allocation61_spill] sm:$0xff] %v9869_v22 }
0x18a4   : > { %11922 = vst [vmem:[#allocation92_spill] sm:$0xff] %v9866_v59 }
0x18a6   : > { %3514 = vmatpush1.bf16.msra.mxu0 %v9853_v23  ;;  %6092 = vmatpush3.bf16.msra.mxu1 %v9856_v45  ;;  %v9873_v45 = vld [vmem:[#allocation10 + $0x78] ss:$12 sps:$4 sm:$0xff]   ;;  %v9879_v23 = vld [vmem:[#allocation10 + $0x94] ss:$12 sps:$4 sm:$0xff]  }
0x18a7   : > { %3515 = vmatprep.subr.bf16.mxu0 %v9859_v21  ;;  %6093 = vmatprep.subr.bf16.mxu1 %v11656_v50  ;;  %v9876_v21 = vld [vmem:[#allocation10 + $0x80] ss:$12 sps:$4 sm:$0xff]   ;;  %11925 = vst [vmem:[#allocation98_spill] sm:$0xff] %v9879_v23 }
0x18a8   : > { %11924 = vst [vmem:[#allocation97_spill] sm:$0xff] %v9876_v21 }
0x18aa   : > { %3516 = vmatpush1.bf16.msra.mxu0 %v9863_v63  ;;  %6094 = vmatpush3.bf16.msra.mxu1 %v9866_v59  ;;  %v9883_v59 = vld [vmem:[#allocation10 + $0x90] ss:$12 sps:$4 sm:$0xff]   ;;  %v9889_v63 = vld [vmem:[#allocation10 + $0xac] ss:$12 sps:$4 sm:$0xff]  }
0x18ab   : > { %3517 = vmatprep.subr.bf16.mxu0 %v9869_v22  ;;  %6095 = vmatprep.subr.bf16.mxu1 %v11656_v50  ;;  %11926 = vst [vmem:[#allocation99_spill] sm:$0xff] %v9883_v59  ;;  %v9886_v22 = vld [vmem:[#allocation10 + $0x98] ss:$12 sps:$4 sm:$0xff]   ;;  %11927 = vst [vmem:[#allocation100_spill] sm:$0xff] %v9889_v63 }
0x18ae   : > { %3518 = vmatpush1.bf16.msra.mxu0 %v9873_v45  ;;  %6096 = vmatpush3.bf16.msra.mxu1 %v9876_v21  ;;  %v9893_v21 = vld [vmem:[#allocation10 + $0xa8] ss:$12 sps:$4 sm:$0xff]  }
0x18af   : > { %3519 = vmatprep.subr.bf16.mxu0 %v9879_v23  ;;  %6097 = vmatprep.subr.bf16.mxu1 %v11656_v50  ;;  %11928 = vst [vmem:[#allocation101_spill] sm:$0xff] %v9893_v21  ;;  %v9896_v23 = vld [vmem:[#allocation10 + $0xb0] ss:$12 sps:$4 sm:$0xff]  }
0x18b2   : > { %3520 = vmatpush1.bf16.msra.mxu0 %v9883_v59  ;;  %6098 = vmatpush3.bf16.msra.mxu1 %v9886_v22  ;;  %v9900_v59 = vld [vmem:[#allocation11 + $0x4] ss:$8 sps:$4 sm:$0xff]  }
0x18b3   : > { %3521 = vmatprep.subr.bf16.mxu0 %v9889_v63  ;;  %6099 = vmatprep.subr.bf16.mxu1 %v11656_v50  ;;  %v9906_v63 = vld [vmem:[#allocation11] ss:$8 sps:$4 sm:$0xff]  }
0x18b6   : > { %3522 = vmatpush1.bf16.msra.mxu0 %v9893_v21  ;;  %6100 = vmatpush3.bf16.msra.mxu1 %v9896_v23  ;;  %v9910_v21 = vld [vmem:[#allocation11 + $0x14] ss:$8 sps:$4 sm:$0xff]  }
0x18b7   : > { %3703 = vmatprep.subr.bf16.mxu1 %v9338_v17  ;;  %3610 = vmatprep.subr.bf16.mxu0 %v9900_v59  ;;  %v9915_v17 = vld [vmem:[#allocation11 + $0x10] ss:$8 sps:$4 sm:$0xff]  }
0x18b9   : > { %3540 = vmatmul.mubr.bf16.vlgmr.msra.gmra.mrb[60].mxu0 %v9582_v9  ;;  %6102 = vmatmul.mubr.bf16.vlgmr.msra.gmra.mrb[68].mxu1 %v9582_v9  ;;  %v9927_v9 = vld [vmem:[#allocation11 + $0x34] ss:$8 sps:$4 sm:$0xff]  }
0x18ba   : > { %3704 = vmatpush1.bf16.msra.mxu1 %v9347_v38  ;;  %3611 = vmatpush1.bf16.msra.mxu0 %v9906_v63  ;;  %v9919_v38 = vld [vmem:[#allocation11 + $0x24] ss:$8 sps:$4 sm:$0xff]  }
0x18bb   : > { %3705 = vmatprep.subr.bf16.mxu1 %v9354_v52  ;;  %3612 = vmatprep.subr.bf16.mxu0 %v9910_v21  ;;  %v9923_v52 = vld [vmem:[#allocation11 + $0x20] ss:$8 sps:$4 sm:$0xff]  }
0x18bc   : > { %3642 = vmatprep.mubr.bf16.mxu0 %v11671_v44 }
0x18be   : > { %3706 = vmatpush1.bf16.msra.mxu1 %v9362_v19  ;;  %3613 = vmatpush1.bf16.msra.mxu0 %v9915_v17  ;;  %v9931_v19 = vld [vmem:[#allocation11 + $0x30] ss:$8 sps:$4 sm:$0xff]  }
0x18bf   : > { %3707 = vmatprep.subr.bf16.mxu1 %v9369_v42  ;;  %3614 = vmatprep.subr.bf16.mxu0 %v9919_v38  ;;  %v9935_v42 = vld [vmem:[#allocation11 + $0x44] ss:$8 sps:$4 sm:$0xff]  }
0x18c2   : > { %3708 = vmatpush1.bf16.msra.mxu1 %v9376_v18  ;;  %3615 = vmatpush1.bf16.msra.mxu0 %v9923_v52  ;;  %v9939_v18 = vld [vmem:[#allocation11 + $0x40] ss:$8 sps:$4 sm:$0xff]  }
0x18c3   : > { %3709 = vmatprep.subr.bf16.mxu1 %v9383_v46  ;;  %3616 = vmatprep.subr.bf16.mxu0 %v9927_v9  ;;  %v9943_v46 = vld [vmem:[#allocation11 + $0x54] ss:$8 sps:$4 sm:$0xff]  }
0x18c6   : > { %3710 = vmatpush1.bf16.msra.mxu1 %v9390_v36  ;;  %3617 = vmatpush1.bf16.msra.mxu0 %v9931_v19  ;;  %v9947_v36 = vld [vmem:[#allocation11 + $0x50] ss:$8 sps:$4 sm:$0xff]  }
0x18c7   : > { %3711 = vmatprep.subr.bf16.mxu1 %v9397_v35  ;;  %3618 = vmatprep.subr.bf16.mxu0 %v9935_v42  ;;  %v9951_v35 = vld [vmem:[#allocation11 + $0x64] ss:$8 sps:$4 sm:$0xff]  }
0x18ca   : > { %3712 = vmatpush1.bf16.msra.mxu1 %v9404_v41  ;;  %3619 = vmatpush1.bf16.msra.mxu0 %v9939_v18  ;;  %v9955_v41 = vld [vmem:[#allocation11 + $0x60] ss:$8 sps:$4 sm:$0xff]  }
0x18cb   : > { %3713 = vmatprep.subr.bf16.mxu1 %v9411_v51  ;;  %3620 = vmatprep.subr.bf16.mxu0 %v9943_v46  ;;  %v9959_v51 = vld [vmem:[#allocation11 + $0x74] ss:$8 sps:$4 sm:$0xff]  }
0x18ce   : > { %3714 = vmatpush1.bf16.msra.mxu1 %v9418_v48  ;;  %3621 = vmatpush1.bf16.msra.mxu0 %v9947_v36  ;;  %v9963_v48 = vld [vmem:[#allocation11 + $0x70] ss:$8 sps:$4 sm:$0xff]  }
0x18cf   : > { %3715 = vmatprep.subr.bf16.mxu1 %v9425_v49  ;;  %3622 = vmatprep.subr.bf16.mxu0 %v9951_v35  ;;  %v11929_v49 = vld [vmem:[#allocation36_spill] sm:$0xff] }
0x18d2   : > { %3716 = vmatpush1.bf16.msra.mxu1 %v9432_v61  ;;  %3623 = vmatpush1.bf16.msra.mxu0 %v9955_v41  ;;  %v9983_v61 = vld [vmem:[#allocation8 + $0x4] ss:$12 sps:$4 sm:$0xff]  }
0x18d3   : > { %3717 = vmatprep.subr.bf16.mxu1 %v9439_v0  ;;  %3624 = vmatprep.subr.bf16.mxu0 %v9959_v51 }
0x18d6   : > { %3718 = vmatpush1.bf16.msra.mxu1 %v9446_v1  ;;  %3625 = vmatpush1.bf16.msra.mxu0 %v9963_v48 }
0x18d7   : > { %3719 = vmatprep.subr.bf16.mxu1 %v9453_v2  ;;  %5719 = vmatprep.subr.bf16.mxu0 %v9459_v3 }
0x18da   : > { %3720 = vmatpush1.bf16.msra.mxu1 %v9465_v6 }
0x18db   : > { %3721 = vmatprep.subr.bf16.mxu1 %v9471_v4 }
0x18de   : > { %3722 = vmatpush1.bf16.msra.mxu1 %v9477_v5 }
0x18df   : > { %3723 = vmatprep.subr.bf16.mxu1 %v9483_v11 }
0x18e2   : > { %3724 = vmatpush1.bf16.msra.mxu1 %v9489_v26 }
0x18e3   : > { %3725 = vmatprep.subr.bf16.mxu1 %v9495_v31 }
0x18e6   : > { %3726 = vmatpush1.bf16.msra.mxu1 %v9501_v47 }
0x18e7   : > { %3727 = vmatprep.subr.bf16.mxu1 %v9507_v12 }
0x18ea   : > { %3728 = vmatpush1.bf16.msra.mxu1 %v9513_v25 }
0x18eb   : > { %3729 = vmatprep.subr.bf16.mxu1 %v9519_v37 }
0x18ee   : > { %3730 = vmatpush1.bf16.msra.mxu1 %v9525_v24 }
0x18ef   : > { %3731 = vmatprep.subr.bf16.mxu1 %v9531_v56 }
0x18f2   : > { %3732 = vmatpush1.bf16.msra.mxu1 %v9537_v43 }
0x18f3   : > { %3733 = vmatprep.subr.bf16.mxu1 %v9543_v33 }
0x18f6   : > { %3734 = vmatpush1.bf16.msra.mxu1 %v11929_v49 }
0x18f7   : > { %3868 = vmatprep.subr.bf16.mxu1 %v9983_v61 }
0x196c   : > { %v3501_v0 = vpop.f32.mrb[64].mxu1 }
0x196d   : > { %v6083_v1 = vpop.f32.mrb[65].mxu1 }
0x196e   : > { %v3504_v2 = vpop.f32.mrb[66].mxu1 }
0x196f   : > { %v6084_v3 = vpop.f32.mrb[67].mxu1 }
0x198c   : > { %v3541_v6 = vpop.f32.mrb[60].mxu0  ;;  %v3582_v4 = vpop.f32.mrb[68].mxu1 }
0x198d   : > { %v6242_v5 = vadd.f32 %v8377_v28, %v3541_v6  ;;  %v3543_v11 = vpop.f32.mrb[61].mxu0  ;;  %v6103_v26 = vpop.f32.mrb[69].mxu1  ;;  %v3583_v2 = vadd.f32 %v3582_v4, %v8384_v27  ;;  %v3502_v6 = vadd.f32 %v3501_v0, %v8386_v34 }
0x198e   : > { %v3545_v31 = vpop.f32.mrb[62].mxu0  ;;  %v3585_v47 = vpop.f32.mrb[70].mxu1  ;;  %v6244_v24 = vadd.f32 %v8379_v30, %v3543_v11 }
0x198f   : > { %v5375_v12 = vmul.f32 -1.442695, %v6242_v5  ;;  %v3546_v25 = vpop.f32.mrb[63].mxu0  ;;  %v6104_v37 = vpop.f32.mrb[71].mxu1  ;;  %v3693_v47 = vstv %s3692_s1 }
0x1990   : > { %v5376_v56 = vmul.f32 -1.442695, %v6244_v24  ;;  %vm3694_vm7 = vcmp.eq.s32.totalorder %v3693_v47, 1  ;;  %v11945_v47 = vld [vmem:[#allocation33_spill] sm:$0xff] }
0x1991   : > { %6640 = vpow2.f32 %v5375_v12 }
0x1992   : > { %6642 = vpow2.f32 %v5376_v56  ;;  %v10011_v56 = vld [vmem:[%s3698_s29] ss:$0 sps:$4 sm:$0x11]   ;;  %s4580_s29 = sadd.s32 7, %s7747_s21  ;;  %s5406_s21 = sshll.u32 %s7535_s20, 8 }
0x1993   : > { %s10797_s15 = sld [smem:[#allocation4 + %s4580_s29]]  ;;  %p5017_p6 = scmp.lt.s32.totalorder %s4580_s29, %s7693_s30 }
0x1994   : > { %s5028_s30 = sand.u32 1, %s7535_s20  }
0x1999   : > { %s4582_s27 = scalar_lea.vmem %s11289_s2, %s10797_s15  ;;  %s12139_s15 = sld [smem:[#allocation113_spill]] }
0x199b   : > { %v6641_v43 = vpop.eup %6640 }
0x199c   : > { %v3592_v33 = vadd.f32 1.0, %v6641_v43  ;;  %v6643_v49 = vpop.eup %6642 }
0x199d   : > { %v3599_v1 = vadd.f32 1.0, %v6643_v49  ;;  %v11932_v49 = vld [vmem:[#allocation65_spill] sm:$0xff] }
0x199e   : > { %6644 = vrcp.f32 %v3592_v33  ;;  %v11931_v33 = vld [vmem:[#allocation64_spill] sm:$0xff] }
0x199f   : > { %6646 = vrcp.f32 %v3599_v1  ;;  %v11933_v1 = vld [vmem:[#allocation38_spill] sm:$0xff]  ;;  %s11168_s1 = scalar_lea.hbm %s12139_s15, %s5406_s21 }
0x19a8   : > { %v6645_v3 = vpop.eup %6644 }
0x19a9   : > { %v3602_v5 = vmul.f32 %v6645_v3, %v3583_v2  ;;  %v6647_v11 = vpop.eup %6646  ;;  %v11934_v2 = vld [vmem:[#allocation39_spill] sm:$0xff]  ;;  %v11936_v3 = vld [vmem:[#allocation73_spill] sm:$0xff] }
0x19aa   : > { %v3605_v31 = vsub.f32 1.0, %v6647_v11  ;;  %v3607_v37 = vmul.f32 %v6647_v11, %v9571_v39  ;;  %v11943_v11 = vld [vmem:[#allocation77_spill] sm:$0xff] }
0x19ab   : > { %v3603_v26 = vadd.f32 %v3602_v5, %v3502_v6  ;;  %v11939_v6 = vld [vmem:[#allocation74_spill] sm:$0xff] }
0x19ac   : > { %v11941_v5 = vld [vmem:[#allocation42_spill] sm:$0xff] }
0x19ad   : > { %6648 = vtanh.f32 %v3603_v26  ;;  %v11942_v26 = vld [vmem:[#allocation43_spill] sm:$0xff] }
0x19b7   : > { %v6649_v12 = vpop.eup %6648 }
0x19b8   : > { %v3606_v25 = vmul.f32 %v6649_v12, %v3605_v31  ;;  %v11944_v31 = vld [vmem:[#allocation79_spill] sm:$0xff]  ;;  %v11946_v12 = vld [vmem:[#allocation44_spill] sm:$0xff] }
0x19ba   : > { %v3608_v4 = vadd.f32 %v3607_v37, %v3606_v25  ;;  %v11947_v25 = vld [vmem:[#allocation45_spill] sm:$0xff]  ;;  %v11948_v37 = vld [vmem:[#allocation46_spill] sm:$0xff] }
0x19bc   : > { %v3609_v24 = vpack.c.bf16 %v3608_v4, %v3608_v4  ;;  %v10004_v0 = vsel %vm3694_vm7, %v3608_v4, %v9571_v39  ;;  %v11930_v39 = vld [vmem:[#allocation37_spill] sm:$0xff] }
0x19bd   : > { %v10015_v43 = vpack.c.bf16 %v10004_v0, %v10004_v0  ;;  %v10043_v4 = vld [vmem:[#allocation8 + $0x94] ss:$12 sps:$4 sm:$0xff]  }
0x19be   : > { %3643 = vmatmul.mubr.bf16.vlgmr.msra.gmra.mrb[64].mxu0 %v3609_v24  ;;  %v11949_v24 = vld [vmem:[#allocation47_spill] sm:$0xff] }
0x19bf   : > { %3735 = vmatprep.mubr.bf16.mxu1 %v10015_v43  ;;  %5720 = vmatpush3.bf16.msra.mxu0 %v9588_v55  ;;  %v11935_v55 = vld [vmem:[#allocation66_spill] sm:$0xff] }
0x19c0   : > { %3736 = vmatmul.mubr.bf16.vlgmr.msra.gmra.mrb[72].mxu1 %v10011_v56  ;;  %5721 = vmatprep.subr.bf16.mxu0 %v9595_v8  ;;  %v11937_v8 = vld [vmem:[#allocation40_spill] sm:$0xff] }
0x19c1   : > { %3869 = vmatpush1.bf16.msra.mxu1 %v9598_v53  ;;  %3900 = vmatprep.mubr.bf16.mxu1 %v11671_v44  ;;  %v11938_v53 = vld [vmem:[#allocation41_spill] sm:$0xff] }
0x19c2   : > { %3870 = vmatprep.subr.bf16.mxu1 %v9602_v58  ;;  %v11940_v58 = vld [vmem:[#allocation76_spill] sm:$0xff] }
0x19c3   : > { %5722 = vmatpush3.bf16.msra.mxu0 %v11930_v39  ;;  %v11950_v39 = vld [vmem:[#allocation48_spill] sm:$0xff] }
0x19c4   : > { %5723 = vmatprep.subr.bf16.mxu0 %v11931_v33  ;;  %v10048_v33 = vld [vmem:[#allocation8 + $0x90] ss:$12 sps:$4 sm:$0xff]  }
0x19c5   : > { %3871 = vmatpush1.bf16.msra.mxu1 %v11932_v49  ;;  %v10051_v49 = vld [vmem:[#allocation8 + $0xac] ss:$12 sps:$4 sm:$0xff]  }
0x19c6   : > { %3872 = vmatprep.subr.bf16.mxu1 %v11933_v1  ;;  %v11951_v1 = vld [vmem:[#allocation51_spill] sm:$0xff] }
0x19c7   : > { %5724 = vmatpush3.bf16.msra.mxu0 %v11934_v2  ;;  %v11952_v2 = vld [vmem:[#allocation52_spill] sm:$0xff] }
0x19c8   : > { %5725 = vmatprep.subr.bf16.mxu0 %v11935_v55  ;;  %v10056_v55 = vld [vmem:[#allocation8 + $0xa8] ss:$12 sps:$4 sm:$0xff]  }
0x19c9   : > { %3873 = vmatpush1.bf16.msra.mxu1 %v11936_v3  ;;  %v10059_v3 = vld [vmem:[#allocation10 + $0x4] ss:$12 sps:$4 sm:$0xff]  }
0x19ca   : > { %3874 = vmatprep.subr.bf16.mxu1 %v11937_v8 }
0x19cb   : > { %5726 = vmatpush3.bf16.msra.mxu0 %v11938_v53 }
0x19cc   : > { %5727 = vmatprep.subr.bf16.mxu0 %v11939_v6 }
0x19cd   : > { %3875 = vmatpush1.bf16.msra.mxu1 %v11940_v58 }
0x19ce   : > { %3876 = vmatprep.subr.bf16.mxu1 %v11941_v5  ;;  %v11955_v5 = vld [vmem:[#allocation32_spill] sm:$0xff] }
0x19cf   : > { %5728 = vmatpush3.bf16.msra.mxu0 %v11942_v26 }
0x19d0   : > { %5729 = vmatprep.subr.bf16.mxu0 %v11943_v11 }
0x19d1   : > { %3877 = vmatpush1.bf16.msra.mxu1 %v11944_v31 }
0x19d2   : > { %3878 = vmatprep.subr.bf16.mxu1 %v11945_v47 }
0x19d3   : > { %5730 = vmatpush3.bf16.msra.mxu0 %v11946_v12 }
0x19d4   : > { %5731 = vmatprep.subr.bf16.mxu0 %v11947_v25 }
0x19d5   : > { %3879 = vmatpush1.bf16.msra.mxu1 %v11948_v37 }
0x19d6   : > { %3880 = vmatprep.subr.bf16.mxu1 %v10043_v4 }
0x19d7   : > { %5732 = vmatpush3.bf16.msra.mxu0 %v11949_v24 }
0x19d8   : > { %5733 = vmatprep.subr.bf16.mxu0 %v11950_v39 }
0x19d9   : > { %3881 = vmatpush1.bf16.msra.mxu1 %v10048_v33 }
0x19da   : > { %3882 = vmatprep.subr.bf16.mxu1 %v10051_v49 }
0x19db   : > { %5734 = vmatpush3.bf16.msra.mxu0 %v11951_v1 }
0x19dc   : > { %5741 = vmatprep.subr.bf16.mxu0 %v11952_v2 }
0x19dd   : > { %3883 = vmatpush1.bf16.msra.mxu1 %v10056_v55 }
0x19de   : > { %3949 = vmatprep.subr.bf16.mxu1 %v10059_v3 }
0x1a91   : > { %v10062_v8 = vpop.f32.mrb[64].mxu0 }
0x1a92   : > { %11953 = vst [vmem:[#allocation36_spill] sm:$0xff] %v10062_v8  ;;  %v10064_v53 = vpop.f32.mrb[65].mxu0 }
0x1a93   : > { %11954 = vst [vmem:[#allocation37_spill] sm:$0xff] %v10064_v53  ;;  %v3648_v6 = vpop.f32.mrb[66].mxu0  ;;  %v3737_v58 = vpop.f32.mrb[72].mxu1 }
0x1a94   : > { %v3738_v26 = vadd.f32 %v3737_v58, %v11955_v5  ;;  %v3649_v11 = vpop.f32.mrb[67].mxu0  ;;  %v3739_v31 = vpop.f32.mrb[73].mxu1 }
0x1a95   : > { %v3740_v47 = vadd.f32 %v3739_v31, %v11710_v54  ;;  %v3741_v12 = vpop.f32.mrb[74].mxu1 }
0x1a96   : > { %v3742_v25 = vpop.f32.mrb[75].mxu1  ;;  %v3744_v37 = vsel %vm960_vm0, %v3738_v26, -inf }
0x1a97   : > { %v3745_v24 = vsel %vm960_vm0, %v3740_v47, -inf }
0x1a98   : > { %v3746_v39 = vmax.f32 %v3744_v37, %v3745_v24 }
0x1a9a   : > { %3747 = vmax.xlane.f32.xlu0 %v3746_v39 }
0x1b27   : > { %v3748_v1 = vpop.xlane.xlu0 %3747 }
0x1b28   : > { %v3749_v2 = vsub.f32 %v3738_v26, %v3748_v1  ;;  %v3750_v8 = vsub.f32 %v3740_v47, %v3748_v1 }
0x1b2a   : > { %v3751_v53 = vmul.f32 1.442695, %v3749_v2  ;;  %v3753_v6 = vmul.f32 1.442695, %v3750_v8  ;;  %v11957_v2 = vld [vmem:[#allocation56_spill] sm:$0xff] }
0x1b2c   : > { %6650 = vpow2.f32 %v3751_v53 }
0x1b2d   : > { %6652 = vpow2.f32 %v3753_v6  ;;  %v11958_v6 = vld [vmem:[#allocation57_spill] sm:$0xff] }
0x1b36   : > { %v6651_v58 = vpop.eup %6650 }
0x1b37   : > { %v6653_v11 = vpop.eup %6652  ;;  %v3755_v5 = vsel %vm960_vm0, %v6651_v58, 0.0 }
0x1b38   : > { %v3756_v31 = vsel %vm960_vm0, %v6653_v11, 0.0 }
0x1b39   : > { %v3757_v12 = vadd.f32 %v3756_v31, %v3755_v5  ;;  %v11956_v5 = vld [vmem:[#allocation55_spill] sm:$0xff] }
0x1b3b   : > { %3758 = vadd.xlane.f32.xlu1 %v3757_v12 }
0x1bc8   : > { %v3759_v25 = vpop.xlane.xlu1 %3758 }
0x1bc9   : > { %6654 = vrcp.f32 %v3759_v25 }
0x1bd3   : > { %v6655_v37 = vpop.eup %6654 }
0x1bd4   : > { %v3761_v24 = vmul.f32 %v6655_v37, %v6651_v58  ;;  %v3762_v39 = vmul.f32 %v6655_v37, %v6653_v11  ;;  %v11961_v58 = vld [vmem:[#allocation60_spill] sm:$0xff]  ;;  %v11962_v11 = vld [vmem:[#allocation67_spill] sm:$0xff] }
0x1bd6   : > { %v3765_v26 = vcombine.low %v3761_v24, %v3762_v39  ;;  %v3784_v47 = vpack.c.bf16 %v3762_v39, %v3762_v39  ;;  %v3783_v1 = vpack.c.bf16 %v3761_v24, %v3761_v24  ;;  %v11965_v24 = vld [vmem:[#allocation70_spill] sm:$0xff]  ;;  %v11966_v39 = vld [vmem:[#allocation71_spill] sm:$0xff] }
0x1bd8   : > { %v3772_v8 = vrot.slane %v3765_v26, %v11711_v57  ;;  %3817 = vmatprep.mubr.bf16.mxu0 %v3784_v47  ;;  %v11967_v26 = vld [vmem:[#allocation72_spill] sm:$0xff]  ;;  %v11968_v47 = vld [vmem:[#allocation75_spill] sm:$0xff] }
0x1bd9   : > { %3818 = vmatmul.mubr.bf16.vlgmr.msra.gmra.mrb[68].mxu0 %v3783_v1  ;;  %v11970_v1 = vld [vmem:[#allocation80_spill] sm:$0xff] }
0x1bda   : > { %v3779_v53 = vrot.slane %v3772_v8, %v11711_v57  ;;  %5742 = vmatpush3.bf16.msra.mxu0 %v9730_v13  ;;  %v11959_v13 = vld [vmem:[#allocation58_spill] sm:$0xff]  ;;  %v11971_v8 = vld [vmem:[#allocation81_spill] sm:$0xff] }
0x1bdb   : > { %5743 = vmatprep.subr.bf16.mxu0 %v9733_v16  ;;  %v11960_v16 = vld [vmem:[#allocation59_spill] sm:$0xff] }
0x1bdc   : > { %5379 = vst.msk [vmem:[%s7699_s22 + $0xa] sm:$0x3] %vm8051_vm1, %v3779_v53  ;;  %v11972_v53 = vld [vmem:[#allocation82_spill] sm:$0xff] }
0x1bde   : > { %5744 = vmatpush3.bf16.msra.mxu0 %v9739_v10  ;;  %v11963_v10 = vld [vmem:[#allocation68_spill] sm:$0xff] }
0x1bdf   : > { %5745 = vmatprep.subr.bf16.mxu0 %v9742_v40  ;;  %v11964_v40 = vld [vmem:[#allocation69_spill] sm:$0xff] }
0x1be2   : > { %5746 = vmatpush3.bf16.msra.mxu0 %v9745_v15 }
0x1be3   : > { %5747 = vmatprep.subr.bf16.mxu0 %v9748_v14 }
0x1be6   : > { %5748 = vmatpush3.bf16.msra.mxu0 %v11956_v5 }
0x1be7   : > { %5749 = vmatprep.subr.bf16.mxu0 %v11957_v2 }
0x1bea   : > { %5750 = vmatpush3.bf16.msra.mxu0 %v11958_v6 }
0x1beb   : > { %5751 = vmatprep.subr.bf16.mxu0 %v11959_v13 }
0x1bee   : > { %5752 = vmatpush3.bf16.msra.mxu0 %v11960_v16 }
0x1bef   : > { %5753 = vmatprep.subr.bf16.mxu0 %v11961_v58 }
0x1bf2   : > { %5754 = vmatpush3.bf16.msra.mxu0 %v11962_v11 }
0x1bf3   : > { %5755 = vmatprep.subr.bf16.mxu0 %v11963_v10 }
0x1bf6   : > { %5756 = vmatpush3.bf16.msra.mxu0 %v11964_v40  ;;  %v11974_v40 = vld [vmem:[#allocation84_spill] sm:$0xff] }
0x1bf7   : > { %6105 = vmatprep.subr.bf16.mxu0 %v11656_v50 }
0x1cac   : > { %v5735_v15 = vpop.f32.mrb[68].mxu0 }
0x1cad   : > { %v5736_v14 = vpop.f32.mrb[69].mxu0 }
0x1cae   : > { %v5737_v31 = vadd.f32 %v5736_v14, %v5735_v15  ;;  %v5738_v12 = vpop.f32.mrb[70].mxu0  ;;  %v11978_v15 = vld [vmem:[#allocation88_spill] sm:$0xff]  ;;  %v11979_v14 = vld [vmem:[#allocation89_spill] sm:$0xff] }
0x1caf   : > { %v5739_v25 = vpop.f32.mrb[71].mxu0  ;;  %v11982_v12 = vld [vmem:[#allocation92_spill] sm:$0xff] }
0x1cb0   : > { %v3825_v37 = vpack.c.bf16 %v5737_v31, %v5737_v31  ;;  %v11980_v31 = vld [vmem:[#allocation90_spill] sm:$0xff]  ;;  %v11983_v25 = vld [vmem:[#allocation61_spill] sm:$0xff] }
0x1cb2   : > { %3858 = vmatprep.mubr.bf16.mxu0 %v3825_v37  ;;  %v11984_v37 = vld [vmem:[#allocation97_spill] sm:$0xff] }
0x1cb3   : > { %3859 = vmatmul.mubr.bf16.vlgmr.msra.gmra.mrb[72].mxu0 %v10011_v56  ;;  %v11969_v56 = vld [vmem:[#allocation78_spill] sm:$0xff] }
0x1cb4   : > { %6106 = vmatpush3.bf16.msra.mxu0 %v11965_v24  ;;  %6121 = vmatprep.mubr.msk.bf16.mxu0 %vm7412_vm2, %v11656_v50  ;;  %v11985_v24 = vld [vmem:[#allocation98_spill] sm:$0xff] }
0x1cb5   : > { %6107 = vmatprep.subr.bf16.mxu0 %v11656_v50 }
0x1cb8   : > { %6108 = vmatpush3.bf16.msra.mxu0 %v11966_v39  ;;  %v11986_v39 = vld [vmem:[#allocation99_spill] sm:$0xff] }
0x1cb9   : > { %6109 = vmatprep.subr.bf16.mxu0 %v11656_v50 }
0x1cbc   : > { %6110 = vmatpush3.bf16.msra.mxu0 %v11967_v26  ;;  %v11987_v26 = vld [vmem:[#allocation100_spill] sm:$0xff] }
0x1cbd   : > { %6111 = vmatprep.subr.bf16.mxu0 %v11656_v50 }
0x1cc0   : > { %6112 = vmatpush3.bf16.msra.mxu0 %v11968_v47  ;;  %v11988_v47 = vld [vmem:[#allocation101_spill] sm:$0xff] }
0x1cc1   : > { %6113 = vmatprep.subr.bf16.mxu0 %v11656_v50 }
0x1cc4   : > { %6114 = vmatpush3.bf16.msra.mxu0 %v11969_v56  ;;  %v10288_v56 = vld [vmem:[%s11292_s5 + $0x90] ss:$8 sps:$4 sm:$0xff]  }
0x1cc5   : > { %6115 = vmatprep.subr.bf16.mxu0 %v11656_v50 }
0x1cc8   : > { %6116 = vmatpush3.bf16.msra.mxu0 %v11970_v1  ;;  %v10294_v1 = vld [vmem:[%s11292_s5 + $0xa4] ss:$8 sps:$4 sm:$0xff]  }
0x1cc9   : > { %6117 = vmatprep.subr.bf16.mxu0 %v11656_v50 }
0x1ccc   : > { %6118 = vmatpush3.bf16.msra.mxu0 %v11971_v8  ;;  %v10300_v8 = vld [vmem:[%s11292_s5 + $0xa0] ss:$8 sps:$4 sm:$0xff]  }
0x1ccd   : > { %6119 = vmatprep.subr.bf16.mxu0 %v11656_v50 }
0x1cd0   : > { %6120 = vmatpush3.bf16.msra.mxu0 %v11972_v53  ;;  %v10306_v53 = vld [vmem:[%s11292_s5 + $0xb4] ss:$8 sps:$4 sm:$0xff]  }
0x1cd1   : > { %6125 = vmatprep.subr.bf16.mxu0 %v11656_v50 }
0x1d86   : > { %v5757_v5 = vpop.f32.mrb[72].mxu0 }
0x1d87   : > { %v5758_v2 = vpop.f32.mrb[73].mxu0 }
0x1d88   : > { %v5759_v6 = vadd.f32 %v5758_v2, %v5757_v5  ;;  %v5760_v13 = vpop.f32.mrb[74].mxu0  ;;  %v10312_v5 = vld [vmem:[%s11292_s5 + $0xb0] ss:$8 sps:$4 sm:$0xff]   ;;  %v10318_v2 = vld [vmem:[%s11292_s5 + $0xc4] ss:$8 sps:$4 sm:$0xff]  }
0x1d89   : > { %v5761_v16 = vpop.f32.mrb[75].mxu0  ;;  %v10330_v13 = vld [vmem:[%s11292_s5 + $0xd4] ss:$8 sps:$4 sm:$0xff]  }
0x1d8a   : > { %v3861_v58 = vadd.f32 %v9817_v29, %v5759_v6  ;;  %v11973_v29 = vld [vmem:[#allocation83_spill] sm:$0xff] }
0x1d8b   : > { %v10324_v6 = vld [vmem:[%s11292_s5 + $0xc0] ss:$8 sps:$4 sm:$0xff]   ;;  %v10336_v16 = vld [vmem:[%s11292_s5 + $0xd0] ss:$8 sps:$4 sm:$0xff]  }
0x1d8c   : > { %v3866_v11 = vmax.f32 %v3861_v58, 0.0  ;;  %v10342_v58 = vld [vmem:[%s11292_s5 + $0xe4] ss:$8 sps:$4 sm:$0xff]  }
0x1d8e   : > { %v3867_v10 = vpack.c.bf16 %v3866_v11, %v3866_v11  ;;  %v10348_v11 = vld [vmem:[%s11292_s5 + $0xe0] ss:$8 sps:$4 sm:$0xff]  }
0x1d90   : > { %3901 = vmatmul.mubr.bf16.vlgmr.msra.gmra.mrb[76].mxu1 %v3867_v10  ;;  %6122 = vmatmul.mubr.bf16.vlgmr.msra.gmra.mrb[76].mxu0 %v3867_v10  ;;  %v10354_v10 = vld [vmem:[%s11292_s5 + $0xf4] ss:$8 sps:$4 sm:$0xff]  }
0x1d91   : > { %3950 = vmatpush1.bf16.msra.mxu1 %v9820_v60  ;;  %6126 = vmatpush3.bf16.msra.mxu0 %v9823_v20  ;;  %v11975_v60 = vld [vmem:[#allocation85_spill] sm:$0xff]  ;;  %v11976_v20 = vld [vmem:[#allocation86_spill] sm:$0xff] }
0x1d92   : > { %3951 = vmatprep.subr.bf16.mxu1 %v9826_v7  ;;  %6127 = vmatprep.subr.bf16.mxu0 %v11656_v50  ;;  %v11977_v7 = vld [vmem:[#allocation87_spill] sm:$0xff] }
0x1d93   : > { %3981 = vmatprep.mubr.bf16.mxu1 %v11671_v44  ;;  %6141 = vmatprep.mubr.msk.bf16.mxu0 %vm7412_vm2, %v11656_v50 }
0x1d95   : > { %3952 = vmatpush1.bf16.msra.mxu1 %v9833_v32  ;;  %6128 = vmatpush3.bf16.msra.mxu0 %v11973_v29  ;;  %v11981_v32 = vld [vmem:[#allocation91_spill] sm:$0xff] }
0x1d96   : > { %3953 = vmatprep.subr.bf16.mxu1 %v11974_v40  ;;  %6129 = vmatprep.subr.bf16.mxu0 %v11656_v50  ;;  %v10360_v29 = vld [vmem:[%s11292_s5 + $0xf0] ss:$8 sps:$4 sm:$0xff]  }
0x1d97   : > { %11989 = vst [vmem:[#allocation64_spill] sm:$0xff] %v10360_v29 }
0x1d99   : > { %3954 = vmatpush1.bf16.msra.mxu1 %v11975_v60  ;;  %6130 = vmatpush3.bf16.msra.mxu0 %v11976_v20 }
0x1d9a   : > { %3955 = vmatprep.subr.bf16.mxu1 %v11977_v7  ;;  %6131 = vmatprep.subr.bf16.mxu0 %v11656_v50 }
0x1d9d   : > { %3956 = vmatpush1.bf16.msra.mxu1 %v11978_v15  ;;  %6132 = vmatpush3.bf16.msra.mxu0 %v11979_v14 }
0x1d9e   : > { %3957 = vmatprep.subr.bf16.mxu1 %v11980_v31  ;;  %6133 = vmatprep.subr.bf16.mxu0 %v11656_v50 }
0x1da1   : > { %3958 = vmatpush1.bf16.msra.mxu1 %v11981_v32  ;;  %6134 = vmatpush3.bf16.msra.mxu0 %v11982_v12 }
0x1da2   : > { %3959 = vmatprep.subr.bf16.mxu1 %v11983_v25  ;;  %6135 = vmatprep.subr.bf16.mxu0 %v11656_v50 }
0x1da5   : > { %3960 = vmatpush1.bf16.msra.mxu1 %v9873_v45  ;;  %6136 = vmatpush3.bf16.msra.mxu0 %v11984_v37  ;;  %v10149_v45 = vld [vmem:[%s11292_s5 + $0x4] ss:$8 sps:$4 sm:$0xff]  }
0x1da6   : > { %3961 = vmatprep.subr.bf16.mxu1 %v11985_v24  ;;  %6137 = vmatprep.subr.bf16.mxu0 %v11656_v50 }
0x1da9   : > { %3962 = vmatpush1.bf16.msra.mxu1 %v11986_v39  ;;  %6138 = vmatpush3.bf16.msra.mxu0 %v9886_v22  ;;  %v10158_v22 = vld [vmem:[%s11292_s5] ss:$8 sps:$4 sm:$0xff]  }
0x1daa   : > { %3963 = vmatprep.subr.bf16.mxu1 %v11987_v26  ;;  %6139 = vmatprep.subr.bf16.mxu0 %v11656_v50 }
0x1dad   : > { %3964 = vmatpush1.bf16.msra.mxu1 %v11988_v47  ;;  %6140 = vmatpush3.bf16.msra.mxu0 %v9896_v23  ;;  %v10165_v23 = vld [vmem:[%s11292_s5 + $0x14] ss:$8 sps:$4 sm:$0xff]  }
0x1dae   : > { %4145 = vmatprep.subr.bf16.mxu0 %v10149_v45  ;;  %4052 = vmatprep.subr.bf16.mxu1 %v9900_v59  ;;  %v10173_v59 = vld [vmem:[%s11292_s5 + $0x10] ss:$8 sps:$4 sm:$0xff]  }
0x1db0   : > { %3982 = vmatmul.mubr.bf16.vlgmr.msra.gmra.mrb[76].mxu1 %v10015_v43  ;;  %6142 = vmatmul.mubr.bf16.vlgmr.msra.gmra.mrb[80].mxu0 %v10015_v43  ;;  %v10276_v43 = vld [vmem:[%s11292_s5 + $0x80] ss:$8 sps:$4 sm:$0xff]  }
0x1db1   : > { %4146 = vmatpush1.bf16.msra.mxu0 %v10158_v22  ;;  %4053 = vmatpush1.bf16.msra.mxu1 %v9906_v63  ;;  %v10180_v63 = vld [vmem:[%s11292_s5 + $0x24] ss:$8 sps:$4 sm:$0xff]  }
0x1db2   : > { %4147 = vmatprep.subr.bf16.mxu0 %v10165_v23  ;;  %4054 = vmatprep.subr.bf16.mxu1 %v9910_v21  ;;  %v10187_v21 = vld [vmem:[%s11292_s5 + $0x20] ss:$8 sps:$4 sm:$0xff]  }
0x1db3   : > { %4084 = vmatprep.mubr.bf16.mxu1 %v11671_v44 }
0x1db5   : > { %4148 = vmatpush1.bf16.msra.mxu0 %v10173_v59  ;;  %4055 = vmatpush1.bf16.msra.mxu1 %v9915_v17  ;;  %v10194_v17 = vld [vmem:[%s11292_s5 + $0x34] ss:$8 sps:$4 sm:$0xff]  }
0x1db6   : > { %4149 = vmatprep.subr.bf16.mxu0 %v10180_v63  ;;  %4056 = vmatprep.subr.bf16.mxu1 %v9919_v38  ;;  %v10201_v38 = vld [vmem:[%s11292_s5 + $0x30] ss:$8 sps:$4 sm:$0xff]  }
0x1db9   : > { %4150 = vmatpush1.bf16.msra.mxu0 %v10187_v21  ;;  %4057 = vmatpush1.bf16.msra.mxu1 %v9923_v52  ;;  %v10208_v52 = vld [vmem:[%s11292_s5 + $0x44] ss:$8 sps:$4 sm:$0xff]  }
0x1dba   : > { %4151 = vmatprep.subr.bf16.mxu0 %v10194_v17  ;;  %4058 = vmatprep.subr.bf16.mxu1 %v9927_v9  ;;  %v10215_v9 = vld [vmem:[%s11292_s5 + $0x40] ss:$8 sps:$4 sm:$0xff]  }
0x1dbd   : > { %4152 = vmatpush1.bf16.msra.mxu0 %v10201_v38  ;;  %4059 = vmatpush1.bf16.msra.mxu1 %v9931_v19  ;;  %v10222_v19 = vld [vmem:[%s11292_s5 + $0x54] ss:$8 sps:$4 sm:$0xff]  }
0x1dbe   : > { %4153 = vmatprep.subr.bf16.mxu0 %v10208_v52  ;;  %4060 = vmatprep.subr.bf16.mxu1 %v9935_v42  ;;  %v10229_v42 = vld [vmem:[%s11292_s5 + $0x50] ss:$8 sps:$4 sm:$0xff]  }
0x1dc1   : > { %4154 = vmatpush1.bf16.msra.mxu0 %v10215_v9  ;;  %4061 = vmatpush1.bf16.msra.mxu1 %v9939_v18  ;;  %v10236_v18 = vld [vmem:[%s11292_s5 + $0x64] ss:$8 sps:$4 sm:$0xff]  }
0x1dc2   : > { %4155 = vmatprep.subr.bf16.mxu0 %v10222_v19  ;;  %4062 = vmatprep.subr.bf16.mxu1 %v9943_v46  ;;  %v10243_v46 = vld [vmem:[%s11292_s5 + $0x60] ss:$8 sps:$4 sm:$0xff]  }
0x1dc5   : > { %4156 = vmatpush1.bf16.msra.mxu0 %v10229_v42  ;;  %4063 = vmatpush1.bf16.msra.mxu1 %v9947_v36  ;;  %v10250_v36 = vld [vmem:[%s11292_s5 + $0x74] ss:$8 sps:$4 sm:$0xff]  }
0x1dc6   : > { %4157 = vmatprep.subr.bf16.mxu0 %v10236_v18  ;;  %4064 = vmatprep.subr.bf16.mxu1 %v9951_v35  ;;  %v10257_v35 = vld [vmem:[%s11292_s5 + $0x70] ss:$8 sps:$4 sm:$0xff]  }
0x1dc9   : > { %4158 = vmatpush1.bf16.msra.mxu0 %v10243_v46  ;;  %4065 = vmatpush1.bf16.msra.mxu1 %v9955_v41  ;;  %v10264_v41 = vld [vmem:[%s11292_s5 + $0x84] ss:$8 sps:$4 sm:$0xff]  }
0x1dca   : > { %4159 = vmatprep.subr.bf16.mxu0 %v10250_v36  ;;  %4066 = vmatprep.subr.bf16.mxu1 %v9959_v51  ;;  %v10270_v51 = vld [vmem:[%s11291_s4 + $0x40] sm:$0xff]  }
0x1dcd   : > { %4160 = vmatpush1.bf16.msra.mxu0 %v10257_v35  ;;  %4067 = vmatpush1.bf16.msra.mxu1 %v9963_v48  ;;  %v10282_v48 = vld [vmem:[%s11292_s5 + $0x94] ss:$8 sps:$4 sm:$0xff]  }
0x1dce   : > { %4161 = vmatprep.subr.bf16.mxu0 %v10264_v41  ;;  %5781 = vmatprep.subr.bf16.mxu1 %v10270_v51 }
0x1dd1   : > { %4162 = vmatpush1.bf16.msra.mxu0 %v10276_v43 }
0x1dd2   : > { %4163 = vmatprep.subr.bf16.mxu0 %v10282_v48 }
0x1dd5   : > { %4164 = vmatpush1.bf16.msra.mxu0 %v10288_v56 }
0x1dd6   : > { %4165 = vmatprep.subr.bf16.mxu0 %v10294_v1 }
0x1dd9   : > { %4166 = vmatpush1.bf16.msra.mxu0 %v10300_v8 }
0x1dda   : > { %4167 = vmatprep.subr.bf16.mxu0 %v10306_v53 }
0x1ddd   : > { %4168 = vmatpush1.bf16.msra.mxu0 %v10312_v5 }
0x1dde   : > { %4169 = vmatprep.subr.bf16.mxu0 %v10318_v2 }
0x1de1   : > { %4170 = vmatpush1.bf16.msra.mxu0 %v10324_v6 }
0x1de2   : > { %4171 = vmatprep.subr.bf16.mxu0 %v10330_v13 }
0x1de5   : > { %4172 = vmatpush1.bf16.msra.mxu0 %v10336_v16 }
0x1de6   : > { %4173 = vmatprep.subr.bf16.mxu0 %v10342_v58 }
0x1de9   : > { %4174 = vmatpush1.bf16.msra.mxu0 %v10348_v11 }
0x1dea   : > { %4175 = vmatprep.subr.bf16.mxu0 %v10354_v10 }
0x1ded   : > { %4176 = vmatpush1.bf16.msra.mxu0 %v10360_v29 }
0x1dee   : > { %4310 = vmatprep.subr.bf16.mxu0 %v9983_v61 }
0x1e63   : > { %v3943_v40 = vpop.f32.mrb[76].mxu0 }
0x1e64   : > { %v6123_v60 = vpop.f32.mrb[77].mxu0 }
0x1e65   : > { %v3946_v20 = vpop.f32.mrb[78].mxu0 }
0x1e66   : > { %v6124_v7 = vpop.f32.mrb[79].mxu0 }
0x1e83   : > { %v3983_v15 = vpop.f32.mrb[76].mxu1  ;;  %v4024_v14 = vpop.f32.mrb[80].mxu0 }
0x1e84   : > { %v6246_v31 = vadd.f32 %v8377_v28, %v3983_v15  ;;  %v3985_v32 = vpop.f32.mrb[77].mxu1  ;;  %v6143_v12 = vpop.f32.mrb[81].mxu0  ;;  %v4025_v15 = vadd.f32 %v4024_v14, %v8384_v27 }
0x1e85   : > { %v3987_v61 = vpop.f32.mrb[78].mxu1  ;;  %v4027_v25 = vpop.f32.mrb[82].mxu0  ;;  %v6248_v26 = vadd.f32 %v8379_v30, %v3985_v32 }
0x1e86   : > { %v5380_v37 = vmul.f32 -1.442695, %v6246_v31  ;;  %v3988_v24 = vpop.f32.mrb[79].mxu1  ;;  %v6144_v39 = vpop.f32.mrb[83].mxu0  ;;  %v3944_v61 = vadd.f32 %v3943_v40, %v8386_v34 }
0x1e87   : > { %v5381_v47 = vmul.f32 -1.442695, %v6248_v26  ;;  %v4135_v24 = vstv %s4134_s19  ;;  %s5018_s19 = scalar_select %p5017_p6, 1, 0 }
0x1e88   : > { %6656 = vpow2.f32 %v5380_v37  ;;  %vm4136_vm8 = vcmp.eq.s32.totalorder %v4135_v24, 1  ;;  %v10443_v24 = vld [vmem:[%s11291_s4 + $0x58] sm:$0xff]  }
0x1e89   : > { %6658 = vpow2.f32 %v5381_v47  ;;  %11995 = vst [vmem:[#allocation40_spill] sm:$0xff] %v10443_v24 }
0x1e92   : > { %v6657_v60 = vpop.eup %6656 }
0x1e93   : > { %v4034_v20 = vadd.f32 1.0, %v6657_v60  ;;  %v6659_v7 = vpop.eup %6658 }
0x1e94   : > { %v4041_v29 = vadd.f32 1.0, %v6659_v7  ;;  %v10399_v7 = vld [vmem:[%s11291_s4] sm:$0xff]  }
0x1e95   : > { %6660 = vrcp.f32 %v4034_v20 }
0x1e96   : > { %6662 = vrcp.f32 %v4041_v29  ;;  %v10389_v29 = vld [vmem:[%s4140_s0] ss:$0 sps:$4 sm:$0x11]  }
0x1e9f   : > { %v6661_v12 = vpop.eup %6660 }
0x1ea0   : > { %v4044_v31 = vmul.f32 %v6661_v12, %v4025_v15  ;;  %v6663_v32 = vpop.eup %6662  ;;  %v10409_v15 = vld [vmem:[#allocation8] ss:$12 sps:$4 sm:$0xff]   ;;  %v10413_v12 = vld [vmem:[#allocation8 + $0x1c] ss:$12 sps:$4 sm:$0xff]  }
0x1ea1   : > { %v4047_v37 = vsub.f32 1.0, %v6663_v32  ;;  %v4049_v47 = vmul.f32 %v6663_v32, %v10004_v0  ;;  %v10431_v32 = vld [vmem:[#allocation8 + $0x34] ss:$12 sps:$4 sm:$0xff]  }
0x1ea2   : > { %v4045_v25 = vadd.f32 %v4044_v31, %v3944_v61  ;;  %v10419_v61 = vld [vmem:[%s11291_s4 + $0x8] sm:$0xff]   ;;  %v10425_v31 = vld [vmem:[%s11291_s4 + $0x50] sm:$0xff]   ;;  %11993 = vst [vmem:[#allocation66_spill] sm:$0xff] %v10431_v32 }
0x1ea3   : > { %11990 = vst [vmem:[#allocation65_spill] sm:$0xff] %v10419_v61  ;;  %11991 = vst [vmem:[#allocation38_spill] sm:$0xff] %v10425_v31 }
0x1ea4   : > { %6664 = vtanh.f32 %v4045_v25  ;;  %v10428_v25 = vld [vmem:[#allocation8 + $0x18] ss:$12 sps:$4 sm:$0xff]  }
0x1ea5   : > { %11992 = vst [vmem:[#allocation39_spill] sm:$0xff] %v10428_v25 }
0x1eae   : > { %v6665_v39 = vpop.eup %6664 }
0x1eaf   : > { %v4048_v26 = vmul.f32 %v6665_v39, %v4047_v37  ;;  %v10437_v37 = vld [vmem:[%s11291_s4 + $0x10] sm:$0xff]  }
0x1eb0   : > { %11994 = vst [vmem:[#allocation73_spill] sm:$0xff] %v10437_v37  ;;  %v10446_v39 = vld [vmem:[#allocation8 + $0x30] ss:$12 sps:$4 sm:$0xff]  }
0x1eb1   : > { %v4050_v14 = vadd.f32 %v4049_v47, %v4048_v26  ;;  %11996 = vst [vmem:[#allocation41_spill] sm:$0xff] %v10446_v39  ;;  %v10449_v26 = vld [vmem:[#allocation8 + $0x4c] ss:$12 sps:$4 sm:$0xff]  }
0x1eb2   : > { %11997 = vst [vmem:[#allocation74_spill] sm:$0xff] %v10449_v26  ;;  %v10455_v47 = vld [vmem:[%s11291_s4 + $0x18] sm:$0xff]  }
0x1eb3   : > { %v4051_v60 = vpack.c.bf16 %v4050_v14, %v4050_v14  ;;  %v10382_v40 = vsel %vm4136_vm8, %v4050_v14, %v10004_v0  ;;  %v10406_v0 = vld [vmem:[%s11291_s4 + $0x48] sm:$0xff]   ;;  %11998 = vst [vmem:[#allocation76_spill] sm:$0xff] %v10455_v47  ;;  %v10461_v14 = vld [vmem:[%s11291_s4 + $0x60] sm:$0xff]  }
0x1eb4   : > { %v10393_v20 = vpack.c.bf16 %v10382_v40, %v10382_v40  ;;  %11999 = vst [vmem:[#allocation42_spill] sm:$0xff] %v10461_v14 }
0x1eb5   : > { %4085 = vmatmul.mubr.bf16.vlgmr.msra.gmra.mrb[80].mxu1 %v4051_v60  ;;  %v10464_v60 = vld [vmem:[#allocation8 + $0x48] ss:$12 sps:$4 sm:$0xff]  }
0x1eb6   : > { %4177 = vmatprep.mubr.bf16.mxu0 %v10393_v20  ;;  %5782 = vmatpush3.bf16.msra.mxu1 %v10399_v7  ;;  %12000 = vst [vmem:[#allocation43_spill] sm:$0xff] %v10464_v60 }
0x1eb7   : > { %4178 = vmatmul.mubr.bf16.vlgmr.msra.gmra.mrb[84].mxu0 %v10389_v29  ;;  %5783 = vmatprep.subr.bf16.mxu1 %v10406_v0 }
0x1eb8   : > { %4311 = vmatpush1.bf16.msra.mxu0 %v10409_v15  ;;  %4342 = vmatprep.mubr.bf16.mxu0 %v11671_v44 }
0x1eb9   : > { %4312 = vmatprep.subr.bf16.mxu0 %v10413_v12 }
0x1eba   : > { %5784 = vmatpush3.bf16.msra.mxu1 %v10419_v61 }
0x1ebb   : > { %5785 = vmatprep.subr.bf16.mxu1 %v10425_v31 }
0x1ebc   : > { %4313 = vmatpush1.bf16.msra.mxu0 %v10428_v25 }
0x1ebd   : > { %4314 = vmatprep.subr.bf16.mxu0 %v10431_v32 }
0x1ebe   : > { %5786 = vmatpush3.bf16.msra.mxu1 %v10437_v37 }
0x1ebf   : > { %5787 = vmatprep.subr.bf16.mxu1 %v10443_v24 }
0x1ec0   : > { %4315 = vmatpush1.bf16.msra.mxu0 %v10446_v39  ;;  %v10467_v39 = vld [vmem:[#allocation8 + $0x64] ss:$12 sps:$4 sm:$0xff]  }
0x1ec1   : > { %4316 = vmatprep.subr.bf16.mxu0 %v10449_v26  ;;  %12001 = vst [vmem:[#allocation77_spill] sm:$0xff] %v10467_v39  ;;  %v10473_v26 = vld [vmem:[%s11291_s4 + $0x20] sm:$0xff]  }
0x1ec2   : > { %5788 = vmatpush3.bf16.msra.mxu1 %v10455_v47  ;;  %12002 = vst [vmem:[#allocation79_spill] sm:$0xff] %v10473_v26  ;;  %v10479_v47 = vld [vmem:[%s11291_s4 + $0x68] sm:$0xff]  }
0x1ec3   : > { %5789 = vmatprep.subr.bf16.mxu1 %v10461_v14  ;;  %12003 = vst [vmem:[#allocation33_spill] sm:$0xff] %v10479_v47  ;;  %v10482_v14 = vld [vmem:[#allocation8 + $0x60] ss:$12 sps:$4 sm:$0xff]  }
0x1ec4   : > { %4317 = vmatpush1.bf16.msra.mxu0 %v10464_v60  ;;  %12004 = vst [vmem:[#allocation44_spill] sm:$0xff] %v10482_v14  ;;  %v10485_v60 = vld [vmem:[#allocation8 + $0x7c] ss:$12 sps:$4 sm:$0xff]  }
0x1ec5   : > { %4318 = vmatprep.subr.bf16.mxu0 %v10467_v39  ;;  %12005 = vst [vmem:[#allocation45_spill] sm:$0xff] %v10485_v60  ;;  %v10491_v39 = vld [vmem:[%s11291_s4 + $0x28] sm:$0xff]  }
0x1ec6   : > { %5790 = vmatpush3.bf16.msra.mxu1 %v10473_v26  ;;  %12006 = vst [vmem:[#allocation46_spill] sm:$0xff] %v10491_v39  ;;  %v10497_v26 = vld [vmem:[%s11291_s4 + $0x70] sm:$0xff]  }
0x1ec7   : > { %5791 = vmatprep.subr.bf16.mxu1 %v10479_v47  ;;  %12007 = vst [vmem:[#allocation47_spill] sm:$0xff] %v10497_v26  ;;  %v10500_v47 = vld [vmem:[#allocation8 + $0x78] ss:$12 sps:$4 sm:$0xff]  }
0x1ec8   : > { %4319 = vmatpush1.bf16.msra.mxu0 %v10482_v14  ;;  %12008 = vst [vmem:[#allocation48_spill] sm:$0xff] %v10500_v47 }
0x1ec9   : > { %4320 = vmatprep.subr.bf16.mxu0 %v10485_v60  ;;  %v10507_v60 = vld [vmem:[%s11291_s4 + $0x30] sm:$0xff]  }
0x1eca   : > { %5792 = vmatpush3.bf16.msra.mxu1 %v10491_v39  ;;  %12009 = vst [vmem:[#allocation51_spill] sm:$0xff] %v10507_v60  ;;  %v10513_v39 = vld [vmem:[%s11291_s4 + $0x78] sm:$0xff]  }
0x1ecb   : > { %5793 = vmatprep.subr.bf16.mxu1 %v10497_v26  ;;  %12010 = vst [vmem:[#allocation52_spill] sm:$0xff] %v10513_v39  ;;  %v12015_v26 = vld [vmem:[#allocation32_spill] sm:$0xff] }
0x1ecc   : > { %4321 = vmatpush1.bf16.msra.mxu0 %v10500_v47  ;;  %v10524_v47 = vld [vmem:[#allocation5 + $0x40] sm:$0xff]  }
0x1ecd   : > { %4322 = vmatprep.subr.bf16.mxu0 %v10043_v4  ;;  %v10521_v4 = vld [vmem:[%s11291_s4 + $0x38] sm:$0xff]   ;;  %12012 = vst [vmem:[#allocation56_spill] sm:$0xff] %v10524_v47 }
0x1ece   : > { %5794 = vmatpush3.bf16.msra.mxu1 %v10507_v60  ;;  %12011 = vst [vmem:[#allocation55_spill] sm:$0xff] %v10521_v4 }
0x1ecf   : > { %5795 = vmatprep.subr.bf16.mxu1 %v10513_v39 }
0x1ed0   : > { %4323 = vmatpush1.bf16.msra.mxu0 %v10048_v33 }
0x1ed1   : > { %4324 = vmatprep.subr.bf16.mxu0 %v10051_v49 }
0x1ed2   : > { %5796 = vmatpush3.bf16.msra.mxu1 %v10521_v4 }
0x1ed3   : > { %5803 = vmatprep.subr.bf16.mxu1 %v10524_v47 }
0x1ed4   : > { %4325 = vmatpush1.bf16.msra.mxu0 %v10056_v55 }
0x1ed5   : > { %4391 = vmatprep.subr.bf16.mxu0 %v10059_v3 }
0x1f88   : > { %v10529_v39 = vpop.f32.mrb[80].mxu1 }
0x1f89   : > { %12013 = vst [vmem:[#allocation57_spill] sm:$0xff] %v10529_v39  ;;  %v10531_v33 = vpop.f32.mrb[81].mxu1 }
0x1f8a   : > { %12014 = vst [vmem:[#allocation58_spill] sm:$0xff] %v10531_v33  ;;  %v4090_v49 = vpop.f32.mrb[82].mxu1  ;;  %v4179_v60 = vpop.f32.mrb[84].mxu0 }
0x1f8b   : > { %v4180_v14 = vadd.f32 %v4179_v60, %v12015_v26  ;;  %v4091_v24 = vpop.f32.mrb[83].mxu1  ;;  %v4181_v37 = vpop.f32.mrb[85].mxu0 }
0x1f8c   : > { %v4182_v4 = vadd.f32 %v4181_v37, %v11710_v54  ;;  %v4183_v32 = vpop.f32.mrb[86].mxu0 }
0x1f8d   : > { %v4184_v25 = vpop.f32.mrb[87].mxu0  ;;  %v4186_v47 = vsel %vm960_vm0, %v4180_v14, -inf }
0x1f8e   : > { %v4187_v55 = vsel %vm960_vm0, %v4182_v4, -inf }
0x1f8f   : > { %v4188_v31 = vmax.f32 %v4186_v47, %v4187_v55 }
0x1f91   : > { %4189 = vmax.xlane.f32.xlu0 %v4188_v31 }
0x201e   : > { %v4190_v3 = vpop.xlane.xlu0 %4189 }
0x201f   : > { %v4191_v39 = vsub.f32 %v4180_v14, %v4190_v3  ;;  %v4192_v61 = vsub.f32 %v4182_v4, %v4190_v3  ;;  %v10541_v3 = vld [vmem:[#allocation5] sm:$0xff]  }
0x2021   : > { %v4193_v33 = vmul.f32 1.442695, %v4191_v39  ;;  %v4195_v49 = vmul.f32 1.442695, %v4192_v61 }
0x2023   : > { %6666 = vpow2.f32 %v4193_v33 }
0x2024   : > { %6668 = vpow2.f32 %v4195_v49  ;;  %v10550_v49 = vld [vmem:[#allocation5 + $0x8] sm:$0xff]  }
0x202d   : > { %v6667_v60 = vpop.eup %6666 }
0x202e   : > { %v6669_v24 = vpop.eup %6668  ;;  %v4197_v26 = vsel %vm960_vm0, %v6667_v60, 0.0 }
0x202f   : > { %v4198_v32 = vsel %vm960_vm0, %v6669_v24, 0.0 }
0x2030   : > { %v4199_v25 = vadd.f32 %v4198_v32, %v4197_v26  ;;  %v10544_v26 = vld [vmem:[#allocation5 + $0x48] sm:$0xff]   ;;  %v10559_v32 = vld [vmem:[#allocation5 + $0x58] sm:$0xff]  }
0x2032   : > { %4200 = vadd.xlane.f32.xlu1 %v4199_v25  ;;  %v10562_v25 = vld [vmem:[#allocation5 + $0x18] sm:$0xff]  }
0x2033   : > { %12016 = vst [vmem:[#allocation59_spill] sm:$0xff] %v10562_v25 }
0x20bf   : > { %v4201_v37 = vpop.xlane.xlu1 %4200 }
0x20c0   : > { %6670 = vrcp.f32 %v4201_v37  ;;  %v10565_v37 = vld [vmem:[#allocation5 + $0x60] sm:$0xff]  }
0x20c1   : > { %12017 = vst [vmem:[#allocation60_spill] sm:$0xff] %v10565_v37 }
0x20ca   : > { %v6671_v47 = vpop.eup %6670 }
0x20cb   : > { %v4203_v31 = vmul.f32 %v6671_v47, %v6667_v60  ;;  %v4204_v55 = vmul.f32 %v6671_v47, %v6669_v24  ;;  %v10553_v60 = vld [vmem:[#allocation5 + $0x50] sm:$0xff]   ;;  %v10568_v47 = vld [vmem:[#allocation5 + $0x20] sm:$0xff]  }
0x20cc   : > { %v10556_v24 = vld [vmem:[#allocation5 + $0x10] sm:$0xff]   ;;  %12018 = vst [vmem:[#allocation67_spill] sm:$0xff] %v10568_v47 }
0x20cd   : > { %v4207_v14 = vcombine.low %v4203_v31, %v4204_v55  ;;  %v4226_v4 = vpack.c.bf16 %v4204_v55, %v4204_v55  ;;  %v4225_v39 = vpack.c.bf16 %v4203_v31, %v4203_v31  ;;  %v10571_v31 = vld [vmem:[#allocation5 + $0x68] sm:$0xff]  }
0x20ce   : > { %12019 = vst [vmem:[#allocation68_spill] sm:$0xff] %v10571_v31  ;;  %v10574_v55 = vld [vmem:[#allocation5 + $0x28] sm:$0xff]  }
0x20cf   : > { %v4214_v61 = vrot.slane %v4207_v14, %v11711_v57  ;;  %4259 = vmatprep.mubr.bf16.mxu1 %v4226_v4  ;;  %12020 = vst [vmem:[#allocation69_spill] sm:$0xff] %v10574_v55  ;;  %v10577_v14 = vld [vmem:[#allocation5 + $0x70] sm:$0xff]  }
0x20d0   : > { %4260 = vmatmul.mubr.bf16.vlgmr.msra.gmra.mrb[84].mxu1 %v4225_v39  ;;  %12021 = vst [vmem:[#allocation70_spill] sm:$0xff] %v10577_v14  ;;  %v10580_v4 = vld [vmem:[#allocation5 + $0x30] sm:$0xff]   ;;  %v10583_v39 = vld [vmem:[#allocation5 + $0x78] sm:$0xff]  }
0x20d1   : > { %v4221_v33 = vrot.slane %v4214_v61, %v11711_v57  ;;  %5804 = vmatpush3.bf16.msra.mxu1 %v10541_v3  ;;  %12022 = vst [vmem:[#allocation71_spill] sm:$0xff] %v10580_v4  ;;  %12023 = vst [vmem:[#allocation72_spill] sm:$0xff] %v10583_v39  ;;  %v10586_v61 = vld [vmem:[#allocation5 + $0x38] sm:$0xff]  }
0x20d2   : > { %5805 = vmatprep.subr.bf16.mxu1 %v10544_v26  ;;  %12024 = vst [vmem:[#allocation75_spill] sm:$0xff] %v10586_v61 }
0x20d3   : > { %5384 = vst.msk [vmem:[%s7699_s22 + $0xc] sm:$0x3] %vm8051_vm1, %v4221_v33 }
0x20d5   : > { %5806 = vmatpush3.bf16.msra.mxu1 %v10550_v49 }
0x20d6   : > { %5807 = vmatprep.subr.bf16.mxu1 %v10553_v60 }
0x20d9   : > { %5808 = vmatpush3.bf16.msra.mxu1 %v10556_v24 }
0x20da   : > { %5809 = vmatprep.subr.bf16.mxu1 %v10559_v32 }
0x20dd   : > { %5810 = vmatpush3.bf16.msra.mxu1 %v10562_v25  ;;  %v10631_v25 = vld [vmem:[#allocation10] ss:$12 sps:$4 sm:$0xff]  }
0x20de   : > { %5811 = vmatprep.subr.bf16.mxu1 %v10565_v37 }
0x20e1   : > { %5812 = vmatpush3.bf16.msra.mxu1 %v10568_v47 }
0x20e2   : > { %5813 = vmatprep.subr.bf16.mxu1 %v10571_v31 }
0x20e5   : > { %5814 = vmatpush3.bf16.msra.mxu1 %v10574_v55 }
0x20e6   : > { %5815 = vmatprep.subr.bf16.mxu1 %v10577_v14 }
0x20e9   : > { %5816 = vmatpush3.bf16.msra.mxu1 %v10580_v4  ;;  %v10591_v4 = vld [vmem:[#allocation8 + $0x8] ss:$12 sps:$4 sm:$0xff]  }
0x20ea   : > { %5817 = vmatprep.subr.bf16.mxu1 %v10583_v39  ;;  %12025 = vst [vmem:[#allocation78_spill] sm:$0xff] %v10591_v4 }
0x20ed   : > { %5818 = vmatpush3.bf16.msra.mxu1 %v10586_v61  ;;  %v10597_v61 = vld [vmem:[#allocation8 + $0x20] ss:$12 sps:$4 sm:$0xff]  }
0x20ee   : > { %6145 = vmatprep.subr.bf16.mxu1 %v11656_v50  ;;  %12026 = vst [vmem:[#allocation80_spill] sm:$0xff] %v10597_v61 }
0x21a3   : > { %v5797_v33 = vpop.f32.mrb[84].mxu1 }
0x21a4   : > { %v5798_v55 = vpop.f32.mrb[85].mxu1 }
0x21a5   : > { %v5799_v31 = vadd.f32 %v5798_v55, %v5797_v33  ;;  %v5800_v47 = vpop.f32.mrb[86].mxu1  ;;  %v10617_v55 = vld [vmem:[#allocation8 + $0x98] ss:$12 sps:$4 sm:$0xff]  }
0x21a6   : > { %v5801_v37 = vpop.f32.mrb[87].mxu1  ;;  %v10609_v47 = vld [vmem:[#allocation8 + $0x68] ss:$12 sps:$4 sm:$0xff]   ;;  %12031 = vst [vmem:[#allocation85_spill] sm:$0xff] %v10617_v55 }
0x21a7   : > { %v4267_v14 = vpack.c.bf16 %v5799_v31, %v5799_v31  ;;  %v10601_v37 = vld [vmem:[#allocation8 + $0x38] ss:$12 sps:$4 sm:$0xff]   ;;  %12029 = vst [vmem:[#allocation83_spill] sm:$0xff] %v10609_v47  ;;  %v10613_v31 = vld [vmem:[#allocation8 + $0x80] ss:$12 sps:$4 sm:$0xff]  }
0x21a8   : > { %12027 = vst [vmem:[#allocation81_spill] sm:$0xff] %v10601_v37  ;;  %12030 = vst [vmem:[#allocation84_spill] sm:$0xff] %v10613_v31 }
0x21a9   : > { %4300 = vmatprep.mubr.bf16.mxu1 %v4267_v14  ;;  %v10621_v14 = vld [vmem:[#allocation8 + $0xb0] ss:$12 sps:$4 sm:$0xff]  }
0x21aa   : > { %4301 = vmatmul.mubr.bf16.vlgmr.msra.gmra.mrb[88].mxu1 %v10389_v29  ;;  %v10605_v29 = vld [vmem:[#allocation8 + $0x50] ss:$12 sps:$4 sm:$0xff]   ;;  %12032 = vst [vmem:[#allocation86_spill] sm:$0xff] %v10621_v14 }
0x21ab   : > { %6146 = vmatpush3.bf16.msra.mxu1 %v10591_v4  ;;  %6161 = vmatprep.mubr.msk.bf16.mxu1 %vm7412_vm2, %v11656_v50  ;;  %12028 = vst [vmem:[#allocation82_spill] sm:$0xff] %v10605_v29 }
0x21ac   : > { %6147 = vmatprep.subr.bf16.mxu1 %v11656_v50 }
0x21af   : > { %6148 = vmatpush3.bf16.msra.mxu1 %v10597_v61 }
0x21b0   : > { %6149 = vmatprep.subr.bf16.mxu1 %v11656_v50 }
0x21b3   : > { %6150 = vmatpush3.bf16.msra.mxu1 %v10601_v37 }
0x21b4   : > { %6151 = vmatprep.subr.bf16.mxu1 %v11656_v50 }
0x21b7   : > { %6152 = vmatpush3.bf16.msra.mxu1 %v10605_v29 }
0x21b8   : > { %6153 = vmatprep.subr.bf16.mxu1 %v11656_v50 }
0x21bb   : > { %6154 = vmatpush3.bf16.msra.mxu1 %v10609_v47 }
0x21bc   : > { %6155 = vmatprep.subr.bf16.mxu1 %v11656_v50 }
0x21bf   : > { %6156 = vmatpush3.bf16.msra.mxu1 %v10613_v31  ;;  %v10628_v31 = vld [vmem:[%s11295_s8] sm:$0x1] }
0x21c0   : > { %6157 = vmatprep.subr.bf16.mxu1 %v11656_v50 }
0x21c3   : > { %6158 = vmatpush3.bf16.msra.mxu1 %v10617_v55 }
0x21c4   : > { %6159 = vmatprep.subr.bf16.mxu1 %v11656_v50 }
0x21c7   : > { %6160 = vmatpush3.bf16.msra.mxu1 %v10621_v14  ;;  %v10634_v14 = vld [vmem:[#allocation10 + $0x8] ss:$12 sps:$4 sm:$0xff]  }
0x21c8   : > { %6165 = vmatprep.subr.bf16.mxu1 %v11656_v50 }
0x227d   : > { %v5819_v33 = vpop.f32.mrb[88].mxu1 }
0x227e   : > { %v5820_v47 = vpop.f32.mrb[89].mxu1 }
0x227f   : > { %v5821_v29 = vadd.f32 %v5820_v47, %v5819_v33  ;;  %v5822_v37 = vpop.f32.mrb[90].mxu1  ;;  %v10657_v47 = vld [vmem:[#allocation10 + $0x38] ss:$12 sps:$4 sm:$0xff]   ;;  %v10664_v33 = vld [vmem:[#allocation10 + $0x48] ss:$12 sps:$4 sm:$0xff]  }
0x2280   : > { %v5823_v61 = vpop.f32.mrb[91].mxu1  ;;  %v10650_v37 = vld [vmem:[#allocation10 + $0x34] ss:$12 sps:$4 sm:$0xff]   ;;  %12036 = vst [vmem:[#allocation90_spill] sm:$0xff] %v10657_v47  ;;  %12038 = vst [vmem:[#allocation92_spill] sm:$0xff] %v10664_v33 }
0x2281   : > { %v4303_v55 = vadd.f32 %v10628_v31, %v5821_v29  ;;  %v10637_v61 = vld [vmem:[#allocation10 + $0x1c] ss:$12 sps:$4 sm:$0xff]   ;;  %12034 = vst [vmem:[#allocation88_spill] sm:$0xff] %v10650_v37 }
0x2282   : > { %v10654_v29 = vld [vmem:[#allocation10 + $0x30] ss:$12 sps:$4 sm:$0xff]  }
0x2283   : > { %v4308_v4 = vmax.f32 %v4303_v55, 0.0  ;;  %12035 = vst [vmem:[#allocation89_spill] sm:$0xff] %v10654_v29  ;;  %v10660_v55 = vld [vmem:[#allocation10 + $0x4c] ss:$12 sps:$4 sm:$0xff]  }
0x2284   : > { %12037 = vst [vmem:[#allocation91_spill] sm:$0xff] %v10660_v55 }
0x2285   : > { %v4309_v39 = vpack.c.bf16 %v4308_v4, %v4308_v4  ;;  %v10644_v4 = vld [vmem:[#allocation10 + $0x18] ss:$12 sps:$4 sm:$0xff]  }
0x2287   : > { %4343 = vmatmul.mubr.bf16.vlgmr.msra.gmra.mrb[88].mxu0 %v4309_v39  ;;  %6162 = vmatmul.mubr.bf16.vlgmr.msra.gmra.mrb[92].mxu1 %v4309_v39  ;;  %v10647_v39 = vld [vmem:[#allocation10 + $0x20] ss:$12 sps:$4 sm:$0xff]  }
0x2288   : > { %4392 = vmatpush1.bf16.msra.mxu0 %v10631_v25  ;;  %6166 = vmatpush3.bf16.msra.mxu1 %v10634_v14  ;;  %12033 = vst [vmem:[#allocation87_spill] sm:$0xff] %v10647_v39 }
0x2289   : > { %4393 = vmatprep.subr.bf16.mxu0 %v10637_v61  ;;  %6167 = vmatprep.subr.bf16.mxu1 %v11656_v50 }
0x228a   : > { %4423 = vmatprep.mubr.bf16.mxu0 %v11671_v44  ;;  %6181 = vmatprep.mubr.msk.bf16.mxu1 %vm7412_vm2, %v11656_v50 }
0x228c   : > { %4394 = vmatpush1.bf16.msra.mxu0 %v10644_v4  ;;  %6168 = vmatpush3.bf16.msra.mxu1 %v10647_v39  ;;  %v10670_v39 = vld [vmem:[#allocation10 + $0x64] ss:$12 sps:$4 sm:$0xff]  }
0x228d   : > { %4395 = vmatprep.subr.bf16.mxu0 %v10650_v37  ;;  %6169 = vmatprep.subr.bf16.mxu1 %v11656_v50  ;;  %v10667_v37 = vld [vmem:[#allocation10 + $0x50] ss:$12 sps:$4 sm:$0xff]   ;;  %12040 = vst [vmem:[#allocation97_spill] sm:$0xff] %v10670_v39 }
0x228e   : > { %12039 = vst [vmem:[#allocation61_spill] sm:$0xff] %v10667_v37 }
0x2290   : > { %4396 = vmatpush1.bf16.msra.mxu0 %v10654_v29  ;;  %6170 = vmatpush3.bf16.msra.mxu1 %v10657_v47  ;;  %v10674_v47 = vld [vmem:[#allocation10 + $0x60] ss:$12 sps:$4 sm:$0xff]   ;;  %v10680_v29 = vld [vmem:[#allocation10 + $0x7c] ss:$12 sps:$4 sm:$0xff]  }
0x2291   : > { %4397 = vmatprep.subr.bf16.mxu0 %v10660_v55  ;;  %6171 = vmatprep.subr.bf16.mxu1 %v11656_v50  ;;  %12041 = vst [vmem:[#allocation98_spill] sm:$0xff] %v10674_v47  ;;  %v10677_v55 = vld [vmem:[#allocation10 + $0x68] ss:$12 sps:$4 sm:$0xff]   ;;  %12043 = vst [vmem:[#allocation100_spill] sm:$0xff] %v10680_v29 }
0x2292   : > { %12042 = vst [vmem:[#allocation99_spill] sm:$0xff] %v10677_v55 }
0x2294   : > { %4398 = vmatpush1.bf16.msra.mxu0 %v10664_v33  ;;  %6172 = vmatpush3.bf16.msra.mxu1 %v10667_v37  ;;  %v10684_v37 = vld [vmem:[#allocation10 + $0x78] ss:$12 sps:$4 sm:$0xff]   ;;  %v10690_v33 = vld [vmem:[#allocation10 + $0x94] ss:$12 sps:$4 sm:$0xff]  }
0x2295   : > { %4399 = vmatprep.subr.bf16.mxu0 %v10670_v39  ;;  %6173 = vmatprep.subr.bf16.mxu1 %v11656_v50  ;;  %v10687_v39 = vld [vmem:[#allocation10 + $0x80] ss:$12 sps:$4 sm:$0xff]   ;;  %12045 = vst [vmem:[#allocation102_spill] sm:$0xff] %v10690_v33 }
0x2296   : > { %12044 = vst [vmem:[#allocation101_spill] sm:$0xff] %v10687_v39 }
0x2298   : > { %4400 = vmatpush1.bf16.msra.mxu0 %v10674_v47  ;;  %6174 = vmatpush3.bf16.msra.mxu1 %v10677_v55  ;;  %v10694_v55 = vld [vmem:[#allocation10 + $0x90] ss:$12 sps:$4 sm:$0xff]   ;;  %v10700_v47 = vld [vmem:[#allocation10 + $0xac] ss:$12 sps:$4 sm:$0xff]  }
0x2299   : > { %4401 = vmatprep.subr.bf16.mxu0 %v10680_v29  ;;  %6175 = vmatprep.subr.bf16.mxu1 %v11656_v50  ;;  %12046 = vst [vmem:[#allocation103_spill] sm:$0xff] %v10694_v55  ;;  %v10697_v29 = vld [vmem:[#allocation10 + $0x98] ss:$12 sps:$4 sm:$0xff]   ;;  %12047 = vst [vmem:[#allocation104_spill] sm:$0xff] %v10700_v47 }
0x229c   : > { %4402 = vmatpush1.bf16.msra.mxu0 %v10684_v37  ;;  %6176 = vmatpush3.bf16.msra.mxu1 %v10687_v39  ;;  %v10704_v39 = vld [vmem:[#allocation10 + $0xa8] ss:$12 sps:$4 sm:$0xff]  }
0x229d   : > { %4403 = vmatprep.subr.bf16.mxu0 %v10690_v33  ;;  %6177 = vmatprep.subr.bf16.mxu1 %v11656_v50  ;;  %12048 = vst [vmem:[#allocation105_spill] sm:$0xff] %v10704_v39  ;;  %v10707_v33 = vld [vmem:[#allocation10 + $0xb0] ss:$12 sps:$4 sm:$0xff]  }
0x22a0   : > { %4404 = vmatpush1.bf16.msra.mxu0 %v10694_v55  ;;  %6178 = vmatpush3.bf16.msra.mxu1 %v10697_v29  ;;  %v10711_v55 = vld [vmem:[#allocation11 + $0x4] ss:$8 sps:$4 sm:$0xff]  }
0x22a1   : > { %4405 = vmatprep.subr.bf16.mxu0 %v10700_v47  ;;  %6179 = vmatprep.subr.bf16.mxu1 %v11656_v50  ;;  %v10717_v47 = vld [vmem:[#allocation11] ss:$8 sps:$4 sm:$0xff]  }
0x22a4   : > { %4406 = vmatpush1.bf16.msra.mxu0 %v10704_v39  ;;  %6180 = vmatpush3.bf16.msra.mxu1 %v10707_v33  ;;  %v10721_v39 = vld [vmem:[#allocation11 + $0x14] ss:$8 sps:$4 sm:$0xff]  }
0x22a5   : > { %4587 = vmatprep.subr.bf16.mxu1 %v10149_v45  ;;  %4494 = vmatprep.subr.bf16.mxu0 %v10711_v55  ;;  %v10726_v45 = vld [vmem:[#allocation11 + $0x10] ss:$8 sps:$4 sm:$0xff]  }
0x22a7   : > { %4424 = vmatmul.mubr.bf16.vlgmr.msra.gmra.mrb[88].mxu0 %v10393_v20  ;;  %6182 = vmatmul.mubr.bf16.vlgmr.msra.gmra.mrb[96].mxu1 %v10393_v20  ;;  %v10738_v20 = vld [vmem:[#allocation11 + $0x34] ss:$8 sps:$4 sm:$0xff]  }
0x22a8   : > { %4588 = vmatpush1.bf16.msra.mxu1 %v10158_v22  ;;  %4495 = vmatpush1.bf16.msra.mxu0 %v10717_v47  ;;  %v10730_v22 = vld [vmem:[#allocation11 + $0x24] ss:$8 sps:$4 sm:$0xff]  }
0x22a9   : > { %4589 = vmatprep.subr.bf16.mxu1 %v10165_v23  ;;  %4496 = vmatprep.subr.bf16.mxu0 %v10721_v39  ;;  %v10734_v23 = vld [vmem:[#allocation11 + $0x20] ss:$8 sps:$4 sm:$0xff]  }
0x22aa   : > { %4526 = vmatprep.mubr.bf16.mxu0 %v11671_v44 }
0x22ac   : > { %4590 = vmatpush1.bf16.msra.mxu1 %v10173_v59  ;;  %4497 = vmatpush1.bf16.msra.mxu0 %v10726_v45  ;;  %v10742_v59 = vld [vmem:[#allocation11 + $0x30] ss:$8 sps:$4 sm:$0xff]  }
0x22ad   : > { %4591 = vmatprep.subr.bf16.mxu1 %v10180_v63  ;;  %4498 = vmatprep.subr.bf16.mxu0 %v10730_v22  ;;  %v10746_v63 = vld [vmem:[#allocation11 + $0x44] ss:$8 sps:$4 sm:$0xff]  }
0x22b0   : > { %4592 = vmatpush1.bf16.msra.mxu1 %v10187_v21  ;;  %4499 = vmatpush1.bf16.msra.mxu0 %v10734_v23  ;;  %v10750_v21 = vld [vmem:[#allocation11 + $0x40] ss:$8 sps:$4 sm:$0xff]  }
0x22b1   : > { %4593 = vmatprep.subr.bf16.mxu1 %v10194_v17  ;;  %4500 = vmatprep.subr.bf16.mxu0 %v10738_v20  ;;  %v10754_v17 = vld [vmem:[#allocation11 + $0x54] ss:$8 sps:$4 sm:$0xff]  }
0x22b4   : > { %4594 = vmatpush1.bf16.msra.mxu1 %v10201_v38  ;;  %4501 = vmatpush1.bf16.msra.mxu0 %v10742_v59  ;;  %v10758_v38 = vld [vmem:[#allocation11 + $0x50] ss:$8 sps:$4 sm:$0xff]  }
0x22b5   : > { %4595 = vmatprep.subr.bf16.mxu1 %v10208_v52  ;;  %4502 = vmatprep.subr.bf16.mxu0 %v10746_v63  ;;  %v10762_v52 = vld [vmem:[#allocation11 + $0x64] ss:$8 sps:$4 sm:$0xff]  }
0x22b8   : > { %4596 = vmatpush1.bf16.msra.mxu1 %v10215_v9  ;;  %4503 = vmatpush1.bf16.msra.mxu0 %v10750_v21  ;;  %v10766_v9 = vld [vmem:[#allocation11 + $0x60] ss:$8 sps:$4 sm:$0xff]  }
0x22b9   : > { %4597 = vmatprep.subr.bf16.mxu1 %v10222_v19  ;;  %4504 = vmatprep.subr.bf16.mxu0 %v10754_v17  ;;  %v10770_v19 = vld [vmem:[#allocation11 + $0x74] ss:$8 sps:$4 sm:$0xff]  }
0x22ba   : > { %12049 = vst [vmem:[#allocation106_spill] sm:$0xff] %v10770_v19 }
0x22bc   : > { %4598 = vmatpush1.bf16.msra.mxu1 %v10229_v42  ;;  %4505 = vmatpush1.bf16.msra.mxu0 %v10758_v38  ;;  %v10774_v42 = vld [vmem:[#allocation11 + $0x70] ss:$8 sps:$4 sm:$0xff]  }
0x22bd   : > { %4599 = vmatprep.subr.bf16.mxu1 %v10236_v18  ;;  %4506 = vmatprep.subr.bf16.mxu0 %v10762_v52  ;;  %12050 = vst [vmem:[#allocation107_spill] sm:$0xff] %v10774_v42  ;;  %v12051_v18 = vld [vmem:[#allocation64_spill] sm:$0xff] }
0x22c0   : > { %4600 = vmatpush1.bf16.msra.mxu1 %v10243_v46  ;;  %4507 = vmatpush1.bf16.msra.mxu0 %v10766_v9  ;;  %v7128_v46 = vld [vmem:[#allocation8 + $0x4] ss:$12 sps:$4 sm:$0xff]  }
0x22c1   : > { %4601 = vmatprep.subr.bf16.mxu1 %v10250_v36  ;;  %4508 = vmatprep.subr.bf16.mxu0 %v10770_v19 }
0x22c4   : > { %4602 = vmatpush1.bf16.msra.mxu1 %v10257_v35  ;;  %4509 = vmatpush1.bf16.msra.mxu0 %v10774_v42 }
0x22c5   : > { %4603 = vmatprep.subr.bf16.mxu1 %v10264_v41  ;;  %5843 = vmatprep.subr.bf16.mxu0 %v10270_v51 }
0x22c8   : > { %4604 = vmatpush1.bf16.msra.mxu1 %v10276_v43 }
0x22c9   : > { %4605 = vmatprep.subr.bf16.mxu1 %v10282_v48 }
0x22cc   : > { %4606 = vmatpush1.bf16.msra.mxu1 %v10288_v56 }
0x22cd   : > { %4607 = vmatprep.subr.bf16.mxu1 %v10294_v1 }
0x22d0   : > { %4608 = vmatpush1.bf16.msra.mxu1 %v10300_v8 }
0x22d1   : > { %4609 = vmatprep.subr.bf16.mxu1 %v10306_v53 }
0x22d4   : > { %4610 = vmatpush1.bf16.msra.mxu1 %v10312_v5 }
0x22d5   : > { %4611 = vmatprep.subr.bf16.mxu1 %v10318_v2 }
0x22d8   : > { %4612 = vmatpush1.bf16.msra.mxu1 %v10324_v6 }
0x22d9   : > { %4613 = vmatprep.subr.bf16.mxu1 %v10330_v13 }
0x22dc   : > { %4614 = vmatpush1.bf16.msra.mxu1 %v10336_v16 }
0x22dd   : > { %4615 = vmatprep.subr.bf16.mxu1 %v10342_v58 }
0x22e0   : > { %4616 = vmatpush1.bf16.msra.mxu1 %v10348_v11 }
0x22e1   : > { %4617 = vmatprep.subr.bf16.mxu1 %v10354_v10 }
0x22e4   : > { %4618 = vmatpush1.bf16.msra.mxu1 %v12051_v18 }
0x22e5   : > { %4752 = vmatprep.subr.bf16.mxu1 %v7128_v46 }
0x235a   : > { %v4385_v36 = vpop.f32.mrb[92].mxu1 }
0x235b   : > { %v6163_v35 = vpop.f32.mrb[93].mxu1 }
0x235c   : > { %v4388_v41 = vpop.f32.mrb[94].mxu1 }
0x235d   : > { %v6164_v51 = vpop.f32.mrb[95].mxu1 }
0x235e   : > { %v4386_v51 = vadd.f32 %v4385_v36, %v8386_v34 }
0x237a   : > { %v4425_v43 = vpop.f32.mrb[88].mxu0  ;;  %v4466_v48 = vpop.f32.mrb[96].mxu1 }
0x237b   : > { %v6250_v56 = vadd.f32 %v8377_v28, %v4425_v43  ;;  %v4427_v1 = vpop.f32.mrb[89].mxu0  ;;  %v6183_v8 = vpop.f32.mrb[97].mxu1  ;;  %v4467_v35 = vadd.f32 %v4466_v48, %v8384_v27  ;;  %v12093_v28 = vld [vmem:[#allocation57_spill] sm:$0xff] }
0x237c   : > { %v4429_v53 = vpop.f32.mrb[90].mxu0  ;;  %v4469_v5 = vpop.f32.mrb[98].mxu1  ;;  %v6252_v16 = vadd.f32 %v8379_v30, %v4427_v1 }
0x237d   : > { %v5385_v2 = vmul.f32 -1.442695, %v6250_v56  ;;  %v4430_v6 = vpop.f32.mrb[91].mxu0  ;;  %v6184_v13 = vpop.f32.mrb[99].mxu1  ;;  %v4577_v53 = vstv %s4576_s9  ;;  %s7258_s9 = scalar_lea.vmem %s11171_s11, 256 }
0x237e   : > { %v5386_v58 = vmul.f32 -1.442695, %v6252_v16  ;;  %vm4578_vm9 = vcmp.eq.s32.totalorder %v4577_v53, 1  ;;  %v10819_v16 = vld [vmem:[%s4582_s27] ss:$0 sps:$4 sm:$0x11]   ;;  %p7259_p10 = scmp.ne.s32.totalorder %s11171_s11, %s7258_s9  ;;  %p7266_p2 = scmp.lt.s32.totalorder %s7264_s25, %s7258_s9 }
0x237f   : > { %6672 = vpow2.f32 %v5385_v2  ;;  %v12069_v53 = vld [vmem:[#allocation46_spill] sm:$0xff]  ;;  %s11173_s27 = scalar_lea.sflag [#allocation15], %s5028_s30 }
0x2380   : > { %6674 = vpow2.f32 %v5386_v58  ;;  %p7260_p0 = pnand %p7259_p10, %p12140_p11  ;;  %p7267_p5 = por %p7266_p2, %p7265_p4 }
0x2382   : > { %p7261_p1 = pneg %p7260_p0 }
0x2384   : > { %p7268_p8 = pnand %p7267_p5, %p7261_p1 }
0x2389   : > { %v6673_v11 = vpop.eup %6672 }
0x238a   : > { %v4476_v10 = vadd.f32 1.0, %v6673_v11  ;;  %v6675_v18 = vpop.eup %6674  ;;  %v12054_v11 = vld [vmem:[#allocation38_spill] sm:$0xff] }
0x238b   : > { %v4483_v46 = vadd.f32 1.0, %v6675_v18  ;;  %v12056_v18 = vld [vmem:[#allocation66_spill] sm:$0xff] }
0x238c   : > { %6676 = vrcp.f32 %v4476_v10  ;;  %v12055_v10 = vld [vmem:[#allocation39_spill] sm:$0xff] }
0x238d   : > { %6678 = vrcp.f32 %v4483_v46  ;;  %v12057_v46 = vld [vmem:[#allocation73_spill] sm:$0xff] }
0x2396   : > { %v6677_v41 = vpop.eup %6676 }
0x2397   : > { %v4486_v43 = vmul.f32 %v6677_v41, %v4467_v35  ;;  %v6679_v1 = vpop.eup %6678  ;;  %v12059_v35 = vld [vmem:[#allocation41_spill] sm:$0xff]  ;;  %v12062_v41 = vld [vmem:[#allocation42_spill] sm:$0xff] }
0x2398   : > { %v4489_v8 = vsub.f32 1.0, %v6679_v1  ;;  %v4491_v6 = vmul.f32 %v6679_v1, %v10382_v40  ;;  %v12067_v1 = vld [vmem:[#allocation44_spill] sm:$0xff] }
0x2399   : > { %v4487_v56 = vadd.f32 %v4486_v43, %v4386_v51  ;;  %v12064_v51 = vld [vmem:[#allocation77_spill] sm:$0xff]  ;;  %v12065_v43 = vld [vmem:[#allocation79_spill] sm:$0xff] }
0x239b   : > { %6680 = vtanh.f32 %v4487_v56  ;;  %v12066_v56 = vld [vmem:[#allocation33_spill] sm:$0xff] }
0x23a5   : > { %v6681_v5 = vpop.eup %6680 }
0x23a6   : > { %v4490_v2 = vmul.f32 %v6681_v5, %v4489_v8  ;;  %v12068_v8 = vld [vmem:[#allocation45_spill] sm:$0xff]  ;;  %v12070_v5 = vld [vmem:[#allocation47_spill] sm:$0xff] }
0x23a8   : > { %v4492_v48 = vadd.f32 %v4491_v6, %v4490_v2  ;;  %v12071_v2 = vld [vmem:[#allocation48_spill] sm:$0xff] }
0x23a9   : > { %v7129_v6 = vld [vmem:[#allocation8 + $0x94] ss:$12 sps:$4 sm:$0xff]  }
0x23aa   : > { %v4493_v13 = vpack.c.bf16 %v4492_v48, %v4492_v48  ;;  %v10812_v36 = vsel %vm4578_vm9, %v4492_v48, %v10382_v40  ;;  %v12053_v40 = vld [vmem:[#allocation65_spill] sm:$0xff]  ;;  %v12072_v48 = vld [vmem:[#allocation51_spill] sm:$0xff] }
0x23ab   : > { %12052 = vst [vmem:[#allocation64_spill] sm:$0xff] %v10812_v36  ;;  %v10823_v58 = vpack.c.bf16 %v10812_v36, %v10812_v36 }
0x23ac   : > { %4527 = vmatmul.mubr.bf16.vlgmr.msra.gmra.mrb[92].mxu0 %v4493_v13  ;;  %v12073_v13 = vld [vmem:[#allocation52_spill] sm:$0xff] }
0x23ad   : > { %4619 = vmatprep.mubr.bf16.mxu1 %v10823_v58  ;;  %5844 = vmatpush3.bf16.msra.mxu0 %v10399_v7  ;;  %v12058_v7 = vld [vmem:[#allocation40_spill] sm:$0xff] }
0x23ae   : > { %4620 = vmatmul.mubr.bf16.vlgmr.msra.gmra.mrb[100].mxu1 %v10819_v16  ;;  %5845 = vmatprep.subr.bf16.mxu0 %v10406_v0  ;;  %v12060_v0 = vld [vmem:[#allocation74_spill] sm:$0xff] }
0x23af   : > { %4753 = vmatpush1.bf16.msra.mxu1 %v10409_v15  ;;  %4784 = vmatprep.mubr.bf16.mxu1 %v11671_v44  ;;  %v12061_v15 = vld [vmem:[#allocation76_spill] sm:$0xff] }
0x23b0   : > { %4754 = vmatprep.subr.bf16.mxu1 %v10413_v12  ;;  %v12063_v12 = vld [vmem:[#allocation43_spill] sm:$0xff] }
0x23b1   : > { %5846 = vmatpush3.bf16.msra.mxu0 %v12053_v40  ;;  %v7130_v40 = vld [vmem:[#allocation8 + $0x90] ss:$12 sps:$4 sm:$0xff]  }
0x23b2   : > { %5847 = vmatprep.subr.bf16.mxu0 %v12054_v11  ;;  %v7131_v11 = vld [vmem:[#allocation8 + $0xac] ss:$12 sps:$4 sm:$0xff]  }
0x23b3   : > { %4755 = vmatpush1.bf16.msra.mxu1 %v12055_v10  ;;  %v12074_v10 = vld [vmem:[#allocation55_spill] sm:$0xff] }
0x23b4   : > { %4756 = vmatprep.subr.bf16.mxu1 %v12056_v18  ;;  %v12075_v18 = vld [vmem:[#allocation56_spill] sm:$0xff] }
0x23b5   : > { %5848 = vmatpush3.bf16.msra.mxu0 %v12057_v46  ;;  %v7132_v46 = vld [vmem:[#allocation8 + $0xa8] ss:$12 sps:$4 sm:$0xff]  }
0x23b6   : > { %5849 = vmatprep.subr.bf16.mxu0 %v12058_v7  ;;  %v7133_v7 = vld [vmem:[#allocation10 + $0x4] ss:$12 sps:$4 sm:$0xff]  }
0x23b7   : > { %4757 = vmatpush1.bf16.msra.mxu1 %v12059_v35  ;;  %v707_v35 = vld [vmem:[%s11301_s14] sm:$0x3] }
0x23b8   : > { %4758 = vmatprep.subr.bf16.mxu1 %v12060_v0  ;;  %v12076_v0 = vld [vmem:[#allocation30_spill] sm:$0xff] }
0x23b9   : > { %5850 = vmatpush3.bf16.msra.mxu0 %v12061_v15  ;;  %v10859_v15 = vrot.slane %v707_v35, %v12076_v0  ;;  %v12083_v0 = vld [vmem:[#allocation62_spill] sm:$0xff] }
0x23ba   : > { %5851 = vmatprep.subr.bf16.mxu0 %v12062_v41  ;;  %v12078_v41 = vld [vmem:[#allocation31_spill] sm:$0xff] }
0x23bb   : > { %4759 = vmatpush1.bf16.msra.mxu1 %v12063_v12  ;;  %12077 = vst [vmem:[#allocation65_spill] sm:$0xff] %v10859_v15  ;;  %v10862_v12 = vrot.slane %v707_v35, %v12078_v41  ;;  %v2761_v41 = vadd.f32 %v12083_v0, %v10859_v15  ;;  %v10946_v42 = vadd.f32 %v12093_v28, %v10859_v15 }
0x23bc   : > { %4760 = vmatprep.subr.bf16.mxu1 %v12064_v51 }
0x23bd   : > { %5852 = vmatpush3.bf16.msra.mxu0 %v12065_v43  ;;  %12079 = vst [vmem:[#allocation38_spill] sm:$0xff] %v10862_v12 }
0x23be   : > { %5853 = vmatprep.subr.bf16.mxu0 %v12066_v56 }
0x23bf   : > { %4761 = vmatpush1.bf16.msra.mxu1 %v12067_v1 }
0x23c0   : > { %4762 = vmatprep.subr.bf16.mxu1 %v12068_v8  ;;  %v12080_v8 = vld [vmem:[#allocation32_spill] sm:$0xff] }
0x23c1   : > { %5854 = vmatpush3.bf16.msra.mxu0 %v12069_v53 }
0x23c2   : > { %5855 = vmatprep.subr.bf16.mxu0 %v12070_v5 }
0x23c3   : > { %4763 = vmatpush1.bf16.msra.mxu1 %v12071_v2 }
0x23c4   : > { %4764 = vmatprep.subr.bf16.mxu1 %v7129_v6  ;;  %v12081_v6 = vld [vmem:[#allocation34_spill] sm:$0xff] }
0x23c5   : > { %5856 = vmatpush3.bf16.msra.mxu0 %v12072_v48  ;;  %v1878_v48 = vadd.f32 %v12081_v6, %v10859_v15 }
0x23c6   : > { %5857 = vmatprep.subr.bf16.mxu0 %v12073_v13  ;;  %v12082_v13 = vld [vmem:[#allocation35_spill] sm:$0xff] }
0x23c7   : > { %4765 = vmatpush1.bf16.msra.mxu1 %v7130_v40  ;;  %v1880_v40 = vadd.f32 %v12082_v13, %v10862_v12  ;;  %v12086_v13 = vld [vmem:[#allocation37_spill] sm:$0xff] }
0x23c8   : > { %4766 = vmatprep.subr.bf16.mxu1 %v7131_v11 }
0x23c9   : > { %5858 = vmatpush3.bf16.msra.mxu0 %v12074_v10 }
0x23ca   : > { %5865 = vmatprep.subr.bf16.mxu0 %v12075_v18 }
0x23cb   : > { %4767 = vmatpush1.bf16.msra.mxu1 %v7132_v46 }
0x23cc   : > { %4833 = vmatprep.subr.bf16.mxu1 %v7133_v7 }
0x247f   : > { %v4528_v51 = vpop.f32.mrb[92].mxu0 }
0x2480   : > { %v4530_v43 = vpop.f32.mrb[93].mxu0  ;;  %v4529_v0 = vadd.f32 %v4528_v51, %v10859_v15 }
0x2481   : > { %v4532_v56 = vpop.f32.mrb[94].mxu0  ;;  %v4621_v1 = vpop.f32.mrb[100].mxu1 }
0x2482   : > { %v4622_v53 = vadd.f32 %v4621_v1, %v12080_v8  ;;  %v4533_v5 = vpop.f32.mrb[95].mxu0  ;;  %v4623_v2 = vpop.f32.mrb[101].mxu1  ;;  %v12084_v56 = vld [vmem:[#allocation63_spill] sm:$0xff]  ;;  %v1884_v8 = vsel %vm960_vm0, %v1878_v48, -inf }
0x2483   : > { %v4624_v11 = vadd.f32 %v4623_v2, %v11710_v54  ;;  %v4625_v10 = vpop.f32.mrb[102].mxu1  ;;  %v2763_v1 = vadd.f32 %v12084_v56, %v10862_v12  ;;  %v1885_v5 = vsel %vm960_vm0, %v1880_v40, -inf  ;;  %v12085_v54 = vld [vmem:[#allocation36_spill] sm:$0xff]  ;;  %v4531_v56 = vadd.f32 %v4530_v43, %v10862_v12 }
0x2484   : > { %v4626_v18 = vpop.f32.mrb[103].mxu1  ;;  %v4628_v46 = vsel %vm960_vm0, %v4622_v53, -inf  ;;  %v1886_v6 = vmax.f32 %v1884_v8, %v1885_v5  ;;  %v3645_v2 = vadd.f32 %v12085_v54, %v10859_v15  ;;  %v3647_v10 = vadd.f32 %v12086_v13, %v10862_v12 }
0x2485   : > { %v4629_v7 = vsel %vm960_vm0, %v4624_v11, -inf  ;;  %v2767_v18 = vsel %vm960_vm0, %v2761_v41, -inf  ;;  %v4535_v5 = vsel %vm960_vm0, %v4529_v0, -inf  ;;  %v4536_v54 = vsel %vm960_vm0, %v4531_v56, -inf }
0x2486   : > { %v4630_v35 = vmax.f32 %v4628_v46, %v4629_v7  ;;  %v2768_v46 = vsel %vm960_vm0, %v2763_v1, -inf  ;;  %v3651_v36 = vsel %vm960_vm0, %v3645_v2, -inf  ;;  %v4537_v13 = vmax.f32 %v4535_v5, %v4536_v54 }
0x2487   : > { %v2769_v7 = vmax.f32 %v2767_v18, %v2768_v46 }
0x2488   : > { %4631 = vmax.xlane.f32.xlu0 %v4630_v35  ;;  %v3652_v35 = vsel %vm960_vm0, %v3647_v10, -inf }
0x2489   : > { %v3653_v8 = vmax.f32 %v3651_v36, %v3652_v35 }
0x248c   : > { %1887 = vmax.xlane.f32.xlu0 %v1886_v6 }
0x2490   : > { %2770 = vmax.xlane.f32.xlu0 %v2769_v7 }
0x2494   : > { %3654 = vmax.xlane.f32.xlu0 %v3653_v8 }
0x2498   : > { %4538 = vmax.xlane.f32.xlu0 %v4537_v13 }
0x2515   : > { %v4632_v34 = vpop.xlane.xlu0 %4631 }
0x2516   : > { %v4633_v6 = vsub.f32 %v4622_v53, %v4632_v34  ;;  %v4634_v18 = vsub.f32 %v4624_v11, %v4632_v34  ;;  %v12087_v11 = vld [vmem:[#allocation49_spill] sm:$0xff] }
0x2517   : > { %v10908_v54 = vadd.f32 %v12087_v11, %v10859_v15  ;;  %v12091_v11 = vld [vmem:[#allocation53_spill] sm:$0xff] }
0x2518   : > { %v4635_v46 = vmul.f32 1.442695, %v4633_v6  ;;  %v4637_v51 = vmul.f32 1.442695, %v4634_v18 }
0x2519   : > { %v1888_v27 = vpop.xlane.xlu0 %1887  ;;  %12088 = vst [vmem:[#allocation39_spill] sm:$0xff] %v10908_v54 }
0x251a   : > { %6682 = vpow2.f32 %v4635_v46  ;;  %v10890_v43 = vsub.f32 %v1878_v48, %v1888_v27  ;;  %v10892_v30 = vsub.f32 %v1880_v40, %v1888_v27 }
0x251b   : > { %6684 = vpow2.f32 %v4637_v51 }
0x251c   : > { %v1891_v36 = vmul.f32 1.442695, %v10890_v43  ;;  %v1893_v7 = vmul.f32 1.442695, %v10892_v30 }
0x251d   : > { %v2771_v35 = vpop.xlane.xlu0 %2770 }
0x251e   : > { %6686 = vpow2.f32 %v1891_v36  ;;  %v10896_v8 = vsub.f32 %v2761_v41, %v2771_v35  ;;  %v10898_v5 = vsub.f32 %v2763_v1, %v2771_v35  ;;  %v12089_v41 = vld [vmem:[#allocation50_spill] sm:$0xff] }
0x251f   : > { %6688 = vpow2.f32 %v1893_v7  ;;  %v10912_v13 = vadd.f32 %v12089_v41, %v10862_v12  ;;  %v10934_v41 = vadd.f32 %v12091_v11, %v10859_v15 }
0x2520   : > { %v2774_v34 = vmul.f32 1.442695, %v10896_v8  ;;  %v2776_v53 = vmul.f32 1.442695, %v10898_v5 }
0x2521   : > { %v3655_v48 = vpop.xlane.xlu0 %3654  ;;  %12090 = vst [vmem:[#allocation66_spill] sm:$0xff] %v10912_v13 }
0x2522   : > { %6690 = vpow2.f32 %v2774_v34  ;;  %v10902_v27 = vsub.f32 %v3645_v2, %v3655_v48  ;;  %v10904_v40 = vsub.f32 %v3647_v10, %v3655_v48  ;;  %v2325_v34 = vsel %vm960_vm0, %v10908_v54, -inf }
0x2523   : > { %6692 = vpow2.f32 %v2776_v53  ;;  %v2326_v53 = vsel %vm960_vm0, %v10912_v13, -inf }
0x2524   : > { %v10914_v1 = vpop.eup %6682  ;;  %v3658_v6 = vmul.f32 1.442695, %v10902_v27  ;;  %v3660_v18 = vmul.f32 1.442695, %v10904_v40  ;;  %v2327_v13 = vmax.f32 %v2325_v34, %v2326_v53 }
0x2525   : > { %v10918_v46 = vpop.eup %6684  ;;  %v4539_v2 = vpop.xlane.xlu0 %4538  ;;  %v4639_v10 = vsel %vm960_vm0, %v10914_v1, 0.0 }
0x2526   : > { %6694 = vpow2.f32 %v3658_v6  ;;  %v10922_v51 = vsub.f32 %v4529_v0, %v4539_v2  ;;  %v10924_v36 = vsub.f32 %v4531_v56, %v4539_v2  ;;  %v4640_v7 = vsel %vm960_vm0, %v10918_v46, 0.0  ;;  %v12092_v0 = vld [vmem:[#allocation54_spill] sm:$0xff] }
0x2527   : > { %6696 = vpow2.f32 %v3660_v18  ;;  %v4641_v35 = vadd.f32 %v4640_v7, %v4639_v10  ;;  %v10938_v56 = vadd.f32 %v12092_v0, %v10862_v12  ;;  %v12094_v0 = vld [vmem:[#allocation58_spill] sm:$0xff] }
0x2528   : > { %v6687_v48 = vpop.eup %6686  ;;  %v4542_v6 = vmul.f32 1.442695, %v10922_v51  ;;  %v4544_v18 = vmul.f32 1.442695, %v10924_v36  ;;  %v10950_v19 = vadd.f32 %v12094_v0, %v10862_v12 }
0x2529   : > { %v6689_v2 = vpop.eup %6688  ;;  %4642 = vadd.xlane.f32.xlu1 %v4641_v35  ;;  %v1895_v10 = vsel %vm960_vm0, %v6687_v48, 0.0  ;;  %v3209_v35 = vsel %vm960_vm0, %v10934_v41, -inf  ;;  %v3210_v48 = vsel %vm960_vm0, %v10938_v56, -inf }
0x252a   : > { %6698 = vpow2.f32 %v4542_v6  ;;  %v1896_v7 = vsel %vm960_vm0, %v6689_v2, 0.0 }
0x252b   : > { %6700 = vpow2.f32 %v4544_v18  ;;  %v1897_v54 = vadd.f32 %v1896_v7, %v1895_v10  ;;  %v3211_v18 = vmax.f32 %v3209_v35, %v3210_v48  ;;  %v4093_v10 = vsel %vm960_vm0, %v10946_v42, -inf }
0x252c   : > { %v6691_v11 = vpop.eup %6690  ;;  %v4094_v7 = vsel %vm960_vm0, %v10950_v19, -inf }
0x252d   : > { %v6693_v6 = vpop.eup %6692  ;;  %2328 = vmax.xlane.f32.xlu1 %v2327_v13  ;;  %1898 = vadd.xlane.f32.xlu0 %v1897_v54  ;;  %v2778_v34 = vsel %vm960_vm0, %v6691_v11, 0.0  ;;  %v4095_v13 = vmax.f32 %v4093_v10, %v4094_v7 }
0x252e   : > { %v2779_v53 = vsel %vm960_vm0, %v6693_v6, 0.0 }
0x252f   : > { %v2780_v28 = vadd.f32 %v2779_v53, %v2778_v34 }
0x2530   : > { %v6695_v2 = vpop.eup %6694 }
0x2531   : > { %v6697_v0 = vpop.eup %6696  ;;  %3212 = vmax.xlane.f32.xlu1 %v3211_v18  ;;  %2781 = vadd.xlane.f32.xlu0 %v2780_v28  ;;  %v3662_v12 = vsel %vm960_vm0, %v6695_v2, 0.0 }
0x2532   : > { %v3663_v54 = vsel %vm960_vm0, %v6697_v0, 0.0 }
0x2533   : > { %v3664_v11 = vadd.f32 %v3663_v54, %v3662_v12 }
0x2534   : > { %v6699_v15 = vpop.eup %6698 }
0x2535   : > { %v6701_v6 = vpop.eup %6700  ;;  %4096 = vmax.xlane.f32.xlu1 %v4095_v13  ;;  %3665 = vadd.xlane.f32.xlu0 %v3664_v11  ;;  %v4546_v35 = vsel %vm960_vm0, %v6699_v15, 0.0 }
0x2536   : > { %v4547_v48 = vsel %vm960_vm0, %v6701_v6, 0.0 }
0x2537   : > { %v4548_v34 = vadd.f32 %v4547_v48, %v4546_v35 }
0x2539   : > { %4549 = vadd.xlane.f32.xlu0 %v4548_v34 }
0x25b6   : > { %v4643_v53 = vpop.xlane.xlu1 %4642 }
0x25b7   : > { %6702 = vrcp.f32 %v4643_v53 }
0x25ba   : > { %v1899_v18 = vpop.xlane.xlu0 %1898 }
0x25bb   : > { %6704 = vlog2.f32 %v1899_v18 }
0x25be   : > { %v2782_v28 = vpop.xlane.xlu0 %2781 }
0x25bf   : > { %6706 = vlog2.f32 %v2782_v28 }
0x25c1   : > { %v6703_v2 = vpop.eup %6702 }
0x25c2   : > { %v3666_v0 = vpop.xlane.xlu0 %3665  ;;  %v4645_v12 = vmul.f32 %v6703_v2, %v10914_v1  ;;  %v4646_v10 = vmul.f32 %v6703_v2, %v10918_v46 }
0x25c3   : > { %6708 = vlog2.f32 %v3666_v0 }
0x25c4   : > { %v4649_v7 = vcombine.low %v4645_v12, %v4646_v10  ;;  %v4668_v54 = vpack.c.bf16 %v4646_v10, %v4646_v10  ;;  %v4667_v15 = vpack.c.bf16 %v4645_v12, %v4645_v12 }
0x25c5   : > { %v6705_v13 = vpop.eup %6704 }
0x25c6   : > { %v1901_v11 = vmul.f32 0.6931472, %v6705_v13  ;;  %v4656_v6 = vrot.slane %v4649_v7, %v11711_v57  ;;  %4701 = vmatprep.mubr.bf16.mxu0 %v4668_v54  ;;  %v4550_v35 = vpop.xlane.xlu0 %4549  ;;  %v12095_v54 = vld [vmem:[#allocation59_spill] sm:$0xff] }
0x25c7   : > { %4702 = vmatmul.mubr.bf16.vlgmr.msra.gmra.mrb[96].mxu0 %v4667_v15  ;;  %6710 = vlog2.f32 %v4550_v35  ;;  %v12096_v15 = vld [vmem:[#allocation60_spill] sm:$0xff] }
0x25c8   : > { %v1902_v48 = vsub.f32 %v10890_v43, %v1901_v11  ;;  %v1903_v34 = vsub.f32 %v10892_v30, %v1901_v11  ;;  %v4663_v1 = vrot.slane %v4656_v6, %v11711_v57  ;;  %5866 = vmatpush3.bf16.msra.mxu0 %v10541_v3  ;;  %v12097_v11 = vld [vmem:[#allocation67_spill] sm:$0xff]  ;;  %v12098_v6 = vld [vmem:[#allocation68_spill] sm:$0xff] }
0x25c9   : > { %5867 = vmatprep.subr.bf16.mxu0 %v10544_v26  ;;  %v6707_v53 = vpop.eup %6706 }
0x25ca   : > { %v1906_v46 = vcombine.low %v1902_v48, %v1903_v34  ;;  %5389 = vst.msk [vmem:[%s7699_s22 + $0xe] sm:$0x3] %vm8051_vm1, %v4663_v1  ;;  %v2784_v28 = vmul.f32 0.6931472, %v6707_v53  ;;  %v12099_v34 = vld [vmem:[#allocation69_spill] sm:$0xff]  ;;  %v12100_v1 = vld [vmem:[#allocation70_spill] sm:$0xff] }
0x25cc   : > { %v1913_v18 = vrot.slane %v1906_v46, %v11711_v57  ;;  %5868 = vmatpush3.bf16.msra.mxu0 %v10550_v49  ;;  %v2785_v43 = vsub.f32 %v10896_v8, %v2784_v28  ;;  %v2786_v3 = vsub.f32 %v10898_v5, %v2784_v28  ;;  %v12103_v46 = vld [vmem:[#allocation75_spill] sm:$0xff] }
0x25cd   : > { %5869 = vmatprep.subr.bf16.mxu0 %v10553_v60  ;;  %v6709_v26 = vpop.eup %6708 }
0x25ce   : > { %v1920_v30 = vrot.slane %v1913_v18, %v11711_v57  ;;  %v2789_v2 = vcombine.low %v2785_v43, %v2786_v3  ;;  %v3668_v0 = vmul.f32 0.6931472, %v6709_v26  ;;  %v12104_v26 = vld [vmem:[#allocation78_spill] sm:$0xff] }
0x25d0   : > { %1922 = vst.msk [vmem:[%s7697_s23] sm:$0x3] %vm8051_vm1, %v1920_v30  ;;  %5870 = vmatpush3.bf16.msra.mxu0 %v10556_v24  ;;  %v2796_v49 = vrot.slane %v2789_v2, %v11711_v57  ;;  %v3669_v60 = vsub.f32 %v10902_v27, %v3668_v0  ;;  %v3670_v8 = vsub.f32 %v10904_v40, %v3668_v0  ;;  %v12105_v2 = vld [vmem:[#allocation80_spill] sm:$0xff]  ;;  %v12106_v0 = vld [vmem:[#allocation81_spill] sm:$0xff] }
0x25d1   : > { %5871 = vmatprep.subr.bf16.mxu0 %v10559_v32  ;;  %v6711_v12 = vpop.eup %6710 }
0x25d2   : > { %v2803_v5 = vrot.slane %v2796_v49, %v11711_v57  ;;  %v3673_v10 = vcombine.low %v3669_v60, %v3670_v8  ;;  %v4552_v7 = vmul.f32 0.6931472, %v6711_v12  ;;  %v12107_v49 = vld [vmem:[#allocation82_spill] sm:$0xff]  ;;  %v12109_v60 = vld [vmem:[#allocation84_spill] sm:$0xff]  ;;  %v12110_v8 = vld [vmem:[#allocation85_spill] sm:$0xff] }
0x25d3   : > { %v12111_v12 = vld [vmem:[#allocation86_spill] sm:$0xff] }
0x25d4   : > { %5872 = vmatpush3.bf16.msra.mxu0 %v12095_v54  ;;  %5367 = vst.msk [vmem:[%s7697_s23 + $0x4] sm:$0x3] %vm8051_vm1, %v2803_v5  ;;  %v3680_v24 = vrot.slane %v3673_v10, %v11711_v57  ;;  %v4553_v32 = vsub.f32 %v10922_v51, %v4552_v7  ;;  %v4554_v27 = vsub.f32 %v10924_v36, %v4552_v7  ;;  %v12101_v51 = vld [vmem:[#allocation71_spill] sm:$0xff]  ;;  %v12102_v36 = vld [vmem:[#allocation72_spill] sm:$0xff] }
0x25d5   : > { %5873 = vmatprep.subr.bf16.mxu0 %v12096_v15 }
0x25d6   : > { %v3687_v40 = vrot.slane %v3680_v24, %v11711_v57  ;;  %v4557_v13 = vcombine.low %v4553_v32, %v4554_v27 }
0x25d8   : > { %5874 = vmatpush3.bf16.msra.mxu0 %v12097_v11  ;;  %5377 = vst.msk [vmem:[%s7697_s23 + $0x8] sm:$0x3] %vm8051_vm1, %v3687_v40  ;;  %v4564_v35 = vrot.slane %v4557_v13, %v11711_v57  ;;  %v12113_v40 = vld [vmem:[#allocation88_spill] sm:$0xff]  ;;  %v12118_v11 = vld [vmem:[#allocation61_spill] sm:$0xff] }
0x25d9   : > { %5875 = vmatprep.subr.bf16.mxu0 %v12098_v6  ;;  %v12117_v13 = vld [vmem:[#allocation92_spill] sm:$0xff]  ;;  %v12119_v6 = vld [vmem:[#allocation97_spill] sm:$0xff] }
0x25da   : > { %v4571_v48 = vrot.slane %v4564_v35, %v11711_v57  ;;  %v12121_v35 = vld [vmem:[#allocation99_spill] sm:$0xff] }
0x25dc   : > { %5876 = vmatpush3.bf16.msra.mxu0 %v12099_v34  ;;  %5387 = vst.msk [vmem:[%s7697_s23 + $0xc] sm:$0x3] %vm8051_vm1, %v4571_v48  ;;  %v12122_v48 = vld [vmem:[#allocation100_spill] sm:$0xff]  ;;  %v12123_v34 = vld [vmem:[#allocation101_spill] sm:$0xff] }
0x25dd   : > { %5877 = vmatprep.subr.bf16.mxu0 %v12100_v1  ;;  %v12124_v1 = vld [vmem:[#allocation102_spill] sm:$0xff] }
0x25e0   : > { %5878 = vmatpush3.bf16.msra.mxu0 %v12101_v51  ;;  %v12125_v51 = vld [vmem:[#allocation103_spill] sm:$0xff] }
0x25e1   : > { %5879 = vmatprep.subr.bf16.mxu0 %v12102_v36  ;;  %v12126_v36 = vld [vmem:[#allocation104_spill] sm:$0xff] }
0x25e4   : > { %5880 = vmatpush3.bf16.msra.mxu0 %v12103_v46  ;;  %v12127_v46 = vld [vmem:[#allocation105_spill] sm:$0xff] }
0x25e5   : > { %6185 = vmatprep.subr.bf16.mxu0 %v11656_v50 }
0x269a   : > { %v5859_v53 = vpop.f32.mrb[96].mxu0 }
0x269b   : > { %v5860_v18 = vpop.f32.mrb[97].mxu0 }
0x269c   : > { %v5861_v28 = vadd.f32 %v5860_v18, %v5859_v53  ;;  %v5862_v30 = vpop.f32.mrb[98].mxu0 }
0x269d   : > { %v5863_v43 = vpop.f32.mrb[99].mxu0 }
0x269e   : > { %v4709_v3 = vpack.c.bf16 %v5861_v28, %v5861_v28  ;;  %v12132_v43 = vld [vmem:[#allocation95_spill] sm:$0xff] }
0x26a0   : > { %4742 = vmatprep.mubr.bf16.mxu0 %v4709_v3 }
0x26a1   : > { %4743 = vmatmul.mubr.bf16.vlgmr.msra.gmra.mrb[100].mxu0 %v10819_v16  ;;  %v12108_v16 = vld [vmem:[#allocation83_spill] sm:$0xff] }
0x26a2   : > { %6186 = vmatpush3.bf16.msra.mxu0 %v12104_v26  ;;  %6201 = vmatprep.mubr.msk.bf16.mxu0 %vm7412_vm2, %v11656_v50 }
0x26a3   : > { %6187 = vmatprep.subr.bf16.mxu0 %v11656_v50 }
0x26a6   : > { %6188 = vmatpush3.bf16.msra.mxu0 %v12105_v2  ;;  %v12133_v2 = vld [vmem:[#allocation96_spill] sm:$0xff] }
0x26a7   : > { %6189 = vmatprep.subr.bf16.mxu0 %v11656_v50 }
0x26aa   : > { %6190 = vmatpush3.bf16.msra.mxu0 %v12106_v0 }
0x26ab   : > { %6191 = vmatprep.subr.bf16.mxu0 %v11656_v50 }
0x26ae   : > { %6192 = vmatpush3.bf16.msra.mxu0 %v12107_v49 }
0x26af   : > { %6193 = vmatprep.subr.bf16.mxu0 %v11656_v50 }
0x26b2   : > { %6194 = vmatpush3.bf16.msra.mxu0 %v12108_v16 }
0x26b3   : > { %6195 = vmatprep.subr.bf16.mxu0 %v11656_v50 }
0x26b6   : > { %6196 = vmatpush3.bf16.msra.mxu0 %v12109_v60 }
0x26b7   : > { %6197 = vmatprep.subr.bf16.mxu0 %v11656_v50 }
0x26ba   : > { %6198 = vmatpush3.bf16.msra.mxu0 %v12110_v8 }
0x26bb   : > { %6199 = vmatprep.subr.bf16.mxu0 %v11656_v50 }
0x26be   : > { %6200 = vmatpush3.bf16.msra.mxu0 %v12111_v12  ;;  %v5019_v12 = vstv %s5018_s19 }
0x26bf   : > { %6205 = vmatprep.subr.bf16.mxu0 %v11656_v50  ;;  %vm5020_vm10 = vcmp.eq.s32.totalorder %v5019_v12, 1 }
0x2774   : > { %v5881_v5 = vpop.f32.mrb[100].mxu0 }
0x2775   : > { %v5882_v10 = vpop.f32.mrb[101].mxu0 }
0x2776   : > { %v5883_v7 = vadd.f32 %v5882_v10, %v5881_v5  ;;  %v5884_v54 = vpop.f32.mrb[102].mxu0 }
0x2777   : > { %v5885_v15 = vpop.f32.mrb[103].mxu0 }
0x2778   : > { %v4745_v24 = vadd.f32 %v10628_v31, %v5883_v7  ;;  %v12112_v31 = vld [vmem:[#allocation87_spill] sm:$0xff]  ;;  %v12134_v7 = vld [vmem:[#allocation64_spill] sm:$0xff] }
0x277a   : > { %v4750_v32 = vmax.f32 %v4745_v24, 0.0 }
0x277c   : > { %v4751_v27 = vpack.c.bf16 %v4750_v32, %v4750_v32 }
0x277e   : > { %4785 = vmatmul.mubr.bf16.vlgmr.msra.gmra.mrb[104].mxu1 %v4751_v27  ;;  %6202 = vmatmul.mubr.bf16.vlgmr.msra.gmra.mrb[104].mxu0 %v4751_v27  ;;  %v2329_v27 = vpop.xlane.xlu1 %2328 }
0x277f   : > { %4834 = vmatpush1.bf16.msra.mxu1 %v10631_v25  ;;  %6206 = vmatpush3.bf16.msra.mxu0 %v10634_v14  ;;  %v12114_v25 = vld [vmem:[#allocation89_spill] sm:$0xff]  ;;  %v12115_v14 = vld [vmem:[#allocation90_spill] sm:$0xff] }
0x2780   : > { %4835 = vmatprep.subr.bf16.mxu1 %v10637_v61  ;;  %6207 = vmatprep.subr.bf16.mxu0 %v11656_v50  ;;  %v12116_v61 = vld [vmem:[#allocation91_spill] sm:$0xff] }
0x2781   : > { %4865 = vmatprep.mubr.bf16.mxu1 %v11671_v44  ;;  %6221 = vmatprep.mubr.msk.bf16.mxu0 %vm7412_vm2, %v11656_v50 }
0x2783   : > { %4836 = vmatpush1.bf16.msra.mxu1 %v10644_v4  ;;  %6208 = vmatpush3.bf16.msra.mxu0 %v12112_v31  ;;  %v12120_v4 = vld [vmem:[#allocation98_spill] sm:$0xff]  ;;  %v3213_v31 = vpop.xlane.xlu1 %3212 }
0x2784   : > { %4837 = vmatprep.subr.bf16.mxu1 %v12113_v40  ;;  %6209 = vmatprep.subr.bf16.mxu0 %v11656_v50  ;;  %v12135_v40 = vld [vmem:[#allocation39_spill] sm:$0xff] }
0x2787   : > { %4838 = vmatpush1.bf16.msra.mxu1 %v12114_v25  ;;  %6210 = vmatpush3.bf16.msra.mxu0 %v12115_v14  ;;  %v11099_v25 = vsub.f32 %v12135_v40, %v2329_v27  ;;  %v12136_v14 = vld [vmem:[#allocation66_spill] sm:$0xff] }
0x2788   : > { %4839 = vmatprep.subr.bf16.mxu1 %v12116_v61  ;;  %6211 = vmatprep.subr.bf16.mxu0 %v11656_v50  ;;  %v11102_v61 = vsub.f32 %v12136_v14, %v2329_v27 }
0x278b   : > { %4840 = vmatpush1.bf16.msra.mxu1 %v12117_v13  ;;  %6212 = vmatpush3.bf16.msra.mxu0 %v12118_v11  ;;  %v2332_v13 = vmul.f32 1.442695, %v11099_v25  ;;  %v11106_v11 = vsub.f32 %v10934_v41, %v3213_v31 }
0x278c   : > { %4841 = vmatprep.subr.bf16.mxu1 %v12119_v6  ;;  %6213 = vmatprep.subr.bf16.mxu0 %v11656_v50  ;;  %v2334_v6 = vmul.f32 1.442695, %v11102_v61 }
0x278f   : > { %4842 = vmatpush1.bf16.msra.mxu1 %v12120_v4  ;;  %6214 = vmatpush3.bf16.msra.mxu0 %v12121_v35  ;;  %v11110_v4 = vsub.f32 %v10938_v56, %v3213_v31  ;;  %v4097_v35 = vpop.xlane.xlu1 %4096 }
0x2790   : > { %4843 = vmatprep.subr.bf16.mxu1 %v12122_v48  ;;  %6215 = vmatprep.subr.bf16.mxu0 %v11656_v50  ;;  %v3216_v48 = vmul.f32 1.442695, %v11106_v11 }
0x2793   : > { %4844 = vmatpush1.bf16.msra.mxu1 %v10684_v37  ;;  %6216 = vmatpush3.bf16.msra.mxu0 %v12123_v34  ;;  %v11114_v34 = vsub.f32 %v10946_v42, %v4097_v35 }
0x2794   : > { %4845 = vmatprep.subr.bf16.mxu1 %v12124_v1  ;;  %6217 = vmatprep.subr.bf16.mxu0 %v11656_v50  ;;  %v3218_v1 = vmul.f32 1.442695, %v11110_v4 }
0x2795   : > { %v4100_v41 = vmul.f32 1.442695, %v11114_v34 }
0x2797   : > { %4846 = vmatpush1.bf16.msra.mxu1 %v12125_v51  ;;  %6218 = vmatpush3.bf16.msra.mxu0 %v10697_v29  ;;  %v11118_v51 = vsub.f32 %v10950_v19, %v4097_v35 }
0x2798   : > { %4847 = vmatprep.subr.bf16.mxu1 %v12126_v36  ;;  %6219 = vmatprep.subr.bf16.mxu0 %v11656_v50  ;;  %v12128_v50 = vld [vmem:[#allocation106_spill] sm:$0xff] }
0x2799   : > { %v4102_v56 = vmul.f32 1.442695, %v11118_v51 }
0x279b   : > { %4848 = vmatpush1.bf16.msra.mxu1 %v12127_v46  ;;  %6220 = vmatpush3.bf16.msra.mxu0 %v10707_v33  ;;  %v12137_v46 = vld [vmem:[#allocation65_spill] sm:$0xff] }
0x279c   : > { %4936 = vmatprep.subr.bf16.mxu1 %v10711_v55 }
0x279e   : > { %4866 = vmatmul.mubr.bf16.vlgmr.msra.gmra.mrb[104].mxu1 %v10823_v58  ;;  %6222 = vmatmul.mubr.bf16.vlgmr.msra.gmra.mrb[108].mxu0 %v10823_v58 }
0x279f   : > { %4937 = vmatpush1.bf16.msra.mxu1 %v10717_v47  ;;  %4968 = vmatprep.mubr.bf16.mxu1 %v11671_v44  ;;  %v12129_v44 = vld [vmem:[#allocation107_spill] sm:$0xff] }
0x27a0   : > { %4938 = vmatprep.subr.bf16.mxu1 %v10721_v39 }
0x27a3   : > { %4939 = vmatpush1.bf16.msra.mxu1 %v10726_v45  ;;  %v12130_v45 = vld [vmem:[#allocation93_spill] sm:$0xff] }
0x27a4   : > { %4940 = vmatprep.subr.bf16.mxu1 %v10730_v22 }
0x27a7   : > { %4941 = vmatpush1.bf16.msra.mxu1 %v10734_v23 }
0x27a8   : > { %4942 = vmatprep.subr.bf16.mxu1 %v10738_v20 }
0x27ab   : > { %4943 = vmatpush1.bf16.msra.mxu1 %v10742_v59 }
0x27ac   : > { %4944 = vmatprep.subr.bf16.mxu1 %v10746_v63 }
0x27af   : > { %4945 = vmatpush1.bf16.msra.mxu1 %v10750_v21 }
0x27b0   : > { %4946 = vmatprep.subr.bf16.mxu1 %v10754_v17 }
0x27b3   : > { %4947 = vmatpush1.bf16.msra.mxu1 %v10758_v38 }
0x27b4   : > { %4948 = vmatprep.subr.bf16.mxu1 %v10762_v52  ;;  %v12131_v52 = vld [vmem:[#allocation94_spill] sm:$0xff] }
0x27b7   : > { %4949 = vmatpush1.bf16.msra.mxu1 %v10766_v9 }
0x27b8   : > { %4950 = vmatprep.subr.bf16.mxu1 %v12128_v50 }
0x27bb   : > { %4951 = vmatpush1.bf16.msra.mxu1 %v12129_v44 }
0x2851   : > { %v4827_v39 = vpop.f32.mrb[104].mxu0 }
0x2852   : > { %v6203_v37 = vpop.f32.mrb[105].mxu0  ;;  %v4828_v0 = vadd.f32 %v4827_v39, %v12133_v2  ;;  %v12138_v39 = vld [vmem:[#allocation38_spill] sm:$0xff] }
0x2853   : > { %v4830_v29 = vpop.f32.mrb[106].mxu0 }
0x2854   : > { %v6204_v47 = vpop.f32.mrb[107].mxu0 }
0x2871   : > { %v4867_v55 = vpop.f32.mrb[104].mxu1  ;;  %v4908_v33 = vpop.f32.mrb[108].mxu0 }
0x2872   : > { %v6254_v22 = vadd.f32 %v12130_v45, %v4867_v55  ;;  %v4869_v23 = vpop.f32.mrb[105].mxu1  ;;  %v6223_v20 = vpop.f32.mrb[109].mxu0  ;;  %v4909_v3 = vadd.f32 %v4908_v33, %v12132_v43 }
0x2873   : > { %v4871_v59 = vpop.f32.mrb[106].mxu1  ;;  %v4911_v63 = vpop.f32.mrb[110].mxu0  ;;  %v6256_v9 = vadd.f32 %v12131_v52, %v4869_v23 }
0x2874   : > { %v5390_v21 = vmul.f32 -1.442695, %v6254_v22  ;;  %v4872_v17 = vpop.f32.mrb[107].mxu1  ;;  %v6224_v38 = vpop.f32.mrb[111].mxu0 }
0x2875   : > { %v5391_v58 = vmul.f32 -1.442695, %v6256_v9 }
0x2876   : > { %6712 = vpow2.f32 %v5390_v21 }
0x2877   : > { %6714 = vpow2.f32 %v5391_v58 }
0x2880   : > { %v6713_v53 = vpop.eup %6712 }
0x2881   : > { %v4918_v18 = vadd.f32 1.0, %v6713_v53  ;;  %v6715_v28 = vpop.eup %6714 }
0x2882   : > { %v4925_v30 = vadd.f32 1.0, %v6715_v28 }
0x2883   : > { %6716 = vrcp.f32 %v4918_v18 }
0x2884   : > { %6718 = vrcp.f32 %v4925_v30 }
0x288d   : > { %v6717_v26 = vpop.eup %6716 }
0x288e   : > { %v4928_v49 = vmul.f32 %v6717_v26, %v4909_v3  ;;  %v6719_v60 = vpop.eup %6718 }
0x288f   : > { %v4931_v8 = vsub.f32 1.0, %v6719_v60  ;;  %v4933_v54 = vmul.f32 %v6719_v60, %v12134_v7 }
0x2890   : > { %v4929_v16 = vadd.f32 %v4928_v49, %v4828_v0 }
0x2892   : > { %6720 = vtanh.f32 %v4929_v16 }
0x2893   : > { %6722 = vpow2.f32 %v2332_v13 }
0x2894   : > { %6724 = vpow2.f32 %v2334_v6 }
0x2895   : > { %6726 = vpow2.f32 %v3216_v48 }
0x2896   : > { %6728 = vpow2.f32 %v3218_v1 }
0x2897   : > { %6730 = vpow2.f32 %v4100_v41 }
0x2898   : > { %6732 = vpow2.f32 %v4102_v56 }
0x289c   : > { %v6721_v5 = vpop.eup %6720 }
0x289d   : > { %v4932_v10 = vmul.f32 %v6721_v5, %v4931_v8  ;;  %v6723_v42 = vpop.eup %6722 }
0x289e   : > { %v6725_v47 = vpop.eup %6724  ;;  %v2336_v23 = vsel %vm960_vm0, %v6723_v42, 0.0 }
0x289f   : > { %v4934_v15 = vadd.f32 %v4933_v54, %v4932_v10  ;;  %v6727_v22 = vpop.eup %6726  ;;  %v2337_v20 = vsel %vm960_vm0, %v6725_v47, 0.0 }
0x28a0   : > { %v6729_v59 = vpop.eup %6728  ;;  %v2338_v63 = vadd.f32 %v2337_v20, %v2336_v23  ;;  %v3220_v17 = vsel %vm960_vm0, %v6727_v22, 0.0 }
0x28a1   : > { %v4935_v24 = vpack.c.bf16 %v4934_v15, %v4934_v15  ;;  %v5021_v32 = vsel %vm5020_vm10, %v4934_v15, %v12134_v7  ;;  %v6731_v21 = vpop.eup %6730  ;;  %v3221_v38 = vsel %vm960_vm0, %v6729_v59, 0.0 }
0x28a2   : > { %5022 = vst [vmem:[#allocation16] sm:$0x1] %v5021_v32  ;;  %v6733_v52 = vpop.eup %6732  ;;  %v3222_v9 = vadd.f32 %v3221_v38, %v3220_v17  ;;  %v4104_v58 = vsel %vm960_vm0, %v6731_v21, 0.0 }
0x28a3   : > { %4969 = vmatmul.mubr.bf16.vlgmr.msra.gmra.mrb[108].mxu1 %v4935_v24  ;;  %v4105_v53 = vsel %vm960_vm0, %v6733_v52, 0.0 }
0x28a4   : > { %v4106_v18 = vadd.f32 %v4105_v53, %v4104_v58 }
0x2976   : > { %v4970_v36 = vpop.f32.mrb[108].mxu1 }
0x2977   : > { %v4971_v50 = vadd.f32 %v4970_v36, %v12137_v46  ;;  %v4972_v44 = vpop.f32.mrb[109].mxu1 }
0x2978   : > { %v4973_v37 = vadd.f32 %v4972_v44, %v12138_v39  ;;  %v4974_v29 = vpop.f32.mrb[110].mxu1 }
0x2979   : > { %v4975_v55 = vpop.f32.mrb[111].mxu1  ;;  %v4977_v19 = vsel %vm960_vm0, %v4971_v50, -inf }
0x297a   : > { %v4978_v33 = vsel %vm960_vm0, %v4973_v37, -inf }
0x297b   : > { %v4979_v45 = vmax.f32 %v4977_v19, %v4978_v33 }
0x297d   : > { %4980 = vmax.xlane.f32.xlu1 %v4979_v45 }
0x2981   : > { %2339 = vadd.xlane.f32.xlu1 %v2338_v63 }
0x2985   : > { %3223 = vadd.xlane.f32.xlu1 %v3222_v9 }
0x2989   : > { %4107 = vadd.xlane.f32.xlu1 %v4106_v18 }
0x2a0a   : > { %v4981_v28 = vpop.xlane.xlu1 %4980 }
0x2a0b   : > { %v11132_v30 = vsub.f32 %v4971_v50, %v4981_v28  ;;  %v11134_v43 = vsub.f32 %v4973_v37, %v4981_v28 }
0x2a0d   : > { %v4984_v3 = vmul.f32 1.442695, %v11132_v30  ;;  %v4986_v26 = vmul.f32 1.442695, %v11134_v43 }
0x2a0e   : > { %v2340_v2 = vpop.xlane.xlu1 %2339 }
0x2a0f   : > { %6734 = vpow2.f32 %v4984_v3 }
0x2a10   : > { %6736 = vpow2.f32 %v4986_v26 }
0x2a11   : > { %6738 = vlog2.f32 %v2340_v2 }
0x2a12   : > { %v3224_v0 = vpop.xlane.xlu1 %3223 }
0x2a13   : > { %6740 = vlog2.f32 %v3224_v0 }
0x2a16   : > { %v4108_v49 = vpop.xlane.xlu1 %4107 }
0x2a17   : > { %6742 = vlog2.f32 %v4108_v49 }
0x2a19   : > { %v6735_v16 = vpop.eup %6734 }
0x2a1a   : > { %v6737_v60 = vpop.eup %6736  ;;  %v4988_v8 = vsel %vm960_vm0, %v6735_v16, 0.0 }
0x2a1b   : > { %v6739_v12 = vpop.eup %6738  ;;  %v4989_v5 = vsel %vm960_vm0, %v6737_v60, 0.0 }
0x2a1c   : > { %v2342_v10 = vmul.f32 0.6931472, %v6739_v12  ;;  %v4990_v7 = vadd.f32 %v4989_v5, %v4988_v8 }
0x2a1d   : > { %v6741_v54 = vpop.eup %6740 }
0x2a1e   : > { %v2343_v15 = vsub.f32 %v11099_v25, %v2342_v10  ;;  %v2344_v24 = vsub.f32 %v11102_v61, %v2342_v10  ;;  %v3226_v32 = vmul.f32 0.6931472, %v6741_v54  ;;  %4991 = vadd.xlane.f32.xlu1 %v4990_v7 }
0x2a20   : > { %v2347_v27 = vcombine.low %v2343_v15, %v2344_v24  ;;  %v3227_v31 = vsub.f32 %v11106_v11, %v3226_v32  ;;  %v3228_v40 = vsub.f32 %v11110_v4, %v3226_v32 }
0x2a21   : > { %v6743_v14 = vpop.eup %6742 }
0x2a22   : > { %v2354_v13 = vrot.slane %v2347_v27, %v11711_v57  ;;  %v3231_v6 = vcombine.low %v3227_v31, %v3228_v40  ;;  %v4110_v25 = vmul.f32 0.6931472, %v6743_v14 }
0x2a24   : > { %v2361_v61 = vrot.slane %v2354_v13, %v11711_v57  ;;  %v3238_v35 = vrot.slane %v3231_v6, %v11711_v57  ;;  %v4111_v48 = vsub.f32 %v11114_v34, %v4110_v25  ;;  %v4112_v11 = vsub.f32 %v11118_v51, %v4110_v25 }
0x2a26   : > { %5362 = vst.msk [vmem:[%s7697_s23 + $0x2] sm:$0x3] %vm8051_vm1, %v2361_v61  ;;  %v3245_v4 = vrot.slane %v3238_v35, %v11711_v57  ;;  %v4115_v1 = vcombine.low %v4111_v48, %v4112_v11 }
0x2a28   : > { %5372 = vst.msk [vmem:[%s7697_s23 + $0x6] sm:$0x3] %vm8051_vm1, %v3245_v4  ;;  %v4122_v41 = vrot.slane %v4115_v1, %v11711_v57 }
0x2a2a   : > { %v4129_v56 = vrot.slane %v4122_v41, %v11711_v57 }
0x2a2c   : > { %5382 = vst.msk [vmem:[%s7697_s23 + $0xa] sm:$0x3] %vm8051_vm1, %v4129_v56 }
0x2a2d   : > { %7271 = shalt.err (!%p7268_p8)
}
0x2a2e   : > { %s7272_s22 = scalar_lea.hbm %s11168_s1, 256  ;;  %s7276_s30 = scalar_lea.hbm %s12139_s15, 512 }
0x2a2f   : > { %p7273_p9 = scmp.ne.s32.totalorder %s11168_s1, %s7272_s22  ;;  %p7277_p3 = scmp.lt.u32.totalorder %s11168_s1, %s12139_s15 }
0x2a30   : > { %p7278_p7 = scmp.lt.u32.totalorder %s7276_s30, %s7272_s22  ;;  %p7280_p10 = scmp.lt.u32.totalorder %s7272_s22, %s11168_s1 }
0x2a31   : > { %p7274_p12 = pnand %p7273_p9, %p12140_p11 }
0x2a32   : > { %p7279_p6 = por %p7278_p7, %p7277_p3 }
0x2a33   : > { %p7275_p13 = pneg %p7274_p12 }
0x2a34   : > { %p7281_p0 = por %p7280_p10, %p7279_p6 }
0x2a36   : > { %p7282_p1 = pnand %p7281_p0, %p7275_p13 }
0x2a38   : > { %7285 = shalt.err (!%p7282_p1)
}
0x2a39   : > { %s7414_s9 = smov 32   ;;  %s7415_s17 = smov 2  }
0x2a3a   : > { %6306 = dma.vmem_to_hbm [thread:$0]  (%p12140_p11), %s11171_s11, 256, %s11168_s1, %s11173_s27, %s7414_s9, %s7414_s9, %s7415_s17  }
0x2a3b   : > { %s7416_s24 = smov [#allocation16]   ;;  %p12141_p2 = scmp.eq.s32.totalorder %s7535_s20, 1 }
0x2a3c   : > { %s5074_s25 = sshll.u32 %s7416_s24, 4  ;;  %s5075_s25 = int_to_ptr.vmem [resolvable:$true] %s5074_s25 }
0x2a3d   : > { %s7286_s0 = scalar_lea.vmem %s5075_s25, 16  ;;  %s7292_s22 = scalar_lea.vmem %s5075_s25, 32 }
0x2a3e   : > { %p7287_p4 = scmp.ne.s32.totalorder %s5075_s25, %s7286_s0  ;;  %p7293_p9 = scmp.lt.s32.totalorder %s5075_s25, %s5075_s25 }
0x2a3f   : > { %p7294_p12 = scmp.lt.s32.totalorder %s7292_s22, %s7286_s0 }
0x2a40   : > { %p7288_p5 = pnand %p7287_p4, %p12141_p2 }
0x2a41   : > { %p7295_p13 = por %p7294_p12, %p7293_p9 }
0x2a42   : > { %p7289_p8 = pneg %p7288_p5 }
0x2a44   : > { %p7296_p3 = pnand %p7295_p13, %p7289_p8 }
0x2a46   : > { %7299 = shalt.err (!%p7296_p3)
}
0x2a47   : > { %s12142_s16 = sld [smem:[#allocation114_spill]]  ;;  %p12143_p6 = pmov %p12141_p2 }
0x2a4d   : > { %s7300_s29 = scalar_lea.hbm %s12142_s16, 16 }
0x2a4e   : > { %p7301_p7 = scmp.ne.s32.totalorder %s12142_s16, %s7300_s29  ;;  %p7306_p1 = scmp.lt.u32.totalorder %s7300_s29, %s12142_s16 }
0x2a50   : > { %p7302_p10 = pnand %p7301_p7, %p12143_p6 }
0x2a52   : > { %p7303_p0 = pneg %p7302_p10 }
0x2a54   : > { %p7308_p4 = pnand %p7306_p1, %p7303_p0 }
0x2a56   : > { %7311 = shalt.err (!%p7308_p4)
}
0x2a57   : > { %6308 = dma.vmem_to_hbm [thread:$0]  (%p12141_p2), %s5075_s25, 16, %s12142_s16, [#allocation15]  }
0x2a58   : > { %s5043_s19 = sshll.u32 %s7697_s23, 4  ;;  %s12144_s1 = sld [smem:[#allocation112_spill]]  ;;  %s11230_s19 = int_to_ptr.vmem [resolvable:$true] %s5043_s19 }
0x2a59   : > { %s11237_s11 = scalar_lea.sflag [#allocation7], %s537_s28  ;;  %s7312_s24 = scalar_lea.vmem %s11230_s19, 256 }
0x2a5a   : > { %p7313_p5 = scmp.ne.s32.totalorder %s11230_s19, %s7312_s24  ;;  %s7417_s0 = smov [#allocation13]  }
0x2a5b   : > { %s7316_s22 = sshll.u32 %s7417_s0, 4  ;;  %s7317_s22 = int_to_ptr.vmem [resolvable:$false] %s7316_s22 }
0x2a5c   : > { %p7314_p8 = pnand %p7313_p5, %p12140_p11  ;;  %p7319_p12 = scmp.lt.s32.totalorder %s11230_s19, %s7317_s22 }
0x2a5e   : > { %s12145_s27 = smov %s12144_s1  ;;  %s11228_s25 = scalar_lea.hbm %s12144_s1, %s5406_s21 }
0x2a5f   : > { %p7315_p9 = pneg %p7314_p8  ;;  %s7318_s21 = scalar_lea.vmem %s7317_s22, 512 }
0x2a60   : > { %p7320_p13 = scmp.lt.s32.totalorder %s7318_s21, %s7312_s24 }
0x2a62   : > { %p7321_p3 = por %p7320_p13, %p7319_p12 }
0x2a64   : > { %p7322_p7 = pnand %p7321_p3, %p7315_p9 }
0x2aab   : > { %v4992_v34 = vpop.xlane.xlu1 %4991 }
0x2aac   : > { %6744 = vlog2.f32 %v4992_v34 }
0x2ab6   : > { %v6745_v51 = vpop.eup %6744 }
0x2ab7   : > { %v4994_v36 = vmul.f32 0.6931472, %v6745_v51 }
0x2ab9   : > { %v4995_v46 = vsub.f32 %v11132_v30, %v4994_v36  ;;  %v4996_v50 = vsub.f32 %v11134_v43, %v4994_v36 }
0x2abb   : > { %v4999_v44 = vcombine.low %v4995_v46, %v4996_v50 }
0x2abd   : > { %v5006_v42 = vrot.slane %v4999_v44, %v11711_v57 }
0x2abf   : > { %v5013_v39 = vrot.slane %v5006_v42, %v11711_v57 }
0x2ac1   : > { %5392 = vst.msk [vmem:[%s7697_s23 + $0xe] sm:$0x3] %vm8051_vm1, %v5013_v39 }
0x2ac2   : > { %7325 = shalt.err (!%p7322_p7)
}
0x2ac3   : > { %s7326_s28 = scalar_lea.hbm %s11228_s25, 256  ;;  %s7330_s29 = scalar_lea.hbm %s12145_s27, 512 }
0x2ac4   : > { %p7327_p6 = scmp.ne.s32.totalorder %s11228_s25, %s7326_s28  ;;  %p7331_p1 = scmp.lt.u32.totalorder %s11228_s25, %s12145_s27 }
0x2ac5   : > { %p7332_p4 = scmp.lt.u32.totalorder %s7330_s29, %s7326_s28  ;;  %p7334_p5 = scmp.lt.u32.totalorder %s7326_s28, %s11228_s25 }
0x2ac6   : > { %p7328_p10 = pnand %p7327_p6, %p12140_p11 }
0x2ac7   : > { %p7333_p2 = por %p7332_p4, %p7331_p1 }
0x2ac8   : > { %p7329_p0 = pneg %p7328_p10 }
0x2ac9   : > { %p7335_p8 = por %p7334_p5, %p7333_p2 }
0x2acb   : > { %p7336_p9 = pnand %p7335_p8, %p7329_p0 }
0x2acd   : > { %7339 = shalt.err (!%p7336_p9)
}
0x2ace   : > { %6305 = dma.vmem_to_hbm [thread:$0]  (%p12140_p11), %s11230_s19, 256, %s11228_s25, %s11237_s11, %s7414_s9, %s7414_s9, %s7415_s17  }
0x2acf   : > { %p12146_p12 = scmp.eq.s32.totalorder %s7535_s20, 1 }
0x2ad1   : > { %7371 = dma.done.wait (%p12146_p12), [#allocation15], 16   ;;  %p12147_p13 = pmov %p12146_p12 }
0x2ad3   : > { %7373 = vsyncadd (%p12147_p13), [#allocation15], 4294967280 }
0x2ad4 PF: > { %s12148_s24 = sld [smem:[#allocation26_spill]]  ;;  %s12149_s22 = sld [smem:[#allocation24_spill]] }
0x2ad5   : > { %s12150_s21 = sld [smem:[#allocation29_spill]] }
0x2ada   : > { %p6343_p3 = scmp.ge.s32.totalorder %s12148_s24, 2  ;;  %s5090_s28 = sand.u32 1, %s12149_s22  }
0x2adb   : > { %p12151_p7 = scmp.ne.s32.totalorder %s12150_s21, 0  ;;  %s5091_s26 = scalar_lea.sflag [#allocation7], %s5090_s28 }
0x2add   : > { %p6327_p6 = pnand %p6343_p3, %p12151_p7 }
0x2adf   : > { %7375 = dma.done.wait (!%p6327_p6), %s5091_s26, 256  }
0x2ae0   : > { %7377 = vsyncadd (!%p6327_p6), %s5091_s26, 4294967040  ;;  %s12152_s23 = sadd.s32 4294967294, %s12148_s24  }
0x2ae1   : > { %s5099_s30 = sand.u32 1, %s12152_s23  }
0x2ae2   : > { %s5100_s9 = scalar_lea.sflag [#allocation15], %s5099_s30 }
0x2ae3   : > { %7379 = dma.done.wait (!%p6327_p6), %s5100_s9, 256  }
0x2ae4   : > { %7381 = vsyncadd (!%p6327_p6), %s5100_s9, 4294967040  ;;  %s12153_s1 = sld [smem:[#allocation27_spill]]  ;;  %s12154_s20 = sld [smem:[#allocation25_spill]] }
0x2ae5   : > { %s12155_s19 = sld [smem:[#allocation28_spill]]  ;;  %s12156_s11 = smov %s7388_s18 }
0x2aea   : > { %p41_p11 = scmp.ge.s32.totalorder %s12153_s1, 4   ;;  %s12157_s18 = smov %s12154_s20 }
0x2aec   :  { %43 = sbr.rel (!%p41_p11) target bundleno = 32 (0x20), region = 172 }
0x2af3   :  { %5105 = vsyncpa [#allocation6], 1 }
0x2af4   :  { %5107 = vsyncpa [#allocation6 + $0x1], 1 }
0x2af5   :  { %5108 = vsyncpa [#allocation9], 1 }
0x2af6   :  { %5109 = vsyncpa [#allocation12], 1 }
0x2af7   :  { %5110 = vsyncpa [#allocation7], 1 }
0x2af8   :  { %5112 = vsyncpa [#allocation7 + $0x1], 1 }
0x2af9   :  { %5113 = vsyncpa [#allocation15], 1 }
0x2afa   :  { %5115 = vsyncpa [#allocation15 + $0x1], 1 }

</bundles_post_ra>
